<compile_context>
chip_gen: v5e
topology: v5e:2x2
jax: 0.10.0
libtpu: 0.0.40
codegen_flags: <defaults>
</compile_context>

<pallas_src>
import jax
import jax.numpy as jnp
from jax.experimental import pallas as pl
from jax.experimental.pallas import tpu as pltpu

VMEM_SPEC = pl.BlockSpec(memory_space=pltpu.MemorySpace.VMEM)


# ---------------------------------------------------------------- kernels ----

def _matmul_bias_relu_kernel(x_ref, w_ref, b_ref, o_ref):
    # o = relu(x @ w + b); used for conv1 (im2col patches @ packed weight).
    acc = jnp.dot(x_ref[...], w_ref[...], preferred_element_type=jnp.float32)
    o_ref[...] = jnp.maximum(acc + b_ref[...], 0.0)


def _conv2_relu_pool_kernel(p_ref, w_ref, b_ref, o_ref):
    # Fused conv2 (im2col matmul) + bias + ReLU + 2x2 max-pool.
    # p_ref stacks the four pool-window patch matrices along rows:
    # rows [a*M:(a+1)*M] belong to pool offset a in {(0,0),(0,1),(1,0),(1,1)},
    # each with M = N*12*12 pooled positions.  One matmul covers all four;
    # the pool is an elementwise max of the four row blocks (ReLU commutes
    # with max, applied once at the end).
    m = o_ref.shape[0]
    y = jnp.dot(p_ref[...], w_ref[...], preferred_element_type=jnp.float32)
    y = y + b_ref[...]
    pooled = jnp.maximum(jnp.maximum(y[0:m], y[m:2 * m]),
                         jnp.maximum(y[2 * m:3 * m], y[3 * m:4 * m]))
    o_ref[...] = jnp.maximum(pooled, 0.0)


def _fc_fused_kernel(x_ref, w1_ref, b1_ref, w2_ref, b2_ref, o_ref, acc_ref):
    # Fused fc1 + ReLU + fc2 + log_softmax.  Grid axis = K blocks of fc1's
    # 9216-wide contraction; bf16 weight blocks stream through VMEM while the
    # (2,128) fc1 activation stays in the f32 scratch accumulator.
    k = pl.program_id(0)

    @pl.when(k == 0)
    def _init():
        acc_ref[...] = jnp.zeros_like(acc_ref)

    acc_ref[...] += jnp.dot(x_ref[...].astype(jnp.bfloat16), w1_ref[...],
                            preferred_element_type=jnp.float32)

    @pl.when(k == pl.num_programs(0) - 1)
    def _finalize():
        h = jnp.maximum(acc_ref[...] + b1_ref[...], 0.0)            # fc1 + ReLU
        logits = jnp.dot(h, w2_ref[...],
                         preferred_element_type=jnp.float32) + b2_ref[...]
        mx = jnp.max(logits, axis=-1, keepdims=True)
        shifted = logits - mx
        lse = jnp.log(jnp.sum(jnp.exp(shifted), axis=-1, keepdims=True))
        o_ref[...] = shifted - lse                                  # log_softmax


# --------------------------------------------------------------- wrappers ----

def conv1_relu(patches, w, b):
    M = patches.shape[0]
    N = w.shape[1]
    return pl.pallas_call(
        _matmul_bias_relu_kernel,
        out_shape=jax.ShapeDtypeStruct((M, N), jnp.float32),
        in_specs=[VMEM_SPEC] * 3,
        out_specs=VMEM_SPEC,
    )(patches, w, b)


def conv2_relu_pool(patches4, w, b):
    M4 = patches4.shape[0]
    M = M4 // 4
    N = w.shape[1]
    return pl.pallas_call(
        _conv2_relu_pool_kernel,
        out_shape=jax.ShapeDtypeStruct((M, N), jnp.float32),
        in_specs=[VMEM_SPEC] * 3,
        out_specs=VMEM_SPEC,
    )(patches4, w, b)


def fc_fused(x, w1, b1, w2, b2, *, tk=2304):
    M, K = x.shape          # (2, 9216)
    H = w1.shape[1]         # 128
    C = w2.shape[1]         # 10
    assert K % tk == 0
    nk = K // tk
    return pl.pallas_call(
        _fc_fused_kernel,
        out_shape=jax.ShapeDtypeStruct((M, C), jnp.float32),
        grid_spec=pltpu.PrefetchScalarGridSpec(
            num_scalar_prefetch=0,
            grid=(nk,),
            in_specs=[
                pl.BlockSpec((M, tk), lambda k: (0, k)),   # fc1 input K-block
                pl.BlockSpec((tk, H), lambda k: (k, 0)),   # fc1 bf16 weight block
                pl.BlockSpec((1, H), lambda k: (0, 0)),    # fc1 bias
                pl.BlockSpec((H, C), lambda k: (0, 0)),    # fc2 weight
                pl.BlockSpec((1, C), lambda k: (0, 0)),    # fc2 bias
            ],
            out_specs=pl.BlockSpec((M, C), lambda k: (0, 0)),
            scratch_shapes=[pltpu.VMEM((M, H), jnp.float32)],
        ),
        compiler_params=pltpu.CompilerParams(
            dimension_semantics=("arbitrary",)),
    )(x, w1, b1, w2, b2)


# ---------------------------------------------------------- im2col (glue) ----

def _im2col_3x3(x_nhwc):
    # 3x3 stride-1 valid patches; feature order (di, dj, ci).
    N, H, W, C = x_nhwc.shape
    Ho, Wo = H - 2, W - 2
    taps = [x_nhwc[:, i:i + Ho, j:j + Wo, :] for i in range(3) for j in range(3)]
    return jnp.concatenate(taps, axis=-1).reshape(N * Ho * Wo, 9 * C)


def _im2col_3x3_pooled(h):
    # Conv2 patches grouped by 2x2 pool-window offset.  Returns
    # (4*N*12*12, 9*C): rows [a*M:(a+1)*M] are the patches of conv2 output
    # pixels (2p+ai, 2q+aj) for offset a=(ai,aj), row-major in (n, p, q).
    # Feature order (di, dj, ci), matching the packed conv2 weight.
    N, H, W, C = h.shape
    Ho, Wo = H - 2, W - 2            # 24, 24
    Po, Qo = Ho // 2, Wo // 2        # 12, 12
    groups = []
    for ai in range(2):
        for aj in range(2):
            taps = [h[:, ai + di:ai + di + Ho:2, aj + dj:aj + dj + Wo:2, :]
                    for di in range(3) for dj in range(3)]
            groups.append(
                jnp.concatenate(taps, axis=-1).reshape(N * Po * Qo, 9 * C))
    return jnp.concatenate(groups, axis=0)


# -------------------------------------------------------------- parameters ---

def init_torch_params(key):
    # Deterministic synthetic parameters with the exact shapes of Net.__init__.
    ks = jax.random.split(key, 8)
    s = 0.05
    return {
        "conv1_w": s * jax.random.normal(ks[0], (32, 1, 3, 3), jnp.float32),
        "conv1_b": s * jax.random.normal(ks[1], (32,), jnp.float32),
        "conv2_w": s * jax.random.normal(ks[2], (64, 32, 3, 3), jnp.float32),
        "conv2_b": s * jax.random.normal(ks[3], (64,), jnp.float32),
        "fc1_w":   s * jax.random.normal(ks[4], (128, 9216), jnp.float32),
        "fc1_b":   s * jax.random.normal(ks[5], (128,), jnp.float32),
        "fc2_w":   s * jax.random.normal(ks[6], (10, 128), jnp.float32),
        "fc2_b":   s * jax.random.normal(ks[7], (10,), jnp.float32),
    }


def pack_params(tp):
    # One-time repack of PyTorch-layout weights into kernel layouts.
    # fc1: torch flatten order is (c, p, q); our pooled activation is (p, q, c),
    # so permute fc1_w's input features accordingly and transpose to (9216,128).
    fc1_wp = jnp.transpose(tp["fc1_w"].reshape(128, 64, 12, 12),   # (out,c,p,q)
                           (2, 3, 1, 0)).reshape(9216, 128)        # (p,q,c)->rows
    return {
        "w1": jnp.transpose(tp["conv1_w"], (2, 3, 1, 0)).reshape(9, 32),
        "b1": tp["conv1_b"].reshape(1, 32),
        "w2": jnp.transpose(tp["conv2_w"], (2, 3, 1, 0)).reshape(288, 64),
        "b2": tp["conv2_b"].reshape(1, 64),
        "fc1_w": fc1_wp.astype(jnp.bfloat16),      # bf16 halves the weight stream
        "fc1_b": tp["fc1_b"].reshape(1, 128),
        "fc2_w": tp["fc2_w"].T,                    # (128, 10)
        "fc2_b": tp["fc2_b"].reshape(1, 10),
    }


# ------------------------------------------------------------------ model ----

def net_forward(packed, x_nchw):
    # x_nchw: (N, 1, 28, 28) float32 (fc1's 9216 = 64*12*12 forces 28x28 input).
    N = x_nchw.shape[0]
    xh = x_nchw.reshape(N, 28, 28, 1)                 # C=1: NCHW->NHWC is a reshape
    p1 = _im2col_3x3(xh)                              # (N*676, 9)
    h1 = conv1_relu(p1, packed["w1"], packed["b1"])   # (N*676, 32)
    h1 = h1.reshape(N, 26, 26, 32)                    # row-major collapse/expand
    p2 = _im2col_3x3_pooled(h1)                       # (4*N*144, 288)
    pooled = conv2_relu_pool(p2, packed["w2"], packed["b2"])   # (N*144, 64)
    # dropout1 / dropout2: identity (eval-mode semantics).
    xf = pooled.reshape(N, 9216)                      # features (p,q,c); fc1_w rows
                                                      # were permuted at init to match
    return fc_fused(xf, packed["fc1_w"], packed["fc1_b"],
                    packed["fc2_w"], packed["fc2_b"])  # (N, 10) log-probs


if __name__ == "__main__":
    key = jax.random.PRNGKey(0)
    pkey, xkey = jax.random.split(key)
    params = pack_params(init_torch_params(pkey))
    x = jax.random.normal(xkey, (2, 1, 28, 28), jnp.float32)

    out = jax.jit(net_forward)(params, x)
    out = jax.block_until_ready(out)

    assert out.shape == (2, 10), out.shape
    assert bool(jnp.all(jnp.isfinite(out)))
    # log_softmax rows must exponentiate-sum to 1
    assert bool(jnp.allclose(jnp.sum(jnp.exp(out), axis=1), 1.0, atol=1e-4))
    print("KERNEL_OK")
</pallas_src>

<mosaic_0001>
module attributes {stable_mosaic.version = 11 : i64} {
  func.func @_matmul_bias_relu_kernel(%arg0: memref<1352x9xf32, #tpu.memory_space<vmem>>, %arg1: memref<9x32xf32, #tpu.memory_space<vmem>>, %arg2: memref<1x32xf32, #tpu.memory_space<vmem>>, %arg3: memref<1352x32xf32, #tpu.memory_space<vmem>>) attributes {dimension_semantics = [], scalar_prefetch = 0 : i64, scratch_operands = 0 : i64, tpu.core_type = #tpu.core_type<tc>} {
    %c0 = arith.constant 0 : index
    %c0_0 = arith.constant 0 : index
    %0 = vector.load %arg0[%c0, %c0_0] : memref<1352x9xf32, #tpu.memory_space<vmem>>, vector<1352x9xf32>
    %c0_1 = arith.constant 0 : index
    %c0_2 = arith.constant 0 : index
    %1 = vector.load %arg1[%c0_1, %c0_2] : memref<9x32xf32, #tpu.memory_space<vmem>>, vector<9x32xf32>
    %cst = arith.constant dense<0.000000e+00> : vector<1352x32xf32>
    %2 = tpu.matmul %0, %1, %cst {dimension_numbers = #tpu.dot_dimension_numbers<[1], [0], [0], [1], [0, 0, 1, 1], [], []>} : vector<1352x9xf32>, vector<9x32xf32>, vector<1352x32xf32> -> vector<1352x32xf32>
    %c0_3 = arith.constant 0 : index
    %c0_4 = arith.constant 0 : index
    %3 = vector.load %arg2[%c0_3, %c0_4] : memref<1x32xf32, #tpu.memory_space<vmem>>, vector<1x32xf32>
    %4 = vector.broadcast %3 : vector<1x32xf32> to vector<1352x32xf32>
    %5 = arith.addf %2, %4 : vector<1352x32xf32>
    %cst_5 = arith.constant 0.000000e+00 : f32
    %6 = vector.broadcast %cst_5 : f32 to vector<1352x32xf32>
    %7 = arith.maximumf %5, %6 : vector<1352x32xf32>
    %c0_6 = arith.constant 0 : index
    %c0_7 = arith.constant 0 : index
    %8 = vector.load %arg3[%c0_6, %c0_7] : memref<1352x32xf32, #tpu.memory_space<vmem>>, vector<1352x32xf32>
    tpu.vector_store %arg3[%c0_6, %c0_7], %7 {strides = array<i32>} : memref<1352x32xf32, #tpu.memory_space<vmem>>, vector<1352x32xf32>,
    return
  }
}

module attributes {stable_mosaic.version = 11 : i64} {
  func.func @_conv2_relu_pool_kernel(%arg0: memref<1152x288xf32, #tpu.memory_space<vmem>>, %arg1: memref<288x64xf32, #tpu.memory_space<vmem>>, %arg2: memref<1x64xf32, #tpu.memory_space<vmem>>, %arg3: memref<288x64xf32, #tpu.memory_space<vmem>>) attributes {dimension_semantics = [], scalar_prefetch = 0 : i64, scratch_operands = 0 : i64, tpu.core_type = #tpu.core_type<tc>} {
    %c0 = arith.constant 0 : index
    %c0_0 = arith.constant 0 : index
    %0 = vector.load %arg0[%c0, %c0_0] : memref<1152x288xf32, #tpu.memory_space<vmem>>, vector<1152x288xf32>
    %c0_1 = arith.constant 0 : index
    %c0_2 = arith.constant 0 : index
    %1 = vector.load %arg1[%c0_1, %c0_2] : memref<288x64xf32, #tpu.memory_space<vmem>>, vector<288x64xf32>
    %cst = arith.constant dense<0.000000e+00> : vector<1152x64xf32>
    %2 = tpu.matmul %0, %1, %cst {dimension_numbers = #tpu.dot_dimension_numbers<[1], [0], [0], [1], [0, 0, 1, 1], [], []>} : vector<1152x288xf32>, vector<288x64xf32>, vector<1152x64xf32> -> vector<1152x64xf32>
    %c0_3 = arith.constant 0 : index
    %c0_4 = arith.constant 0 : index
    %3 = vector.load %arg2[%c0_3, %c0_4] : memref<1x64xf32, #tpu.memory_space<vmem>>, vector<1x64xf32>
    %4 = vector.broadcast %3 : vector<1x64xf32> to vector<1152x64xf32>
    %5 = arith.addf %2, %4 : vector<1152x64xf32>
    %6 = vector.extract_strided_slice %5 {offsets = [0, 0], sizes = [288, 64], strides = [1, 1]} : vector<1152x64xf32> to vector<288x64xf32>
    %7 = vector.extract_strided_slice %5 {offsets = [288, 0], sizes = [288, 64], strides = [1, 1]} : vector<1152x64xf32> to vector<288x64xf32>
    %8 = arith.maximumf %6, %7 : vector<288x64xf32>
    %9 = vector.extract_strided_slice %5 {offsets = [576, 0], sizes = [288, 64], strides = [1, 1]} : vector<1152x64xf32> to vector<288x64xf32>
    %10 = vector.extract_strided_slice %5 {offsets = [864, 0], sizes = [288, 64], strides = [1, 1]} : vector<1152x64xf32> to vector<288x64xf32>
    %11 = arith.maximumf %9, %10 : vector<288x64xf32>
    %12 = arith.maximumf %8, %11 : vector<288x64xf32>
    %cst_5 = arith.constant 0.000000e+00 : f32
    %13 = vector.broadcast %cst_5 : f32 to vector<288x64xf32>
    %14 = arith.maximumf %12, %13 : vector<288x64xf32>
    %c0_6 = arith.constant 0 : index
    %c0_7 = arith.constant 0 : index
    %15 = vector.load %arg3[%c0_6, %c0_7] : memref<288x64xf32, #tpu.memory_space<vmem>>, vector<288x64xf32>
    tpu.vector_store %arg3[%c0_6, %c0_7], %14 {strides = array<i32>} : memref<288x64xf32, #tpu.memory_space<vmem>>, vector<288x64xf32>,
    return
  }
}

module attributes {stable_mosaic.version = 11 : i64} {
  func.func @_fc_fused_kernel(%arg0: i32, %arg1: memref<2x2304xf32, #tpu.memory_space<vmem>>, %arg2: memref<2304x128xbf16, #tpu.memory_space<vmem>>, %arg3: memref<1x128xf32, #tpu.memory_space<vmem>>, %arg4: memref<128x10xf32, #tpu.memory_space<vmem>>, %arg5: memref<1x10xf32, #tpu.memory_space<vmem>>, %arg6: memref<2x10xf32, #tpu.memory_space<vmem>>, %arg7: memref<2x128xf32, #tpu.memory_space<vmem>>) attributes {dimension_semantics = [#tpu.dimension_semantics<arbitrary>], iteration_bounds = array<i64: 4>, scalar_prefetch = 0 : i64, scratch_operands = 1 : i64, tpu.core_type = #tpu.core_type<tc>, window_params = [{transform_indices = @transform_0, window_bounds = array<i64: 2, 2304>}, {transform_indices = @transform_1, window_bounds = array<i64: 2304, 128>}, {pipeline_mode = #tpu.pipeline_mode<synchronous>, transform_indices = @transform_2, window_bounds = array<i64: 1, 128>}, {pipeline_mode = #tpu.pipeline_mode<synchronous>, transform_indices = @transform_3, window_bounds = array<i64: 128, 10>}, {pipeline_mode = #tpu.pipeline_mode<synchronous>, transform_indices = @transform_4, window_bounds = array<i64: 1, 10>}, {pipeline_mode = #tpu.pipeline_mode<synchronous>, transform_indices = @transform_5, window_bounds = array<i64: 2, 10>}]} {
    %c0_i32 = arith.constant 0 : i32
    %0 = arith.cmpi eq, %arg0, %c0_i32 : i32
    %1 = arith.extui %0 : i1 to i32
    %c0_i32_0 = arith.constant 0 : i32
    %2 = arith.cmpi ne, %1, %c0_i32_0 : i32
    scf.if %2 {
      %cst_9 = arith.constant 0.000000e+00 : f32
      %13 = vector.broadcast %cst_9 : f32 to vector<2x128xf32>
      %c0_10 = arith.constant 0 : index
      %c0_11 = arith.constant 0 : index
      %14 = vector.load %arg7[%c0_10, %c0_11] : memref<2x128xf32, #tpu.memory_space<vmem>>, vector<2x128xf32>
      tpu.vector_store %arg7[%c0_10, %c0_11], %13 {strides = array<i32>} : memref<2x128xf32, #tpu.memory_space<vmem>>, vector<2x128xf32>,
    } else {
    }
    %c0 = arith.constant 0 : index
    %c0_1 = arith.constant 0 : index
    %3 = vector.load %arg7[%c0, %c0_1] : memref<2x128xf32, #tpu.memory_space<vmem>>, vector<2x128xf32>
    %c0_2 = arith.constant 0 : index
    %c0_3 = arith.constant 0 : index
    %4 = vector.load %arg1[%c0_2, %c0_3] : memref<2x2304xf32, #tpu.memory_space<vmem>>, vector<2x2304xf32>
    %5 = arith.truncf %4 : vector<2x2304xf32> to vector<2x2304xbf16>
    %c0_4 = arith.constant 0 : index
    %c0_5 = arith.constant 0 : index
    %6 = vector.load %arg2[%c0_4, %c0_5] : memref<2304x128xbf16, #tpu.memory_space<vmem>>, vector<2304x128xbf16>
    %cst = arith.constant dense<0.000000e+00> : vector<2x128xf32>
    %7 = tpu.matmul %5, %6, %cst {dimension_numbers = #tpu.dot_dimension_numbers<[1], [0], [0], [1], [0, 0, 1, 1], [], []>} : vector<2x2304xbf16>, vector<2304x128xbf16>, vector<2x128xf32> -> vector<2x128xf32>
    %8 = arith.addf %3, %7 : vector<2x128xf32>
    %c0_6 = arith.constant 0 : index
    %c0_7 = arith.constant 0 : index
    %9 = vector.load %arg7[%c0_6, %c0_7] : memref<2x128xf32, #tpu.memory_space<vmem>>, vector<2x128xf32>
    tpu.vector_store %arg7[%c0_6, %c0_7], %8 {strides = array<i32>} : memref<2x128xf32, #tpu.memory_space<vmem>>, vector<2x128xf32>,
    %c3_i32 = arith.constant 3 : i32
    %10 = arith.cmpi eq, %arg0, %c3_i32 : i32
    %11 = arith.extui %10 : i1 to i32
    %c0_i32_8 = arith.constant 0 : i32
    %12 = arith.cmpi ne, %11, %c0_i32_8 : i32
    scf.if %12 {
      %c0_9 = arith.constant 0 : index
      %c0_10 = arith.constant 0 : index
      %13 = vector.load %arg7[%c0_9, %c0_10] : memref<2x128xf32, #tpu.memory_space<vmem>>, vector<2x128xf32>
      %c0_11 = arith.constant 0 : index
      %c0_12 = arith.constant 0 : index
      %14 = vector.load %arg3[%c0_11, %c0_12] : memref<1x128xf32, #tpu.memory_space<vmem>>, vector<1x128xf32>
      %15 = vector.broadcast %14 : vector<1x128xf32> to vector<2x128xf32>
      %16 = arith.addf %13, %15 : vector<2x128xf32>
      %cst_13 = arith.constant 0.000000e+00 : f32
      %17 = vector.broadcast %cst_13 : f32 to vector<2x128xf32>
      %18 = arith.maximumf %16, %17 : vector<2x128xf32>
      %c0_14 = arith.constant 0 : index
      %c0_15 = arith.constant 0 : index
      %19 = vector.load %arg4[%c0_14, %c0_15] : memref<128x10xf32, #tpu.memory_space<vmem>>, vector<128x10xf32>
      %cst_16 = arith.constant dense<0.000000e+00> : vector<2x10xf32>
      %20 = tpu.matmul %18, %19, %cst_16 {dimension_numbers = #tpu.dot_dimension_numbers<[1], [0], [0], [1], [0, 0, 1, 1], [], []>} : vector<2x128xf32>, vector<128x10xf32>, vector<2x10xf32> -> vector<2x10xf32>
      %c0_17 = arith.constant 0 : index
      %c0_18 = arith.constant 0 : index
      %21 = vector.load %arg5[%c0_17, %c0_18] : memref<1x10xf32, #tpu.memory_space<vmem>>, vector<1x10xf32>
      %22 = vector.broadcast %21 : vector<1x10xf32> to vector<2x10xf32>
      %23 = arith.addf %20, %22 : vector<2x10xf32>
      %cst_19 = arith.constant dense<0xFF800000> : vector<2xf32>
      %24 = vector.multi_reduction <maximumf>, %23, %cst_19 [1] : vector<2x10xf32> to vector<2xf32>
      %25 = vector.shape_cast %24 : vector<2xf32> to vector<2x1xf32>
      %26 = vector.broadcast %25 : vector<2x1xf32> to vector<2x10xf32>
      %27 = arith.subf %23, %26 : vector<2x10xf32>
      %28 = math.exp %27 : vector<2x10xf32>
      %cst_20 = arith.constant dense<0.000000e+00> : vector<2xf32>
      %29 = vector.multi_reduction <add>, %28, %cst_20 [1] : vector<2x10xf32> to vector<2xf32>
      %30 = vector.shape_cast %29 : vector<2xf32> to vector<2x1xf32>
      %31 = math.log %30 : vector<2x1xf32>
      %32 = vector.broadcast %31 : vector<2x1xf32> to vector<2x10xf32>
      %33 = arith.subf %27, %32 : vector<2x10xf32>
      %c0_21 = arith.constant 0 : index
      %c0_22 = arith.constant 0 : index
      %34 = vector.load %arg6[%c0_21, %c0_22] : memref<2x10xf32, #tpu.memory_space<vmem>>, vector<2x10xf32>
      tpu.vector_store %arg6[%c0_21, %c0_22], %33 {strides = array<i32>} : memref<2x10xf32, #tpu.memory_space<vmem>>, vector<2x10xf32>,
    } else {
    }
    return
  }
  func.func @transform_0(%arg0: i32) -> (i32, i32) {
    %c0_i32 = arith.constant 0 : i32
    %c0_i32_0 = arith.constant 0 : i32
    return %c0_i32, %arg0 : i32, i32
  }
  func.func @transform_1(%arg0: i32) -> (i32, i32) {
    %c0_i32 = arith.constant 0 : i32
    %c0_i32_0 = arith.constant 0 : i32
    return %arg0, %c0_i32 : i32, i32
  }
  func.func @transform_2(%arg0: i32) -> (i32, i32) {
    %c0_i32 = arith.constant 0 : i32
    %c0_i32_0 = arith.constant 0 : i32
    %c0_i32_1 = arith.constant 0 : i32
    return %c0_i32, %c0_i32_0 : i32, i32
  }
  func.func @transform_3(%arg0: i32) -> (i32, i32) {
    %c0_i32 = arith.constant 0 : i32
    %c0_i32_0 = arith.constant 0 : i32
    %c0_i32_1 = arith.constant 0 : i32
    return %c0_i32, %c0_i32_0 : i32, i32
  }
  func.func @transform_4(%arg0: i32) -> (i32, i32) {
    %c0_i32 = arith.constant 0 : i32
    %c0_i32_0 = arith.constant 0 : i32
    %c0_i32_1 = arith.constant 0 : i32
    return %c0_i32, %c0_i32_0 : i32, i32
  }
  func.func @transform_5(%arg0: i32) -> (i32, i32) {
    %c0_i32 = arith.constant 0 : i32
    %c0_i32_0 = arith.constant 0 : i32
    %c0_i32_1 = arith.constant 0 : i32
    return %c0_i32, %c0_i32_0 : i32, i32
  }
}

</mosaic_0001>

<bundles_post_ra>
// kernel: net_forward.3
= control target key start
LH: loop header
LB: loop body
LE: loop exit
PB: predicated region body
PF: predicated region fallthrough
CT: control target
= control target key end

     0   :  { %8 = vsyncpa [#allocation3], 0  ;;  %s3389_s0 = inlined_call_operand.vmem [shape: f32[1352,9], index: 0, kind: input, shape index: {}]   ;;  %s3390_s1 = inlined_call_operand.hbm [shape: f32[9,32], index: 1, kind: input, shape index: {}]   ;;  %s3391_s2 = inlined_call_operand.hbm [shape: f32[1,32], index: 2, kind: input, shape index: {}]   ;;  %s3392_s3 = inlined_call_operand.vmem [shape: f32[1352,32], index: 3, kind: output, shape index: {}]  }
   0x1   :  { %s16_s14 = sshll.u32 %s3390_s1, 4  ;;  %s17_s14 = int_to_ptr.hbm [resolvable:$true] %s16_s14 }
   0x2   :  { %9 = vsyncpa [#allocation5], 0  ;;  %s1834_s15 = smov [#allocation2]   ;;  %s30_s19 = sshll.u32 %s3391_s2, 4  ;;  %s31_s19 = int_to_ptr.hbm [resolvable:$true] %s30_s19 }
   0x3   :  { %s18_s16 = sshll.u32 %s1834_s15, 4  ;;  %s1835_s20 = smov 128   ;;  %s19_s16 = int_to_ptr.vmem [resolvable:$true] %s18_s16 }
   0x4   :  { %s1836_s21 = smov 8   ;;  %s1837_s22 = smov [#allocation4]  }
   0x5   :  { %24 = dma.hbm_to_vmem [thread:$0]  %s17_s14, 256, %s19_s16, [#allocation3], %s1835_s20, %s1835_s20, %s1836_s21  }
   0x6   :  { %s32_s23 = sshll.u32 %s1837_s22, 4  ;;  %s33_s23 = int_to_ptr.vmem [resolvable:$true] %s32_s23 }
   0x7   :  { %35 = dma.hbm_to_vmem [thread:$0]  %s31_s19, 16, %s33_s23, [#allocation5]  }
   0x8   :  { %1830 = dma.done.wait [#allocation3], 256  }
   0x9   :  { %1831 = vsyncadd [#allocation3], 4294967040 }
   0xa   :  { %1832 = dma.done.wait [#allocation5], 16  }
   0xb   :  { %1833 = vsyncadd [#allocation5], 4294967280  ;;  %vm727_vm0 = vcmask 1040384   ;;  %v214_v0 = vld [vmem:[#allocation2 + $0x8] sm:$0x1]  ;;  %v213_v1 = vld [vmem:[#allocation2] sm:$0xff] }
   0xc   :  { %1771 = vmatpush.msk.msra.mxu2 %vm727_vm0, %v214_v0  ;;  %v129_v2 = vld [vmem:[%s3389_s0 + $0x2a8] sm:$0xff]  ;;  %vm219_vm1 = vcmask 72704   ;;  %1770 = vmatpush.msk.msra.mxu1 %vm727_vm0, %v214_v0  ;;  %v86_v3 = vld [vmem:[%s3389_s0 + $0x150] sm:$0xff]  ;;  %v44_v4 = vld [vmem:[%s3389_s0] sm:$0xff]  ;;  %vm1424_vm2 = vcmask 261120  }
   0xd   :  { %1600 = vmatpush.msk.msra.mxu0 %vm727_vm0, %v214_v0  ;;  %1772 = vmatpush.msk.msra.mxu3 %vm727_vm0, %v214_v0  ;;  %v172_v5 = vld [vmem:[%s3389_s0 + $0x400] sm:$0xff]  ;;  %v130_v6 = vld [vmem:[%s3389_s0 + $0x2b0] sm:$0xff]  ;;  %v87_v7 = vld [vmem:[%s3389_s0 + $0x158] sm:$0xff] }
   0xe   :  { %1774 = vmatpush.msra.mxu2 %v213_v1  ;;  %1773 = vmatpush.msra.mxu1 %v213_v1  ;;  %v45_v8 = vld [vmem:[%s3389_s0 + $0x8] sm:$0xff]  ;;  %v131_v10 = vld [vmem:[%s3389_s0 + $0x2b8] sm:$0xff]  ;;  %v88_v11 = vld [vmem:[%s3389_s0 + $0x160] sm:$0xff] }
   0xf   :  { %1686 = vmatmul.msk.f32.vlgmr.msra.gmra.mxu2 %vm219_vm1, %v129_v2  ;;  %1643 = vmatmul.msk.f32.vlgmr.msra.gmra.mxu1 %vm219_vm1, %v86_v3  ;;  %v173_v9 = vld [vmem:[%s3389_s0 + $0x408] sm:$0xff]  ;;  %v46_v12 = vld [vmem:[%s3389_s0 + $0x10] sm:$0xff]  ;;  %v132_v14 = vld [vmem:[%s3389_s0 + $0x2c0] sm:$0xff] }
  0x10   :  { %746 = vmatpush.msra.mxu0 %v213_v1  ;;  %1775 = vmatpush.msra.mxu3 %v213_v1  ;;  %v174_v13 = vld [vmem:[%s3389_s0 + $0x410] sm:$0xff]  ;;  %v89_v15 = vld [vmem:[%s3389_s0 + $0x168] sm:$0xff]  ;;  %v47_v16 = vld [vmem:[%s3389_s0 + $0x18] sm:$0xff] }
  0x11   :  { %1601 = vmatmul.msk.f32.vlgmr.msra.gmra.mxu0 %vm219_vm1, %v44_v4  ;;  %1729 = vmatmul.msk.f32.vlgmr.msra.gmra.mxu3 %vm219_vm1, %v172_v5  ;;  %v175_v17 = vld [vmem:[%s3389_s0 + $0x418] sm:$0xff]  ;;  %v133_v18 = vld [vmem:[%s3389_s0 + $0x2c8] sm:$0xff]  ;;  %v90_v19 = vld [vmem:[%s3389_s0 + $0x170] sm:$0xff] }
  0x12   :  { %v48_v20 = vld [vmem:[%s3389_s0 + $0x20] sm:$0xff]  ;;  %v134_v22 = vld [vmem:[%s3389_s0 + $0x2d0] sm:$0xff]  ;;  %v91_v23 = vld [vmem:[%s3389_s0 + $0x178] sm:$0xff] }
  0x13   :  { %v176_v21 = vld [vmem:[%s3389_s0 + $0x420] sm:$0xff]  ;;  %v49_v24 = vld [vmem:[%s3389_s0 + $0x28] sm:$0xff]  ;;  %v135_v26 = vld [vmem:[%s3389_s0 + $0x2d8] sm:$0xff] }
  0x14   :  { %v177_v25 = vld [vmem:[%s3389_s0 + $0x428] sm:$0xff]  ;;  %v92_v27 = vld [vmem:[%s3389_s0 + $0x180] sm:$0xff]  ;;  %v50_v28 = vld [vmem:[%s3389_s0 + $0x30] sm:$0xff] }
  0x15   :  { %v178_v29 = vld [vmem:[%s3389_s0 + $0x430] sm:$0xff]  ;;  %v136_v30 = vld [vmem:[%s3389_s0 + $0x2e0] sm:$0xff]  ;;  %v93_v31 = vld [vmem:[%s3389_s0 + $0x188] sm:$0xff] }
  0x16   :  { %v51_v32 = vld [vmem:[%s3389_s0 + $0x38] sm:$0xff]  ;;  %v137_v34 = vld [vmem:[%s3389_s0 + $0x2e8] sm:$0xff]  ;;  %v94_v35 = vld [vmem:[%s3389_s0 + $0x190] sm:$0xff] }
  0x17   :  { %1687 = vmatmul.msk.f32.gmra.mxu2 %vm219_vm1, %v130_v6  ;;  %1644 = vmatmul.msk.f32.gmra.mxu1 %vm219_vm1, %v87_v7  ;;  %v179_v33 = vld [vmem:[%s3389_s0 + $0x438] sm:$0xff]  ;;  %v52_v36 = vld [vmem:[%s3389_s0 + $0x40] sm:$0xff]  ;;  %v138_v38 = vld [vmem:[%s3389_s0 + $0x2f0] sm:$0xff] }
  0x18   :  { %v180_v37 = vld [vmem:[%s3389_s0 + $0x440] sm:$0xff]  ;;  %v95_v39 = vld [vmem:[%s3389_s0 + $0x198] sm:$0xff]  ;;  %v53_v40 = vld [vmem:[%s3389_s0 + $0x48] sm:$0xff] }
  0x19   :  { %1602 = vmatmul.msk.f32.gmra.mxu0 %vm219_vm1, %v45_v8  ;;  %1730 = vmatmul.msk.f32.gmra.mxu3 %vm219_vm1, %v173_v9  ;;  %v181_v41 = vld [vmem:[%s3389_s0 + $0x448] sm:$0xff]  ;;  %v139_v42 = vld [vmem:[%s3389_s0 + $0x2f8] sm:$0xff]  ;;  %v96_v43 = vld [vmem:[%s3389_s0 + $0x1a0] sm:$0xff] }
  0x1a   :  { %v54_v44 = vld [vmem:[%s3389_s0 + $0x50] sm:$0xff]  ;;  %v140_v46 = vld [vmem:[%s3389_s0 + $0x300] sm:$0xff]  ;;  %v97_v47 = vld [vmem:[%s3389_s0 + $0x1a8] sm:$0xff] }
  0x1b   :  { %v182_v45 = vld [vmem:[%s3389_s0 + $0x450] sm:$0xff]  ;;  %v55_v48 = vld [vmem:[%s3389_s0 + $0x58] sm:$0xff]  ;;  %v141_v50 = vld [vmem:[%s3389_s0 + $0x308] sm:$0xff] }
  0x1c   :  { %v183_v49 = vld [vmem:[%s3389_s0 + $0x458] sm:$0xff]  ;;  %v98_v51 = vld [vmem:[%s3389_s0 + $0x1b0] sm:$0xff]  ;;  %v56_v52 = vld [vmem:[%s3389_s0 + $0x60] sm:$0xff] }
  0x1d   :  { %v184_v53 = vld [vmem:[%s3389_s0 + $0x460] sm:$0xff]  ;;  %v142_v54 = vld [vmem:[%s3389_s0 + $0x310] sm:$0xff]  ;;  %v99_v55 = vld [vmem:[%s3389_s0 + $0x1b8] sm:$0xff] }
  0x1e   :  { %v57_v56 = vld [vmem:[%s3389_s0 + $0x68] sm:$0xff]  ;;  %v143_v58 = vld [vmem:[%s3389_s0 + $0x318] sm:$0xff]  ;;  %v100_v59 = vld [vmem:[%s3389_s0 + $0x1c0] sm:$0xff] }
  0x1f   :  { %1688 = vmatmul.msk.f32.gmra.mxu2 %vm219_vm1, %v131_v10  ;;  %1645 = vmatmul.msk.f32.gmra.mxu1 %vm219_vm1, %v88_v11  ;;  %v185_v57 = vld [vmem:[%s3389_s0 + $0x468] sm:$0xff]  ;;  %v58_v60 = vld [vmem:[%s3389_s0 + $0x70] sm:$0xff]  ;;  %v144_v62 = vld [vmem:[%s3389_s0 + $0x320] sm:$0xff] }
  0x20   :  { %v186_v61 = vld [vmem:[%s3389_s0 + $0x470] sm:$0xff]  ;;  %v101_v63 = vld [vmem:[%s3389_s0 + $0x1c8] sm:$0xff]  ;;  %v59_v0 = vld [vmem:[%s3389_s0 + $0x78] sm:$0xff] }
  0x21   :  { %1603 = vmatmul.msk.f32.gmra.mxu0 %vm219_vm1, %v46_v12  ;;  %1731 = vmatmul.msk.f32.gmra.mxu3 %vm219_vm1, %v174_v13  ;;  %v187_v1 = vld [vmem:[%s3389_s0 + $0x478] sm:$0xff]  ;;  %v2118_v2 = vld [vmem:[#allocation4] ss:$0 sm:$0xff]  ;;  %v145_v3 = vld [vmem:[%s3389_s0 + $0x328] sm:$0xff] }
  0x22   :  { %v102_v5 = vld [vmem:[%s3389_s0 + $0x1d0] sm:$0xff]  ;;  %v60_v8 = vld [vmem:[%s3389_s0 + $0x80] sm:$0xff] }
  0x23   :  { %v188_v9 = vld [vmem:[%s3389_s0 + $0x480] sm:$0xff] }
  0x27   :  { %1689 = vmatmul.msk.f32.gmra.mxu2 %vm219_vm1, %v132_v14  ;;  %1646 = vmatmul.msk.f32.gmra.mxu1 %vm219_vm1, %v89_v15  ;;  %v146_v15 = vld [vmem:[%s3389_s0 + $0x330] sm:$0xff] }
  0x29   :  { %1604 = vmatmul.msk.f32.gmra.mxu0 %vm219_vm1, %v47_v16  ;;  %1732 = vmatmul.msk.f32.gmra.mxu3 %vm219_vm1, %v175_v17  ;;  %v103_v17 = vld [vmem:[%s3389_s0 + $0x1d8] sm:$0xff] }
  0x2f   :  { %1690 = vmatmul.msk.f32.gmra.mxu2 %vm219_vm1, %v133_v18  ;;  %1647 = vmatmul.msk.f32.gmra.mxu1 %vm219_vm1, %v90_v19 }
  0x31   :  { %1605 = vmatmul.msk.f32.gmra.mxu0 %vm219_vm1, %v48_v20  ;;  %1733 = vmatmul.msk.f32.gmra.mxu3 %vm219_vm1, %v176_v21 }
  0x37   :  { %1691 = vmatmul.msk.f32.gmra.mxu2 %vm219_vm1, %v134_v22  ;;  %1648 = vmatmul.msk.f32.gmra.mxu1 %vm219_vm1, %v91_v23  ;;  %v61_v23 = vld [vmem:[%s3389_s0 + $0x88] sm:$0xff] }
  0x39   :  { %1606 = vmatmul.msk.f32.gmra.mxu0 %vm219_vm1, %v49_v24  ;;  %1734 = vmatmul.msk.f32.gmra.mxu3 %vm219_vm1, %v177_v25  ;;  %v189_v24 = vld [vmem:[%s3389_s0 + $0x488] sm:$0xff] }
  0x3f   :  { %1692 = vmatmul.msk.f32.gmra.mxu2 %vm219_vm1, %v135_v26  ;;  %1649 = vmatmul.msk.f32.gmra.mxu1 %vm219_vm1, %v92_v27 }
  0x41   :  { %1607 = vmatmul.msk.f32.gmra.mxu0 %vm219_vm1, %v50_v28  ;;  %1735 = vmatmul.msk.f32.gmra.mxu3 %vm219_vm1, %v178_v29 }
  0x47   :  { %1693 = vmatmul.msk.f32.gmra.mxu2 %vm219_vm1, %v136_v30  ;;  %1650 = vmatmul.msk.f32.gmra.mxu1 %vm219_vm1, %v93_v31  ;;  %v147_v31 = vld [vmem:[%s3389_s0 + $0x338] sm:$0xff] }
  0x49   :  { %1608 = vmatmul.msk.f32.gmra.mxu0 %vm219_vm1, %v51_v32  ;;  %1736 = vmatmul.msk.f32.gmra.mxu3 %vm219_vm1, %v179_v33  ;;  %v104_v33 = vld [vmem:[%s3389_s0 + $0x1e0] sm:$0xff] }
  0x4f   :  { %1694 = vmatmul.msk.f32.gmra.mxu2 %vm219_vm1, %v137_v34  ;;  %1651 = vmatmul.msk.f32.gmra.mxu1 %vm219_vm1, %v94_v35 }
  0x51   :  { %1609 = vmatmul.msk.f32.gmra.mxu0 %vm219_vm1, %v52_v36  ;;  %1737 = vmatmul.msk.f32.gmra.mxu3 %vm219_vm1, %v180_v37 }
  0x57   :  { %1695 = vmatmul.msk.f32.gmra.mxu2 %vm219_vm1, %v138_v38  ;;  %1652 = vmatmul.msk.f32.gmra.mxu1 %vm219_vm1, %v95_v39  ;;  %v62_v39 = vld [vmem:[%s3389_s0 + $0x90] sm:$0xff] }
  0x59   :  { %1610 = vmatmul.msk.f32.gmra.mxu0 %vm219_vm1, %v53_v40  ;;  %1738 = vmatmul.msk.f32.gmra.mxu3 %vm219_vm1, %v181_v41  ;;  %v190_v40 = vld [vmem:[%s3389_s0 + $0x490] sm:$0xff] }
  0x5f   :  { %1696 = vmatmul.msk.f32.gmra.mxu2 %vm219_vm1, %v139_v42  ;;  %1653 = vmatmul.msk.f32.gmra.mxu1 %vm219_vm1, %v96_v43 }
  0x61   :  { %1611 = vmatmul.msk.f32.gmra.mxu0 %vm219_vm1, %v54_v44  ;;  %1739 = vmatmul.msk.f32.gmra.mxu3 %vm219_vm1, %v182_v45 }
  0x67   :  { %1697 = vmatmul.msk.f32.gmra.mxu2 %vm219_vm1, %v140_v46  ;;  %1654 = vmatmul.msk.f32.gmra.mxu1 %vm219_vm1, %v97_v47  ;;  %v148_v47 = vld [vmem:[%s3389_s0 + $0x340] sm:$0xff] }
  0x69   :  { %1612 = vmatmul.msk.f32.gmra.mxu0 %vm219_vm1, %v55_v48  ;;  %1740 = vmatmul.msk.f32.gmra.mxu3 %vm219_vm1, %v183_v49  ;;  %v105_v49 = vld [vmem:[%s3389_s0 + $0x1e8] sm:$0xff] }
  0x6f   :  { %1698 = vmatmul.msk.f32.gmra.mxu2 %vm219_vm1, %v141_v50  ;;  %1655 = vmatmul.msk.f32.gmra.mxu1 %vm219_vm1, %v98_v51 }
  0x71   :  { %1613 = vmatmul.msk.f32.gmra.mxu0 %vm219_vm1, %v56_v52  ;;  %1741 = vmatmul.msk.f32.gmra.mxu3 %vm219_vm1, %v184_v53 }
  0x77   :  { %1699 = vmatmul.msk.f32.gmra.mxu2 %vm219_vm1, %v142_v54  ;;  %1656 = vmatmul.msk.f32.gmra.mxu1 %vm219_vm1, %v99_v55  ;;  %v63_v55 = vld [vmem:[%s3389_s0 + $0x98] sm:$0xff] }
  0x79   :  { %1614 = vmatmul.msk.f32.gmra.mxu0 %vm219_vm1, %v57_v56  ;;  %1742 = vmatmul.msk.f32.gmra.mxu3 %vm219_vm1, %v185_v57  ;;  %v191_v56 = vld [vmem:[%s3389_s0 + $0x498] sm:$0xff] }
  0x7f   :  { %1700 = vmatmul.msk.f32.gmra.mxu2 %vm219_vm1, %v143_v58  ;;  %1657 = vmatmul.msk.f32.gmra.mxu1 %vm219_vm1, %v100_v59 }
  0x81   :  { %1615 = vmatmul.msk.f32.gmra.mxu0 %vm219_vm1, %v58_v60  ;;  %1743 = vmatmul.msk.f32.gmra.mxu3 %vm219_vm1, %v186_v61 }
  0x87   :  { %1701 = vmatmul.msk.f32.gmra.mxu2 %vm219_vm1, %v144_v62  ;;  %1658 = vmatmul.msk.f32.gmra.mxu1 %vm219_vm1, %v101_v63  ;;  %v149_v63 = vld [vmem:[%s3389_s0 + $0x348] sm:$0xff] }
  0x89   :  { %1616 = vmatmul.msk.f32.gmra.mxu0 %vm219_vm1, %v59_v0  ;;  %1744 = vmatmul.msk.f32.gmra.mxu3 %vm219_vm1, %v187_v1  ;;  %v106_v1 = vld [vmem:[%s3389_s0 + $0x1f0] sm:$0xff] }
  0x8c   :  { %v874_v4 = vpop.f32.mrf.mxu1 }
  0x8d   :  { %v875_v6 = vadd.f32 %v2118_v2, %v874_v4 }
  0x8e   :  { %v748_v7 = vpop.f32.mrf.mxu0 }
  0x8f   :  { %1702 = vmatmul.msk.f32.gmra.mxu2 %vm219_vm1, %v145_v3  ;;  %v1297_v10 = vmax.f32 %v875_v6, 0.0  ;;  %1659 = vmatmul.msk.f32.gmra.mxu1 %vm219_vm1, %v102_v5  ;;  %v749_v11 = vadd.f32 %v2118_v2, %v748_v7 }
  0x91   :  { %1467 = vst.msk [vmem:[%s3392_s3 + $0x150] sm:$0xff] %vm1424_vm2, %v1297_v10  ;;  %v1255_v12 = vmax.f32 %v749_v11, 0.0  ;;  %1617 = vmatmul.msk.f32.gmra.mxu0 %vm219_vm1, %v60_v8  ;;  %1745 = vmatmul.msk.f32.gmra.mxu3 %vm219_vm1, %v188_v9  ;;  %v64_v8 = vld [vmem:[%s3389_s0 + $0xa0] sm:$0xff] }
  0x92   :  { %v1003_v13 = vpop.f32.mrf.mxu2  ;;  %v192_v9 = vld [vmem:[%s3389_s0 + $0x4a0] sm:$0xff] }
  0x93   :  { %v1004_v14 = vadd.f32 %v2118_v2, %v1003_v13  ;;  %1425 = vst.msk [vmem:[%s3392_s3] sm:$0xff] %vm1424_vm2, %v1255_v12 }
  0x94   :  { %v877_v16 = vpop.f32.mrf.mxu1  ;;  %v1132_v18 = vpop.f32.mrf.mxu3 }
  0x95   :  { %v1340_v19 = vmax.f32 %v1004_v14, 0.0  ;;  %v878_v20 = vadd.f32 %v2118_v2, %v877_v16  ;;  %v1133_v21 = vadd.f32 %v2118_v2, %v1132_v18  ;;  %v150_v16 = vld [vmem:[%s3389_s0 + $0x350] sm:$0xff]  ;;  %v107_v18 = vld [vmem:[%s3389_s0 + $0x1f8] sm:$0xff] }
  0x96   :  { %v751_v22 = vpop.f32.mrf.mxu0 }
  0x97   :  { %1510 = vst.msk [vmem:[%s3392_s3 + $0x2a8] sm:$0xff] %vm1424_vm2, %v1340_v19  ;;  %1703 = vmatmul.msk.f32.gmra.mxu2 %vm219_vm1, %v146_v15  ;;  %v1298_v25 = vmax.f32 %v878_v20, 0.0  ;;  %1660 = vmatmul.msk.f32.gmra.mxu1 %vm219_vm1, %v103_v17  ;;  %v752_v26 = vadd.f32 %v2118_v2, %v751_v22  ;;  %v1383_v27 = vmax.f32 %v1133_v21, 0.0 }
  0x99   :  { %1468 = vst.msk [vmem:[%s3392_s3 + $0x158] sm:$0xff] %vm1424_vm2, %v1298_v25  ;;  %v1256_v28 = vmax.f32 %v752_v26, 0.0  ;;  %1618 = vmatmul.msk.f32.gmra.mxu0 %vm219_vm1, %v61_v23  ;;  %1746 = vmatmul.msk.f32.gmra.mxu3 %vm219_vm1, %v189_v24  ;;  %v65_v24 = vld [vmem:[%s3389_s0 + $0xa8] sm:$0xff] }
  0x9a   :  { %v1006_v29 = vpop.f32.mrf.mxu2  ;;  %1553 = vst.msk [vmem:[%s3392_s3 + $0x400] sm:$0xff] %vm1424_vm2, %v1383_v27  ;;  %v193_v25 = vld [vmem:[%s3389_s0 + $0x4a8] sm:$0xff] }
  0x9b   :  { %v1007_v30 = vadd.f32 %v2118_v2, %v1006_v29  ;;  %1426 = vst.msk [vmem:[%s3392_s3 + $0x8] sm:$0xff] %vm1424_vm2, %v1256_v28 }
  0x9c   :  { %v880_v32 = vpop.f32.mrf.mxu1  ;;  %v1135_v34 = vpop.f32.mrf.mxu3 }
  0x9d   :  { %v1341_v35 = vmax.f32 %v1007_v30, 0.0  ;;  %v881_v36 = vadd.f32 %v2118_v2, %v880_v32  ;;  %v1136_v37 = vadd.f32 %v2118_v2, %v1135_v34  ;;  %v151_v32 = vld [vmem:[%s3389_s0 + $0x358] sm:$0xff]  ;;  %v108_v34 = vld [vmem:[%s3389_s0 + $0x200] sm:$0xff] }
  0x9e   :  { %v754_v38 = vpop.f32.mrf.mxu0 }
  0x9f   :  { %1511 = vst.msk [vmem:[%s3392_s3 + $0x2b0] sm:$0xff] %vm1424_vm2, %v1341_v35  ;;  %1704 = vmatmul.msk.f32.gmra.mxu2 %vm219_vm1, %v147_v31  ;;  %v1299_v41 = vmax.f32 %v881_v36, 0.0  ;;  %1661 = vmatmul.msk.f32.gmra.mxu1 %vm219_vm1, %v104_v33  ;;  %v755_v42 = vadd.f32 %v2118_v2, %v754_v38  ;;  %v1384_v43 = vmax.f32 %v1136_v37, 0.0 }
  0xa1   :  { %1469 = vst.msk [vmem:[%s3392_s3 + $0x160] sm:$0xff] %vm1424_vm2, %v1299_v41  ;;  %v1257_v44 = vmax.f32 %v755_v42, 0.0  ;;  %1619 = vmatmul.msk.f32.gmra.mxu0 %vm219_vm1, %v62_v39  ;;  %1747 = vmatmul.msk.f32.gmra.mxu3 %vm219_vm1, %v190_v40  ;;  %v66_v40 = vld [vmem:[%s3389_s0 + $0xb0] sm:$0xff] }
  0xa2   :  { %v1009_v45 = vpop.f32.mrf.mxu2  ;;  %1554 = vst.msk [vmem:[%s3392_s3 + $0x408] sm:$0xff] %vm1424_vm2, %v1384_v43  ;;  %v194_v41 = vld [vmem:[%s3389_s0 + $0x4b0] sm:$0xff] }
  0xa3   :  { %v1010_v46 = vadd.f32 %v2118_v2, %v1009_v45  ;;  %1427 = vst.msk [vmem:[%s3392_s3 + $0x10] sm:$0xff] %vm1424_vm2, %v1257_v44 }
  0xa4   :  { %v883_v48 = vpop.f32.mrf.mxu1  ;;  %v1138_v50 = vpop.f32.mrf.mxu3 }
  0xa5   :  { %v1342_v51 = vmax.f32 %v1010_v46, 0.0  ;;  %v884_v52 = vadd.f32 %v2118_v2, %v883_v48  ;;  %v1139_v53 = vadd.f32 %v2118_v2, %v1138_v50  ;;  %v152_v48 = vld [vmem:[%s3389_s0 + $0x360] sm:$0xff]  ;;  %v109_v50 = vld [vmem:[%s3389_s0 + $0x208] sm:$0xff] }
  0xa6   :  { %v757_v54 = vpop.f32.mrf.mxu0 }
  0xa7   :  { %1512 = vst.msk [vmem:[%s3392_s3 + $0x2b8] sm:$0xff] %vm1424_vm2, %v1342_v51  ;;  %1705 = vmatmul.msk.f32.gmra.mxu2 %vm219_vm1, %v148_v47  ;;  %v1300_v57 = vmax.f32 %v884_v52, 0.0  ;;  %1662 = vmatmul.msk.f32.gmra.mxu1 %vm219_vm1, %v105_v49  ;;  %v758_v58 = vadd.f32 %v2118_v2, %v757_v54  ;;  %v1385_v59 = vmax.f32 %v1139_v53, 0.0 }
  0xa9   :  { %1470 = vst.msk [vmem:[%s3392_s3 + $0x168] sm:$0xff] %vm1424_vm2, %v1300_v57  ;;  %v1258_v60 = vmax.f32 %v758_v58, 0.0  ;;  %1620 = vmatmul.msk.f32.gmra.mxu0 %vm219_vm1, %v63_v55  ;;  %1748 = vmatmul.msk.f32.gmra.mxu3 %vm219_vm1, %v191_v56  ;;  %v67_v56 = vld [vmem:[%s3389_s0 + $0xb8] sm:$0xff] }
  0xaa   :  { %v1012_v61 = vpop.f32.mrf.mxu2  ;;  %1555 = vst.msk [vmem:[%s3392_s3 + $0x410] sm:$0xff] %vm1424_vm2, %v1385_v59  ;;  %v195_v57 = vld [vmem:[%s3389_s0 + $0x4b8] sm:$0xff] }
  0xab   :  { %v1013_v62 = vadd.f32 %v2118_v2, %v1012_v61  ;;  %1428 = vst.msk [vmem:[%s3392_s3 + $0x18] sm:$0xff] %vm1424_vm2, %v1258_v60 }
  0xac   :  { %v886_v0 = vpop.f32.mrf.mxu1  ;;  %v1141_v3 = vpop.f32.mrf.mxu3 }
  0xad   :  { %v1343_v4 = vmax.f32 %v1013_v62, 0.0  ;;  %v887_v5 = vadd.f32 %v2118_v2, %v886_v0  ;;  %v1142_v6 = vadd.f32 %v2118_v2, %v1141_v3  ;;  %v153_v0 = vld [vmem:[%s3389_s0 + $0x368] sm:$0xff]  ;;  %v110_v3 = vld [vmem:[%s3389_s0 + $0x210] sm:$0xff] }
  0xae   :  { %v760_v7 = vpop.f32.mrf.mxu0 }
  0xaf   :  { %1513 = vst.msk [vmem:[%s3392_s3 + $0x2c0] sm:$0xff] %vm1424_vm2, %v1343_v4  ;;  %1706 = vmatmul.msk.f32.gmra.mxu2 %vm219_vm1, %v149_v63  ;;  %v1301_v10 = vmax.f32 %v887_v5, 0.0  ;;  %1663 = vmatmul.msk.f32.gmra.mxu1 %vm219_vm1, %v106_v1  ;;  %v761_v11 = vadd.f32 %v2118_v2, %v760_v7  ;;  %v1386_v12 = vmax.f32 %v1142_v6, 0.0 }
  0xb1   :  { %1471 = vst.msk [vmem:[%s3392_s3 + $0x170] sm:$0xff] %vm1424_vm2, %v1301_v10  ;;  %v1259_v13 = vmax.f32 %v761_v11, 0.0  ;;  %1621 = vmatmul.msk.f32.gmra.mxu0 %vm219_vm1, %v64_v8  ;;  %1749 = vmatmul.msk.f32.gmra.mxu3 %vm219_vm1, %v192_v9  ;;  %v68_v9 = vld [vmem:[%s3389_s0 + $0xc0] sm:$0xff] }
  0xb2   :  { %v1015_v14 = vpop.f32.mrf.mxu2  ;;  %1556 = vst.msk [vmem:[%s3392_s3 + $0x418] sm:$0xff] %vm1424_vm2, %v1386_v12  ;;  %v196_v10 = vld [vmem:[%s3389_s0 + $0x4c0] sm:$0xff] }
  0xb3   :  { %v1016_v15 = vadd.f32 %v2118_v2, %v1015_v14  ;;  %1429 = vst.msk [vmem:[%s3392_s3 + $0x20] sm:$0xff] %vm1424_vm2, %v1259_v13 }
  0xb4   :  { %v889_v17 = vpop.f32.mrf.mxu1  ;;  %v1144_v19 = vpop.f32.mrf.mxu3 }
  0xb5   :  { %v1344_v20 = vmax.f32 %v1016_v15, 0.0  ;;  %v890_v21 = vadd.f32 %v2118_v2, %v889_v17  ;;  %v1145_v22 = vadd.f32 %v2118_v2, %v1144_v19  ;;  %v154_v17 = vld [vmem:[%s3389_s0 + $0x370] sm:$0xff]  ;;  %v111_v19 = vld [vmem:[%s3389_s0 + $0x218] sm:$0xff] }
  0xb6   :  { %v763_v23 = vpop.f32.mrf.mxu0 }
  0xb7   :  { %1514 = vst.msk [vmem:[%s3392_s3 + $0x2c8] sm:$0xff] %vm1424_vm2, %v1344_v20  ;;  %1707 = vmatmul.msk.f32.gmra.mxu2 %vm219_vm1, %v150_v16  ;;  %v1302_v26 = vmax.f32 %v890_v21, 0.0  ;;  %1664 = vmatmul.msk.f32.gmra.mxu1 %vm219_vm1, %v107_v18  ;;  %v764_v27 = vadd.f32 %v2118_v2, %v763_v23  ;;  %v1387_v28 = vmax.f32 %v1145_v22, 0.0 }
  0xb9   :  { %1472 = vst.msk [vmem:[%s3392_s3 + $0x178] sm:$0xff] %vm1424_vm2, %v1302_v26  ;;  %v1260_v29 = vmax.f32 %v764_v27, 0.0  ;;  %1622 = vmatmul.msk.f32.gmra.mxu0 %vm219_vm1, %v65_v24  ;;  %1750 = vmatmul.msk.f32.gmra.mxu3 %vm219_vm1, %v193_v25  ;;  %v69_v25 = vld [vmem:[%s3389_s0 + $0xc8] sm:$0xff] }
  0xba   :  { %v1018_v30 = vpop.f32.mrf.mxu2  ;;  %1557 = vst.msk [vmem:[%s3392_s3 + $0x420] sm:$0xff] %vm1424_vm2, %v1387_v28  ;;  %v197_v26 = vld [vmem:[%s3389_s0 + $0x4c8] sm:$0xff] }
  0xbb   :  { %v1019_v31 = vadd.f32 %v2118_v2, %v1018_v30  ;;  %1430 = vst.msk [vmem:[%s3392_s3 + $0x28] sm:$0xff] %vm1424_vm2, %v1260_v29 }
  0xbc   :  { %v892_v33 = vpop.f32.mrf.mxu1  ;;  %v1147_v35 = vpop.f32.mrf.mxu3 }
  0xbd   :  { %v1345_v36 = vmax.f32 %v1019_v31, 0.0  ;;  %v893_v37 = vadd.f32 %v2118_v2, %v892_v33  ;;  %v1148_v38 = vadd.f32 %v2118_v2, %v1147_v35  ;;  %v155_v33 = vld [vmem:[%s3389_s0 + $0x378] sm:$0xff]  ;;  %v112_v35 = vld [vmem:[%s3389_s0 + $0x220] sm:$0xff] }
  0xbe   :  { %v766_v39 = vpop.f32.mrf.mxu0 }
  0xbf   :  { %1515 = vst.msk [vmem:[%s3392_s3 + $0x2d0] sm:$0xff] %vm1424_vm2, %v1345_v36  ;;  %1708 = vmatmul.msk.f32.gmra.mxu2 %vm219_vm1, %v151_v32  ;;  %v1303_v42 = vmax.f32 %v893_v37, 0.0  ;;  %1665 = vmatmul.msk.f32.gmra.mxu1 %vm219_vm1, %v108_v34  ;;  %v767_v43 = vadd.f32 %v2118_v2, %v766_v39  ;;  %v1388_v44 = vmax.f32 %v1148_v38, 0.0 }
  0xc1   :  { %1473 = vst.msk [vmem:[%s3392_s3 + $0x180] sm:$0xff] %vm1424_vm2, %v1303_v42  ;;  %v1261_v45 = vmax.f32 %v767_v43, 0.0  ;;  %1623 = vmatmul.msk.f32.gmra.mxu0 %vm219_vm1, %v66_v40  ;;  %1751 = vmatmul.msk.f32.gmra.mxu3 %vm219_vm1, %v194_v41  ;;  %v70_v41 = vld [vmem:[%s3389_s0 + $0xd0] sm:$0xff] }
  0xc2   :  { %v1021_v46 = vpop.f32.mrf.mxu2  ;;  %1558 = vst.msk [vmem:[%s3392_s3 + $0x428] sm:$0xff] %vm1424_vm2, %v1388_v44  ;;  %v198_v42 = vld [vmem:[%s3389_s0 + $0x4d0] sm:$0xff] }
  0xc3   :  { %v1022_v47 = vadd.f32 %v2118_v2, %v1021_v46  ;;  %1431 = vst.msk [vmem:[%s3392_s3 + $0x30] sm:$0xff] %vm1424_vm2, %v1261_v45 }
  0xc4   :  { %v895_v49 = vpop.f32.mrf.mxu1  ;;  %v1150_v51 = vpop.f32.mrf.mxu3 }
  0xc5   :  { %v1346_v52 = vmax.f32 %v1022_v47, 0.0  ;;  %v896_v53 = vadd.f32 %v2118_v2, %v895_v49  ;;  %v1151_v54 = vadd.f32 %v2118_v2, %v1150_v51  ;;  %v156_v49 = vld [vmem:[%s3389_s0 + $0x380] sm:$0xff]  ;;  %v113_v51 = vld [vmem:[%s3389_s0 + $0x228] sm:$0xff] }
  0xc6   :  { %v769_v55 = vpop.f32.mrf.mxu0 }
  0xc7   :  { %1516 = vst.msk [vmem:[%s3392_s3 + $0x2d8] sm:$0xff] %vm1424_vm2, %v1346_v52  ;;  %1709 = vmatmul.msk.f32.gmra.mxu2 %vm219_vm1, %v152_v48  ;;  %v1304_v58 = vmax.f32 %v896_v53, 0.0  ;;  %1666 = vmatmul.msk.f32.gmra.mxu1 %vm219_vm1, %v109_v50  ;;  %v770_v59 = vadd.f32 %v2118_v2, %v769_v55  ;;  %v1389_v60 = vmax.f32 %v1151_v54, 0.0 }
  0xc9   :  { %1474 = vst.msk [vmem:[%s3392_s3 + $0x188] sm:$0xff] %vm1424_vm2, %v1304_v58  ;;  %v1262_v61 = vmax.f32 %v770_v59, 0.0  ;;  %1624 = vmatmul.msk.f32.gmra.mxu0 %vm219_vm1, %v67_v56  ;;  %1752 = vmatmul.msk.f32.gmra.mxu3 %vm219_vm1, %v195_v57  ;;  %v71_v57 = vld [vmem:[%s3389_s0 + $0xd8] sm:$0xff] }
  0xca   :  { %v1024_v62 = vpop.f32.mrf.mxu2  ;;  %1559 = vst.msk [vmem:[%s3392_s3 + $0x430] sm:$0xff] %vm1424_vm2, %v1389_v60  ;;  %v199_v58 = vld [vmem:[%s3389_s0 + $0x4d8] sm:$0xff] }
  0xcb   :  { %v1025_v63 = vadd.f32 %v2118_v2, %v1024_v62  ;;  %1432 = vst.msk [vmem:[%s3392_s3 + $0x38] sm:$0xff] %vm1424_vm2, %v1262_v61 }
  0xcc   :  { %v898_v1 = vpop.f32.mrf.mxu1  ;;  %v1153_v4 = vpop.f32.mrf.mxu3 }
  0xcd   :  { %v1347_v5 = vmax.f32 %v1025_v63, 0.0  ;;  %v899_v6 = vadd.f32 %v2118_v2, %v898_v1  ;;  %v1154_v7 = vadd.f32 %v2118_v2, %v1153_v4  ;;  %v157_v1 = vld [vmem:[%s3389_s0 + $0x388] sm:$0xff]  ;;  %v114_v4 = vld [vmem:[%s3389_s0 + $0x230] sm:$0xff] }
  0xce   :  { %v772_v8 = vpop.f32.mrf.mxu0 }
  0xcf   :  { %1517 = vst.msk [vmem:[%s3392_s3 + $0x2e0] sm:$0xff] %vm1424_vm2, %v1347_v5  ;;  %1710 = vmatmul.msk.f32.gmra.mxu2 %vm219_vm1, %v153_v0  ;;  %v1305_v11 = vmax.f32 %v899_v6, 0.0  ;;  %1667 = vmatmul.msk.f32.gmra.mxu1 %vm219_vm1, %v110_v3  ;;  %v773_v12 = vadd.f32 %v2118_v2, %v772_v8  ;;  %v1390_v13 = vmax.f32 %v1154_v7, 0.0 }
  0xd1   :  { %1475 = vst.msk [vmem:[%s3392_s3 + $0x190] sm:$0xff] %vm1424_vm2, %v1305_v11  ;;  %v1263_v14 = vmax.f32 %v773_v12, 0.0  ;;  %1625 = vmatmul.msk.f32.gmra.mxu0 %vm219_vm1, %v68_v9  ;;  %1753 = vmatmul.msk.f32.gmra.mxu3 %vm219_vm1, %v196_v10  ;;  %v72_v10 = vld [vmem:[%s3389_s0 + $0xe0] sm:$0xff] }
  0xd2   :  { %v1027_v15 = vpop.f32.mrf.mxu2  ;;  %1560 = vst.msk [vmem:[%s3392_s3 + $0x438] sm:$0xff] %vm1424_vm2, %v1390_v13  ;;  %v200_v11 = vld [vmem:[%s3389_s0 + $0x4e0] sm:$0xff] }
  0xd3   :  { %v1028_v16 = vadd.f32 %v2118_v2, %v1027_v15  ;;  %1433 = vst.msk [vmem:[%s3392_s3 + $0x40] sm:$0xff] %vm1424_vm2, %v1263_v14 }
  0xd4   :  { %v901_v18 = vpop.f32.mrf.mxu1  ;;  %v1156_v20 = vpop.f32.mrf.mxu3 }
  0xd5   :  { %v1348_v21 = vmax.f32 %v1028_v16, 0.0  ;;  %v902_v22 = vadd.f32 %v2118_v2, %v901_v18  ;;  %v1157_v23 = vadd.f32 %v2118_v2, %v1156_v20  ;;  %v158_v18 = vld [vmem:[%s3389_s0 + $0x390] sm:$0xff]  ;;  %v115_v20 = vld [vmem:[%s3389_s0 + $0x238] sm:$0xff] }
  0xd6   :  { %v775_v24 = vpop.f32.mrf.mxu0 }
  0xd7   :  { %1518 = vst.msk [vmem:[%s3392_s3 + $0x2e8] sm:$0xff] %vm1424_vm2, %v1348_v21  ;;  %1711 = vmatmul.msk.f32.gmra.mxu2 %vm219_vm1, %v154_v17  ;;  %v1306_v27 = vmax.f32 %v902_v22, 0.0  ;;  %1668 = vmatmul.msk.f32.gmra.mxu1 %vm219_vm1, %v111_v19  ;;  %v776_v28 = vadd.f32 %v2118_v2, %v775_v24  ;;  %v1391_v29 = vmax.f32 %v1157_v23, 0.0 }
  0xd9   :  { %1476 = vst.msk [vmem:[%s3392_s3 + $0x198] sm:$0xff] %vm1424_vm2, %v1306_v27  ;;  %v1264_v30 = vmax.f32 %v776_v28, 0.0  ;;  %1626 = vmatmul.msk.f32.gmra.mxu0 %vm219_vm1, %v69_v25  ;;  %1754 = vmatmul.msk.f32.gmra.mxu3 %vm219_vm1, %v197_v26  ;;  %v73_v26 = vld [vmem:[%s3389_s0 + $0xe8] sm:$0xff] }
  0xda   :  { %v1030_v31 = vpop.f32.mrf.mxu2  ;;  %1561 = vst.msk [vmem:[%s3392_s3 + $0x440] sm:$0xff] %vm1424_vm2, %v1391_v29  ;;  %v201_v27 = vld [vmem:[%s3389_s0 + $0x4e8] sm:$0xff] }
  0xdb   :  { %v1031_v32 = vadd.f32 %v2118_v2, %v1030_v31  ;;  %1434 = vst.msk [vmem:[%s3392_s3 + $0x48] sm:$0xff] %vm1424_vm2, %v1264_v30 }
  0xdc   :  { %v904_v34 = vpop.f32.mrf.mxu1  ;;  %v1159_v36 = vpop.f32.mrf.mxu3 }
  0xdd   :  { %v1349_v37 = vmax.f32 %v1031_v32, 0.0  ;;  %v905_v38 = vadd.f32 %v2118_v2, %v904_v34  ;;  %v1160_v39 = vadd.f32 %v2118_v2, %v1159_v36  ;;  %v159_v34 = vld [vmem:[%s3389_s0 + $0x398] sm:$0xff]  ;;  %v116_v36 = vld [vmem:[%s3389_s0 + $0x240] sm:$0xff] }
  0xde   :  { %v778_v40 = vpop.f32.mrf.mxu0 }
  0xdf   :  { %1519 = vst.msk [vmem:[%s3392_s3 + $0x2f0] sm:$0xff] %vm1424_vm2, %v1349_v37  ;;  %1712 = vmatmul.msk.f32.gmra.mxu2 %vm219_vm1, %v155_v33  ;;  %v1307_v43 = vmax.f32 %v905_v38, 0.0  ;;  %1669 = vmatmul.msk.f32.gmra.mxu1 %vm219_vm1, %v112_v35  ;;  %v779_v44 = vadd.f32 %v2118_v2, %v778_v40  ;;  %v1392_v45 = vmax.f32 %v1160_v39, 0.0 }
  0xe1   :  { %1477 = vst.msk [vmem:[%s3392_s3 + $0x1a0] sm:$0xff] %vm1424_vm2, %v1307_v43  ;;  %v1265_v46 = vmax.f32 %v779_v44, 0.0  ;;  %1627 = vmatmul.msk.f32.gmra.mxu0 %vm219_vm1, %v70_v41  ;;  %1755 = vmatmul.msk.f32.gmra.mxu3 %vm219_vm1, %v198_v42  ;;  %v74_v42 = vld [vmem:[%s3389_s0 + $0xf0] sm:$0xff] }
  0xe2   :  { %v1033_v47 = vpop.f32.mrf.mxu2  ;;  %1562 = vst.msk [vmem:[%s3392_s3 + $0x448] sm:$0xff] %vm1424_vm2, %v1392_v45  ;;  %v202_v43 = vld [vmem:[%s3389_s0 + $0x4f0] sm:$0xff] }
  0xe3   :  { %v1034_v48 = vadd.f32 %v2118_v2, %v1033_v47  ;;  %1435 = vst.msk [vmem:[%s3392_s3 + $0x50] sm:$0xff] %vm1424_vm2, %v1265_v46 }
  0xe4   :  { %v907_v50 = vpop.f32.mrf.mxu1  ;;  %v1162_v52 = vpop.f32.mrf.mxu3 }
  0xe5   :  { %v1350_v53 = vmax.f32 %v1034_v48, 0.0  ;;  %v908_v54 = vadd.f32 %v2118_v2, %v907_v50  ;;  %v1163_v55 = vadd.f32 %v2118_v2, %v1162_v52  ;;  %v160_v50 = vld [vmem:[%s3389_s0 + $0x3a0] sm:$0xff]  ;;  %v117_v52 = vld [vmem:[%s3389_s0 + $0x248] sm:$0xff] }
  0xe6   :  { %v781_v56 = vpop.f32.mrf.mxu0 }
  0xe7   :  { %1520 = vst.msk [vmem:[%s3392_s3 + $0x2f8] sm:$0xff] %vm1424_vm2, %v1350_v53  ;;  %1713 = vmatmul.msk.f32.gmra.mxu2 %vm219_vm1, %v156_v49  ;;  %v1308_v59 = vmax.f32 %v908_v54, 0.0  ;;  %1670 = vmatmul.msk.f32.gmra.mxu1 %vm219_vm1, %v113_v51  ;;  %v782_v60 = vadd.f32 %v2118_v2, %v781_v56  ;;  %v1393_v61 = vmax.f32 %v1163_v55, 0.0 }
  0xe9   :  { %1478 = vst.msk [vmem:[%s3392_s3 + $0x1a8] sm:$0xff] %vm1424_vm2, %v1308_v59  ;;  %v1266_v62 = vmax.f32 %v782_v60, 0.0  ;;  %1628 = vmatmul.msk.f32.gmra.mxu0 %vm219_vm1, %v71_v57  ;;  %1756 = vmatmul.msk.f32.gmra.mxu3 %vm219_vm1, %v199_v58  ;;  %v75_v58 = vld [vmem:[%s3389_s0 + $0xf8] sm:$0xff] }
  0xea   :  { %v1036_v63 = vpop.f32.mrf.mxu2  ;;  %1563 = vst.msk [vmem:[%s3392_s3 + $0x450] sm:$0xff] %vm1424_vm2, %v1393_v61  ;;  %v203_v59 = vld [vmem:[%s3389_s0 + $0x4f8] sm:$0xff] }
  0xeb   :  { %v1037_v0 = vadd.f32 %v2118_v2, %v1036_v63  ;;  %1436 = vst.msk [vmem:[%s3392_s3 + $0x58] sm:$0xff] %vm1424_vm2, %v1266_v62 }
  0xec   :  { %v910_v3 = vpop.f32.mrf.mxu1  ;;  %v1165_v5 = vpop.f32.mrf.mxu3 }
  0xed   :  { %v1351_v6 = vmax.f32 %v1037_v0, 0.0  ;;  %v911_v7 = vadd.f32 %v2118_v2, %v910_v3  ;;  %v1166_v8 = vadd.f32 %v2118_v2, %v1165_v5  ;;  %v161_v3 = vld [vmem:[%s3389_s0 + $0x3a8] sm:$0xff]  ;;  %v118_v5 = vld [vmem:[%s3389_s0 + $0x250] sm:$0xff] }
  0xee   :  { %v784_v9 = vpop.f32.mrf.mxu0 }
  0xef   :  { %1521 = vst.msk [vmem:[%s3392_s3 + $0x300] sm:$0xff] %vm1424_vm2, %v1351_v6  ;;  %1714 = vmatmul.msk.f32.gmra.mxu2 %vm219_vm1, %v157_v1  ;;  %v1309_v12 = vmax.f32 %v911_v7, 0.0  ;;  %1671 = vmatmul.msk.f32.gmra.mxu1 %vm219_vm1, %v114_v4  ;;  %v785_v13 = vadd.f32 %v2118_v2, %v784_v9  ;;  %v1394_v14 = vmax.f32 %v1166_v8, 0.0 }
  0xf1   :  { %1479 = vst.msk [vmem:[%s3392_s3 + $0x1b0] sm:$0xff] %vm1424_vm2, %v1309_v12  ;;  %v1267_v15 = vmax.f32 %v785_v13, 0.0  ;;  %1629 = vmatmul.msk.f32.gmra.mxu0 %vm219_vm1, %v72_v10  ;;  %1757 = vmatmul.msk.f32.gmra.mxu3 %vm219_vm1, %v200_v11  ;;  %v76_v11 = vld [vmem:[%s3389_s0 + $0x100] sm:$0xff] }
  0xf2   :  { %v1039_v16 = vpop.f32.mrf.mxu2  ;;  %1564 = vst.msk [vmem:[%s3392_s3 + $0x458] sm:$0xff] %vm1424_vm2, %v1394_v14  ;;  %v204_v12 = vld [vmem:[%s3389_s0 + $0x500] sm:$0xff] }
  0xf3   :  { %v1040_v17 = vadd.f32 %v2118_v2, %v1039_v16  ;;  %1437 = vst.msk [vmem:[%s3392_s3 + $0x60] sm:$0xff] %vm1424_vm2, %v1267_v15 }
  0xf4   :  { %v913_v19 = vpop.f32.mrf.mxu1  ;;  %v1168_v21 = vpop.f32.mrf.mxu3 }
  0xf5   :  { %v1352_v22 = vmax.f32 %v1040_v17, 0.0  ;;  %v914_v23 = vadd.f32 %v2118_v2, %v913_v19  ;;  %v1169_v24 = vadd.f32 %v2118_v2, %v1168_v21  ;;  %v162_v19 = vld [vmem:[%s3389_s0 + $0x3b0] sm:$0xff]  ;;  %v119_v21 = vld [vmem:[%s3389_s0 + $0x258] sm:$0xff] }
  0xf6   :  { %v787_v25 = vpop.f32.mrf.mxu0 }
  0xf7   :  { %1522 = vst.msk [vmem:[%s3392_s3 + $0x308] sm:$0xff] %vm1424_vm2, %v1352_v22  ;;  %1715 = vmatmul.msk.f32.gmra.mxu2 %vm219_vm1, %v158_v18  ;;  %v1310_v28 = vmax.f32 %v914_v23, 0.0  ;;  %1672 = vmatmul.msk.f32.gmra.mxu1 %vm219_vm1, %v115_v20  ;;  %v788_v29 = vadd.f32 %v2118_v2, %v787_v25  ;;  %v1395_v30 = vmax.f32 %v1169_v24, 0.0 }
  0xf9   :  { %1480 = vst.msk [vmem:[%s3392_s3 + $0x1b8] sm:$0xff] %vm1424_vm2, %v1310_v28  ;;  %v1268_v31 = vmax.f32 %v788_v29, 0.0  ;;  %1630 = vmatmul.msk.f32.gmra.mxu0 %vm219_vm1, %v73_v26  ;;  %1758 = vmatmul.msk.f32.gmra.mxu3 %vm219_vm1, %v201_v27  ;;  %v77_v27 = vld [vmem:[%s3389_s0 + $0x108] sm:$0xff] }
  0xfa   :  { %v1042_v32 = vpop.f32.mrf.mxu2  ;;  %1565 = vst.msk [vmem:[%s3392_s3 + $0x460] sm:$0xff] %vm1424_vm2, %v1395_v30  ;;  %v205_v28 = vld [vmem:[%s3389_s0 + $0x508] sm:$0xff] }
  0xfb   :  { %v1043_v33 = vadd.f32 %v2118_v2, %v1042_v32  ;;  %1438 = vst.msk [vmem:[%s3392_s3 + $0x68] sm:$0xff] %vm1424_vm2, %v1268_v31 }
  0xfc   :  { %v916_v35 = vpop.f32.mrf.mxu1  ;;  %v1171_v37 = vpop.f32.mrf.mxu3 }
  0xfd   :  { %v1353_v38 = vmax.f32 %v1043_v33, 0.0  ;;  %v917_v39 = vadd.f32 %v2118_v2, %v916_v35  ;;  %v1172_v40 = vadd.f32 %v2118_v2, %v1171_v37  ;;  %v163_v35 = vld [vmem:[%s3389_s0 + $0x3b8] sm:$0xff]  ;;  %v120_v37 = vld [vmem:[%s3389_s0 + $0x260] sm:$0xff] }
  0xfe   :  { %v790_v41 = vpop.f32.mrf.mxu0 }
  0xff   :  { %1523 = vst.msk [vmem:[%s3392_s3 + $0x310] sm:$0xff] %vm1424_vm2, %v1353_v38  ;;  %1716 = vmatmul.msk.f32.gmra.mxu2 %vm219_vm1, %v159_v34  ;;  %v1311_v44 = vmax.f32 %v917_v39, 0.0  ;;  %1673 = vmatmul.msk.f32.gmra.mxu1 %vm219_vm1, %v116_v36  ;;  %v791_v45 = vadd.f32 %v2118_v2, %v790_v41  ;;  %v1396_v46 = vmax.f32 %v1172_v40, 0.0 }
 0x101   :  { %1481 = vst.msk [vmem:[%s3392_s3 + $0x1c0] sm:$0xff] %vm1424_vm2, %v1311_v44  ;;  %v1269_v47 = vmax.f32 %v791_v45, 0.0  ;;  %1631 = vmatmul.msk.f32.gmra.mxu0 %vm219_vm1, %v74_v42  ;;  %1759 = vmatmul.msk.f32.gmra.mxu3 %vm219_vm1, %v202_v43  ;;  %v78_v43 = vld [vmem:[%s3389_s0 + $0x110] sm:$0xff] }
 0x102   :  { %v1045_v48 = vpop.f32.mrf.mxu2  ;;  %1566 = vst.msk [vmem:[%s3392_s3 + $0x468] sm:$0xff] %vm1424_vm2, %v1396_v46  ;;  %v206_v44 = vld [vmem:[%s3389_s0 + $0x510] sm:$0xff] }
 0x103   :  { %v1046_v49 = vadd.f32 %v2118_v2, %v1045_v48  ;;  %1439 = vst.msk [vmem:[%s3392_s3 + $0x70] sm:$0xff] %vm1424_vm2, %v1269_v47 }
 0x104   :  { %v919_v51 = vpop.f32.mrf.mxu1  ;;  %v1174_v53 = vpop.f32.mrf.mxu3 }
 0x105   :  { %v1354_v54 = vmax.f32 %v1046_v49, 0.0  ;;  %v920_v55 = vadd.f32 %v2118_v2, %v919_v51  ;;  %v1175_v56 = vadd.f32 %v2118_v2, %v1174_v53  ;;  %v164_v51 = vld [vmem:[%s3389_s0 + $0x3c0] sm:$0xff]  ;;  %v121_v53 = vld [vmem:[%s3389_s0 + $0x268] sm:$0xff] }
 0x106   :  { %v793_v57 = vpop.f32.mrf.mxu0 }
 0x107   :  { %1524 = vst.msk [vmem:[%s3392_s3 + $0x318] sm:$0xff] %vm1424_vm2, %v1354_v54  ;;  %1717 = vmatmul.msk.f32.gmra.mxu2 %vm219_vm1, %v160_v50  ;;  %v1312_v60 = vmax.f32 %v920_v55, 0.0  ;;  %1674 = vmatmul.msk.f32.gmra.mxu1 %vm219_vm1, %v117_v52  ;;  %v794_v61 = vadd.f32 %v2118_v2, %v793_v57  ;;  %v1397_v62 = vmax.f32 %v1175_v56, 0.0 }
 0x109   :  { %1482 = vst.msk [vmem:[%s3392_s3 + $0x1c8] sm:$0xff] %vm1424_vm2, %v1312_v60  ;;  %v1270_v63 = vmax.f32 %v794_v61, 0.0  ;;  %1632 = vmatmul.msk.f32.gmra.mxu0 %vm219_vm1, %v75_v58  ;;  %1760 = vmatmul.msk.f32.gmra.mxu3 %vm219_vm1, %v203_v59  ;;  %v79_v59 = vld [vmem:[%s3389_s0 + $0x118] sm:$0xff] }
 0x10a   :  { %v1048_v0 = vpop.f32.mrf.mxu2  ;;  %1567 = vst.msk [vmem:[%s3392_s3 + $0x470] sm:$0xff] %vm1424_vm2, %v1397_v62  ;;  %v207_v60 = vld [vmem:[%s3389_s0 + $0x518] sm:$0xff] }
 0x10b   :  { %v1049_v1 = vadd.f32 %v2118_v2, %v1048_v0  ;;  %1440 = vst.msk [vmem:[%s3392_s3 + $0x78] sm:$0xff] %vm1424_vm2, %v1270_v63 }
 0x10c   :  { %v922_v4 = vpop.f32.mrf.mxu1  ;;  %v1177_v6 = vpop.f32.mrf.mxu3 }
 0x10d   :  { %v1355_v7 = vmax.f32 %v1049_v1, 0.0  ;;  %v923_v8 = vadd.f32 %v2118_v2, %v922_v4  ;;  %v1178_v9 = vadd.f32 %v2118_v2, %v1177_v6  ;;  %v165_v4 = vld [vmem:[%s3389_s0 + $0x3c8] sm:$0xff]  ;;  %v122_v6 = vld [vmem:[%s3389_s0 + $0x270] sm:$0xff] }
 0x10e   :  { %v796_v10 = vpop.f32.mrf.mxu0 }
 0x10f   :  { %1525 = vst.msk [vmem:[%s3392_s3 + $0x320] sm:$0xff] %vm1424_vm2, %v1355_v7  ;;  %1718 = vmatmul.msk.f32.gmra.mxu2 %vm219_vm1, %v161_v3  ;;  %v1313_v13 = vmax.f32 %v923_v8, 0.0  ;;  %1675 = vmatmul.msk.f32.gmra.mxu1 %vm219_vm1, %v118_v5  ;;  %v797_v14 = vadd.f32 %v2118_v2, %v796_v10  ;;  %v1398_v15 = vmax.f32 %v1178_v9, 0.0 }
 0x111   :  { %1483 = vst.msk [vmem:[%s3392_s3 + $0x1d0] sm:$0xff] %vm1424_vm2, %v1313_v13  ;;  %v1271_v16 = vmax.f32 %v797_v14, 0.0  ;;  %1633 = vmatmul.msk.f32.gmra.mxu0 %vm219_vm1, %v76_v11  ;;  %1761 = vmatmul.msk.f32.gmra.mxu3 %vm219_vm1, %v204_v12  ;;  %v80_v12 = vld [vmem:[%s3389_s0 + $0x120] sm:$0xff] }
 0x112   :  { %v1051_v17 = vpop.f32.mrf.mxu2  ;;  %1568 = vst.msk [vmem:[%s3392_s3 + $0x478] sm:$0xff] %vm1424_vm2, %v1398_v15  ;;  %v208_v13 = vld [vmem:[%s3389_s0 + $0x520] sm:$0xff] }
 0x113   :  { %v1052_v18 = vadd.f32 %v2118_v2, %v1051_v17  ;;  %1441 = vst.msk [vmem:[%s3392_s3 + $0x80] sm:$0xff] %vm1424_vm2, %v1271_v16 }
 0x114   :  { %v925_v20 = vpop.f32.mrf.mxu1  ;;  %v1180_v22 = vpop.f32.mrf.mxu3 }
 0x115   :  { %v1356_v23 = vmax.f32 %v1052_v18, 0.0  ;;  %v926_v24 = vadd.f32 %v2118_v2, %v925_v20  ;;  %v1181_v25 = vadd.f32 %v2118_v2, %v1180_v22  ;;  %v166_v20 = vld [vmem:[%s3389_s0 + $0x3d0] sm:$0xff]  ;;  %v123_v22 = vld [vmem:[%s3389_s0 + $0x278] sm:$0xff] }
 0x116   :  { %v799_v26 = vpop.f32.mrf.mxu0 }
 0x117   :  { %1526 = vst.msk [vmem:[%s3392_s3 + $0x328] sm:$0xff] %vm1424_vm2, %v1356_v23  ;;  %1719 = vmatmul.msk.f32.gmra.mxu2 %vm219_vm1, %v162_v19  ;;  %v1314_v29 = vmax.f32 %v926_v24, 0.0  ;;  %1676 = vmatmul.msk.f32.gmra.mxu1 %vm219_vm1, %v119_v21  ;;  %v800_v30 = vadd.f32 %v2118_v2, %v799_v26  ;;  %v1399_v31 = vmax.f32 %v1181_v25, 0.0 }
 0x119   :  { %1484 = vst.msk [vmem:[%s3392_s3 + $0x1d8] sm:$0xff] %vm1424_vm2, %v1314_v29  ;;  %v1272_v32 = vmax.f32 %v800_v30, 0.0  ;;  %1634 = vmatmul.msk.f32.gmra.mxu0 %vm219_vm1, %v77_v27  ;;  %1762 = vmatmul.msk.f32.gmra.mxu3 %vm219_vm1, %v205_v28  ;;  %v81_v28 = vld [vmem:[%s3389_s0 + $0x128] sm:$0xff] }
 0x11a   :  { %v1054_v33 = vpop.f32.mrf.mxu2  ;;  %1569 = vst.msk [vmem:[%s3392_s3 + $0x480] sm:$0xff] %vm1424_vm2, %v1399_v31  ;;  %v209_v29 = vld [vmem:[%s3389_s0 + $0x528] sm:$0xff] }
 0x11b   :  { %v1055_v34 = vadd.f32 %v2118_v2, %v1054_v33  ;;  %1442 = vst.msk [vmem:[%s3392_s3 + $0x88] sm:$0xff] %vm1424_vm2, %v1272_v32 }
 0x11c   :  { %v928_v36 = vpop.f32.mrf.mxu1  ;;  %v1183_v38 = vpop.f32.mrf.mxu3 }
 0x11d   :  { %v1357_v39 = vmax.f32 %v1055_v34, 0.0  ;;  %v929_v40 = vadd.f32 %v2118_v2, %v928_v36  ;;  %v1184_v41 = vadd.f32 %v2118_v2, %v1183_v38  ;;  %v167_v36 = vld [vmem:[%s3389_s0 + $0x3d8] sm:$0xff]  ;;  %v124_v38 = vld [vmem:[%s3389_s0 + $0x280] sm:$0xff] }
 0x11e   :  { %v802_v42 = vpop.f32.mrf.mxu0 }
 0x11f   :  { %1527 = vst.msk [vmem:[%s3392_s3 + $0x330] sm:$0xff] %vm1424_vm2, %v1357_v39  ;;  %1720 = vmatmul.msk.f32.gmra.mxu2 %vm219_vm1, %v163_v35  ;;  %v1315_v45 = vmax.f32 %v929_v40, 0.0  ;;  %1677 = vmatmul.msk.f32.gmra.mxu1 %vm219_vm1, %v120_v37  ;;  %v803_v46 = vadd.f32 %v2118_v2, %v802_v42  ;;  %v1400_v47 = vmax.f32 %v1184_v41, 0.0 }
 0x121   :  { %1485 = vst.msk [vmem:[%s3392_s3 + $0x1e0] sm:$0xff] %vm1424_vm2, %v1315_v45  ;;  %v1273_v48 = vmax.f32 %v803_v46, 0.0  ;;  %1635 = vmatmul.msk.f32.gmra.mxu0 %vm219_vm1, %v78_v43  ;;  %1763 = vmatmul.msk.f32.gmra.mxu3 %vm219_vm1, %v206_v44  ;;  %v82_v44 = vld [vmem:[%s3389_s0 + $0x130] sm:$0xff] }
 0x122   :  { %v1057_v49 = vpop.f32.mrf.mxu2  ;;  %1570 = vst.msk [vmem:[%s3392_s3 + $0x488] sm:$0xff] %vm1424_vm2, %v1400_v47  ;;  %v210_v45 = vld [vmem:[%s3389_s0 + $0x530] sm:$0xff] }
 0x123   :  { %v1058_v50 = vadd.f32 %v2118_v2, %v1057_v49  ;;  %1443 = vst.msk [vmem:[%s3392_s3 + $0x90] sm:$0xff] %vm1424_vm2, %v1273_v48 }
 0x124   :  { %v931_v52 = vpop.f32.mrf.mxu1  ;;  %v1186_v54 = vpop.f32.mrf.mxu3 }
 0x125   :  { %v1358_v55 = vmax.f32 %v1058_v50, 0.0  ;;  %v932_v56 = vadd.f32 %v2118_v2, %v931_v52  ;;  %v1187_v57 = vadd.f32 %v2118_v2, %v1186_v54  ;;  %v168_v52 = vld [vmem:[%s3389_s0 + $0x3e0] sm:$0xff]  ;;  %v125_v54 = vld [vmem:[%s3389_s0 + $0x288] sm:$0xff] }
 0x126   :  { %v805_v58 = vpop.f32.mrf.mxu0 }
 0x127   :  { %1528 = vst.msk [vmem:[%s3392_s3 + $0x338] sm:$0xff] %vm1424_vm2, %v1358_v55  ;;  %1721 = vmatmul.msk.f32.gmra.mxu2 %vm219_vm1, %v164_v51  ;;  %v1316_v61 = vmax.f32 %v932_v56, 0.0  ;;  %1678 = vmatmul.msk.f32.gmra.mxu1 %vm219_vm1, %v121_v53  ;;  %v806_v62 = vadd.f32 %v2118_v2, %v805_v58  ;;  %v1401_v63 = vmax.f32 %v1187_v57, 0.0 }
 0x129   :  { %1486 = vst.msk [vmem:[%s3392_s3 + $0x1e8] sm:$0xff] %vm1424_vm2, %v1316_v61  ;;  %v1274_v0 = vmax.f32 %v806_v62, 0.0  ;;  %1636 = vmatmul.msk.f32.gmra.mxu0 %vm219_vm1, %v79_v59  ;;  %1764 = vmatmul.msk.f32.gmra.mxu3 %vm219_vm1, %v207_v60  ;;  %v83_v60 = vld [vmem:[%s3389_s0 + $0x138] sm:$0xff] }
 0x12a   :  { %v1060_v1 = vpop.f32.mrf.mxu2  ;;  %1571 = vst.msk [vmem:[%s3392_s3 + $0x490] sm:$0xff] %vm1424_vm2, %v1401_v63  ;;  %v211_v61 = vld [vmem:[%s3389_s0 + $0x538] sm:$0xff] }
 0x12b   :  { %v1061_v3 = vadd.f32 %v2118_v2, %v1060_v1  ;;  %1444 = vst.msk [vmem:[%s3392_s3 + $0x98] sm:$0xff] %vm1424_vm2, %v1274_v0 }
 0x12c   :  { %v934_v5 = vpop.f32.mrf.mxu1  ;;  %v1189_v7 = vpop.f32.mrf.mxu3 }
 0x12d   :  { %v1359_v8 = vmax.f32 %v1061_v3, 0.0  ;;  %v935_v9 = vadd.f32 %v2118_v2, %v934_v5  ;;  %v1190_v10 = vadd.f32 %v2118_v2, %v1189_v7  ;;  %v169_v5 = vld [vmem:[%s3389_s0 + $0x3e8] sm:$0xff]  ;;  %v126_v7 = vld [vmem:[%s3389_s0 + $0x290] sm:$0xff] }
 0x12e   :  { %v808_v11 = vpop.f32.mrf.mxu0 }
 0x12f   :  { %1529 = vst.msk [vmem:[%s3392_s3 + $0x340] sm:$0xff] %vm1424_vm2, %v1359_v8  ;;  %1722 = vmatmul.msk.f32.gmra.mxu2 %vm219_vm1, %v165_v4  ;;  %v1317_v14 = vmax.f32 %v935_v9, 0.0  ;;  %1679 = vmatmul.msk.f32.gmra.mxu1 %vm219_vm1, %v122_v6  ;;  %v809_v15 = vadd.f32 %v2118_v2, %v808_v11  ;;  %v1402_v16 = vmax.f32 %v1190_v10, 0.0 }
 0x131   :  { %1487 = vst.msk [vmem:[%s3392_s3 + $0x1f0] sm:$0xff] %vm1424_vm2, %v1317_v14  ;;  %v1275_v17 = vmax.f32 %v809_v15, 0.0  ;;  %1637 = vmatmul.msk.f32.gmra.mxu0 %vm219_vm1, %v80_v12  ;;  %1765 = vmatmul.msk.f32.gmra.mxu3 %vm219_vm1, %v208_v13  ;;  %v84_v13 = vld [vmem:[%s3389_s0 + $0x140] sm:$0xff] }
 0x132   :  { %v1063_v18 = vpop.f32.mrf.mxu2  ;;  %1572 = vst.msk [vmem:[%s3392_s3 + $0x498] sm:$0xff] %vm1424_vm2, %v1402_v16  ;;  %v212_v14 = vld [vmem:[%s3389_s0 + $0x540] sm:$0xff] }
 0x133   :  { %v1064_v19 = vadd.f32 %v2118_v2, %v1063_v18  ;;  %1445 = vst.msk [vmem:[%s3392_s3 + $0xa0] sm:$0xff] %vm1424_vm2, %v1275_v17 }
 0x134   :  { %v937_v21 = vpop.f32.mrf.mxu1  ;;  %v1192_v23 = vpop.f32.mrf.mxu3 }
 0x135   :  { %v1360_v24 = vmax.f32 %v1064_v19, 0.0  ;;  %v938_v25 = vadd.f32 %v2118_v2, %v937_v21  ;;  %v1193_v26 = vadd.f32 %v2118_v2, %v1192_v23  ;;  %v2889_v2 = vld [vmem:[#allocation4] ss:$0 sm:$0xff]  ;;  %v127_v23 = vld [vmem:[%s3389_s0 + $0x298] sm:$0xff] }
 0x136   :  { %v811_v27 = vpop.f32.mrf.mxu0  ;;  %v170_v21 = vld [vmem:[%s3389_s0 + $0x3f0] sm:$0xff] }
 0x137   :  { %1530 = vst.msk [vmem:[%s3392_s3 + $0x348] sm:$0xff] %vm1424_vm2, %v1360_v24  ;;  %1723 = vmatmul.msk.f32.gmra.mxu2 %vm219_vm1, %v166_v20  ;;  %v1318_v30 = vmax.f32 %v938_v25, 0.0  ;;  %1680 = vmatmul.msk.f32.gmra.mxu1 %vm219_vm1, %v123_v22  ;;  %v812_v31 = vadd.f32 %v2889_v2, %v811_v27  ;;  %v1403_v32 = vmax.f32 %v1193_v26, 0.0 }
 0x139   :  { %1488 = vst.msk [vmem:[%s3392_s3 + $0x1f8] sm:$0xff] %vm1424_vm2, %v1318_v30  ;;  %v1276_v33 = vmax.f32 %v812_v31, 0.0  ;;  %1638 = vmatmul.msk.f32.gmra.mxu0 %vm219_vm1, %v81_v28  ;;  %1766 = vmatmul.msk.f32.gmra.mxu3 %vm219_vm1, %v209_v29  ;;  %v85_v29 = vld [vmem:[%s3389_s0 + $0x148] sm:$0xff] }
 0x13a   :  { %v1066_v34 = vpop.f32.mrf.mxu2  ;;  %1573 = vst.msk [vmem:[%s3392_s3 + $0x4a0] sm:$0xff] %vm1424_vm2, %v1403_v32 }
 0x13b   :  { %v1067_v35 = vadd.f32 %v2889_v2, %v1066_v34  ;;  %1446 = vst.msk [vmem:[%s3392_s3 + $0xa8] sm:$0xff] %vm1424_vm2, %v1276_v33 }
 0x13c   :  { %v940_v37 = vpop.f32.mrf.mxu1  ;;  %v1195_v39 = vpop.f32.mrf.mxu3 }
 0x13d   :  { %v1361_v40 = vmax.f32 %v1067_v35, 0.0  ;;  %v941_v41 = vadd.f32 %v2889_v2, %v940_v37  ;;  %v1196_v42 = vadd.f32 %v2889_v2, %v1195_v39 }
 0x13e   :  { %v814_v43 = vpop.f32.mrf.mxu0 }
 0x13f   :  { %1531 = vst.msk [vmem:[%s3392_s3 + $0x350] sm:$0xff] %vm1424_vm2, %v1361_v40  ;;  %1724 = vmatmul.msk.f32.gmra.mxu2 %vm219_vm1, %v167_v36  ;;  %v1319_v46 = vmax.f32 %v941_v41, 0.0  ;;  %1681 = vmatmul.msk.f32.gmra.mxu1 %vm219_vm1, %v124_v38  ;;  %v815_v47 = vadd.f32 %v2889_v2, %v814_v43  ;;  %v1404_v48 = vmax.f32 %v1196_v42, 0.0  ;;  %v171_v36 = vld [vmem:[%s3389_s0 + $0x3f8] sm:$0xff]  ;;  %v128_v38 = vld [vmem:[%s3389_s0 + $0x2a0] sm:$0xff] }
 0x141   :  { %1489 = vst.msk [vmem:[%s3392_s3 + $0x200] sm:$0xff] %vm1424_vm2, %v1319_v46  ;;  %v1277_v49 = vmax.f32 %v815_v47, 0.0  ;;  %1639 = vmatmul.msk.f32.gmra.mxu0 %vm219_vm1, %v82_v44  ;;  %1767 = vmatmul.msk.f32.gmra.mxu3 %vm219_vm1, %v210_v45 }
 0x142   :  { %v1069_v50 = vpop.f32.mrf.mxu2  ;;  %1574 = vst.msk [vmem:[%s3392_s3 + $0x4a8] sm:$0xff] %vm1424_vm2, %v1404_v48 }
 0x143   :  { %v1070_v51 = vadd.f32 %v2889_v2, %v1069_v50  ;;  %1447 = vst.msk [vmem:[%s3392_s3 + $0xb0] sm:$0xff] %vm1424_vm2, %v1277_v49 }
 0x144   :  { %v943_v53 = vpop.f32.mrf.mxu1  ;;  %v1198_v55 = vpop.f32.mrf.mxu3 }
 0x145   :  { %v1362_v56 = vmax.f32 %v1070_v51, 0.0  ;;  %v944_v57 = vadd.f32 %v2889_v2, %v943_v53  ;;  %v1199_v58 = vadd.f32 %v2889_v2, %v1198_v55 }
 0x146   :  { %v817_v59 = vpop.f32.mrf.mxu0 }
 0x147   :  { %1532 = vst.msk [vmem:[%s3392_s3 + $0x358] sm:$0xff] %vm1424_vm2, %v1362_v56  ;;  %1725 = vmatmul.msk.f32.gmra.mxu2 %vm219_vm1, %v168_v52  ;;  %v1320_v62 = vmax.f32 %v944_v57, 0.0  ;;  %1682 = vmatmul.msk.f32.gmra.mxu1 %vm219_vm1, %v125_v54  ;;  %v818_v63 = vadd.f32 %v2889_v2, %v817_v59  ;;  %v1405_v0 = vmax.f32 %v1199_v58, 0.0 }
 0x149   :  { %1490 = vst.msk [vmem:[%s3392_s3 + $0x208] sm:$0xff] %vm1424_vm2, %v1320_v62  ;;  %v1278_v1 = vmax.f32 %v818_v63, 0.0  ;;  %1640 = vmatmul.msk.f32.gmra.mxu0 %vm219_vm1, %v83_v60  ;;  %1768 = vmatmul.msk.f32.gmra.mxu3 %vm219_vm1, %v211_v61 }
 0x14a   :  { %v1072_v3 = vpop.f32.mrf.mxu2  ;;  %1575 = vst.msk [vmem:[%s3392_s3 + $0x4b0] sm:$0xff] %vm1424_vm2, %v1405_v0 }
 0x14b   :  { %v1073_v4 = vadd.f32 %v2889_v2, %v1072_v3  ;;  %1448 = vst.msk [vmem:[%s3392_s3 + $0xb8] sm:$0xff] %vm1424_vm2, %v1278_v1 }
 0x14c   :  { %v946_v6 = vpop.f32.mrf.mxu1  ;;  %v1201_v8 = vpop.f32.mrf.mxu3 }
 0x14d   :  { %v1363_v9 = vmax.f32 %v1073_v4, 0.0  ;;  %v947_v10 = vadd.f32 %v2889_v2, %v946_v6  ;;  %v1202_v11 = vadd.f32 %v2889_v2, %v1201_v8 }
 0x14e   :  { %v820_v12 = vpop.f32.mrf.mxu0 }
 0x14f   :  { %1533 = vst.msk [vmem:[%s3392_s3 + $0x360] sm:$0xff] %vm1424_vm2, %v1363_v9  ;;  %1726 = vmatmul.msk.f32.gmra.mxu2 %vm219_vm1, %v169_v5  ;;  %v1321_v15 = vmax.f32 %v947_v10, 0.0  ;;  %1683 = vmatmul.msk.f32.gmra.mxu1 %vm219_vm1, %v126_v7  ;;  %v821_v16 = vadd.f32 %v2889_v2, %v820_v12  ;;  %v1406_v17 = vmax.f32 %v1202_v11, 0.0 }
 0x151   :  { %1491 = vst.msk [vmem:[%s3392_s3 + $0x210] sm:$0xff] %vm1424_vm2, %v1321_v15  ;;  %v1279_v18 = vmax.f32 %v821_v16, 0.0  ;;  %1641 = vmatmul.msk.f32.gmra.mxu0 %vm219_vm1, %v84_v13  ;;  %1769 = vmatmul.msk.f32.gmra.mxu3 %vm219_vm1, %v212_v14 }
 0x152   :  { %v1075_v19 = vpop.f32.mrf.mxu2  ;;  %1576 = vst.msk [vmem:[%s3392_s3 + $0x4b8] sm:$0xff] %vm1424_vm2, %v1406_v17 }
 0x153   :  { %v1076_v20 = vadd.f32 %v2889_v2, %v1075_v19  ;;  %1449 = vst.msk [vmem:[%s3392_s3 + $0xc0] sm:$0xff] %vm1424_vm2, %v1279_v18 }
 0x154   :  { %v949_v22 = vpop.f32.mrf.mxu1  ;;  %v1204_v24 = vpop.f32.mrf.mxu3 }
 0x155   :  { %v1364_v25 = vmax.f32 %v1076_v20, 0.0  ;;  %v950_v26 = vadd.f32 %v2889_v2, %v949_v22  ;;  %v1205_v27 = vadd.f32 %v2889_v2, %v1204_v24 }
 0x156   :  { %v823_v28 = vpop.f32.mrf.mxu0 }
 0x157   :  { %1534 = vst.msk [vmem:[%s3392_s3 + $0x368] sm:$0xff] %vm1424_vm2, %v1364_v25  ;;  %1727 = vmatmul.msk.f32.gmra.mxu2 %vm219_vm1, %v170_v21  ;;  %v1322_v30 = vmax.f32 %v950_v26, 0.0  ;;  %1684 = vmatmul.msk.f32.gmra.mxu1 %vm219_vm1, %v127_v23  ;;  %v824_v31 = vadd.f32 %v2889_v2, %v823_v28  ;;  %v1407_v32 = vmax.f32 %v1205_v27, 0.0 }
 0x159   :  { %1492 = vst.msk [vmem:[%s3392_s3 + $0x218] sm:$0xff] %vm1424_vm2, %v1322_v30  ;;  %v1280_v33 = vmax.f32 %v824_v31, 0.0  ;;  %1642 = vmatmul.msk.f32.gmra.mxu0 %vm219_vm1, %v85_v29 }
 0x15a   :  { %v1078_v34 = vpop.f32.mrf.mxu2  ;;  %1577 = vst.msk [vmem:[%s3392_s3 + $0x4c0] sm:$0xff] %vm1424_vm2, %v1407_v32 }
 0x15b   :  { %v1079_v35 = vadd.f32 %v2889_v2, %v1078_v34  ;;  %1450 = vst.msk [vmem:[%s3392_s3 + $0xc8] sm:$0xff] %vm1424_vm2, %v1280_v33 }
 0x15c   :  { %v952_v37 = vpop.f32.mrf.mxu1  ;;  %v1207_v39 = vpop.f32.mrf.mxu3 }
 0x15d   :  { %v1365_v40 = vmax.f32 %v1079_v35, 0.0  ;;  %v953_v41 = vadd.f32 %v2889_v2, %v952_v37  ;;  %v1208_v42 = vadd.f32 %v2889_v2, %v1207_v39 }
 0x15e   :  { %v826_v43 = vpop.f32.mrf.mxu0 }
 0x15f   :  { %1535 = vst.msk [vmem:[%s3392_s3 + $0x370] sm:$0xff] %vm1424_vm2, %v1365_v40  ;;  %1728 = vmatmul.msk.f32.gmra.mxu2 %vm219_vm1, %v171_v36  ;;  %v1323_v44 = vmax.f32 %v953_v41, 0.0  ;;  %1685 = vmatmul.msk.f32.gmra.mxu1 %vm219_vm1, %v128_v38  ;;  %v827_v45 = vadd.f32 %v2889_v2, %v826_v43  ;;  %v1408_v46 = vmax.f32 %v1208_v42, 0.0 }
 0x161   :  { %1493 = vst.msk [vmem:[%s3392_s3 + $0x220] sm:$0xff] %vm1424_vm2, %v1323_v44  ;;  %v1281_v47 = vmax.f32 %v827_v45, 0.0 }
 0x162   :  { %v1081_v48 = vpop.f32.mrf.mxu2  ;;  %1578 = vst.msk [vmem:[%s3392_s3 + $0x4c8] sm:$0xff] %vm1424_vm2, %v1408_v46 }
 0x163   :  { %v1082_v49 = vadd.f32 %v2889_v2, %v1081_v48  ;;  %1451 = vst.msk [vmem:[%s3392_s3 + $0xd0] sm:$0xff] %vm1424_vm2, %v1281_v47 }
 0x164   :  { %v955_v50 = vpop.f32.mrf.mxu1  ;;  %v1210_v51 = vpop.f32.mrf.mxu3 }
 0x165   :  { %v1366_v52 = vmax.f32 %v1082_v49, 0.0  ;;  %v956_v53 = vadd.f32 %v2889_v2, %v955_v50  ;;  %v1211_v54 = vadd.f32 %v2889_v2, %v1210_v51 }
 0x166   :  { %v829_v55 = vpop.f32.mrf.mxu0 }
 0x167   :  { %1536 = vst.msk [vmem:[%s3392_s3 + $0x378] sm:$0xff] %vm1424_vm2, %v1366_v52  ;;  %v1324_v56 = vmax.f32 %v956_v53, 0.0  ;;  %v830_v57 = vadd.f32 %v2889_v2, %v829_v55  ;;  %v1409_v58 = vmax.f32 %v1211_v54, 0.0 }
 0x169   :  { %1494 = vst.msk [vmem:[%s3392_s3 + $0x228] sm:$0xff] %vm1424_vm2, %v1324_v56  ;;  %v1282_v59 = vmax.f32 %v830_v57, 0.0 }
 0x16a   :  { %v1084_v60 = vpop.f32.mrf.mxu2  ;;  %1579 = vst.msk [vmem:[%s3392_s3 + $0x4d0] sm:$0xff] %vm1424_vm2, %v1409_v58 }
 0x16b   :  { %v1085_v61 = vadd.f32 %v2889_v2, %v1084_v60  ;;  %1452 = vst.msk [vmem:[%s3392_s3 + $0xd8] sm:$0xff] %vm1424_vm2, %v1282_v59 }
 0x16c   :  { %v958_v62 = vpop.f32.mrf.mxu1  ;;  %v1213_v63 = vpop.f32.mrf.mxu3 }
 0x16d   :  { %v1367_v0 = vmax.f32 %v1085_v61, 0.0  ;;  %v959_v1 = vadd.f32 %v2889_v2, %v958_v62  ;;  %v1214_v3 = vadd.f32 %v2889_v2, %v1213_v63 }
 0x16e   :  { %v832_v4 = vpop.f32.mrf.mxu0 }
 0x16f   :  { %1537 = vst.msk [vmem:[%s3392_s3 + $0x380] sm:$0xff] %vm1424_vm2, %v1367_v0  ;;  %v1325_v5 = vmax.f32 %v959_v1, 0.0  ;;  %v833_v6 = vadd.f32 %v2889_v2, %v832_v4  ;;  %v1410_v7 = vmax.f32 %v1214_v3, 0.0 }
 0x171   :  { %1495 = vst.msk [vmem:[%s3392_s3 + $0x230] sm:$0xff] %vm1424_vm2, %v1325_v5  ;;  %v1283_v8 = vmax.f32 %v833_v6, 0.0 }
 0x172   :  { %v1087_v9 = vpop.f32.mrf.mxu2  ;;  %1580 = vst.msk [vmem:[%s3392_s3 + $0x4d8] sm:$0xff] %vm1424_vm2, %v1410_v7 }
 0x173   :  { %v1088_v10 = vadd.f32 %v2889_v2, %v1087_v9  ;;  %1453 = vst.msk [vmem:[%s3392_s3 + $0xe0] sm:$0xff] %vm1424_vm2, %v1283_v8 }
 0x174   :  { %v961_v11 = vpop.f32.mrf.mxu1  ;;  %v1216_v12 = vpop.f32.mrf.mxu3 }
 0x175   :  { %v1368_v13 = vmax.f32 %v1088_v10, 0.0  ;;  %v962_v14 = vadd.f32 %v2889_v2, %v961_v11  ;;  %v1217_v15 = vadd.f32 %v2889_v2, %v1216_v12 }
 0x176   :  { %v835_v16 = vpop.f32.mrf.mxu0 }
 0x177   :  { %1538 = vst.msk [vmem:[%s3392_s3 + $0x388] sm:$0xff] %vm1424_vm2, %v1368_v13  ;;  %v1326_v17 = vmax.f32 %v962_v14, 0.0  ;;  %v836_v18 = vadd.f32 %v2889_v2, %v835_v16  ;;  %v1411_v19 = vmax.f32 %v1217_v15, 0.0 }
 0x179   :  { %1496 = vst.msk [vmem:[%s3392_s3 + $0x238] sm:$0xff] %vm1424_vm2, %v1326_v17  ;;  %v1284_v20 = vmax.f32 %v836_v18, 0.0 }
 0x17a   :  { %v1090_v21 = vpop.f32.mrf.mxu2  ;;  %1581 = vst.msk [vmem:[%s3392_s3 + $0x4e0] sm:$0xff] %vm1424_vm2, %v1411_v19 }
 0x17b   :  { %v1091_v22 = vadd.f32 %v2889_v2, %v1090_v21  ;;  %1454 = vst.msk [vmem:[%s3392_s3 + $0xe8] sm:$0xff] %vm1424_vm2, %v1284_v20 }
 0x17c   :  { %v964_v23 = vpop.f32.mrf.mxu1  ;;  %v1219_v24 = vpop.f32.mrf.mxu3 }
 0x17d   :  { %v1369_v25 = vmax.f32 %v1091_v22, 0.0  ;;  %v965_v26 = vadd.f32 %v2889_v2, %v964_v23  ;;  %v1220_v27 = vadd.f32 %v2889_v2, %v1219_v24 }
 0x17e   :  { %v838_v28 = vpop.f32.mrf.mxu0 }
 0x17f   :  { %1539 = vst.msk [vmem:[%s3392_s3 + $0x390] sm:$0xff] %vm1424_vm2, %v1369_v25  ;;  %v1327_v29 = vmax.f32 %v965_v26, 0.0  ;;  %v839_v30 = vadd.f32 %v2889_v2, %v838_v28  ;;  %v1412_v31 = vmax.f32 %v1220_v27, 0.0 }
 0x181   :  { %1497 = vst.msk [vmem:[%s3392_s3 + $0x240] sm:$0xff] %vm1424_vm2, %v1327_v29  ;;  %v1285_v32 = vmax.f32 %v839_v30, 0.0 }
 0x182   :  { %v1093_v33 = vpop.f32.mrf.mxu2  ;;  %1582 = vst.msk [vmem:[%s3392_s3 + $0x4e8] sm:$0xff] %vm1424_vm2, %v1412_v31 }
 0x183   :  { %v1094_v34 = vadd.f32 %v2889_v2, %v1093_v33  ;;  %1455 = vst.msk [vmem:[%s3392_s3 + $0xf0] sm:$0xff] %vm1424_vm2, %v1285_v32 }
 0x184   :  { %v967_v35 = vpop.f32.mrf.mxu1  ;;  %v1222_v36 = vpop.f32.mrf.mxu3 }
 0x185   :  { %v1370_v37 = vmax.f32 %v1094_v34, 0.0  ;;  %v968_v38 = vadd.f32 %v2889_v2, %v967_v35  ;;  %v1223_v39 = vadd.f32 %v2889_v2, %v1222_v36 }
 0x186   :  { %v841_v40 = vpop.f32.mrf.mxu0 }
 0x187   :  { %1540 = vst.msk [vmem:[%s3392_s3 + $0x398] sm:$0xff] %vm1424_vm2, %v1370_v37  ;;  %v1328_v41 = vmax.f32 %v968_v38, 0.0  ;;  %v842_v42 = vadd.f32 %v2889_v2, %v841_v40  ;;  %v1413_v43 = vmax.f32 %v1223_v39, 0.0 }
 0x189   :  { %1498 = vst.msk [vmem:[%s3392_s3 + $0x248] sm:$0xff] %vm1424_vm2, %v1328_v41  ;;  %v1286_v44 = vmax.f32 %v842_v42, 0.0 }
 0x18a   :  { %v1096_v45 = vpop.f32.mrf.mxu2  ;;  %1583 = vst.msk [vmem:[%s3392_s3 + $0x4f0] sm:$0xff] %vm1424_vm2, %v1413_v43 }
 0x18b   :  { %v1097_v46 = vadd.f32 %v2889_v2, %v1096_v45  ;;  %1456 = vst.msk [vmem:[%s3392_s3 + $0xf8] sm:$0xff] %vm1424_vm2, %v1286_v44 }
 0x18c   :  { %v970_v47 = vpop.f32.mrf.mxu1  ;;  %v1225_v48 = vpop.f32.mrf.mxu3 }
 0x18d   :  { %v1371_v49 = vmax.f32 %v1097_v46, 0.0  ;;  %v971_v50 = vadd.f32 %v2889_v2, %v970_v47  ;;  %v1226_v51 = vadd.f32 %v2889_v2, %v1225_v48 }
 0x18e   :  { %v844_v52 = vpop.f32.mrf.mxu0 }
 0x18f   :  { %1541 = vst.msk [vmem:[%s3392_s3 + $0x3a0] sm:$0xff] %vm1424_vm2, %v1371_v49  ;;  %v1329_v53 = vmax.f32 %v971_v50, 0.0  ;;  %v845_v54 = vadd.f32 %v2889_v2, %v844_v52  ;;  %v1414_v55 = vmax.f32 %v1226_v51, 0.0 }
 0x191   :  { %1499 = vst.msk [vmem:[%s3392_s3 + $0x250] sm:$0xff] %vm1424_vm2, %v1329_v53  ;;  %v1287_v56 = vmax.f32 %v845_v54, 0.0 }
 0x192   :  { %v1099_v57 = vpop.f32.mrf.mxu2  ;;  %1584 = vst.msk [vmem:[%s3392_s3 + $0x4f8] sm:$0xff] %vm1424_vm2, %v1414_v55 }
 0x193   :  { %v1100_v58 = vadd.f32 %v2889_v2, %v1099_v57  ;;  %1457 = vst.msk [vmem:[%s3392_s3 + $0x100] sm:$0xff] %vm1424_vm2, %v1287_v56 }
 0x194   :  { %v973_v59 = vpop.f32.mrf.mxu1  ;;  %v1228_v60 = vpop.f32.mrf.mxu3 }
 0x195   :  { %v1372_v61 = vmax.f32 %v1100_v58, 0.0  ;;  %v974_v62 = vadd.f32 %v2889_v2, %v973_v59  ;;  %v1229_v63 = vadd.f32 %v2889_v2, %v1228_v60 }
 0x196   :  { %v847_v0 = vpop.f32.mrf.mxu0 }
 0x197   :  { %1542 = vst.msk [vmem:[%s3392_s3 + $0x3a8] sm:$0xff] %vm1424_vm2, %v1372_v61  ;;  %v1330_v1 = vmax.f32 %v974_v62, 0.0  ;;  %v848_v3 = vadd.f32 %v2889_v2, %v847_v0  ;;  %v1415_v4 = vmax.f32 %v1229_v63, 0.0 }
 0x199   :  { %1500 = vst.msk [vmem:[%s3392_s3 + $0x258] sm:$0xff] %vm1424_vm2, %v1330_v1  ;;  %v1288_v5 = vmax.f32 %v848_v3, 0.0 }
 0x19a   :  { %v1102_v6 = vpop.f32.mrf.mxu2  ;;  %1585 = vst.msk [vmem:[%s3392_s3 + $0x500] sm:$0xff] %vm1424_vm2, %v1415_v4 }
 0x19b   :  { %v1103_v7 = vadd.f32 %v2889_v2, %v1102_v6  ;;  %1458 = vst.msk [vmem:[%s3392_s3 + $0x108] sm:$0xff] %vm1424_vm2, %v1288_v5 }
 0x19c   :  { %v976_v8 = vpop.f32.mrf.mxu1  ;;  %v1231_v9 = vpop.f32.mrf.mxu3 }
 0x19d   :  { %v1373_v10 = vmax.f32 %v1103_v7, 0.0  ;;  %v977_v11 = vadd.f32 %v2889_v2, %v976_v8  ;;  %v1232_v12 = vadd.f32 %v2889_v2, %v1231_v9 }
 0x19e   :  { %v850_v13 = vpop.f32.mrf.mxu0 }
 0x19f   :  { %1543 = vst.msk [vmem:[%s3392_s3 + $0x3b0] sm:$0xff] %vm1424_vm2, %v1373_v10  ;;  %v1331_v14 = vmax.f32 %v977_v11, 0.0  ;;  %v851_v15 = vadd.f32 %v2889_v2, %v850_v13  ;;  %v1416_v16 = vmax.f32 %v1232_v12, 0.0 }
 0x1a1   :  { %1501 = vst.msk [vmem:[%s3392_s3 + $0x260] sm:$0xff] %vm1424_vm2, %v1331_v14  ;;  %v1289_v17 = vmax.f32 %v851_v15, 0.0 }
 0x1a2   :  { %v1105_v18 = vpop.f32.mrf.mxu2  ;;  %1586 = vst.msk [vmem:[%s3392_s3 + $0x508] sm:$0xff] %vm1424_vm2, %v1416_v16 }
 0x1a3   :  { %v1106_v19 = vadd.f32 %v2889_v2, %v1105_v18  ;;  %1459 = vst.msk [vmem:[%s3392_s3 + $0x110] sm:$0xff] %vm1424_vm2, %v1289_v17 }
 0x1a4   :  { %v979_v20 = vpop.f32.mrf.mxu1  ;;  %v1234_v21 = vpop.f32.mrf.mxu3 }
 0x1a5   :  { %v1374_v22 = vmax.f32 %v1106_v19, 0.0  ;;  %v980_v23 = vadd.f32 %v2889_v2, %v979_v20  ;;  %v1235_v24 = vadd.f32 %v2889_v2, %v1234_v21 }
 0x1a6   :  { %v853_v25 = vpop.f32.mrf.mxu0 }
 0x1a7   :  { %1544 = vst.msk [vmem:[%s3392_s3 + $0x3b8] sm:$0xff] %vm1424_vm2, %v1374_v22  ;;  %v1332_v26 = vmax.f32 %v980_v23, 0.0  ;;  %v854_v27 = vadd.f32 %v2889_v2, %v853_v25  ;;  %v1417_v28 = vmax.f32 %v1235_v24, 0.0 }
 0x1a9   :  { %1502 = vst.msk [vmem:[%s3392_s3 + $0x268] sm:$0xff] %vm1424_vm2, %v1332_v26  ;;  %v1290_v29 = vmax.f32 %v854_v27, 0.0 }
 0x1aa   :  { %v1108_v30 = vpop.f32.mrf.mxu2  ;;  %1587 = vst.msk [vmem:[%s3392_s3 + $0x510] sm:$0xff] %vm1424_vm2, %v1417_v28 }
 0x1ab   :  { %v1109_v31 = vadd.f32 %v2889_v2, %v1108_v30  ;;  %1460 = vst.msk [vmem:[%s3392_s3 + $0x118] sm:$0xff] %vm1424_vm2, %v1290_v29 }
 0x1ac   :  { %v982_v32 = vpop.f32.mrf.mxu1  ;;  %v1237_v33 = vpop.f32.mrf.mxu3 }
 0x1ad   :  { %v1375_v34 = vmax.f32 %v1109_v31, 0.0  ;;  %v983_v35 = vadd.f32 %v2889_v2, %v982_v32  ;;  %v1238_v36 = vadd.f32 %v2889_v2, %v1237_v33 }
 0x1ae   :  { %v856_v37 = vpop.f32.mrf.mxu0 }
 0x1af   :  { %1545 = vst.msk [vmem:[%s3392_s3 + $0x3c0] sm:$0xff] %vm1424_vm2, %v1375_v34  ;;  %v1333_v38 = vmax.f32 %v983_v35, 0.0  ;;  %v857_v39 = vadd.f32 %v2889_v2, %v856_v37  ;;  %v1418_v40 = vmax.f32 %v1238_v36, 0.0 }
 0x1b1   :  { %1503 = vst.msk [vmem:[%s3392_s3 + $0x270] sm:$0xff] %vm1424_vm2, %v1333_v38  ;;  %v1291_v41 = vmax.f32 %v857_v39, 0.0 }
 0x1b2   :  { %v1111_v42 = vpop.f32.mrf.mxu2  ;;  %1588 = vst.msk [vmem:[%s3392_s3 + $0x518] sm:$0xff] %vm1424_vm2, %v1418_v40 }
 0x1b3   :  { %v1112_v43 = vadd.f32 %v2889_v2, %v1111_v42  ;;  %1461 = vst.msk [vmem:[%s3392_s3 + $0x120] sm:$0xff] %vm1424_vm2, %v1291_v41 }
 0x1b4   :  { %v985_v44 = vpop.f32.mrf.mxu1  ;;  %v1240_v45 = vpop.f32.mrf.mxu3 }
 0x1b5   :  { %v1376_v46 = vmax.f32 %v1112_v43, 0.0  ;;  %v986_v47 = vadd.f32 %v2889_v2, %v985_v44  ;;  %v1241_v48 = vadd.f32 %v2889_v2, %v1240_v45 }
 0x1b6   :  { %v859_v49 = vpop.f32.mrf.mxu0 }
 0x1b7   :  { %1546 = vst.msk [vmem:[%s3392_s3 + $0x3c8] sm:$0xff] %vm1424_vm2, %v1376_v46  ;;  %v1334_v50 = vmax.f32 %v986_v47, 0.0  ;;  %v860_v51 = vadd.f32 %v2889_v2, %v859_v49  ;;  %v1419_v52 = vmax.f32 %v1241_v48, 0.0 }
 0x1b9   :  { %1504 = vst.msk [vmem:[%s3392_s3 + $0x278] sm:$0xff] %vm1424_vm2, %v1334_v50  ;;  %v1292_v53 = vmax.f32 %v860_v51, 0.0 }
 0x1ba   :  { %v1114_v54 = vpop.f32.mrf.mxu2  ;;  %1589 = vst.msk [vmem:[%s3392_s3 + $0x520] sm:$0xff] %vm1424_vm2, %v1419_v52 }
 0x1bb   :  { %v1115_v55 = vadd.f32 %v2889_v2, %v1114_v54  ;;  %1462 = vst.msk [vmem:[%s3392_s3 + $0x128] sm:$0xff] %vm1424_vm2, %v1292_v53 }
 0x1bc   :  { %v988_v56 = vpop.f32.mrf.mxu1  ;;  %v1243_v57 = vpop.f32.mrf.mxu3 }
 0x1bd   :  { %v1377_v58 = vmax.f32 %v1115_v55, 0.0  ;;  %v989_v59 = vadd.f32 %v2889_v2, %v988_v56  ;;  %v1244_v60 = vadd.f32 %v2889_v2, %v1243_v57 }
 0x1be   :  { %v862_v61 = vpop.f32.mrf.mxu0 }
 0x1bf   :  { %1547 = vst.msk [vmem:[%s3392_s3 + $0x3d0] sm:$0xff] %vm1424_vm2, %v1377_v58  ;;  %v1335_v62 = vmax.f32 %v989_v59, 0.0  ;;  %v863_v63 = vadd.f32 %v2889_v2, %v862_v61  ;;  %v1420_v0 = vmax.f32 %v1244_v60, 0.0 }
 0x1c1   :  { %1505 = vst.msk [vmem:[%s3392_s3 + $0x280] sm:$0xff] %vm1424_vm2, %v1335_v62  ;;  %v1293_v1 = vmax.f32 %v863_v63, 0.0 }
 0x1c2   :  { %v1117_v3 = vpop.f32.mrf.mxu2  ;;  %1590 = vst.msk [vmem:[%s3392_s3 + $0x528] sm:$0xff] %vm1424_vm2, %v1420_v0 }
 0x1c3   :  { %v1118_v4 = vadd.f32 %v2889_v2, %v1117_v3  ;;  %1463 = vst.msk [vmem:[%s3392_s3 + $0x130] sm:$0xff] %vm1424_vm2, %v1293_v1 }
 0x1c4   :  { %v991_v5 = vpop.f32.mrf.mxu1  ;;  %v1246_v6 = vpop.f32.mrf.mxu3 }
 0x1c5   :  { %v1378_v7 = vmax.f32 %v1118_v4, 0.0  ;;  %v992_v8 = vadd.f32 %v2889_v2, %v991_v5  ;;  %v1247_v9 = vadd.f32 %v2889_v2, %v1246_v6 }
 0x1c6   :  { %v865_v10 = vpop.f32.mrf.mxu0 }
 0x1c7   :  { %1548 = vst.msk [vmem:[%s3392_s3 + $0x3d8] sm:$0xff] %vm1424_vm2, %v1378_v7  ;;  %v1336_v11 = vmax.f32 %v992_v8, 0.0  ;;  %v866_v12 = vadd.f32 %v2889_v2, %v865_v10  ;;  %v1421_v13 = vmax.f32 %v1247_v9, 0.0 }
 0x1c9   :  { %1506 = vst.msk [vmem:[%s3392_s3 + $0x288] sm:$0xff] %vm1424_vm2, %v1336_v11  ;;  %v1294_v14 = vmax.f32 %v866_v12, 0.0 }
 0x1ca   :  { %v1120_v15 = vpop.f32.mrf.mxu2  ;;  %1591 = vst.msk [vmem:[%s3392_s3 + $0x530] sm:$0xff] %vm1424_vm2, %v1421_v13 }
 0x1cb   :  { %v1121_v16 = vadd.f32 %v2889_v2, %v1120_v15  ;;  %1464 = vst.msk [vmem:[%s3392_s3 + $0x138] sm:$0xff] %vm1424_vm2, %v1294_v14 }
 0x1cc   :  { %v994_v17 = vpop.f32.mrf.mxu1  ;;  %v1249_v18 = vpop.f32.mrf.mxu3 }
 0x1cd   :  { %v1379_v19 = vmax.f32 %v1121_v16, 0.0  ;;  %v995_v20 = vadd.f32 %v2889_v2, %v994_v17  ;;  %v1250_v21 = vadd.f32 %v2889_v2, %v1249_v18 }
 0x1ce   :  { %v868_v22 = vpop.f32.mrf.mxu0 }
 0x1cf   :  { %1549 = vst.msk [vmem:[%s3392_s3 + $0x3e0] sm:$0xff] %vm1424_vm2, %v1379_v19  ;;  %v1337_v23 = vmax.f32 %v995_v20, 0.0  ;;  %v869_v24 = vadd.f32 %v2889_v2, %v868_v22  ;;  %v1422_v25 = vmax.f32 %v1250_v21, 0.0 }
 0x1d1   :  { %1507 = vst.msk [vmem:[%s3392_s3 + $0x290] sm:$0xff] %vm1424_vm2, %v1337_v23  ;;  %v1295_v26 = vmax.f32 %v869_v24, 0.0 }
 0x1d2   :  { %v1123_v27 = vpop.f32.mrf.mxu2  ;;  %1592 = vst.msk [vmem:[%s3392_s3 + $0x538] sm:$0xff] %vm1424_vm2, %v1422_v25 }
 0x1d3   :  { %v1124_v28 = vadd.f32 %v2889_v2, %v1123_v27  ;;  %1465 = vst.msk [vmem:[%s3392_s3 + $0x140] sm:$0xff] %vm1424_vm2, %v1295_v26 }
 0x1d4   :  { %v997_v29 = vpop.f32.mrf.mxu1  ;;  %v1252_v30 = vpop.f32.mrf.mxu3 }
 0x1d5   :  { %v1380_v31 = vmax.f32 %v1124_v28, 0.0  ;;  %v998_v32 = vadd.f32 %v2889_v2, %v997_v29  ;;  %v1253_v33 = vadd.f32 %v2889_v2, %v1252_v30 }
 0x1d6   :  { %v871_v34 = vpop.f32.mrf.mxu0 }
 0x1d7   :  { %1550 = vst.msk [vmem:[%s3392_s3 + $0x3e8] sm:$0xff] %vm1424_vm2, %v1380_v31  ;;  %v1338_v35 = vmax.f32 %v998_v32, 0.0  ;;  %v872_v36 = vadd.f32 %v2889_v2, %v871_v34  ;;  %v1423_v37 = vmax.f32 %v1253_v33, 0.0 }
 0x1d9   :  { %1508 = vst.msk [vmem:[%s3392_s3 + $0x298] sm:$0xff] %vm1424_vm2, %v1338_v35  ;;  %v1296_v38 = vmax.f32 %v872_v36, 0.0 }
 0x1da   :  { %v1126_v39 = vpop.f32.mrf.mxu2  ;;  %1593 = vst.msk [vmem:[%s3392_s3 + $0x540] sm:$0xff] %vm1424_vm2, %v1423_v37 }
 0x1db   :  { %v1127_v40 = vadd.f32 %v2889_v2, %v1126_v39  ;;  %1466 = vst.msk [vmem:[%s3392_s3 + $0x148] sm:$0xff] %vm1424_vm2, %v1296_v38 }
 0x1dc   :  { %v1000_v41 = vpop.f32.mrf.mxu1 }
 0x1dd   :  { %v1381_v42 = vmax.f32 %v1127_v40, 0.0  ;;  %v1001_v43 = vadd.f32 %v2889_v2, %v1000_v41 }
 0x1df   :  { %1551 = vst.msk [vmem:[%s3392_s3 + $0x3f0] sm:$0xff] %vm1424_vm2, %v1381_v42  ;;  %v1339_v44 = vmax.f32 %v1001_v43, 0.0 }
 0x1e1   :  { %1509 = vst.msk [vmem:[%s3392_s3 + $0x2a0] sm:$0xff] %vm1424_vm2, %v1339_v44 }
 0x1e2   :  { %v1129_v45 = vpop.f32.mrf.mxu2 }
 0x1e3   :  { %v1130_v46 = vadd.f32 %v2889_v2, %v1129_v45 }
 0x1e5   :  { %v1382_v47 = vmax.f32 %v1130_v46, 0.0 }
 0x1e7   :  { %1552 = vst.msk [vmem:[%s3392_s3 + $0x3f8] sm:$0xff] %vm1424_vm2, %v1382_v47 }
 0x1e8   :  { %1598 = vsyncpa [#allocation3], 1 }
 0x1e9   :  { %1599 = vsyncpa [#allocation5], 1 }

// kernel: net_forward.5
= control target key start
LH: loop header
LB: loop body
LE: loop exit
PB: predicated region body
PF: predicated region fallthrough
CT: control target
= control target key end

     0   :  { %10 = vsyncpa [#allocation4], 0  ;;  %s2650_s18 = smov 0   ;;  %s2919_s0 = inlined_call_operand.vmem [shape: f32[2,9216], index: 0, kind: input, shape index: {}]   ;;  %s2920_s1 = inlined_call_operand.vmem [shape: bf16[9216,128], index: 1, kind: input, shape index: {}]   ;;  %s2921_s2 = inlined_call_operand.vmem [shape: f32[1,128], index: 2, kind: input, shape index: {}]   ;;  %s2922_s3 = inlined_call_operand.vmem [shape: f32[128,10], index: 3, kind: input, shape index: {}]   ;;  %s2923_s4 = inlined_call_operand.vmem [shape: f32[1,10], index: 4, kind: input, shape index: {}]   ;;  %s2924_s5 = inlined_call_operand.hbm [shape: f32[2,10], index: 5, kind: output, shape index: {}]  }
   0x1 LB: > { %s2656_s19 = sadd.s32 4294967295, %s2616_s18   ;;  %p1827_p0 = scmp.ge.s32.totalorder %s2616_s18, 1  ;;  %s2616_s18 = sphi %s2650_s18, %s16_s18  }
   0x2   : > { %p195_p1 = scmp.lt.s32.totalorder %s2616_s18, 5 }
   0x4   : > { %p196_p2 = pnand %p1827_p0, %p195_p1 }
   0x5   : > { %s223_s20 = smul.u32 (!%p196_p2), 18, %s2656_s19  ;;  %p1830_p5 = scmp.ne.s32.totalorder (!%p196_p2), %s2656_s19, 0 }
   0x6   : > { %199 = sbr.rel (%p196_p2) target bundleno = 738 (0x2e2), region = 40 }
   0x7   : > { %s229_s21 = smul.u32 (!%p196_p2), 288, %s2656_s19  ;;  %p224_p3 = scmp.lt.s32.totalorder (!%p196_p2), %s223_s20, 71 }
   0x9   : > { %p230_p4 = scmp.lt.s32.totalorder (!%p196_p2), %s229_s21, 1151 }
   0xb   : > { %s2926_s20 = smov (!%p224_p3, %s223_s20), 71  ;;  %s2928_s21 = smov (!%p230_p4, %s229_s21), 1151 }
   0xc   : > { %s1828_s22 = sshll.u32 %s2926_s20, 1  ;;  %s1829_s26 = sshll.u32 %s2928_s21, 2 }
   0xd   : > { %s2665_s25 = scalar_lea.vmem %s2919_s0, %s1828_s22  ;;  %s2670_s29 = scalar_lea.vmem %s2920_s1, %s1829_s26 }
   0xe   : > { %238 = sbr.rel (%p1830_p5) target bundleno = 21 (0x15), region = 44 }
  0x13   : > { %v2618_v0 = vmov 0.0  }
  0x14   : > { %239 = vst [vmem:[#allocation2] sm:$0x3] %v2618_v0 }
  0x15 PF: > { %v2419_v1 = vld [vmem:[%s2670_s29 + $0x38] sm:$0xff]  ;;  %v2418_v5 = vld [vmem:[%s2670_s29 + $0x30] sm:$0xff]  ;;  %v2417_v9 = vld [vmem:[%s2670_s29 + $0x28] sm:$0xff]  ;;  %p2407_p6 = scmp.ne.s32.totalorder %s2656_s19, 3 }
  0x16   : > { %v2427_v2 = vld [vmem:[%s2670_s29 + $0x78] sm:$0xff]  ;;  %1463 = vmatpush.bf16.msra.mxu0 %v2419_v1  ;;  %v2426_v6 = vld [vmem:[%s2670_s29 + $0x70] sm:$0xff]  ;;  %v2425_v10 = vld [vmem:[%s2670_s29 + $0x68] sm:$0xff] }
  0x17   : > { %v2435_v3 = vld [vmem:[%s2670_s29 + $0xb8] sm:$0xff]  ;;  %1476 = vmatpush.bf16.msra.mxu1 %v2427_v2  ;;  %v2434_v7 = vld [vmem:[%s2670_s29 + $0xb0] sm:$0xff]  ;;  %v2433_v11 = vld [vmem:[%s2670_s29 + $0xa8] sm:$0xff] }
  0x18   : > { %v2443_v4 = vld [vmem:[%s2670_s29 + $0xf8] sm:$0xff]  ;;  %1489 = vmatpush.bf16.msra.mxu2 %v2435_v3  ;;  %v2442_v8 = vld [vmem:[%s2670_s29 + $0xf0] sm:$0xff]  ;;  %v2441_v12 = vld [vmem:[%s2670_s29 + $0xe8] sm:$0xff] }
  0x19   : > { %1502 = vmatpush.bf16.msra.mxu3 %v2443_v4  ;;  %v2416_v13 = vld [vmem:[%s2670_s29 + $0x20] sm:$0xff]  ;;  %v2415_v17 = vld [vmem:[%s2670_s29 + $0x18] sm:$0xff]  ;;  %v2414_v22 = vld [vmem:[%s2670_s29 + $0x10] sm:$0xff] }
  0x1a   : > { %1464 = vmatpush.bf16.msra.mxu0 %v2418_v5  ;;  %v2424_v14 = vld [vmem:[%s2670_s29 + $0x60] sm:$0xff]  ;;  %v2423_v18 = vld [vmem:[%s2670_s29 + $0x58] sm:$0xff]  ;;  %v2422_v23 = vld [vmem:[%s2670_s29 + $0x50] sm:$0xff] }
  0x1b   : > { %1477 = vmatpush.bf16.msra.mxu1 %v2426_v6  ;;  %v2432_v15 = vld [vmem:[%s2670_s29 + $0xa0] sm:$0xff]  ;;  %v2431_v19 = vld [vmem:[%s2670_s29 + $0x98] sm:$0xff]  ;;  %v2430_v24 = vld [vmem:[%s2670_s29 + $0x90] sm:$0xff] }
  0x1c   : > { %1490 = vmatpush.bf16.msra.mxu2 %v2434_v7  ;;  %v2440_v16 = vld [vmem:[%s2670_s29 + $0xe0] sm:$0xff]  ;;  %v2439_v20 = vld [vmem:[%s2670_s29 + $0xd8] sm:$0xff]  ;;  %v2438_v25 = vld [vmem:[%s2670_s29 + $0xd0] sm:$0xff] }
  0x1d   : > { %1503 = vmatpush.bf16.msra.mxu3 %v2442_v8  ;;  %v241_v21 = vld [vmem:[%s2665_s25] sm:$0xff]  ;;  %v2413_v26 = vld [vmem:[%s2670_s29 + $0x8] sm:$0xff]  ;;  %v243_v33 = vld [vmem:[%s2665_s25 + $0x10] sm:$0xff] }
  0x1e   : > { %1465 = vmatpush.bf16.msra.mxu0 %v2417_v9  ;;  %251 = vst [vmem:[#allocation1] ss:$4 sm:$0xff] %v241_v21  ;;  %v2421_v27 = vld [vmem:[%s2670_s29 + $0x48] sm:$0xff]  ;;  %v2412_v31 = vld [vmem:[%s2670_s29] sm:$0xff]  ;;  %v2451_v39 = vld [vmem:[%s2670_s29 + $0x138] sm:$0xff] }
  0x1f   : > { %1478 = vmatpush.bf16.msra.mxu1 %v2425_v10  ;;  %v2429_v28 = vld [vmem:[%s2670_s29 + $0x88] sm:$0xff]  ;;  %v2420_v32 = vld [vmem:[%s2670_s29 + $0x40] sm:$0xff]  ;;  %v2459_v40 = vld [vmem:[%s2670_s29 + $0x178] sm:$0xff] }
  0x20   : > { %1491 = vmatpush.bf16.msra.mxu2 %v2433_v11  ;;  %v2437_v29 = vld [vmem:[%s2670_s29 + $0xc8] sm:$0xff]  ;;  %v2428_v38 = vld [vmem:[%s2670_s29 + $0x80] sm:$0xff]  ;;  %v2467_v41 = vld [vmem:[%s2670_s29 + $0x1b8] sm:$0xff] }
  0x21   : > { %1504 = vmatpush.bf16.msra.mxu3 %v2441_v12  ;;  %v242_v30 = vld [vmem:[%s2665_s25 + $0x8] sm:$0xff]  ;;  %v2436_v42 = vld [vmem:[%s2670_s29 + $0xc0] sm:$0xff]  ;;  %v2475_v44 = vld [vmem:[%s2670_s29 + $0x1f8] sm:$0xff] }
  0x22   : > { %1466 = vmatpush.bf16.msra.mxu0 %v2416_v13  ;;  %253 = vst [vmem:[#allocation1 + $0x20] ss:$4 sm:$0xff] %v242_v30  ;;  %v2450_v46 = vld [vmem:[%s2670_s29 + $0x130] sm:$0xff]  ;;  %v2449_v55 = vld [vmem:[%s2670_s29 + $0x128] sm:$0xff]  ;;  %v244_v56 = vld [vmem:[%s2665_s25 + $0x18] sm:$0xff] }
  0x23   : > { %1479 = vmatpush.bf16.msra.mxu1 %v2424_v14  ;;  %v2458_v48 = vld [vmem:[%s2670_s29 + $0x170] sm:$0xff]  ;;  %v2457_v58 = vld [vmem:[%s2670_s29 + $0x168] sm:$0xff]  ;;  %v2448_v61 = vld [vmem:[%s2670_s29 + $0x120] sm:$0xff] }
  0x24   : > { %1492 = vmatpush.bf16.msra.mxu2 %v2432_v15  ;;  %v2466_v49 = vld [vmem:[%s2670_s29 + $0x1b0] sm:$0xff]  ;;  %v2465_v59 = vld [vmem:[%s2670_s29 + $0x1a8] sm:$0xff]  ;;  %v2456_v62 = vld [vmem:[%s2670_s29 + $0x160] sm:$0xff] }
  0x25   : > { %1505 = vmatpush.bf16.msra.mxu3 %v2440_v16  ;;  %v256_v34 = vld.sshfl [vmem:[#allocation1 + $0x10] sm:$0xff pattern:$0x73625140]  ;;  %v254_v35 = vld.sshfl [vmem:[#allocation1] sm:$0xff pattern:$0x73625140] }
  0x26   : > { %1467 = vmatpush.bf16.msra.mxu0 %v2415_v17  ;;  %v257_v36 = vld.sshfl [vmem:[#allocation1 + $0x18] sm:$0xff pattern:$0x73625140]  ;;  %v255_v37 = vld.sshfl [vmem:[#allocation1 + $0x8] sm:$0xff pattern:$0x73625140]  ;;  %v293_v43 = vpack.c.bf16 %v254_v35, %v254_v35  ;;  %v295_v45 = vpack.c.bf16 %v256_v34, %v256_v34 }
  0x27   : > { %1480 = vmatpush.bf16.msra.mxu1 %v2423_v18  ;;  %262 = vst [vmem:[#allocation1] ss:$4 sm:$0xff] %v243_v33  ;;  %v294_v47 = vpack.c.bf16 %v255_v37, %v255_v37  ;;  %v2474_v50 = vld [vmem:[%s2670_s29 + $0x1f0] sm:$0xff]  ;;  %v296_v51 = vpack.c.bf16 %v257_v36, %v257_v36  ;;  %v2473_v60 = vld [vmem:[%s2670_s29 + $0x1e8] sm:$0xff]  ;;  %v2464_v63 = vld [vmem:[%s2670_s29 + $0x1a0] sm:$0xff] }
  0x28   : > { %1493 = vmatpush.bf16.msra.mxu2 %v2431_v19  ;;  %v2472_v0 = vld [vmem:[%s2670_s29 + $0x1e0] sm:$0xff]  ;;  %v2447_v1 = vld [vmem:[%s2670_s29 + $0x118] sm:$0xff]  ;;  %v2446_v5 = vld [vmem:[%s2670_s29 + $0x110] sm:$0xff] }
  0x29   : > { %1506 = vmatpush.bf16.msra.mxu3 %v2439_v20  ;;  %v2716_v52 = vld.sshfl [vmem:[#allocation1 + $0x30] sm:$0xff pattern:$0x73625140]  ;;  %v2718_v53 = vld.sshfl [vmem:[#allocation1 + $0x20] sm:$0xff pattern:$0x73625140] }
  0x2a   : > { %1468 = vmatpush.bf16.msra.mxu0 %v2414_v22  ;;  %v2720_v54 = vld.sshfl [vmem:[#allocation1 + $0x38] sm:$0xff pattern:$0x73625140]  ;;  %v2724_v57 = vld.sshfl [vmem:[#allocation1 + $0x28] sm:$0xff pattern:$0x73625140]  ;;  %v299_v21 = vpack.c.bf16 %v2716_v52, %v2716_v52 }
  0x2b   : > { %1481 = vmatpush.bf16.msra.mxu1 %v2422_v23  ;;  %263 = vst [vmem:[#allocation1 + $0x20] ss:$4 sm:$0xff] %v244_v56  ;;  %v2455_v2 = vld [vmem:[%s2670_s29 + $0x158] sm:$0xff]  ;;  %v2454_v6 = vld [vmem:[%s2670_s29 + $0x150] sm:$0xff]  ;;  %v2445_v9 = vld [vmem:[%s2670_s29 + $0x108] sm:$0xff]  ;;  %v300_v30 = vpack.c.bf16 %v2720_v54, %v2720_v54 }
  0x2c   : > { %1494 = vmatpush.bf16.msra.mxu2 %v2430_v24  ;;  %v2463_v3 = vld [vmem:[%s2670_s29 + $0x198] sm:$0xff]  ;;  %v2462_v7 = vld [vmem:[%s2670_s29 + $0x190] sm:$0xff]  ;;  %v2453_v10 = vld [vmem:[%s2670_s29 + $0x148] sm:$0xff]  ;;  %v297_v24 = vpack.c.bf16 %v2718_v53, %v2718_v53 }
  0x2d   : > { %1507 = vmatpush.bf16.msra.mxu3 %v2438_v25  ;;  %v2471_v4 = vld [vmem:[%s2670_s29 + $0x1d8] sm:$0xff]  ;;  %v2470_v8 = vld [vmem:[%s2670_s29 + $0x1d0] sm:$0xff]  ;;  %v2461_v11 = vld [vmem:[%s2670_s29 + $0x188] sm:$0xff]  ;;  %v298_v25 = vpack.c.bf16 %v2724_v57, %v2724_v57 }
  0x2e   : > { %1469 = vmatpush.bf16.msra.mxu0 %v2413_v26  ;;  %v2469_v12 = vld [vmem:[%s2670_s29 + $0x1c8] sm:$0xff]  ;;  %v2444_v13 = vld [vmem:[%s2670_s29 + $0x100] sm:$0xff]  ;;  %v2483_v16 = vld [vmem:[%s2670_s29 + $0x238] sm:$0xff] }
  0x2f   : > { %1482 = vmatpush.bf16.msra.mxu1 %v2421_v27  ;;  %v2452_v14 = vld [vmem:[%s2670_s29 + $0x140] sm:$0xff]  ;;  %v2491_v17 = vld [vmem:[%s2670_s29 + $0x278] sm:$0xff]  ;;  %v2482_v22 = vld [vmem:[%s2670_s29 + $0x230] sm:$0xff] }
  0x30   : > { %1495 = vmatpush.bf16.msra.mxu2 %v2429_v28  ;;  %v2460_v15 = vld [vmem:[%s2670_s29 + $0x180] sm:$0xff]  ;;  %v2499_v18 = vld [vmem:[%s2670_s29 + $0x2b8] sm:$0xff]  ;;  %v2490_v23 = vld [vmem:[%s2670_s29 + $0x270] sm:$0xff] }
  0x31   : > { %1508 = vmatpush.bf16.msra.mxu3 %v2437_v29  ;;  %v2468_v19 = vld [vmem:[%s2670_s29 + $0x1c0] sm:$0xff]  ;;  %v2507_v20 = vld [vmem:[%s2670_s29 + $0x2f8] sm:$0xff]  ;;  %v2763_v27 = vld.sshfl [vmem:[#allocation1 + $0x10] sm:$0xff pattern:$0x73625140] }
  0x32   : > { %1470 = vmatpush.bf16.msra.mxu0 %v2412_v31  ;;  %v2761_v26 = vld.sshfl [vmem:[#allocation1] sm:$0xff pattern:$0x73625140]  ;;  %v2765_v28 = vld.sshfl [vmem:[#allocation1 + $0x8] sm:$0xff pattern:$0x73625140] }
  0x33   : > { %1483 = vmatpush.bf16.msra.mxu1 %v2420_v32  ;;  %v2498_v29 = vld [vmem:[%s2670_s29 + $0x2b0] sm:$0xff]  ;;  %v245_v31 = vld [vmem:[%s2665_s25 + $0x20] sm:$0xf]  ;;  %v2771_v32 = vld.sshfl [vmem:[#allocation1 + $0x18] sm:$0xff pattern:$0x73625140] }
  0x34   : > { %1496 = vmatpush.bf16.msra.mxu2 %v2428_v38  ;;  %v2506_v33 = vld [vmem:[%s2670_s29 + $0x2f0] sm:$0xff]  ;;  %272 = vst [vmem:[#allocation1] ss:$4 sm:$0xff] %v245_v31  ;;  %v2481_v34 = vld [vmem:[%s2670_s29 + $0x228] sm:$0xff]  ;;  %v2480_v38 = vld [vmem:[%s2670_s29 + $0x220] sm:$0xff] }
  0x35   : > { %1509 = vmatpush.bf16.msra.mxu3 %v2436_v42  ;;  %1471 = vmatmul.bf16.vlgmr.msra.gmra.mxu0 %v293_v43  ;;  %v2489_v35 = vld [vmem:[%s2670_s29 + $0x268] sm:$0xff]  ;;  %v2479_v42 = vld [vmem:[%s2670_s29 + $0x218] sm:$0xff]  ;;  %v2476_v54 = vld [vmem:[%s2670_s29 + $0x200] sm:$0xff] }
  0x36   : > { %1515 = vmatpush.bf16.msrb.mxu0 %v2451_v39  ;;  %1484 = vmatmul.bf16.vlgmr.msra.gmra.mxu1 %v294_v47  ;;  %v2497_v36 = vld [vmem:[%s2670_s29 + $0x2a8] sm:$0xff]  ;;  %v2488_v39 = vld [vmem:[%s2670_s29 + $0x260] sm:$0xff]  ;;  %v2487_v43 = vld [vmem:[%s2670_s29 + $0x258] sm:$0xff] }
  0x37   : > { %1528 = vmatpush.bf16.msrb.mxu1 %v2459_v40  ;;  %1497 = vmatmul.bf16.vlgmr.msra.gmra.mxu2 %v295_v45  ;;  %v2505_v37 = vld [vmem:[%s2670_s29 + $0x2e8] sm:$0xff]  ;;  %v2496_v40 = vld [vmem:[%s2670_s29 + $0x2a0] sm:$0xff]  ;;  %v2503_v45 = vld [vmem:[%s2670_s29 + $0x2d8] sm:$0xff] }
  0x38   : > { %1541 = vmatpush.bf16.msrb.mxu2 %v2467_v41  ;;  %1510 = vmatmul.bf16.vlgmr.msra.gmra.mxu3 %v296_v51  ;;  %v2504_v41 = vld [vmem:[%s2670_s29 + $0x2e0] sm:$0xff]  ;;  %v2486_v47 = vld [vmem:[%s2670_s29 + $0x250] sm:$0xff]  ;;  %v2485_v51 = vld [vmem:[%s2670_s29 + $0x248] sm:$0xff] }
  0x39   : > { %1554 = vmatpush.bf16.msrb.mxu3 %v2475_v44  ;;  %v2495_v44 = vld [vmem:[%s2670_s29 + $0x298] sm:$0xff]  ;;  %v2493_v52 = vld [vmem:[%s2670_s29 + $0x288] sm:$0xff]  ;;  %v2492_v56 = vld [vmem:[%s2670_s29 + $0x280] sm:$0xff] }
  0x3a   : > { %1516 = vmatpush.bf16.msrb.mxu0 %v2450_v46  ;;  %v2478_v46 = vld [vmem:[%s2670_s29 + $0x210] sm:$0xff]  ;;  %v2501_v53 = vld [vmem:[%s2670_s29 + $0x2c8] sm:$0xff]  ;;  %v2515_v57 = vld [vmem:[%s2670_s29 + $0x338] sm:$0xff] }
  0x3b   : > { %1529 = vmatpush.bf16.msrb.mxu1 %v2458_v48  ;;  %v2494_v48 = vld [vmem:[%s2670_s29 + $0x290] sm:$0xff]  ;;  %v2524_v31 = vld [vmem:[%s2670_s29 + $0x380] sm:$0xff] }
  0x3c   : > { %1542 = vmatpush.bf16.msrb.mxu2 %v2466_v49  ;;  %v2502_v49 = vld [vmem:[%s2670_s29 + $0x2d0] sm:$0xff] }
  0x3d   : > { %1555 = vmatpush.bf16.msrb.mxu3 %v2474_v50  ;;  %v2477_v50 = vld [vmem:[%s2670_s29 + $0x208] sm:$0xff] }
  0x3e   : > { %1517 = vmatpush.bf16.msrb.mxu0 %v2449_v55  ;;  %v2484_v55 = vld [vmem:[%s2670_s29 + $0x240] sm:$0xff] }
  0x3f   : > { %1530 = vmatpush.bf16.msrb.mxu1 %v2457_v58  ;;  %v2523_v58 = vld [vmem:[%s2670_s29 + $0x378] sm:$0xff] }
  0x40   : > { %1543 = vmatpush.bf16.msrb.mxu2 %v2465_v59  ;;  %v2531_v59 = vld [vmem:[%s2670_s29 + $0x3b8] sm:$0xff] }
  0x41   : > { %1556 = vmatpush.bf16.msrb.mxu3 %v2473_v60  ;;  %v2500_v60 = vld [vmem:[%s2670_s29 + $0x2c0] sm:$0xff] }
  0x42   : > { %1518 = vmatpush.bf16.msrb.mxu0 %v2448_v61  ;;  %v301_v61 = vpack.c.bf16 %v2761_v26, %v2761_v26  ;;  %v2508_v26 = vld [vmem:[%s2670_s29 + $0x300] sm:$0xff] }
  0x43   : > { %1531 = vmatpush.bf16.msrb.mxu1 %v2456_v62  ;;  %v303_v62 = vpack.c.bf16 %v2763_v27, %v2763_v27  ;;  %v268_v27 = vld.sshfl [vmem:[#allocation1 + $0x20] sm:$0xff pattern:$0x73625140] }
  0x44   : > { %1544 = vmatpush.bf16.msrb.mxu2 %v2464_v63  ;;  %v2539_v63 = vld [vmem:[%s2670_s29 + $0x3f8] sm:$0xff] }
  0x45   : > { %1557 = vmatpush.bf16.msrb.mxu3 %v2472_v0  ;;  %v302_v0 = vpack.c.bf16 %v2765_v28, %v2765_v28  ;;  %v2516_v28 = vld [vmem:[%s2670_s29 + $0x340] sm:$0xff] }
  0x46   : > { %1519 = vmatpush.bf16.msrb.mxu0 %v2447_v1  ;;  %v2514_v1 = vld [vmem:[%s2670_s29 + $0x330] sm:$0xff] }
  0x47   : > { %1532 = vmatpush.bf16.msrb.mxu1 %v2455_v2  ;;  %v304_v2 = vpack.c.bf16 %v2771_v32, %v2771_v32  ;;  %v2555_v32 = vld [vmem:[%s2670_s29 + $0x478] sm:$0xff] }
  0x48   : > { %1545 = vmatpush.bf16.msrb.mxu2 %v2463_v3  ;;  %v2522_v3 = vld [vmem:[%s2670_s29 + $0x370] sm:$0xff] }
  0x49   : > { %1558 = vmatpush.bf16.msrb.mxu3 %v2471_v4  ;;  %v2530_v4 = vld [vmem:[%s2670_s29 + $0x3b0] sm:$0xff] }
  0x4a   : > { %1520 = vmatpush.bf16.msrb.mxu0 %v2446_v5  ;;  %v2538_v5 = vld [vmem:[%s2670_s29 + $0x3f0] sm:$0xff] }
  0x4b   : > { %1533 = vmatpush.bf16.msrb.mxu1 %v2454_v6  ;;  %v2513_v6 = vld [vmem:[%s2670_s29 + $0x328] sm:$0xff] }
  0x4c   : > { %1546 = vmatpush.bf16.msrb.mxu2 %v2462_v7  ;;  %v2521_v7 = vld [vmem:[%s2670_s29 + $0x368] sm:$0xff] }
  0x4d   : > { %1559 = vmatpush.bf16.msrb.mxu3 %v2470_v8  ;;  %v2529_v8 = vld [vmem:[%s2670_s29 + $0x3a8] sm:$0xff] }
  0x4e   : > { %1521 = vmatpush.bf16.msrb.mxu0 %v2445_v9  ;;  %v2537_v9 = vld [vmem:[%s2670_s29 + $0x3e8] sm:$0xff] }
  0x4f   : > { %1534 = vmatpush.bf16.msrb.mxu1 %v2453_v10  ;;  %v2512_v10 = vld [vmem:[%s2670_s29 + $0x320] sm:$0xff] }
  0x50   : > { %1547 = vmatpush.bf16.msrb.mxu2 %v2461_v11  ;;  %v2520_v11 = vld [vmem:[%s2670_s29 + $0x360] sm:$0xff] }
  0x51   : > { %1560 = vmatpush.bf16.msrb.mxu3 %v2469_v12  ;;  %v2528_v12 = vld [vmem:[%s2670_s29 + $0x3a0] sm:$0xff] }
  0x52   : > { %1522 = vmatpush.bf16.msrb.mxu0 %v2444_v13  ;;  %v2536_v13 = vld [vmem:[%s2670_s29 + $0x3e0] sm:$0xff] }
  0x53   : > { %1535 = vmatpush.bf16.msrb.mxu1 %v2452_v14  ;;  %v2511_v14 = vld [vmem:[%s2670_s29 + $0x318] sm:$0xff] }
  0x54   : > { %1548 = vmatpush.bf16.msrb.mxu2 %v2460_v15  ;;  %v2519_v15 = vld [vmem:[%s2670_s29 + $0x358] sm:$0xff] }
  0x55   : > { %1561 = vmatpush.bf16.msrb.mxu3 %v2468_v19  ;;  %1523 = vmatmul.bf16.vlgmr.msrb.gmra.mxu0 %v297_v24  ;;  %v2518_v19 = vld [vmem:[%s2670_s29 + $0x350] sm:$0xff]  ;;  %v2525_v24 = vld [vmem:[%s2670_s29 + $0x388] sm:$0xff] }
  0x56   : > { %1567 = vmatpush.bf16.msra.mxu0 %v2483_v16  ;;  %1536 = vmatmul.bf16.vlgmr.msrb.gmra.mxu1 %v298_v25  ;;  %v2527_v16 = vld [vmem:[%s2670_s29 + $0x398] sm:$0xff]  ;;  %v2533_v25 = vld [vmem:[%s2670_s29 + $0x3c8] sm:$0xff] }
  0x57   : > { %1580 = vmatpush.bf16.msra.mxu1 %v2491_v17  ;;  %1549 = vmatmul.bf16.vlgmr.msrb.gmra.mxu2 %v299_v21  ;;  %v2535_v17 = vld [vmem:[%s2670_s29 + $0x3d8] sm:$0xff]  ;;  %v2534_v21 = vld [vmem:[%s2670_s29 + $0x3d0] sm:$0xff] }
  0x58   : > { %1593 = vmatpush.bf16.msra.mxu2 %v2499_v18  ;;  %1562 = vmatmul.bf16.vlgmr.msrb.gmra.mxu3 %v300_v30  ;;  %v2510_v18 = vld [vmem:[%s2670_s29 + $0x310] sm:$0xff]  ;;  %v269_v30 = vld.sshfl [vmem:[#allocation1 + $0x28] sm:$0xff pattern:$0x73625140] }
  0x59   : > { %1606 = vmatpush.bf16.msra.mxu3 %v2507_v20  ;;  %v2526_v20 = vld [vmem:[%s2670_s29 + $0x390] sm:$0xff] }
  0x5a   : > { %1568 = vmatpush.bf16.msra.mxu0 %v2482_v22  ;;  %v2509_v22 = vld [vmem:[%s2670_s29 + $0x308] sm:$0xff] }
  0x5b   : > { %1581 = vmatpush.bf16.msra.mxu1 %v2490_v23  ;;  %v2517_v23 = vld [vmem:[%s2670_s29 + $0x348] sm:$0xff] }
  0x5c   : > { %1594 = vmatpush.bf16.msra.mxu2 %v2498_v29  ;;  %v2547_v29 = vld [vmem:[%s2670_s29 + $0x438] sm:$0xff] }
  0x5d   : > { %1607 = vmatpush.bf16.msra.mxu3 %v2506_v33  ;;  %v270_v33 = vld.sshfl [vmem:[#allocation1 + $0x30] sm:$0xff pattern:$0x73625140] }
  0x5e   : > { %1569 = vmatpush.bf16.msra.mxu0 %v2481_v34  ;;  %v2532_v34 = vld [vmem:[%s2670_s29 + $0x3c0] sm:$0xff] }
  0x5f   : > { %1582 = vmatpush.bf16.msra.mxu1 %v2489_v35  ;;  %v305_v35 = vpack.c.bf16 %v268_v27, %v268_v27 }
  0x60   : > { %1595 = vmatpush.bf16.msra.mxu2 %v2497_v36  ;;  %v271_v36 = vld.sshfl [vmem:[#allocation1 + $0x38] sm:$0xff pattern:$0x73625140] }
  0x61   : > { %1608 = vmatpush.bf16.msra.mxu3 %v2505_v37  ;;  %v306_v37 = vpack.c.bf16 %v269_v30, %v269_v30 }
  0x62   : > { %1570 = vmatpush.bf16.msra.mxu0 %v2480_v38  ;;  %v307_v38 = vpack.c.bf16 %v270_v33, %v270_v33 }
  0x63   : > { %1583 = vmatpush.bf16.msra.mxu1 %v2488_v39  ;;  %v2546_v39 = vld [vmem:[%s2670_s29 + $0x430] sm:$0xff] }
  0x64   : > { %1596 = vmatpush.bf16.msra.mxu2 %v2496_v40  ;;  %v308_v40 = vpack.c.bf16 %v271_v36, %v271_v36 }
  0x65   : > { %1609 = vmatpush.bf16.msra.mxu3 %v2504_v41  ;;  %v2554_v41 = vld [vmem:[%s2670_s29 + $0x470] sm:$0xff] }
  0x66   : > { %1571 = vmatpush.bf16.msra.mxu0 %v2479_v42  ;;  %v2545_v42 = vld [vmem:[%s2670_s29 + $0x428] sm:$0xff] }
  0x67   : > { %1584 = vmatpush.bf16.msra.mxu1 %v2487_v43  ;;  %v2553_v43 = vld [vmem:[%s2670_s29 + $0x468] sm:$0xff] }
  0x68   : > { %1597 = vmatpush.bf16.msra.mxu2 %v2495_v44  ;;  %v2544_v44 = vld [vmem:[%s2670_s29 + $0x420] sm:$0xff] }
  0x69   : > { %1610 = vmatpush.bf16.msra.mxu3 %v2503_v45  ;;  %v2552_v45 = vld [vmem:[%s2670_s29 + $0x460] sm:$0xff] }
  0x6a   : > { %1572 = vmatpush.bf16.msra.mxu0 %v2478_v46  ;;  %v2543_v46 = vld [vmem:[%s2670_s29 + $0x418] sm:$0xff] }
  0x6b   : > { %1585 = vmatpush.bf16.msra.mxu1 %v2486_v47  ;;  %v2551_v47 = vld [vmem:[%s2670_s29 + $0x458] sm:$0xff] }
  0x6c   : > { %1598 = vmatpush.bf16.msra.mxu2 %v2494_v48  ;;  %v2542_v48 = vld [vmem:[%s2670_s29 + $0x410] sm:$0xff] }
  0x6d   : > { %1611 = vmatpush.bf16.msra.mxu3 %v2502_v49  ;;  %v2550_v49 = vld [vmem:[%s2670_s29 + $0x450] sm:$0xff] }
  0x6e   : > { %1573 = vmatpush.bf16.msra.mxu0 %v2477_v50  ;;  %v2541_v50 = vld [vmem:[%s2670_s29 + $0x408] sm:$0xff] }
  0x6f   : > { %1586 = vmatpush.bf16.msra.mxu1 %v2485_v51  ;;  %v2549_v51 = vld [vmem:[%s2670_s29 + $0x448] sm:$0xff] }
  0x70   : > { %1599 = vmatpush.bf16.msra.mxu2 %v2493_v52  ;;  %v2540_v52 = vld [vmem:[%s2670_s29 + $0x400] sm:$0xff] }
  0x71   : > { %1612 = vmatpush.bf16.msra.mxu3 %v2501_v53  ;;  %v273_v53 = vld.sshfl [vmem:[#allocation1] sm:$0xff pattern:$0x73625140] }
  0x72   : > { %1574 = vmatpush.bf16.msra.mxu0 %v2476_v54  ;;  %v2548_v54 = vld [vmem:[%s2670_s29 + $0x440] sm:$0xff] }
  0x73   : > { %1587 = vmatpush.bf16.msra.mxu1 %v2484_v55  ;;  %v274_v55 = vld.sshfl [vmem:[#allocation1 + $0x8] sm:$0xff pattern:$0x73625140] }
  0x74   : > { %1600 = vmatpush.bf16.msra.mxu2 %v2492_v56  ;;  %v309_v56 = vpack.c.bf16 %v273_v53, %v273_v53 }
  0x75   : > { %1613 = vmatpush.bf16.msra.mxu3 %v2500_v60  ;;  %1575 = vmatmul.bf16.vlgmr.msra.gmra.mxu0 %v301_v61 }
  0x76   : > { %1619 = vmatpush.bf16.msrb.mxu0 %v2515_v57  ;;  %1588 = vmatmul.bf16.vlgmr.msra.gmra.mxu1 %v302_v0  ;;  %v310_v57 = vpack.c.bf16 %v274_v55, %v274_v55 }
  0x77   : > { %1632 = vmatpush.bf16.msrb.mxu1 %v2523_v58  ;;  %1601 = vmatmul.bf16.vlgmr.msra.gmra.mxu2 %v303_v62 }
  0x78   : > { %1645 = vmatpush.bf16.msrb.mxu2 %v2531_v59  ;;  %1614 = vmatmul.bf16.vlgmr.msra.gmra.mxu3 %v304_v2 }
  0x79   : > { %1658 = vmatpush.bf16.msrb.mxu3 %v2539_v63 }
  0x7a   : > { %1620 = vmatpush.bf16.msrb.mxu0 %v2514_v1 }
  0x7b   : > { %1633 = vmatpush.bf16.msrb.mxu1 %v2522_v3 }
  0x7c   : > { %1646 = vmatpush.bf16.msrb.mxu2 %v2530_v4 }
  0x7d   : > { %1659 = vmatpush.bf16.msrb.mxu3 %v2538_v5 }
  0x7e   : > { %1621 = vmatpush.bf16.msrb.mxu0 %v2513_v6 }
  0x7f   : > { %1634 = vmatpush.bf16.msrb.mxu1 %v2521_v7 }
  0x80   : > { %1647 = vmatpush.bf16.msrb.mxu2 %v2529_v8 }
  0x81   : > { %1660 = vmatpush.bf16.msrb.mxu3 %v2537_v9 }
  0x82   : > { %1622 = vmatpush.bf16.msrb.mxu0 %v2512_v10 }
  0x83   : > { %1635 = vmatpush.bf16.msrb.mxu1 %v2520_v11 }
  0x84   : > { %1648 = vmatpush.bf16.msrb.mxu2 %v2528_v12 }
  0x85   : > { %1661 = vmatpush.bf16.msrb.mxu3 %v2536_v13 }
  0x86   : > { %1623 = vmatpush.bf16.msrb.mxu0 %v2511_v14 }
  0x87   : > { %1636 = vmatpush.bf16.msrb.mxu1 %v2519_v15 }
  0x88   : > { %1649 = vmatpush.bf16.msrb.mxu2 %v2527_v16 }
  0x89   : > { %1662 = vmatpush.bf16.msrb.mxu3 %v2535_v17 }
  0x8a   : > { %1624 = vmatpush.bf16.msrb.mxu0 %v2510_v18 }
  0x8b   : > { %1637 = vmatpush.bf16.msrb.mxu1 %v2518_v19 }
  0x8c   : > { %1650 = vmatpush.bf16.msrb.mxu2 %v2526_v20 }
  0x8d   : > { %1663 = vmatpush.bf16.msrb.mxu3 %v2534_v21 }
  0x8e   : > { %1625 = vmatpush.bf16.msrb.mxu0 %v2509_v22 }
  0x8f   : > { %1638 = vmatpush.bf16.msrb.mxu1 %v2517_v23 }
  0x90   : > { %1651 = vmatpush.bf16.msrb.mxu2 %v2525_v24 }
  0x91   : > { %1664 = vmatpush.bf16.msrb.mxu3 %v2533_v25 }
  0x92   : > { %1626 = vmatpush.bf16.msrb.mxu0 %v2508_v26 }
  0x93   : > { %1639 = vmatpush.bf16.msrb.mxu1 %v2516_v28 }
  0x94   : > { %1652 = vmatpush.bf16.msrb.mxu2 %v2524_v31 }
  0x95   : > { %1665 = vmatpush.bf16.msrb.mxu3 %v2532_v34  ;;  %1627 = vmatmul.bf16.vlgmr.msrb.gmra.mxu0 %v305_v35 }
  0x96   : > { %1671 = vmatpush.bf16.msra.mxu0 %v2547_v29  ;;  %1640 = vmatmul.bf16.vlgmr.msrb.gmra.mxu1 %v306_v37 }
  0x97   : > { %1684 = vmatpush.bf16.msra.mxu1 %v2555_v32  ;;  %1653 = vmatmul.bf16.vlgmr.msrb.gmra.mxu2 %v307_v38 }
  0x98   : > { %1666 = vmatmul.bf16.vlgmr.msrb.gmra.mxu3 %v308_v40 }
  0x9a   : > { %1672 = vmatpush.bf16.msra.mxu0 %v2546_v39 }
  0x9b   : > { %1685 = vmatpush.bf16.msra.mxu1 %v2554_v41 }
  0x9e   : > { %1673 = vmatpush.bf16.msra.mxu0 %v2545_v42 }
  0x9f   : > { %1686 = vmatpush.bf16.msra.mxu1 %v2553_v43 }
  0xa2   : > { %1674 = vmatpush.bf16.msra.mxu0 %v2544_v44  ;;  %v240_v44 = vld [vmem:[#allocation2] sm:$0x3] }
  0xa3   : > { %1687 = vmatpush.bf16.msra.mxu1 %v2552_v45 }
  0xa6   : > { %1675 = vmatpush.bf16.msra.mxu0 %v2543_v46 }
  0xa7   : > { %1688 = vmatpush.bf16.msra.mxu1 %v2551_v47 }
  0xaa   : > { %1676 = vmatpush.bf16.msra.mxu0 %v2542_v48 }
  0xab   : > { %1689 = vmatpush.bf16.msra.mxu1 %v2550_v49 }
  0xae   : > { %1677 = vmatpush.bf16.msra.mxu0 %v2541_v50 }
  0xaf   : > { %1690 = vmatpush.bf16.msra.mxu1 %v2549_v51 }
  0xb2   : > { %1678 = vmatpush.bf16.msra.mxu0 %v2540_v52  ;;  %v1472_v58 = vpop.f32.mrf.mxu0 }
  0xb3   : > { %1691 = vmatpush.bf16.msra.mxu1 %v2548_v54  ;;  %v1485_v59 = vpop.f32.mrf.mxu1 }
  0xb4   : > { %v1486_v60 = vadd.f32 %v1485_v59, %v1472_v58 }
  0xb5   : > { %1679 = vmatmul.bf16.vlgmr.msra.gmra.mxu0 %v309_v56 }
  0xb6   : > { %1692 = vmatmul.bf16.vlgmr.msra.gmra.mxu1 %v310_v57 }
  0xba   : > { %v1498_v61 = vpop.f32.mrf.mxu2  ;;  %v1474_v63 = vpop.f32.mrf.mxu0 }
  0xbb   : > { %v1499_v62 = vadd.f32 %v1498_v61, %v1486_v60  ;;  %v1511_v0 = vpop.f32.mrf.mxu3  ;;  %v1487_v1 = vpop.f32.mrf.mxu1 }
  0xbd   : > { %v1512_v2 = vadd.f32 %v1511_v0, %v1499_v62 }
  0xc2   : > { %v1500_v3 = vpop.f32.mrf.mxu2 }
  0xc3   : > { %v1513_v4 = vpop.f32.mrf.mxu3 }
  0xd2   : > { %v1524_v5 = vpop.f32.mrf.mxu0 }
  0xd3   : > { %v1537_v6 = vpop.f32.mrf.mxu1  ;;  %v1525_v21 = vadd.f32 %v1524_v5, %v1512_v2 }
  0xd5   : > { %v1538_v22 = vadd.f32 %v1537_v6, %v1525_v21 }
  0xda   : > { %v1550_v7 = vpop.f32.mrf.mxu2  ;;  %v1526_v9 = vpop.f32.mrf.mxu0 }
  0xdb   : > { %v1563_v8 = vpop.f32.mrf.mxu3  ;;  %v1539_v10 = vpop.f32.mrf.mxu1  ;;  %v1551_v23 = vadd.f32 %v1550_v7, %v1538_v22 }
  0xdd   : > { %v1564_v26 = vadd.f32 %v1563_v8, %v1551_v23 }
  0xe2   : > { %v1552_v11 = vpop.f32.mrf.mxu2 }
  0xe3   : > { %v1565_v12 = vpop.f32.mrf.mxu3 }
  0xf2   : > { %v1576_v13 = vpop.f32.mrf.mxu0 }
  0xf3   : > { %v1589_v14 = vpop.f32.mrf.mxu1  ;;  %v1577_v27 = vadd.f32 %v1576_v13, %v1564_v26 }
  0xf5   : > { %v1590_v32 = vadd.f32 %v1589_v14, %v1577_v27 }
  0xfa   : > { %v1602_v15 = vpop.f32.mrf.mxu2  ;;  %v1578_v16 = vpop.f32.mrf.mxu0 }
  0xfb   : > { %v1615_v17 = vpop.f32.mrf.mxu3  ;;  %v1591_v18 = vpop.f32.mrf.mxu1  ;;  %v1603_v33 = vadd.f32 %v1602_v15, %v1590_v32 }
  0xfd   : > { %v1616_v34 = vadd.f32 %v1615_v17, %v1603_v33 }
 0x102   : > { %v1604_v19 = vpop.f32.mrf.mxu2 }
 0x103   : > { %v1617_v20 = vpop.f32.mrf.mxu3 }
 0x112   : > { %v1628_v24 = vpop.f32.mrf.mxu0 }
 0x113   : > { %v1641_v25 = vpop.f32.mrf.mxu1  ;;  %v1629_v37 = vadd.f32 %v1628_v24, %v1616_v34 }
 0x115   : > { %v1642_v38 = vadd.f32 %v1641_v25, %v1629_v37 }
 0x11a   : > { %v1654_v28 = vpop.f32.mrf.mxu2  ;;  %v1630_v29 = vpop.f32.mrf.mxu0 }
 0x11b   : > { %v1667_v30 = vpop.f32.mrf.mxu3  ;;  %v1643_v31 = vpop.f32.mrf.mxu1  ;;  %v1655_v39 = vadd.f32 %v1654_v28, %v1642_v38 }
 0x11d   : > { %v1668_v40 = vadd.f32 %v1667_v30, %v1655_v39 }
 0x122   : > { %v1656_v35 = vpop.f32.mrf.mxu2 }
 0x123   : > { %v1669_v36 = vpop.f32.mrf.mxu3 }
 0x132   : > { %v1680_v41 = vpop.f32.mrf.mxu0 }
 0x133   : > { %v1681_v42 = vadd.f32 %v1680_v41, %v1668_v40  ;;  %v1693_v43 = vpop.f32.mrf.mxu1 }
 0x135   : > { %v1694_v45 = vadd.f32 %v1693_v43, %v1681_v42 }
 0x137   : > { %v1697_v46 = vadd.f32 %v1694_v45, %v240_v44  ;;  %1702 = sbr.rel (%p2407_p6) target bundleno = 733 (0x2dd), region = 48 }
 0x139   : > { %1698 = vst [vmem:[#allocation2] sm:$0x3] %v1697_v46 }
 0x13a   : > { %v1682_v47 = vpop.f32.mrf.mxu0 }
 0x13b   : > { %v1695_v48 = vpop.f32.mrf.mxu1 }
 0x13c   : > { %v1725_v49 = vld [vmem:[%s2922_s3 + $0x78] sm:$0xff]  ;;  %v1724_v50 = vld [vmem:[%s2922_s3 + $0x70] sm:$0xff]  ;;  %v1723_v51 = vld [vmem:[%s2922_s3 + $0x68] sm:$0xff]  ;;  %vm1750_vm0 = vcmask 74752  }
 0x13d   : > { %1730 = vmatpush.msra.mxu0 %v1725_v49  ;;  %v1722_v52 = vld [vmem:[%s2922_s3 + $0x60] sm:$0xff]  ;;  %v1721_v53 = vld [vmem:[%s2922_s3 + $0x58] sm:$0xff]  ;;  %v1720_v54 = vld [vmem:[%s2922_s3 + $0x50] sm:$0xff] }
 0x13e   : > { %v1719_v55 = vld [vmem:[%s2922_s3 + $0x48] sm:$0xff]  ;;  %v1718_v56 = vld [vmem:[%s2922_s3 + $0x40] sm:$0xff]  ;;  %v1717_v57 = vld [vmem:[%s2922_s3 + $0x38] sm:$0xff] }
 0x13f   : > { %1731 = vmatpush.msra.mxu0 %v1724_v50  ;;  %v1716_v58 = vld [vmem:[%s2922_s3 + $0x30] sm:$0xff]  ;;  %v1715_v59 = vld [vmem:[%s2922_s3 + $0x28] sm:$0xff]  ;;  %v1714_v60 = vld [vmem:[%s2922_s3 + $0x20] sm:$0xff] }
 0x140   : > { %v2572_v61 = vld [vmem:[%s2921_s2] ss:$0 sm:$0xff]  ;;  %v1703_v62 = vld [vmem:[#allocation2] sm:$0x3]  ;;  %v1713_v63 = vld [vmem:[%s2922_s3 + $0x18] sm:$0xff] }
 0x141   : > { %1732 = vmatpush.msra.mxu0 %v1723_v51  ;;  %v1712_v0 = vld [vmem:[%s2922_s3 + $0x10] sm:$0xff]  ;;  %v1708_v1 = vadd.f32 %v2572_v61, %v1703_v62  ;;  %v1711_v2 = vld [vmem:[%s2922_s3 + $0x8] sm:$0xff]  ;;  %v1710_v3 = vld [vmem:[%s2922_s3] sm:$0xff] }
 0x142   : > { %v2573_v5 = vld [vmem:[%s2923_s4] ss:$0 sm:$0xff] }
 0x143   : > { %1733 = vmatpush.msra.mxu0 %v1722_v52  ;;  %v1709_v4 = vmax.f32 %v1708_v1, 0.0 }
 0x145   : > { %1734 = vmatpush.msra.mxu0 %v1721_v53 }
 0x147   : > { %1735 = vmatpush.msra.mxu0 %v1720_v54 }
 0x149   : > { %1736 = vmatpush.msra.mxu0 %v1719_v55 }
 0x14b   : > { %1737 = vmatpush.msra.mxu0 %v1718_v56 }
 0x14d   : > { %1738 = vmatpush.msra.mxu0 %v1717_v57 }
 0x14f   : > { %1739 = vmatpush.msra.mxu0 %v1716_v58 }
 0x151   : > { %1740 = vmatpush.msra.mxu0 %v1715_v59 }
 0x153   : > { %1741 = vmatpush.msra.mxu0 %v1714_v60 }
 0x155   : > { %1742 = vmatpush.msra.mxu0 %v1713_v63 }
 0x157   : > { %1743 = vmatpush.msra.mxu0 %v1712_v0 }
 0x159   : > { %1744 = vmatpush.msra.mxu0 %v1711_v2 }
 0x15b   : > { %1745 = vmatpush.msra.mxu0 %v1710_v3 }
 0x15c   : > { %1746 = vmatmul.f32.vlgmr.msra.gmra.mxu0 %v1709_v4 }
 0x1d9   : > { %v1747_v6 = vpop.f32.mrf.mxu0 }
 0x1da   : > { %v1748_v7 = vadd.f32 %v2573_v5, %v1747_v6 }
 0x1dc   : > { %v1751_v8 = vsel %vm1750_vm0, %v1748_v7, -inf }
 0x1dd   : > { %1752 = vmax.xlane.f32.xlu0 %v1751_v8 }
 0x250   : > { %v1753_v9 = vpop.xlane.xlu0 %1752 }
 0x251   : > { %v1754_v10 = vsub.f32 %v1748_v7, %v1753_v9 }
 0x253   : > { %v1755_v11 = vmul.f32 1.442695, %v1754_v10 }
 0x255   : > { %2574 = vpow2.f32 %v1755_v11 }
 0x25b   : > { %v2575_v12 = vpop.eup %2574 }
 0x25c   : > { %v1757_v13 = vsel %vm1750_vm0, %v2575_v12, 0.0 }
 0x25d   : > { %1758 = vadd.xlane.f32.xlu0 %v1757_v13 }
 0x2d0   : > { %v1759_v14 = vpop.xlane.xlu0 %1758 }
 0x2d1   : > { %2576 = vlog2.f32 %v1759_v14 }
 0x2d7   : > { %v2577_v15 = vpop.eup %2576 }
 0x2d8   : > { %v1761_v16 = vmul.f32 0.6931472, %v2577_v15 }
 0x2da   : > { %v1762_v17 = vsub.f32 %v1754_v10, %v1761_v16 }
 0x2dc   : > { %1763 = vst.msk [vmem:[#allocation3] sm:$0x3] %vm1750_vm0, %v1762_v17 }
 0x2dd PF: > { %p2560_p7 = scmp.eq.s32.totalorder %s2656_s19, 3  ;;  %s2619_s20 = smov [#allocation3]  }
 0x2de   : > { %s1770_s21 = sshll.u32 %s2619_s20, 4  ;;  %s1772_s24 = sshll.u32 %s2924_s5, 4  ;;  %s1771_s21 = int_to_ptr.vmem [resolvable:$true] %s1770_s21  ;;  %s1773_s24 = int_to_ptr.hbm [resolvable:$true] %s1772_s24 }
 0x2df   : > { %2557 = dma.vmem_to_hbm [thread:$0]  (%p2560_p7), %s1771_s21, 32, %s1773_s24, [#allocation4]  }
 0x2e0   : > { %2611 = dma.done.wait (%p2560_p7), [#allocation4], 32  }
 0x2e1   : > { %2613 = vsyncadd (%p2560_p7), [#allocation4], 4294967264 }
 0x2e2 PF: > { %s16_s18 = sadd.s32 1, %s2616_s18  }
 0x2e3   : > { %p13_p8 = scmp.ge.s32.totalorder %s16_s18, 6  }
 0x2e5   :  { %15 = sbr.rel (!%p13_p8) target bundleno = 1 (0x1), region = 79 }
 0x2ea   :  { %1786 = vsyncpa [#allocation4], 1 }
 0x2eb   :  { %1788 = vsyncpa [#allocation4 + $0x1], 1 }

// kernel: net_forward.4
= control target key start
LH: loop header
LB: loop body
LE: loop exit
PB: predicated region body
PF: predicated region fallthrough
CT: control target
= control target key end

     0   :  { %vm486_vm0 = vcmask 261120   ;;  %vm2410_vm1 = vcmask 523264   ;;  %s5464_s1 = inlined_call_operand.vmem [shape: f32[288,64], index: 1, kind: input, shape index: {}]   ;;  %s5465_s0 = inlined_call_operand.vmem [shape: f32[1152,288], index: 0, kind: input, shape index: {}]   ;;  %s5466_s2 = inlined_call_operand.vmem [shape: f32[1,64], index: 2, kind: input, shape index: {}]   ;;  %s5467_s3 = inlined_call_operand.vmem [shape: f32[288,64], index: 3, kind: output, shape index: {}]  }
   0x1   :  { %v461_v0 = vld [vmem:[%s5464_s1 + $0x78] sm:$0xff]  ;;  %v460_v2 = vld [vmem:[%s5464_s1 + $0x70] sm:$0xff]  ;;  %v459_v5 = vld [vmem:[%s5464_s1 + $0x68] sm:$0xff] }
   0x2   :  { %v2660_v1 = vld [vmem:[%s5464_s1 + $0x118] sm:$0xff]  ;;  %919 = vmatpush.msra.mxu0 %v461_v0  ;;  %2595 = vmatpush.msra.mxu3 %v461_v0  ;;  %v2673_v4 = vld [vmem:[%s5464_s1 + $0x110] sm:$0xff]  ;;  %v2688_v7 = vld [vmem:[%s5464_s1 + $0x108] sm:$0xff] }
   0x3   :  { %v2668_v3 = vld [vmem:[%s5464_s1 + $0xf8] sm:$0xff]  ;;  %1829 = vmatpush.msra.mxu2 %v2660_v1  ;;  %v2683_v6 = vld [vmem:[%s5464_s1 + $0xf0] sm:$0xff]  ;;  %v2693_v8 = vld [vmem:[%s5464_s1 + $0xe8] sm:$0xff] }
   0x4   :  { %1368 = vmatpush.msra.mxu1 %v2668_v3  ;;  %920 = vmatpush.msra.mxu0 %v460_v2  ;;  %v458_v9 = vld [vmem:[%s5464_s1 + $0x60] sm:$0xff]  ;;  %v16_v12 = vld [vmem:[%s5465_s0 + $0x10] sm:$0xff]  ;;  %v457_v13 = vld [vmem:[%s5464_s1 + $0x58] sm:$0xff] }
   0x5   :  { %2596 = vmatpush.msra.mxu3 %v460_v2  ;;  %1830 = vmatpush.msra.mxu2 %v2673_v4  ;;  %v2703_v10 = vld [vmem:[%s5464_s1 + $0x100] sm:$0xff]  ;;  %v2721_v14 = vld [vmem:[%s5464_s1 + $0xd8] sm:$0xff]  ;;  %v456_v15 = vld [vmem:[%s5464_s1 + $0x50] sm:$0xff] }
   0x6   :  { %1369 = vmatpush.msra.mxu1 %v2683_v6  ;;  %921 = vmatpush.msra.mxu0 %v459_v5  ;;  %v2708_v11 = vld [vmem:[%s5464_s1 + $0xe0] sm:$0xff]  ;;  %v2732_v16 = vld [vmem:[%s5464_s1 + $0xd0] sm:$0xff]  ;;  %v455_v17 = vld [vmem:[%s5464_s1 + $0x48] sm:$0xff] }
   0x7   :  { %2597 = vmatpush.msra.mxu3 %v459_v5  ;;  %1831 = vmatpush.msra.mxu2 %v2688_v7  ;;  %v2741_v18 = vld [vmem:[%s5464_s1 + $0xc8] sm:$0xff]  ;;  %v454_v19 = vld [vmem:[%s5464_s1 + $0x40] sm:$0xff]  ;;  %v453_v22 = vld [vmem:[%s5464_s1 + $0x38] sm:$0xff] }
   0x8   :  { %1370 = vmatpush.msra.mxu1 %v2693_v8  ;;  %922 = vmatpush.msra.mxu0 %v458_v9  ;;  %v2750_v20 = vld [vmem:[%s5464_s1 + $0xc0] sm:$0xff]  ;;  %v19_v21 = vld [vmem:[%s5465_s0 + $0x28] sm:$0xff]  ;;  %v2762_v23 = vld [vmem:[%s5464_s1 + $0xb8] sm:$0xff] }
   0x9   :  { %2598 = vmatpush.msra.mxu3 %v458_v9  ;;  %1832 = vmatpush.msra.mxu2 %v2703_v10  ;;  %v452_v24 = vld [vmem:[%s5464_s1 + $0x30] sm:$0xff]  ;;  %v451_v26 = vld [vmem:[%s5464_s1 + $0x28] sm:$0xff]  ;;  %v450_v28 = vld [vmem:[%s5464_s1 + $0x20] sm:$0xff] }
   0xa   :  { %1371 = vmatpush.msra.mxu1 %v2708_v11  ;;  %2451 = vmatmul.msk.f32.vlgmr.msra.gmra.mxu2 %vm486_vm0, %v16_v12  ;;  %v2772_v25 = vld [vmem:[%s5464_s1 + $0xb0] sm:$0xff]  ;;  %v2781_v27 = vld [vmem:[%s5464_s1 + $0xa8] sm:$0xff]  ;;  %v2790_v29 = vld [vmem:[%s5464_s1 + $0xa0] sm:$0xff] }
   0xb   :  { %923 = vmatpush.msra.mxu0 %v457_v13  ;;  %2599 = vmatpush.msra.mxu3 %v457_v13  ;;  %v22_v30 = vld [vmem:[%s5465_s0 + $0x40] sm:$0xff]  ;;  %v449_v31 = vld [vmem:[%s5464_s1 + $0x18] sm:$0xff]  ;;  %v448_v33 = vld [vmem:[%s5464_s1 + $0x10] sm:$0xff] }
   0xc   :  { %1372 = vmatpush.msra.mxu1 %v2721_v14  ;;  %v2802_v32 = vld [vmem:[%s5464_s1 + $0x98] sm:$0xff]  ;;  %v464_v34 = vld [vmem:[%s5464_s1 + $0x90] sm:$0xff]  ;;  %v447_v35 = vld [vmem:[%s5464_s1 + $0x8] sm:$0xff] }
   0xd   :  { %924 = vmatpush.msra.mxu0 %v456_v15  ;;  %2600 = vmatpush.msra.mxu3 %v456_v15  ;;  %v463_v36 = vld [vmem:[%s5464_s1 + $0x88] sm:$0xff]  ;;  %v446_v37 = vld [vmem:[%s5464_s1] sm:$0xff]  ;;  %v25_v40 = vld [vmem:[%s5465_s0 + $0x58] sm:$0xff] }
   0xe   :  { %1373 = vmatpush.msra.mxu1 %v2732_v16  ;;  %v14_v38 = vld [vmem:[%s5465_s0] sm:$0xff]  ;;  %v15_v42 = vld [vmem:[%s5465_s0 + $0x8] sm:$0xff]  ;;  %v17_v43 = vld [vmem:[%s5465_s0 + $0x18] sm:$0xff] }
   0xf   :  { %925 = vmatpush.msra.mxu0 %v455_v17  ;;  %2601 = vmatpush.msra.mxu3 %v455_v17  ;;  %v338_v39 = vld [vmem:[%s5465_s0 + $0xa20] sm:$0xff]  ;;  %v341_v44 = vld [vmem:[%s5465_s0 + $0xa38] sm:$0xff]  ;;  %v28_v45 = vld [vmem:[%s5465_s0 + $0x70] sm:$0xff] }
  0x10   :  { %1374 = vmatpush.msra.mxu1 %v2741_v18  ;;  %v462_v41 = vld [vmem:[%s5464_s1 + $0x80] sm:$0xff]  ;;  %v20_v47 = vld [vmem:[%s5465_s0 + $0x30] sm:$0xff]  ;;  %v31_v49 = vld [vmem:[%s5465_s0 + $0x88] sm:$0xff] }
  0x11   :  { %926 = vmatpush.msra.mxu0 %v454_v19  ;;  %2602 = vmatpush.msra.mxu3 %v454_v19  ;;  %v18_v46 = vld [vmem:[%s5465_s0 + $0x20] sm:$0xff]  ;;  %v344_v48 = vld [vmem:[%s5465_s0 + $0xa50] sm:$0xff]  ;;  %v21_v50 = vld [vmem:[%s5465_s0 + $0x38] sm:$0xff] }
  0x12   :  { %1375 = vmatpush.msra.mxu1 %v2750_v20  ;;  %2452 = vmatmul.msk.f32.gmra.mxu2 %vm486_vm0, %v19_v21  ;;  %v23_v51 = vld [vmem:[%s5465_s0 + $0x48] sm:$0xff]  ;;  %v34_v53 = vld [vmem:[%s5465_s0 + $0xa0] sm:$0xff]  ;;  %v24_v54 = vld [vmem:[%s5465_s0 + $0x50] sm:$0xff] }
  0x13   :  { %927 = vmatpush.msra.mxu0 %v453_v22  ;;  %2603 = vmatpush.msra.mxu3 %v453_v22  ;;  %v347_v52 = vld [vmem:[%s5465_s0 + $0xa68] sm:$0xff]  ;;  %v26_v55 = vld [vmem:[%s5465_s0 + $0x60] sm:$0xff]  ;;  %v37_v57 = vld [vmem:[%s5465_s0 + $0xb8] sm:$0xff] }
  0x14   :  { %1376 = vmatpush.msra.mxu1 %v2762_v23  ;;  %v350_v56 = vld [vmem:[%s5465_s0 + $0xa80] sm:$0xff]  ;;  %v27_v58 = vld [vmem:[%s5465_s0 + $0x68] sm:$0xff]  ;;  %v29_v59 = vld [vmem:[%s5465_s0 + $0x78] sm:$0xff] }
  0x15   :  { %928 = vmatpush.msra.mxu0 %v452_v24  ;;  %2604 = vmatpush.msra.mxu3 %v452_v24  ;;  %v353_v60 = vld [vmem:[%s5465_s0 + $0xa98] sm:$0xff]  ;;  %v40_v61 = vld [vmem:[%s5465_s0 + $0xd0] sm:$0xff]  ;;  %v30_v62 = vld [vmem:[%s5465_s0 + $0x80] sm:$0xff] }
  0x16   :  { %1377 = vmatpush.msra.mxu1 %v2772_v25  ;;  %v32_v63 = vld [vmem:[%s5465_s0 + $0x90] sm:$0xff]  ;;  %v33_v2 = vld [vmem:[%s5465_s0 + $0x98] sm:$0xff]  ;;  %v46_v5 = vld [vmem:[%s5465_s0 + $0x100] sm:$0xff] }
  0x17   :  { %929 = vmatpush.msra.mxu0 %v451_v26  ;;  %2605 = vmatpush.msra.mxu3 %v451_v26  ;;  %v356_v0 = vld [vmem:[%s5465_s0 + $0xab0] sm:$0xff]  ;;  %v49_v9 = vld [vmem:[%s5465_s0 + $0x118] sm:$0xff]  ;;  %v55_v17 = vld [vmem:[%s5465_s0 + $0x148] sm:$0xff] }
  0x18   :  { %1378 = vmatpush.msra.mxu1 %v2781_v27  ;;  %v365_v12 = vld [vmem:[%s5465_s0 + $0xaf8] sm:$0xff]  ;;  %v52_v13 = vld [vmem:[%s5465_s0 + $0x130] sm:$0xff]  ;;  %v47_v19 = vld [vmem:[%s5465_s0 + $0x108] sm:$0xff] }
  0x19   :  { %930 = vmatpush.msra.mxu0 %v450_v28  ;;  %2606 = vmatpush.msra.mxu3 %v450_v28  ;;  %v44_v15 = vld [vmem:[%s5465_s0 + $0xf0] sm:$0xff]  ;;  %v58_v21 = vld [vmem:[%s5465_s0 + $0x160] sm:$0xff]  ;;  %v51_v26 = vld [vmem:[%s5465_s0 + $0x128] sm:$0xff] }
  0x1a   :  { %1379 = vmatpush.msra.mxu1 %v2790_v29  ;;  %2453 = vmatmul.msk.f32.gmra.mxu2 %vm486_vm0, %v22_v30  ;;  %v48_v22 = vld [vmem:[%s5465_s0 + $0x110] sm:$0xff]  ;;  %v374_v24 = vld [vmem:[%s5465_s0 + $0xb40] sm:$0xff]  ;;  %v377_v28 = vld [vmem:[%s5465_s0 + $0xb58] sm:$0xff] }
  0x1b   :  { %931 = vmatpush.msra.mxu0 %v449_v31  ;;  %2607 = vmatpush.msra.mxu3 %v449_v31  ;;  %v54_v30 = vld [vmem:[%s5465_s0 + $0x140] sm:$0xff] }
  0x1c   :  { %1380 = vmatpush.msra.mxu1 %v2802_v32 }
  0x1d   :  { %932 = vmatpush.msra.mxu0 %v448_v33  ;;  %2608 = vmatpush.msra.mxu3 %v448_v33  ;;  %v380_v33 = vld [vmem:[%s5465_s0 + $0xb70] sm:$0xff] }
  0x1e   :  { %1381 = vmatpush.msra.mxu1 %v464_v34 }
  0x1f   :  { %933 = vmatpush.msra.mxu0 %v447_v35  ;;  %2609 = vmatpush.msra.mxu3 %v447_v35  ;;  %v57_v35 = vld [vmem:[%s5465_s0 + $0x158] sm:$0xff] }
  0x20   :  { %1382 = vmatpush.msra.mxu1 %v463_v36 }
  0x21   :  { %934 = vmatpush.msra.mxu0 %v446_v37  ;;  %2610 = vmatpush.msra.mxu3 %v446_v37  ;;  %v59_v37 = vld [vmem:[%s5465_s0 + $0x168] sm:$0xff] }
  0x22   :  { %935 = vmatmul.f32.vlgmr.msra.gmra.mxu0 %v14_v38  ;;  %1259 = vmatmul.f32.vlgmr.msra.gmra.mxu3 %v338_v39  ;;  %v383_v38 = vld [vmem:[%s5465_s0 + $0xb88] sm:$0xff]  ;;  %v70_v39 = vld [vmem:[%s5465_s0 + $0x1c0] sm:$0xff] }
  0x23   :  { %2454 = vmatmul.msk.f32.gmra.mxu2 %vm486_vm0, %v25_v40  ;;  %1383 = vmatpush.msra.mxu1 %v462_v41  ;;  %v60_v40 = vld [vmem:[%s5465_s0 + $0x170] sm:$0xff] }
  0x24   :  { %2611 = vmatpush.msrb.mxu3 %v2668_v3  ;;  %1384 = vmatmul.f32.vlgmr.msra.gmra.mxu1 %v15_v42  ;;  %v35_v3 = vld [vmem:[%s5465_s0 + $0xa8] sm:$0xff] }
  0x26   :  { %2612 = vmatpush.msrb.mxu3 %v2683_v6  ;;  %v36_v6 = vld [vmem:[%s5465_s0 + $0xb0] sm:$0xff] }
  0x28   :  { %2613 = vmatpush.msrb.mxu3 %v2693_v8  ;;  %v362_v8 = vld [vmem:[%s5465_s0 + $0xae0] sm:$0xff] }
  0x2a   :  { %938 = vmatmul.f32.gmra.mxu0 %v17_v43  ;;  %2614 = vmatpush.msrb.mxu3 %v2708_v11  ;;  %v41_v11 = vld [vmem:[%s5465_s0 + $0xd8] sm:$0xff]  ;;  %v62_v43 = vld [vmem:[%s5465_s0 + $0x180] sm:$0xff] }
  0x2b   :  { %1262 = vmatmul.f32.gmra.mxu3 %v341_v44  ;;  %2455 = vmatmul.msk.f32.gmra.mxu2 %vm486_vm0, %v28_v45  ;;  %v386_v44 = vld [vmem:[%s5465_s0 + $0xba0] sm:$0xff]  ;;  %v73_v45 = vld [vmem:[%s5465_s0 + $0x1d8] sm:$0xff] }
  0x2c   :  { %2615 = vmatpush.msrb.mxu3 %v2721_v14  ;;  %1387 = vmatmul.f32.gmra.mxu1 %v18_v46  ;;  %v42_v14 = vld [vmem:[%s5465_s0 + $0xe0] sm:$0xff] }
  0x2e   :  { %2616 = vmatpush.msrb.mxu3 %v2732_v16  ;;  %v368_v16 = vld [vmem:[%s5465_s0 + $0xb10] sm:$0xff] }
  0x30   :  { %2617 = vmatpush.msrb.mxu3 %v2741_v18  ;;  %v45_v18 = vld [vmem:[%s5465_s0 + $0xf8] sm:$0xff] }
  0x32   :  { %941 = vmatmul.f32.gmra.mxu0 %v20_v47  ;;  %2618 = vmatpush.msrb.mxu3 %v2750_v20  ;;  %v371_v20 = vld [vmem:[%s5465_s0 + $0xb28] sm:$0xff] }
  0x33   :  { %1265 = vmatmul.f32.gmra.mxu3 %v344_v48  ;;  %2456 = vmatmul.msk.f32.gmra.mxu2 %vm486_vm0, %v31_v49  ;;  %v63_v47 = vld [vmem:[%s5465_s0 + $0x188] sm:$0xff] }
  0x34   :  { %2619 = vmatpush.msrb.mxu3 %v2762_v23  ;;  %1390 = vmatmul.f32.gmra.mxu1 %v21_v50  ;;  %v50_v23 = vld [vmem:[%s5465_s0 + $0x120] sm:$0xff] }
  0x36   :  { %2620 = vmatpush.msrb.mxu3 %v2772_v25  ;;  %v61_v25 = vld [vmem:[%s5465_s0 + $0x178] sm:$0xff] }
  0x38   :  { %2621 = vmatpush.msrb.mxu3 %v2781_v27  ;;  %v53_v27 = vld [vmem:[%s5465_s0 + $0x138] sm:$0xff] }
  0x3a   :  { %944 = vmatmul.f32.gmra.mxu0 %v23_v51  ;;  %2622 = vmatpush.msrb.mxu3 %v2790_v29  ;;  %v64_v29 = vld [vmem:[%s5465_s0 + $0x190] sm:$0xff]  ;;  %v65_v51 = vld [vmem:[%s5465_s0 + $0x198] sm:$0xff] }
  0x3b   :  { %1268 = vmatmul.f32.gmra.mxu3 %v347_v52  ;;  %2457 = vmatmul.msk.f32.gmra.mxu2 %vm486_vm0, %v34_v53  ;;  %v389_v52 = vld [vmem:[%s5465_s0 + $0xbb8] sm:$0xff]  ;;  %v76_v53 = vld [vmem:[%s5465_s0 + $0x1f0] sm:$0xff] }
  0x3c   :  { %2623 = vmatpush.msrb.mxu3 %v2802_v32  ;;  %1393 = vmatmul.f32.gmra.mxu1 %v24_v54  ;;  %v56_v32 = vld [vmem:[%s5465_s0 + $0x150] sm:$0xff] }
  0x3e   :  { %2624 = vmatpush.msrb.mxu3 %v464_v34  ;;  %v67_v34 = vld [vmem:[%s5465_s0 + $0x1a8] sm:$0xff] }
  0x40   :  { %2625 = vmatpush.msrb.mxu3 %v463_v36 }
  0x42   :  { %947 = vmatmul.f32.gmra.mxu0 %v26_v55  ;;  %2626 = vmatpush.msrb.mxu3 %v462_v41  ;;  %v66_v55 = vld [vmem:[%s5465_s0 + $0x1a0] sm:$0xff] }
  0x43   :  { %1271 = vmatmul.f32.gmra.mxu3 %v350_v56  ;;  %2458 = vmatmul.msk.f32.gmra.mxu2 %vm486_vm0, %v37_v57 }
  0x44   :  { %2627 = vmatpush.msra.mxu3 %v2660_v1  ;;  %1396 = vmatmul.f32.gmra.mxu1 %v27_v58  ;;  %v43_v1 = vld [vmem:[%s5465_s0 + $0xe8] sm:$0xff] }
  0x46   :  { %2628 = vmatpush.msra.mxu3 %v2673_v4  ;;  %v359_v4 = vld [vmem:[%s5465_s0 + $0xac8] sm:$0xff] }
  0x48   :  { %2629 = vmatpush.msra.mxu3 %v2688_v7  ;;  %v38_v7 = vld [vmem:[%s5465_s0 + $0xc0] sm:$0xff] }
  0x4a   :  { %950 = vmatmul.f32.gmra.mxu0 %v29_v59  ;;  %2630 = vmatpush.msra.mxu3 %v2703_v10  ;;  %v39_v10 = vld [vmem:[%s5465_s0 + $0xc8] sm:$0xff]  ;;  %v68_v59 = vld [vmem:[%s5465_s0 + $0x1b0] sm:$0xff] }
  0x4b   :  { %1274 = vmatmul.f32.gmra.mxu3 %v353_v60  ;;  %2459 = vmatmul.msk.f32.gmra.mxu2 %vm486_vm0, %v40_v61  ;;  %v392_v60 = vld [vmem:[%s5465_s0 + $0xbd0] sm:$0xff]  ;;  %v79_v61 = vld [vmem:[%s5465_s0 + $0x208] sm:$0xff] }
  0x4c   :  { %1399 = vmatmul.f32.gmra.mxu1 %v30_v62 }
  0x52   :  { %953 = vmatmul.f32.gmra.mxu0 %v32_v63  ;;  %v69_v63 = vld [vmem:[%s5465_s0 + $0x1b8] sm:$0xff] }
  0x53   :  { %1277 = vmatmul.f32.gmra.mxu3 %v356_v0  ;;  %2460 = vmatmul.msk.f32.gmra.mxu2 %vm486_vm0, %v43_v1 }
  0x54   :  { %1402 = vmatmul.f32.gmra.mxu1 %v33_v2 }
  0x5a   :  { %956 = vmatmul.f32.gmra.mxu0 %v35_v3  ;;  %v71_v3 = vld [vmem:[%s5465_s0 + $0x1c8] sm:$0xff] }
  0x5b   :  { %1280 = vmatmul.f32.gmra.mxu3 %v359_v4  ;;  %2461 = vmatmul.msk.f32.gmra.mxu2 %vm486_vm0, %v46_v5  ;;  %v395_v4 = vld [vmem:[%s5465_s0 + $0xbe8] sm:$0xff]  ;;  %v82_v5 = vld [vmem:[%s5465_s0 + $0x220] sm:$0xff] }
  0x5c   :  { %1405 = vmatmul.f32.gmra.mxu1 %v36_v6 }
  0x62   :  { %959 = vmatmul.f32.gmra.mxu0 %v38_v7  ;;  %v72_v7 = vld [vmem:[%s5465_s0 + $0x1d0] sm:$0xff] }
  0x63   :  { %1283 = vmatmul.f32.gmra.mxu3 %v362_v8  ;;  %2462 = vmatmul.msk.f32.gmra.mxu2 %vm486_vm0, %v49_v9 }
  0x64   :  { %1408 = vmatmul.f32.gmra.mxu1 %v39_v10 }
  0x6a   :  { %962 = vmatmul.f32.gmra.mxu0 %v41_v11  ;;  %v74_v11 = vld [vmem:[%s5465_s0 + $0x1e0] sm:$0xff] }
  0x6b   :  { %1286 = vmatmul.f32.gmra.mxu3 %v365_v12  ;;  %2463 = vmatmul.msk.f32.gmra.mxu2 %vm486_vm0, %v52_v13  ;;  %v398_v12 = vld [vmem:[%s5465_s0 + $0xc00] sm:$0xff]  ;;  %v85_v13 = vld [vmem:[%s5465_s0 + $0x238] sm:$0xff] }
  0x6c   :  { %1411 = vmatmul.f32.gmra.mxu1 %v42_v14 }
  0x72   :  { %965 = vmatmul.f32.gmra.mxu0 %v44_v15  ;;  %v75_v15 = vld [vmem:[%s5465_s0 + $0x1e8] sm:$0xff] }
  0x73   :  { %1289 = vmatmul.f32.gmra.mxu3 %v368_v16  ;;  %2464 = vmatmul.msk.f32.gmra.mxu2 %vm486_vm0, %v55_v17 }
  0x74   :  { %1414 = vmatmul.f32.gmra.mxu1 %v45_v18 }
  0x7a   :  { %968 = vmatmul.f32.gmra.mxu0 %v47_v19  ;;  %v77_v19 = vld [vmem:[%s5465_s0 + $0x1f8] sm:$0xff] }
  0x7b   :  { %1292 = vmatmul.f32.gmra.mxu3 %v371_v20  ;;  %2465 = vmatmul.msk.f32.gmra.mxu2 %vm486_vm0, %v58_v21  ;;  %v401_v20 = vld [vmem:[%s5465_s0 + $0xc18] sm:$0xff]  ;;  %v88_v21 = vld [vmem:[%s5465_s0 + $0x250] sm:$0xff] }
  0x7c   :  { %1417 = vmatmul.f32.gmra.mxu1 %v48_v22 }
  0x82   :  { %971 = vmatmul.f32.gmra.mxu0 %v50_v23  ;;  %v78_v23 = vld [vmem:[%s5465_s0 + $0x200] sm:$0xff] }
  0x83   :  { %1295 = vmatmul.f32.gmra.mxu3 %v374_v24  ;;  %2466 = vmatmul.msk.f32.gmra.mxu2 %vm486_vm0, %v61_v25 }
  0x84   :  { %1420 = vmatmul.f32.gmra.mxu1 %v51_v26 }
  0x8a   :  { %974 = vmatmul.f32.gmra.mxu0 %v53_v27  ;;  %v80_v27 = vld [vmem:[%s5465_s0 + $0x210] sm:$0xff] }
  0x8b   :  { %1298 = vmatmul.f32.gmra.mxu3 %v377_v28  ;;  %2467 = vmatmul.msk.f32.gmra.mxu2 %vm486_vm0, %v64_v29  ;;  %v404_v28 = vld [vmem:[%s5465_s0 + $0xc30] sm:$0xff]  ;;  %v91_v29 = vld [vmem:[%s5465_s0 + $0x268] sm:$0xff] }
  0x8c   :  { %1423 = vmatmul.f32.gmra.mxu1 %v54_v30 }
  0x8d   :  { %v3024_v31 = vpop.f32.mrf.mxu2 }
  0x92   :  { %977 = vmatmul.f32.gmra.mxu0 %v56_v32  ;;  %v81_v32 = vld [vmem:[%s5465_s0 + $0x218] sm:$0xff] }
  0x93   :  { %1301 = vmatmul.f32.gmra.mxu3 %v380_v33  ;;  %2468 = vmatmul.msk.f32.gmra.mxu2 %vm486_vm0, %v67_v34 }
  0x94   :  { %1426 = vmatmul.f32.gmra.mxu1 %v57_v35 }
  0x95   :  { %v3039_v36 = vpop.f32.mrf.mxu2 }
  0x9a   :  { %980 = vmatmul.f32.gmra.mxu0 %v59_v37  ;;  %v83_v37 = vld [vmem:[%s5465_s0 + $0x228] sm:$0xff] }
  0x9b   :  { %1304 = vmatmul.f32.gmra.mxu3 %v383_v38  ;;  %2469 = vmatmul.msk.f32.gmra.mxu2 %vm486_vm0, %v70_v39  ;;  %v407_v38 = vld [vmem:[%s5465_s0 + $0xc48] sm:$0xff]  ;;  %v94_v39 = vld [vmem:[%s5465_s0 + $0x280] sm:$0xff] }
  0x9c   :  { %1429 = vmatmul.f32.gmra.mxu1 %v60_v40 }
  0x9d   :  { %v3054_v41 = vpop.f32.mrf.mxu2 }
  0x9f   :  { %v3056_v42 = vpop.f32.mrf.mxu0 }
  0xa1   :  { %v3067_v46 = vpop.f32.mrf.mxu1 }
  0xa2   :  { %983 = vmatmul.f32.gmra.mxu0 %v62_v43  ;;  %v84_v43 = vld [vmem:[%s5465_s0 + $0x230] sm:$0xff] }
  0xa3   :  { %1307 = vmatmul.f32.gmra.mxu3 %v386_v44  ;;  %2470 = vmatmul.msk.f32.gmra.mxu2 %vm486_vm0, %v73_v45 }
  0xa4   :  { %1432 = vmatmul.f32.gmra.mxu1 %v63_v47 }
  0xa5   :  { %v3073_v48 = vpop.f32.mrf.mxu3 }
  0xa6   :  { %v3075_v49 = vpop.f32.mrf.mxu2 }
  0xa7   :  { %v3077_v50 = vpop.f32.mrf.mxu0 }
  0xa9   :  { %v3088_v54 = vpop.f32.mrf.mxu1 }
  0xaa   :  { %986 = vmatmul.f32.gmra.mxu0 %v65_v51  ;;  %v86_v51 = vld [vmem:[%s5465_s0 + $0x240] sm:$0xff] }
  0xab   :  { %1310 = vmatmul.f32.gmra.mxu3 %v389_v52  ;;  %2471 = vmatmul.msk.f32.gmra.mxu2 %vm486_vm0, %v76_v53  ;;  %v410_v52 = vld [vmem:[%s5465_s0 + $0xc60] sm:$0xff]  ;;  %v97_v53 = vld [vmem:[%s5465_s0 + $0x298] sm:$0xff] }
  0xac   :  { %1435 = vmatmul.f32.gmra.mxu1 %v66_v55 }
  0xae   :  { %v3094_v56 = vpop.f32.mrf.mxu3  ;;  %v3096_v57 = vpop.f32.mrf.mxu2 }
  0xaf   :  { %v3098_v58 = vpop.f32.mrf.mxu0 }
  0xb1   :  { %v3109_v62 = vpop.f32.mrf.mxu1 }
  0xb2   :  { %989 = vmatmul.f32.gmra.mxu0 %v68_v59  ;;  %v87_v59 = vld [vmem:[%s5465_s0 + $0x248] sm:$0xff] }
  0xb3   :  { %1313 = vmatmul.f32.gmra.mxu3 %v392_v60  ;;  %2472 = vmatmul.msk.f32.gmra.mxu2 %vm486_vm0, %v79_v61 }
  0xb4   :  { %1438 = vmatmul.f32.gmra.mxu1 %v69_v63 }
  0xb6   :  { %v3115_v0 = vpop.f32.mrf.mxu3  ;;  %v3117_v1 = vpop.f32.mrf.mxu2 }
  0xb7   :  { %v3119_v2 = vpop.f32.mrf.mxu0 }
  0xb9   :  { %v3130_v6 = vpop.f32.mrf.mxu1 }
  0xba   :  { %992 = vmatmul.f32.gmra.mxu0 %v71_v3  ;;  %v89_v3 = vld [vmem:[%s5465_s0 + $0x258] sm:$0xff] }
  0xbb   :  { %1316 = vmatmul.f32.gmra.mxu3 %v395_v4  ;;  %2473 = vmatmul.msk.f32.gmra.mxu2 %vm486_vm0, %v82_v5  ;;  %v413_v4 = vld [vmem:[%s5465_s0 + $0xc78] sm:$0xff]  ;;  %v100_v5 = vld [vmem:[%s5465_s0 + $0x2b0] sm:$0xff] }
  0xbc   :  { %1441 = vmatmul.f32.gmra.mxu1 %v72_v7 }
  0xbe   :  { %v3136_v8 = vpop.f32.mrf.mxu3  ;;  %v3138_v9 = vpop.f32.mrf.mxu2 }
  0xbf   :  { %v3140_v10 = vpop.f32.mrf.mxu0 }
  0xc1   :  { %v3151_v14 = vpop.f32.mrf.mxu1 }
  0xc2   :  { %995 = vmatmul.f32.gmra.mxu0 %v74_v11  ;;  %v90_v11 = vld [vmem:[%s5465_s0 + $0x260] sm:$0xff] }
  0xc3   :  { %1319 = vmatmul.f32.gmra.mxu3 %v398_v12  ;;  %2474 = vmatmul.msk.f32.gmra.mxu2 %vm486_vm0, %v85_v13 }
  0xc4   :  { %1444 = vmatmul.f32.gmra.mxu1 %v75_v15 }
  0xc6   :  { %v3157_v16 = vpop.f32.mrf.mxu3  ;;  %v3159_v17 = vpop.f32.mrf.mxu2 }
  0xc7   :  { %v3161_v18 = vpop.f32.mrf.mxu0 }
  0xc9   :  { %v3172_v22 = vpop.f32.mrf.mxu1 }
  0xca   :  { %998 = vmatmul.f32.gmra.mxu0 %v77_v19  ;;  %v92_v19 = vld [vmem:[%s5465_s0 + $0x270] sm:$0xff] }
  0xcb   :  { %1322 = vmatmul.f32.gmra.mxu3 %v401_v20  ;;  %2475 = vmatmul.msk.f32.gmra.mxu2 %vm486_vm0, %v88_v21  ;;  %v416_v20 = vld [vmem:[%s5465_s0 + $0xc90] sm:$0xff]  ;;  %v103_v21 = vld [vmem:[%s5465_s0 + $0x2c8] sm:$0xff] }
  0xcc   :  { %1447 = vmatmul.f32.gmra.mxu1 %v78_v23 }
  0xce   :  { %v3178_v24 = vpop.f32.mrf.mxu3  ;;  %v3180_v25 = vpop.f32.mrf.mxu2 }
  0xcf   :  { %v3182_v26 = vpop.f32.mrf.mxu0 }
  0xd1   :  { %v3193_v30 = vpop.f32.mrf.mxu1 }
  0xd2   :  { %1001 = vmatmul.f32.gmra.mxu0 %v80_v27  ;;  %v93_v27 = vld [vmem:[%s5465_s0 + $0x278] sm:$0xff] }
  0xd3   :  { %1325 = vmatmul.f32.gmra.mxu3 %v404_v28  ;;  %2476 = vmatmul.msk.f32.gmra.mxu2 %vm486_vm0, %v91_v29 }
  0xd4   :  { %1450 = vmatmul.f32.gmra.mxu1 %v81_v32 }
  0xd6   :  { %v3199_v33 = vpop.f32.mrf.mxu3  ;;  %v3201_v34 = vpop.f32.mrf.mxu2 }
  0xd7   :  { %v3203_v35 = vpop.f32.mrf.mxu0 }
  0xd9   :  { %v3214_v40 = vpop.f32.mrf.mxu1 }
  0xda   :  { %1004 = vmatmul.f32.gmra.mxu0 %v83_v37  ;;  %v95_v37 = vld [vmem:[%s5465_s0 + $0x288] sm:$0xff] }
  0xdb   :  { %1328 = vmatmul.f32.gmra.mxu3 %v407_v38  ;;  %2477 = vmatmul.msk.f32.gmra.mxu2 %vm486_vm0, %v94_v39  ;;  %v419_v38 = vld [vmem:[%s5465_s0 + $0xca8] sm:$0xff]  ;;  %v106_v39 = vld [vmem:[%s5465_s0 + $0x2e0] sm:$0xff] }
  0xdc   :  { %1453 = vmatmul.f32.gmra.mxu1 %v84_v43 }
  0xde   :  { %v3220_v44 = vpop.f32.mrf.mxu3  ;;  %v3222_v45 = vpop.f32.mrf.mxu2 }
  0xdf   :  { %v3224_v47 = vpop.f32.mrf.mxu0 }
  0xe1   :  { %v3235_v55 = vpop.f32.mrf.mxu1 }
  0xe2   :  { %1007 = vmatmul.f32.gmra.mxu0 %v86_v51  ;;  %v96_v51 = vld [vmem:[%s5465_s0 + $0x290] sm:$0xff] }
  0xe3   :  { %1331 = vmatmul.f32.gmra.mxu3 %v410_v52  ;;  %2478 = vmatmul.msk.f32.gmra.mxu2 %vm486_vm0, %v97_v53 }
  0xe4   :  { %1456 = vmatmul.f32.gmra.mxu1 %v87_v59 }
  0xe6   :  { %v3241_v60 = vpop.f32.mrf.mxu3  ;;  %v3243_v61 = vpop.f32.mrf.mxu2 }
  0xe7   :  { %v3245_v63 = vpop.f32.mrf.mxu0 }
  0xe9   :  { %v3256_v7 = vpop.f32.mrf.mxu1 }
  0xea   :  { %1010 = vmatmul.f32.gmra.mxu0 %v89_v3  ;;  %v98_v3 = vld [vmem:[%s5465_s0 + $0x2a0] sm:$0xff] }
  0xeb   :  { %1334 = vmatmul.f32.gmra.mxu3 %v413_v4  ;;  %2479 = vmatmul.msk.f32.gmra.mxu2 %vm486_vm0, %v100_v5  ;;  %v422_v4 = vld [vmem:[%s5465_s0 + $0xcc0] sm:$0xff]  ;;  %v109_v5 = vld [vmem:[%s5465_s0 + $0x2f8] sm:$0xff] }
  0xec   :  { %1459 = vmatmul.f32.gmra.mxu1 %v90_v11 }
  0xee   :  { %v3262_v12 = vpop.f32.mrf.mxu3  ;;  %v3264_v13 = vpop.f32.mrf.mxu2 }
  0xef   :  { %5512 = vst [vmem:[#allocation2_spill] sm:$0xff] %v3264_v13  ;;  %v3266_v15 = vpop.f32.mrf.mxu0 }
  0xf1   :  { %v3277_v23 = vpop.f32.mrf.mxu1 }
  0xf2   :  { %1013 = vmatmul.f32.gmra.mxu0 %v92_v19  ;;  %v99_v19 = vld [vmem:[%s5465_s0 + $0x2a8] sm:$0xff] }
  0xf3   :  { %1337 = vmatmul.f32.gmra.mxu3 %v416_v20  ;;  %2480 = vmatmul.msk.f32.gmra.mxu2 %vm486_vm0, %v103_v21 }
  0xf4   :  { %1462 = vmatmul.f32.gmra.mxu1 %v93_v27 }
  0xf6   :  { %v3283_v28 = vpop.f32.mrf.mxu3  ;;  %v3285_v29 = vpop.f32.mrf.mxu2 }
  0xf7   :  { %5513 = vst [vmem:[#allocation3_spill] sm:$0xff] %v3285_v29  ;;  %v3287_v32 = vpop.f32.mrf.mxu0  ;;  %v167_v29 = vld [vmem:[%s5465_s0 + $0x4c8] sm:$0xff] }
  0xf9   :  { %v3298_v43 = vpop.f32.mrf.mxu1 }
  0xfa   :  { %1016 = vmatmul.f32.gmra.mxu0 %v95_v37  ;;  %v101_v37 = vld [vmem:[%s5465_s0 + $0x2b8] sm:$0xff] }
  0xfb   :  { %1340 = vmatmul.f32.gmra.mxu3 %v419_v38  ;;  %2481 = vmatmul.msk.f32.gmra.mxu2 %vm486_vm0, %v106_v39  ;;  %v425_v38 = vld [vmem:[%s5465_s0 + $0xcd8] sm:$0xff]  ;;  %v112_v39 = vld [vmem:[%s5465_s0 + $0x310] sm:$0xff] }
  0xfc   :  { %1465 = vmatmul.f32.gmra.mxu1 %v96_v51 }
  0xfe   :  { %v3304_v52 = vpop.f32.mrf.mxu3  ;;  %v3306_v53 = vpop.f32.mrf.mxu2 }
  0xff   :  { %5514 = vst [vmem:[#allocation4_spill] sm:$0xff] %v3306_v53  ;;  %v3308_v59 = vpop.f32.mrf.mxu0 }
 0x101   :  { %v3319_v11 = vpop.f32.mrf.mxu1 }
 0x102   :  { %5515 = vst [vmem:[#allocation5_spill] sm:$0xff] %v3319_v11  ;;  %1019 = vmatmul.f32.gmra.mxu0 %v98_v3  ;;  %v102_v3 = vld [vmem:[%s5465_s0 + $0x2c0] sm:$0xff] }
 0x103   :  { %1343 = vmatmul.f32.gmra.mxu3 %v422_v4  ;;  %2482 = vmatmul.msk.f32.gmra.mxu2 %vm486_vm0, %v109_v5 }
 0x104   :  { %1468 = vmatmul.f32.gmra.mxu1 %v99_v19 }
 0x106   :  { %v3325_v20 = vpop.f32.mrf.mxu3  ;;  %v3327_v21 = vpop.f32.mrf.mxu2 }
 0x107   :  { %5516 = vst [vmem:[#allocation6_spill] sm:$0xff] %v3325_v20  ;;  %v3329_v27 = vpop.f32.mrf.mxu0 }
 0x108   :  { %5517 = vst [vmem:[#allocation7_spill] sm:$0xff] %v3327_v21  ;;  %v104_v21 = vld [vmem:[%s5465_s0 + $0x2d0] sm:$0xff] }
 0x109   :  { %5518 = vst [vmem:[#allocation8_spill] sm:$0xff] %v3329_v27  ;;  %v3340_v51 = vpop.f32.mrf.mxu1 }
 0x10a   :  { %5519 = vst [vmem:[#allocation9_spill] sm:$0xff] %v3340_v51  ;;  %1022 = vmatmul.f32.gmra.mxu0 %v101_v37  ;;  %v428_v37 = vld [vmem:[%s5465_s0 + $0xcf0] sm:$0xff] }
 0x10b   :  { %1346 = vmatmul.f32.gmra.mxu3 %v425_v38  ;;  %2483 = vmatmul.msk.f32.gmra.mxu2 %vm486_vm0, %v112_v39  ;;  %v115_v38 = vld [vmem:[%s5465_s0 + $0x328] sm:$0xff] }
 0x10c   :  { %1471 = vmatmul.f32.gmra.mxu1 %v102_v3  ;;  %v105_v3 = vld [vmem:[%s5465_s0 + $0x2d8] sm:$0xff] }
 0x10e   :  { %v3346_v4 = vpop.f32.mrf.mxu3  ;;  %v3348_v5 = vpop.f32.mrf.mxu2 }
 0x10f   :  { %5520 = vst [vmem:[#allocation10_spill] sm:$0xff] %v3346_v4  ;;  %v3350_v19 = vpop.f32.mrf.mxu0  ;;  %v107_v4 = vld [vmem:[%s5465_s0 + $0x2e8] sm:$0xff] }
 0x110   :  { %5521 = vst [vmem:[#allocation11_spill] sm:$0xff] %v3348_v5 }
 0x111   :  { %5522 = vst [vmem:[#allocation12_spill] sm:$0xff] %v3350_v19  ;;  %v3361_v39 = vpop.f32.mrf.mxu1 }
 0x112   :  { %5523 = vst [vmem:[#allocation13_spill] sm:$0xff] %v3361_v39  ;;  %1025 = vmatmul.f32.gmra.mxu0 %v104_v21  ;;  %v431_v21 = vld [vmem:[%s5465_s0 + $0xd08] sm:$0xff]  ;;  %v110_v39 = vld [vmem:[%s5465_s0 + $0x300] sm:$0xff] }
 0x113   :  { %1349 = vmatmul.f32.gmra.mxu3 %v428_v37  ;;  %2484 = vmatmul.msk.f32.gmra.mxu2 %vm486_vm0, %v115_v38  ;;  %v118_v37 = vld [vmem:[%s5465_s0 + $0x340] sm:$0xff] }
 0x114   :  { %1474 = vmatmul.f32.gmra.mxu1 %v105_v3  ;;  %v108_v3 = vld [vmem:[%s5465_s0 + $0x2f0] sm:$0xff] }
 0x116   :  { %v3367_v5 = vpop.f32.mrf.mxu3  ;;  %v3369_v53 = vpop.f32.mrf.mxu2 }
 0x117   :  { %5524 = vst [vmem:[#allocation14_spill] sm:$0xff] %v3367_v5  ;;  %v3371_v19 = vpop.f32.mrf.mxu0 }
 0x118   :  { %5525 = vst [vmem:[#allocation15_spill] sm:$0xff] %v3369_v53 }
 0x119   :  { %5526 = vst [vmem:[#allocation16_spill] sm:$0xff] %v3371_v19  ;;  %v3382_v38 = vpop.f32.mrf.mxu1 }
 0x11a   :  { %5527 = vst [vmem:[#allocation17_spill] sm:$0xff] %v3382_v38  ;;  %1028 = vmatmul.f32.gmra.mxu0 %v107_v4  ;;  %v434_v4 = vld [vmem:[%s5465_s0 + $0xd20] sm:$0xff]  ;;  %v113_v38 = vld [vmem:[%s5465_s0 + $0x318] sm:$0xff] }
 0x11b   :  { %1352 = vmatmul.f32.gmra.mxu3 %v431_v21  ;;  %2485 = vmatmul.msk.f32.gmra.mxu2 %vm486_vm0, %v118_v37  ;;  %v121_v21 = vld [vmem:[%s5465_s0 + $0x358] sm:$0xff] }
 0x11c   :  { %1477 = vmatmul.f32.gmra.mxu1 %v108_v3  ;;  %v111_v3 = vld [vmem:[%s5465_s0 + $0x308] sm:$0xff] }
 0x11e   :  { %v3388_v53 = vpop.f32.mrf.mxu3  ;;  %v3390_v19 = vpop.f32.mrf.mxu2 }
 0x11f   :  { %5528 = vst [vmem:[#allocation18_spill] sm:$0xff] %v3388_v53  ;;  %v3392_v5 = vpop.f32.mrf.mxu0 }
 0x120   :  { %5529 = vst [vmem:[#allocation19_spill] sm:$0xff] %v3390_v19 }
 0x121   :  { %5530 = vst [vmem:[#allocation20_spill] sm:$0xff] %v3392_v5  ;;  %v3403_v37 = vpop.f32.mrf.mxu1 }
 0x122   :  { %5531 = vst [vmem:[#allocation21_spill] sm:$0xff] %v3403_v37  ;;  %1031 = vmatmul.f32.gmra.mxu0 %v110_v39  ;;  %v437_v39 = vld [vmem:[%s5465_s0 + $0xd38] sm:$0xff]  ;;  %v116_v37 = vld [vmem:[%s5465_s0 + $0x330] sm:$0xff] }
 0x123   :  { %1355 = vmatmul.f32.gmra.mxu3 %v434_v4  ;;  %2486 = vmatmul.msk.f32.gmra.mxu2 %vm486_vm0, %v121_v21  ;;  %v124_v4 = vld [vmem:[%s5465_s0 + $0x370] sm:$0xff] }
 0x124   :  { %1480 = vmatmul.f32.gmra.mxu1 %v111_v3  ;;  %v114_v3 = vld [vmem:[%s5465_s0 + $0x320] sm:$0xff] }
 0x126   :  { %v3409_v19 = vpop.f32.mrf.mxu3  ;;  %v3411_v5 = vpop.f32.mrf.mxu2 }
 0x127   :  { %5532 = vst [vmem:[#allocation22_spill] sm:$0xff] %v3409_v19  ;;  %v3413_v53 = vpop.f32.mrf.mxu0 }
 0x128   :  { %5533 = vst [vmem:[#allocation23_spill] sm:$0xff] %v3411_v5 }
 0x129   :  { %5534 = vst [vmem:[#allocation24_spill] sm:$0xff] %v3413_v53  ;;  %v3424_v21 = vpop.f32.mrf.mxu1 }
 0x12a   :  { %5535 = vst [vmem:[#allocation25_spill] sm:$0xff] %v3424_v21  ;;  %1034 = vmatmul.f32.gmra.mxu0 %v113_v38  ;;  %v440_v38 = vld [vmem:[%s5465_s0 + $0xd50] sm:$0xff]  ;;  %v119_v21 = vld [vmem:[%s5465_s0 + $0x348] sm:$0xff] }
 0x12b   :  { %1358 = vmatmul.f32.gmra.mxu3 %v437_v39  ;;  %2487 = vmatmul.msk.f32.gmra.mxu2 %vm486_vm0, %v124_v4  ;;  %v127_v39 = vld [vmem:[%s5465_s0 + $0x388] sm:$0xff] }
 0x12c   :  { %1483 = vmatmul.f32.gmra.mxu1 %v114_v3  ;;  %v117_v3 = vld [vmem:[%s5465_s0 + $0x338] sm:$0xff] }
 0x12e   :  { %v3430_v5 = vpop.f32.mrf.mxu3  ;;  %v3432_v53 = vpop.f32.mrf.mxu2 }
 0x12f   :  { %5536 = vst [vmem:[#allocation26_spill] sm:$0xff] %v3430_v5  ;;  %v3434_v19 = vpop.f32.mrf.mxu0 }
 0x130   :  { %5537 = vst [vmem:[#allocation27_spill] sm:$0xff] %v3432_v53 }
 0x131   :  { %5538 = vst [vmem:[#allocation28_spill] sm:$0xff] %v3434_v19  ;;  %v3445_v4 = vpop.f32.mrf.mxu1 }
 0x132   :  { %5539 = vst [vmem:[#allocation29_spill] sm:$0xff] %v3445_v4  ;;  %1037 = vmatmul.f32.gmra.mxu0 %v116_v37  ;;  %v443_v37 = vld [vmem:[%s5465_s0 + $0xd68] sm:$0xff]  ;;  %v122_v4 = vld [vmem:[%s5465_s0 + $0x360] sm:$0xff] }
 0x133   :  { %1361 = vmatmul.f32.gmra.mxu3 %v440_v38  ;;  %2488 = vmatmul.msk.f32.gmra.mxu2 %vm486_vm0, %v127_v39  ;;  %v130_v38 = vld [vmem:[%s5465_s0 + $0x3a0] sm:$0xff] }
 0x134   :  { %1486 = vmatmul.f32.gmra.mxu1 %v117_v3  ;;  %v120_v3 = vld [vmem:[%s5465_s0 + $0x350] sm:$0xff] }
 0x136   :  { %v3451_v53 = vpop.f32.mrf.mxu3  ;;  %v3453_v19 = vpop.f32.mrf.mxu2 }
 0x137   :  { %5540 = vst [vmem:[#allocation30_spill] sm:$0xff] %v3451_v53  ;;  %v3455_v5 = vpop.f32.mrf.mxu0 }
 0x138   :  { %5541 = vst [vmem:[#allocation31_spill] sm:$0xff] %v3453_v19 }
 0x139   :  { %5542 = vst [vmem:[#allocation32_spill] sm:$0xff] %v3455_v5  ;;  %v3466_v39 = vpop.f32.mrf.mxu1 }
 0x13a   :  { %5543 = vst [vmem:[#allocation33_spill] sm:$0xff] %v3466_v39  ;;  %1040 = vmatmul.f32.gmra.mxu0 %v119_v21  ;;  %v339_v21 = vld [vmem:[%s5465_s0 + $0xa28] sm:$0xff]  ;;  %v125_v39 = vld [vmem:[%s5465_s0 + $0x378] sm:$0xff] }
 0x13b   :  { %1364 = vmatmul.f32.gmra.mxu3 %v443_v37  ;;  %2489 = vmatmul.msk.f32.gmra.mxu2 %vm486_vm0, %v130_v38  ;;  %v133_v37 = vld [vmem:[%s5465_s0 + $0x3b8] sm:$0xff] }
 0x13c   :  { %1489 = vmatmul.f32.gmra.mxu1 %v120_v3  ;;  %v123_v3 = vld [vmem:[%s5465_s0 + $0x368] sm:$0xff] }
 0x13e   :  { %v3472_v19 = vpop.f32.mrf.mxu3  ;;  %v3474_v5 = vpop.f32.mrf.mxu2 }
 0x13f   :  { %5544 = vst [vmem:[#allocation34_spill] sm:$0xff] %v3472_v19  ;;  %v3476_v53 = vpop.f32.mrf.mxu0 }
 0x140   :  { %5545 = vst [vmem:[#allocation35_spill] sm:$0xff] %v3474_v5 }
 0x141   :  { %5546 = vst [vmem:[#allocation36_spill] sm:$0xff] %v3476_v53  ;;  %v3487_v38 = vpop.f32.mrf.mxu1 }
 0x142   :  { %5547 = vst [vmem:[#allocation37_spill] sm:$0xff] %v3487_v38  ;;  %1043 = vmatmul.f32.gmra.mxu0 %v122_v4  ;;  %v342_v4 = vld [vmem:[%s5465_s0 + $0xa40] sm:$0xff]  ;;  %v128_v38 = vld [vmem:[%s5465_s0 + $0x390] sm:$0xff] }
 0x143   :  { %1708 = vmatmul.f32.vlgmr.msrb.gmra.mxu3 %v339_v21  ;;  %2490 = vmatmul.msk.f32.gmra.mxu2 %vm486_vm0, %v133_v37  ;;  %v136_v21 = vld [vmem:[%s5465_s0 + $0x3d0] sm:$0xff] }
 0x144   :  { %1492 = vmatmul.f32.gmra.mxu1 %v123_v3  ;;  %v126_v3 = vld [vmem:[%s5465_s0 + $0x380] sm:$0xff] }
 0x146   :  { %v3493_v5 = vpop.f32.mrf.mxu3  ;;  %v3495_v53 = vpop.f32.mrf.mxu2 }
 0x147   :  { %5548 = vst [vmem:[#allocation38_spill] sm:$0xff] %v3493_v5  ;;  %v3497_v19 = vpop.f32.mrf.mxu0 }
 0x148   :  { %5549 = vst [vmem:[#allocation39_spill] sm:$0xff] %v3495_v53 }
 0x149   :  { %5550 = vst [vmem:[#allocation40_spill] sm:$0xff] %v3497_v19  ;;  %v3508_v37 = vpop.f32.mrf.mxu1 }
 0x14a   :  { %5551 = vst [vmem:[#allocation41_spill] sm:$0xff] %v3508_v37  ;;  %1046 = vmatmul.f32.gmra.mxu0 %v125_v39  ;;  %v345_v39 = vld [vmem:[%s5465_s0 + $0xa58] sm:$0xff]  ;;  %v131_v37 = vld [vmem:[%s5465_s0 + $0x3a8] sm:$0xff] }
 0x14b   :  { %1711 = vmatmul.f32.gmra.mxu3 %v342_v4  ;;  %2491 = vmatmul.msk.f32.gmra.mxu2 %vm486_vm0, %v136_v21  ;;  %v139_v4 = vld [vmem:[%s5465_s0 + $0x3e8] sm:$0xff] }
 0x14c   :  { %1495 = vmatmul.f32.gmra.mxu1 %v126_v3  ;;  %v129_v3 = vld [vmem:[%s5465_s0 + $0x398] sm:$0xff] }
 0x14e   :  { %v3514_v53 = vpop.f32.mrf.mxu3  ;;  %v3516_v19 = vpop.f32.mrf.mxu2 }
 0x14f   :  { %5552 = vst [vmem:[#allocation42_spill] sm:$0xff] %v3514_v53  ;;  %v3518_v5 = vpop.f32.mrf.mxu0 }
 0x150   :  { %5553 = vst [vmem:[#allocation43_spill] sm:$0xff] %v3516_v19 }
 0x151   :  { %5554 = vst [vmem:[#allocation44_spill] sm:$0xff] %v3518_v5  ;;  %v3529_v21 = vpop.f32.mrf.mxu1 }
 0x152   :  { %5555 = vst [vmem:[#allocation45_spill] sm:$0xff] %v3529_v21  ;;  %1049 = vmatmul.f32.gmra.mxu0 %v128_v38  ;;  %v348_v38 = vld [vmem:[%s5465_s0 + $0xa70] sm:$0xff]  ;;  %v134_v21 = vld [vmem:[%s5465_s0 + $0x3c0] sm:$0xff] }
 0x153   :  { %1714 = vmatmul.f32.gmra.mxu3 %v345_v39  ;;  %2492 = vmatmul.msk.f32.gmra.mxu2 %vm486_vm0, %v139_v4  ;;  %v142_v39 = vld [vmem:[%s5465_s0 + $0x400] sm:$0xff] }
 0x154   :  { %1498 = vmatmul.f32.gmra.mxu1 %v129_v3  ;;  %v132_v3 = vld [vmem:[%s5465_s0 + $0x3b0] sm:$0xff] }
 0x156   :  { %v3535_v19 = vpop.f32.mrf.mxu3  ;;  %v3537_v5 = vpop.f32.mrf.mxu2 }
 0x157   :  { %5556 = vst [vmem:[#allocation46_spill] sm:$0xff] %v3535_v19  ;;  %v3539_v53 = vpop.f32.mrf.mxu0 }
 0x158   :  { %5557 = vst [vmem:[#allocation47_spill] sm:$0xff] %v3537_v5 }
 0x159   :  { %5558 = vst [vmem:[#allocation48_spill] sm:$0xff] %v3539_v53  ;;  %v3550_v4 = vpop.f32.mrf.mxu1 }
 0x15a   :  { %5559 = vst [vmem:[#allocation49_spill] sm:$0xff] %v3550_v4  ;;  %1052 = vmatmul.f32.gmra.mxu0 %v131_v37  ;;  %v351_v37 = vld [vmem:[%s5465_s0 + $0xa88] sm:$0xff]  ;;  %v137_v4 = vld [vmem:[%s5465_s0 + $0x3d8] sm:$0xff] }
 0x15b   :  { %1717 = vmatmul.f32.gmra.mxu3 %v348_v38  ;;  %2493 = vmatmul.msk.f32.gmra.mxu2 %vm486_vm0, %v142_v39  ;;  %v145_v38 = vld [vmem:[%s5465_s0 + $0x418] sm:$0xff] }
 0x15c   :  { %1501 = vmatmul.f32.gmra.mxu1 %v132_v3  ;;  %v135_v3 = vld [vmem:[%s5465_s0 + $0x3c8] sm:$0xff] }
 0x15e   :  { %v3556_v5 = vpop.f32.mrf.mxu3  ;;  %v3558_v53 = vpop.f32.mrf.mxu2 }
 0x15f   :  { %5560 = vst [vmem:[#allocation50_spill] sm:$0xff] %v3556_v5  ;;  %v3560_v19 = vpop.f32.mrf.mxu0 }
 0x160   :  { %5561 = vst [vmem:[#allocation51_spill] sm:$0xff] %v3558_v53 }
 0x161   :  { %5562 = vst [vmem:[#allocation52_spill] sm:$0xff] %v3560_v19  ;;  %v3571_v39 = vpop.f32.mrf.mxu1 }
 0x162   :  { %5563 = vst [vmem:[#allocation53_spill] sm:$0xff] %v3571_v39  ;;  %1055 = vmatmul.f32.gmra.mxu0 %v134_v21  ;;  %v354_v21 = vld [vmem:[%s5465_s0 + $0xaa0] sm:$0xff]  ;;  %v140_v39 = vld [vmem:[%s5465_s0 + $0x3f0] sm:$0xff] }
 0x163   :  { %1720 = vmatmul.f32.gmra.mxu3 %v351_v37  ;;  %2494 = vmatmul.msk.f32.gmra.mxu2 %vm486_vm0, %v145_v38  ;;  %v148_v37 = vld [vmem:[%s5465_s0 + $0x430] sm:$0xff] }
 0x164   :  { %1504 = vmatmul.f32.gmra.mxu1 %v135_v3  ;;  %v138_v3 = vld [vmem:[%s5465_s0 + $0x3e0] sm:$0xff] }
 0x166   :  { %v3577_v53 = vpop.f32.mrf.mxu3  ;;  %v3579_v19 = vpop.f32.mrf.mxu2 }
 0x167   :  { %5564 = vst [vmem:[#allocation54_spill] sm:$0xff] %v3577_v53  ;;  %v3581_v5 = vpop.f32.mrf.mxu0 }
 0x168   :  { %5565 = vst [vmem:[#allocation55_spill] sm:$0xff] %v3579_v19 }
 0x169   :  { %5566 = vst [vmem:[#allocation56_spill] sm:$0xff] %v3581_v5  ;;  %v3592_v38 = vpop.f32.mrf.mxu1 }
 0x16a   :  { %5567 = vst [vmem:[#allocation57_spill] sm:$0xff] %v3592_v38  ;;  %1058 = vmatmul.f32.gmra.mxu0 %v137_v4  ;;  %v357_v4 = vld [vmem:[%s5465_s0 + $0xab8] sm:$0xff]  ;;  %v143_v38 = vld [vmem:[%s5465_s0 + $0x408] sm:$0xff] }
 0x16b   :  { %1723 = vmatmul.f32.gmra.mxu3 %v354_v21  ;;  %2495 = vmatmul.msk.f32.gmra.mxu2 %vm486_vm0, %v148_v37  ;;  %v151_v21 = vld [vmem:[%s5465_s0 + $0x448] sm:$0xff] }
 0x16c   :  { %1507 = vmatmul.f32.gmra.mxu1 %v138_v3  ;;  %v141_v3 = vld [vmem:[%s5465_s0 + $0x3f8] sm:$0xff] }
 0x16e   :  { %v3598_v19 = vpop.f32.mrf.mxu3  ;;  %v3600_v5 = vpop.f32.mrf.mxu2 }
 0x16f   :  { %5568 = vst [vmem:[#allocation58_spill] sm:$0xff] %v3598_v19  ;;  %v3602_v53 = vpop.f32.mrf.mxu0 }
 0x170   :  { %5569 = vst [vmem:[#allocation59_spill] sm:$0xff] %v3600_v5 }
 0x171   :  { %5570 = vst [vmem:[#allocation60_spill] sm:$0xff] %v3602_v53  ;;  %v3613_v37 = vpop.f32.mrf.mxu1 }
 0x172   :  { %5571 = vst [vmem:[#allocation61_spill] sm:$0xff] %v3613_v37  ;;  %1061 = vmatmul.f32.gmra.mxu0 %v140_v39  ;;  %v360_v39 = vld [vmem:[%s5465_s0 + $0xad0] sm:$0xff]  ;;  %v146_v37 = vld [vmem:[%s5465_s0 + $0x420] sm:$0xff] }
 0x173   :  { %1726 = vmatmul.f32.gmra.mxu3 %v357_v4  ;;  %2496 = vmatmul.msk.f32.gmra.mxu2 %vm486_vm0, %v151_v21  ;;  %v154_v4 = vld [vmem:[%s5465_s0 + $0x460] sm:$0xff] }
 0x174   :  { %1510 = vmatmul.f32.gmra.mxu1 %v141_v3  ;;  %v144_v3 = vld [vmem:[%s5465_s0 + $0x410] sm:$0xff] }
 0x176   :  { %v3619_v5 = vpop.f32.mrf.mxu3  ;;  %v3621_v53 = vpop.f32.mrf.mxu2 }
 0x177   :  { %5572 = vst [vmem:[#allocation62_spill] sm:$0xff] %v3619_v5  ;;  %v3623_v19 = vpop.f32.mrf.mxu0 }
 0x178   :  { %5573 = vst [vmem:[#allocation63_spill] sm:$0xff] %v3621_v53 }
 0x179   :  { %5574 = vst [vmem:[#allocation64_spill] sm:$0xff] %v3623_v19  ;;  %v3634_v21 = vpop.f32.mrf.mxu1 }
 0x17a   :  { %5575 = vst [vmem:[#allocation65_spill] sm:$0xff] %v3634_v21  ;;  %1064 = vmatmul.f32.gmra.mxu0 %v143_v38  ;;  %v363_v38 = vld [vmem:[%s5465_s0 + $0xae8] sm:$0xff]  ;;  %v149_v21 = vld [vmem:[%s5465_s0 + $0x438] sm:$0xff] }
 0x17b   :  { %1729 = vmatmul.f32.gmra.mxu3 %v360_v39  ;;  %2497 = vmatmul.msk.f32.gmra.mxu2 %vm486_vm0, %v154_v4  ;;  %v157_v39 = vld [vmem:[%s5465_s0 + $0x478] sm:$0xff] }
 0x17c   :  { %1513 = vmatmul.f32.gmra.mxu1 %v144_v3  ;;  %v147_v3 = vld [vmem:[%s5465_s0 + $0x428] sm:$0xff] }
 0x17e   :  { %v3640_v53 = vpop.f32.mrf.mxu3  ;;  %v3642_v19 = vpop.f32.mrf.mxu2 }
 0x17f   :  { %5576 = vst [vmem:[#allocation66_spill] sm:$0xff] %v3640_v53  ;;  %v3644_v5 = vpop.f32.mrf.mxu0 }
 0x180   :  { %5577 = vst [vmem:[#allocation67_spill] sm:$0xff] %v3642_v19 }
 0x181   :  { %5578 = vst [vmem:[#allocation68_spill] sm:$0xff] %v3644_v5  ;;  %v3655_v4 = vpop.f32.mrf.mxu1 }
 0x182   :  { %5579 = vst [vmem:[#allocation69_spill] sm:$0xff] %v3655_v4  ;;  %1067 = vmatmul.f32.gmra.mxu0 %v146_v37  ;;  %v366_v37 = vld [vmem:[%s5465_s0 + $0xb00] sm:$0xff]  ;;  %v152_v4 = vld [vmem:[%s5465_s0 + $0x450] sm:$0xff] }
 0x183   :  { %1732 = vmatmul.f32.gmra.mxu3 %v363_v38  ;;  %2498 = vmatmul.msk.f32.gmra.mxu2 %vm486_vm0, %v157_v39  ;;  %v160_v38 = vld [vmem:[%s5465_s0 + $0x490] sm:$0xff] }
 0x184   :  { %1516 = vmatmul.f32.gmra.mxu1 %v147_v3  ;;  %v150_v3 = vld [vmem:[%s5465_s0 + $0x440] sm:$0xff] }
 0x186   :  { %v3661_v19 = vpop.f32.mrf.mxu3  ;;  %v3663_v5 = vpop.f32.mrf.mxu2 }
 0x187   :  { %5580 = vst [vmem:[#allocation70_spill] sm:$0xff] %v3661_v19  ;;  %v3665_v53 = vpop.f32.mrf.mxu0 }
 0x188   :  { %5581 = vst [vmem:[#allocation71_spill] sm:$0xff] %v3663_v5 }
 0x189   :  { %5582 = vst [vmem:[#allocation72_spill] sm:$0xff] %v3665_v53  ;;  %v3676_v39 = vpop.f32.mrf.mxu1 }
 0x18a   :  { %5583 = vst [vmem:[#allocation73_spill] sm:$0xff] %v3676_v39  ;;  %1070 = vmatmul.f32.gmra.mxu0 %v149_v21  ;;  %v369_v21 = vld [vmem:[%s5465_s0 + $0xb18] sm:$0xff]  ;;  %v155_v39 = vld [vmem:[%s5465_s0 + $0x468] sm:$0xff] }
 0x18b   :  { %1735 = vmatmul.f32.gmra.mxu3 %v366_v37  ;;  %2499 = vmatmul.msk.f32.gmra.mxu2 %vm486_vm0, %v160_v38  ;;  %v163_v37 = vld [vmem:[%s5465_s0 + $0x4a8] sm:$0xff] }
 0x18c   :  { %1519 = vmatmul.f32.gmra.mxu1 %v150_v3  ;;  %v153_v3 = vld [vmem:[%s5465_s0 + $0x458] sm:$0xff] }
 0x18e   :  { %v3682_v5 = vpop.f32.mrf.mxu3  ;;  %v3684_v53 = vpop.f32.mrf.mxu2 }
 0x18f   :  { %5584 = vst [vmem:[#allocation74_spill] sm:$0xff] %v3682_v5  ;;  %v3686_v19 = vpop.f32.mrf.mxu0 }
 0x190   :  { %5585 = vst [vmem:[#allocation75_spill] sm:$0xff] %v3684_v53 }
 0x191   :  { %5586 = vst [vmem:[#allocation76_spill] sm:$0xff] %v3686_v19  ;;  %v3697_v38 = vpop.f32.mrf.mxu1 }
 0x192   :  { %5587 = vst [vmem:[#allocation77_spill] sm:$0xff] %v3697_v38  ;;  %1073 = vmatmul.f32.gmra.mxu0 %v152_v4  ;;  %v372_v4 = vld [vmem:[%s5465_s0 + $0xb30] sm:$0xff]  ;;  %v158_v38 = vld [vmem:[%s5465_s0 + $0x480] sm:$0xff] }
 0x193   :  { %1738 = vmatmul.f32.gmra.mxu3 %v369_v21  ;;  %2500 = vmatmul.msk.f32.gmra.mxu2 %vm486_vm0, %v163_v37  ;;  %v166_v21 = vld [vmem:[%s5465_s0 + $0x4c0] sm:$0xff] }
 0x194   :  { %1522 = vmatmul.f32.gmra.mxu1 %v153_v3  ;;  %v156_v3 = vld [vmem:[%s5465_s0 + $0x470] sm:$0xff] }
 0x196   :  { %v3703_v53 = vpop.f32.mrf.mxu3  ;;  %v3705_v19 = vpop.f32.mrf.mxu2 }
 0x197   :  { %5588 = vst [vmem:[#allocation78_spill] sm:$0xff] %v3703_v53  ;;  %v3707_v5 = vpop.f32.mrf.mxu0 }
 0x198   :  { %5589 = vst [vmem:[#allocation79_spill] sm:$0xff] %v3705_v19 }
 0x199   :  { %5590 = vst [vmem:[#allocation80_spill] sm:$0xff] %v3707_v5  ;;  %v3718_v37 = vpop.f32.mrf.mxu1 }
 0x19a   :  { %5591 = vst [vmem:[#allocation81_spill] sm:$0xff] %v3718_v37  ;;  %1076 = vmatmul.f32.gmra.mxu0 %v155_v39  ;;  %v375_v39 = vld [vmem:[%s5465_s0 + $0xb48] sm:$0xff]  ;;  %v161_v37 = vld [vmem:[%s5465_s0 + $0x498] sm:$0xff] }
 0x19b   :  { %1741 = vmatmul.f32.gmra.mxu3 %v372_v4  ;;  %2501 = vmatmul.msk.f32.gmra.mxu2 %vm486_vm0, %v166_v21  ;;  %v169_v4 = vld [vmem:[%s5465_s0 + $0x4d8] sm:$0xff] }
 0x19c   :  { %1525 = vmatmul.f32.gmra.mxu1 %v156_v3  ;;  %v159_v3 = vld [vmem:[%s5465_s0 + $0x488] sm:$0xff] }
 0x19e   :  { %v3724_v19 = vpop.f32.mrf.mxu3  ;;  %v3726_v5 = vpop.f32.mrf.mxu2 }
 0x19f   :  { %5592 = vst [vmem:[#allocation82_spill] sm:$0xff] %v3724_v19  ;;  %v3728_v53 = vpop.f32.mrf.mxu0 }
 0x1a0   :  { %5593 = vst [vmem:[#allocation83_spill] sm:$0xff] %v3726_v5 }
 0x1a1   :  { %5594 = vst [vmem:[#allocation84_spill] sm:$0xff] %v3728_v53  ;;  %v3739_v21 = vpop.f32.mrf.mxu1 }
 0x1a2   :  { %5595 = vst [vmem:[#allocation85_spill] sm:$0xff] %v3739_v21  ;;  %1079 = vmatmul.f32.gmra.mxu0 %v158_v38  ;;  %v378_v38 = vld [vmem:[%s5465_s0 + $0xb60] sm:$0xff]  ;;  %v164_v21 = vld [vmem:[%s5465_s0 + $0x4b0] sm:$0xff] }
 0x1a3   :  { %1744 = vmatmul.f32.gmra.mxu3 %v375_v39  ;;  %2502 = vmatmul.msk.f32.gmra.mxu2 %vm486_vm0, %v169_v4  ;;  %v172_v39 = vld [vmem:[%s5465_s0 + $0x4f0] sm:$0xff] }
 0x1a4   :  { %1528 = vmatmul.f32.gmra.mxu1 %v159_v3  ;;  %v162_v3 = vld [vmem:[%s5465_s0 + $0x4a0] sm:$0xff] }
 0x1a6   :  { %v3745_v5 = vpop.f32.mrf.mxu3  ;;  %v3747_v53 = vpop.f32.mrf.mxu2 }
 0x1a7   :  { %5596 = vst [vmem:[#allocation86_spill] sm:$0xff] %v3745_v5  ;;  %v3749_v19 = vpop.f32.mrf.mxu0 }
 0x1a8   :  { %5597 = vst [vmem:[#allocation87_spill] sm:$0xff] %v3747_v53 }
 0x1a9   :  { %5598 = vst [vmem:[#allocation88_spill] sm:$0xff] %v3749_v19  ;;  %v3760_v4 = vpop.f32.mrf.mxu1 }
 0x1aa   :  { %5599 = vst [vmem:[#allocation89_spill] sm:$0xff] %v3760_v4  ;;  %1082 = vmatmul.f32.gmra.mxu0 %v161_v37  ;;  %v381_v37 = vld [vmem:[%s5465_s0 + $0xb78] sm:$0xff] }
 0x1ab   :  { %1747 = vmatmul.f32.gmra.mxu3 %v378_v38  ;;  %2503 = vmatmul.msk.f32.gmra.mxu2 %vm486_vm0, %v172_v39  ;;  %v175_v38 = vld [vmem:[%s5465_s0 + $0x508] sm:$0xff]  ;;  %v165_v39 = vld [vmem:[%s5465_s0 + $0x4b8] sm:$0xff] }
 0x1ac   :  { %1531 = vmatmul.f32.gmra.mxu1 %v162_v3 }
 0x1ae   :  { %v3766_v53 = vpop.f32.mrf.mxu3  ;;  %v1942_v19 = vpop.f32.mrf.mxu2 }
 0x1af   :  { %5600 = vst [vmem:[#allocation90_spill] sm:$0xff] %v3766_v53  ;;  %v3768_v5 = vpop.f32.mrf.mxu0 }
 0x1b0   :  { %5601 = vst [vmem:[#allocation91_spill] sm:$0xff] %v3768_v5 }
 0x1b1   :  { %v3779_v4 = vpop.f32.mrf.mxu1 }
 0x1b2   :  { %5602 = vst [vmem:[#allocation92_spill] sm:$0xff] %v3779_v4  ;;  %1085 = vmatmul.f32.gmra.mxu0 %v164_v21  ;;  %v384_v21 = vld [vmem:[%s5465_s0 + $0xb90] sm:$0xff] }
 0x1b3   :  { %1750 = vmatmul.f32.gmra.mxu3 %v381_v37  ;;  %2504 = vmatmul.msk.f32.gmra.mxu2 %vm486_vm0, %v175_v38  ;;  %v178_v37 = vld [vmem:[%s5465_s0 + $0x520] sm:$0xff] }
 0x1b4   :  { %1534 = vmatmul.f32.gmra.mxu1 %v165_v39  ;;  %v3801_v38 = vld [vmem:[%s5466_s2] ss:$0 sm:$0xff] }
 0x1b5   :  { %v1261_v13 = vadd.f32 %v3801_v38, %v3073_v48  ;;  %v940_v11 = vadd.f32 %v3801_v38, %v3077_v50  ;;  %v390_v50 = vld [vmem:[%s5465_s0 + $0xbc0] sm:$0xff] }
 0x1b6   :  { %v3785_v3 = vpop.f32.mrf.mxu3  ;;  %v1945_v5 = vpop.f32.mrf.mxu2 }
 0x1b7   :  { %5603 = vst [vmem:[#allocation93_spill] sm:$0xff] %v3785_v3  ;;  %v3787_v53 = vpop.f32.mrf.mxu0  ;;  %v937_v3 = vadd.f32 %v3801_v38, %v3056_v42 }
 0x1b8   :  { %5604 = vst [vmem:[#allocation94_spill] sm:$0xff] %v3787_v53  ;;  %v168_v53 = vld [vmem:[%s5465_s0 + $0x4d0] sm:$0xff] }
 0x1b9   :  { %v3803_v39 = vpop.f32.mrf.mxu1  ;;  %v1386_v42 = vadd.f32 %v3067_v46, %v937_v3 }
 0x1ba   :  { %5605 = vst [vmem:[#allocation95_spill] sm:$0xff] %v3803_v39  ;;  %1088 = vmatmul.f32.gmra.mxu0 %v167_v29  ;;  %v170_v39 = vld [vmem:[%s5465_s0 + $0x4e0] sm:$0xff] }
 0x1bb   :  { %1753 = vmatmul.f32.gmra.mxu3 %v384_v21  ;;  %2505 = vmatmul.msk.f32.gmra.mxu2 %vm486_vm0, %v178_v37  ;;  %v387_v21 = vld [vmem:[%s5465_s0 + $0xba8] sm:$0xff]  ;;  %v181_v37 = vld [vmem:[%s5465_s0 + $0x538] sm:$0xff] }
 0x1bc   :  { %1537 = vmatmul.f32.gmra.mxu1 %v168_v53 }
 0x1be   :  { %v3811_v4 = vpop.f32.mrf.mxu3  ;;  %v1948_v51 = vpop.f32.mrf.mxu2 }
 0x1bf   :  { %5606 = vst [vmem:[#allocation96_spill] sm:$0xff] %v3811_v4  ;;  %v1044_v27 = vpop.f32.mrf.mxu0  ;;  %v171_v4 = vld [vmem:[%s5465_s0 + $0x4e8] sm:$0xff] }
 0x1c0   :  { %v1045_v29 = vadd.f32 %v3801_v38, %v1044_v27  ;;  %v3829_v27 = vadd.f32 %v3024_v31, %v1386_v42  ;;  %v173_v31 = vld [vmem:[%s5465_s0 + $0x4f8] sm:$0xff] }
 0x1c1   :  { %v1493_v53 = vpop.f32.mrf.mxu1 }
 0x1c2   :  { %1091 = vmatmul.f32.gmra.mxu0 %v170_v39  ;;  %v1494_v20 = vadd.f32 %v1493_v53, %v1045_v29  ;;  %5607 = vst [vmem:[#allocation97_spill] sm:$0xff] %v3829_v27  ;;  %v5619_v29 = vld [vmem:[#allocation8_spill] sm:$0xff] }
 0x1c3   :  { %1756 = vmatmul.f32.gmra.mxu3 %v387_v21  ;;  %2506 = vmatmul.msk.f32.gmra.mxu2 %vm486_vm0, %v181_v37 }
 0x1c4   :  { %v3835_v46 = vadd.f32 %v1942_v19, %v1494_v20  ;;  %1540 = vmatmul.f32.gmra.mxu1 %v171_v4  ;;  %v184_v20 = vld [vmem:[%s5465_s0 + $0x550] sm:$0xff]  ;;  %v1389_v19 = vadd.f32 %v3088_v54, %v940_v11 }
 0x1c6   :  { %5608 = vst [vmem:[#allocation98_spill] sm:$0xff] %v3835_v46  ;;  %v1709_v3 = vpop.f32.mrf.mxu3  ;;  %v1951_v39 = vpop.f32.mrf.mxu2  ;;  %v3857_v53 = vadd.f32 %v3039_v36, %v1389_v19  ;;  %v176_v36 = vld [vmem:[%s5465_s0 + $0x510] sm:$0xff] }
 0x1c7   :  { %v3839_v21 = vadd.f32 %v1709_v3, %v1261_v13  ;;  %v1047_v37 = vpop.f32.mrf.mxu0  ;;  %v174_v13 = vld [vmem:[%s5465_s0 + $0x500] sm:$0xff]  ;;  %v1264_v3 = vadd.f32 %v3801_v38, %v3094_v56 }
 0x1c8   :  { %v1048_v48 = vadd.f32 %v3801_v38, %v1047_v37  ;;  %5610 = vst [vmem:[#allocation100_spill] sm:$0xff] %v3857_v53  ;;  %v943_v37 = vadd.f32 %v3801_v38, %v3098_v58  ;;  %v393_v58 = vld [vmem:[%s5465_s0 + $0xbd8] sm:$0xff] }
 0x1c9   :  { %5609 = vst [vmem:[#allocation99_spill] sm:$0xff] %v3839_v21  ;;  %v1496_v4 = vpop.f32.mrf.mxu1  ;;  %v5646_v21 = vld [vmem:[#allocation32_spill] sm:$0xff] }
 0x1ca   :  { %1094 = vmatmul.f32.gmra.mxu0 %v173_v31  ;;  %v1497_v42 = vadd.f32 %v1496_v4, %v1048_v48  ;;  %v1392_v19 = vadd.f32 %v3109_v62, %v943_v37 }
 0x1cb   :  { %1759 = vmatmul.f32.gmra.mxu3 %v390_v50  ;;  %2507 = vmatmul.msk.f32.gmra.mxu2 %vm486_vm0, %v184_v20 }
 0x1cc   :  { %v3863_v54 = vadd.f32 %v1945_v5, %v1497_v42  ;;  %1543 = vmatmul.f32.gmra.mxu1 %v174_v13  ;;  %v187_v5 = vld [vmem:[%s5465_s0 + $0x568] sm:$0xff]  ;;  %v177_v13 = vld [vmem:[%s5465_s0 + $0x518] sm:$0xff] }
 0x1ce   :  { %5611 = vst [vmem:[#allocation101_spill] sm:$0xff] %v3863_v54  ;;  %v1712_v11 = vpop.f32.mrf.mxu3  ;;  %v1954_v31 = vpop.f32.mrf.mxu2 }
 0x1cf   :  { %v3867_v50 = vadd.f32 %v1712_v11, %v1264_v3  ;;  %v1050_v20 = vpop.f32.mrf.mxu0  ;;  %v3885_v3 = vadd.f32 %v3054_v41, %v1392_v19  ;;  %v1267_v11 = vadd.f32 %v3801_v38, %v3115_v0  ;;  %v179_v41 = vld [vmem:[%s5465_s0 + $0x528] sm:$0xff] }
 0x1d0   :  { %v1051_v56 = vadd.f32 %v3801_v38, %v1050_v20  ;;  %v946_v20 = vadd.f32 %v3801_v38, %v3119_v2  ;;  %v396_v2 = vld [vmem:[%s5465_s0 + $0xbf0] sm:$0xff] }
 0x1d1   :  { %5612 = vst [vmem:[#allocation102_spill] sm:$0xff] %v3867_v50  ;;  %v1499_v4 = vpop.f32.mrf.mxu1  ;;  %v5640_v50 = vld [vmem:[#allocation28_spill] sm:$0xff] }
 0x1d2   :  { %1097 = vmatmul.f32.gmra.mxu0 %v176_v36  ;;  %v1500_v42 = vadd.f32 %v1499_v4, %v1051_v56  ;;  %5613 = vst [vmem:[#allocation103_spill] sm:$0xff] %v3885_v3  ;;  %v1395_v19 = vadd.f32 %v3130_v6, %v946_v20  ;;  %v5618_v56 = vld [vmem:[#allocation6_spill] sm:$0xff]  ;;  %v991_v46 = vadd.f32 %v3801_v38, %v5640_v50  ;;  %v441_v50 = vld [vmem:[%s5465_s0 + $0xd58] sm:$0xff] }
 0x1d3   :  { %1762 = vmatmul.f32.gmra.mxu3 %v393_v58  ;;  %2508 = vmatmul.msk.f32.gmra.mxu2 %vm486_vm0, %v187_v5  ;;  %v1297_v48 = vadd.f32 %v3801_v38, %v5618_v56 }
 0x1d4   :  { %v3891_v62 = vadd.f32 %v1948_v51, %v1500_v42  ;;  %1546 = vmatmul.f32.gmra.mxu1 %v177_v13  ;;  %v190_v51 = vld [vmem:[%s5465_s0 + $0x580] sm:$0xff]  ;;  %v180_v13 = vld [vmem:[%s5465_s0 + $0x530] sm:$0xff] }
 0x1d6   :  { %5614 = vst [vmem:[#allocation104_spill] sm:$0xff] %v3891_v62  ;;  %v1715_v37 = vpop.f32.mrf.mxu3  ;;  %v1957_v36 = vpop.f32.mrf.mxu2 }
 0x1d7   :  { %v3895_v58 = vadd.f32 %v1715_v37, %v1267_v11  ;;  %v1053_v5 = vpop.f32.mrf.mxu0  ;;  %v3913_v11 = vadd.f32 %v3075_v49, %v1395_v19  ;;  %v1270_v37 = vadd.f32 %v3801_v38, %v3136_v8  ;;  %v182_v49 = vld [vmem:[%s5465_s0 + $0x540] sm:$0xff] }
 0x1d8   :  { %v1054_v0 = vadd.f32 %v3801_v38, %v1053_v5  ;;  %v949_v5 = vadd.f32 %v3801_v38, %v3140_v10  ;;  %v399_v10 = vld [vmem:[%s5465_s0 + $0xc08] sm:$0xff] }
 0x1d9   :  { %5615 = vst [vmem:[#allocation105_spill] sm:$0xff] %v3895_v58  ;;  %v1502_v4 = vpop.f32.mrf.mxu1  ;;  %v5635_v58 = vld [vmem:[#allocation24_spill] sm:$0xff] }
 0x1da   :  { %1100 = vmatmul.f32.gmra.mxu0 %v179_v41  ;;  %v1503_v42 = vadd.f32 %v1502_v4, %v1054_v0  ;;  %v1398_v19 = vadd.f32 %v3151_v14, %v949_v5  ;;  %v5631_v0 = vld [vmem:[#allocation20_spill] sm:$0xff]  ;;  %v988_v54 = vadd.f32 %v3801_v38, %v5635_v58  ;;  %v438_v58 = vld [vmem:[%s5465_s0 + $0xd40] sm:$0xff] }
 0x1db   :  { %1765 = vmatmul.f32.gmra.mxu3 %v396_v2  ;;  %2509 = vmatmul.msk.f32.gmra.mxu2 %vm486_vm0, %v190_v51  ;;  %v985_v62 = vadd.f32 %v3801_v38, %v5631_v0  ;;  %v435_v0 = vld [vmem:[%s5465_s0 + $0xd28] sm:$0xff] }
 0x1dc   :  { %v3919_v6 = vadd.f32 %v1951_v39, %v1503_v42  ;;  %1549 = vmatmul.f32.gmra.mxu1 %v180_v13  ;;  %v193_v39 = vld [vmem:[%s5465_s0 + $0x598] sm:$0xff]  ;;  %v183_v13 = vld [vmem:[%s5465_s0 + $0x548] sm:$0xff] }
 0x1de   :  { %v1718_v20 = vpop.f32.mrf.mxu3  ;;  %v1960_v41 = vpop.f32.mrf.mxu2 }
 0x1df   :  { %v3923_v2 = vadd.f32 %v1718_v20, %v1270_v37  ;;  %v1056_v51 = vpop.f32.mrf.mxu0  ;;  %v3941_v37 = vadd.f32 %v3096_v57, %v1398_v19  ;;  %v1273_v20 = vadd.f32 %v3801_v38, %v3157_v16  ;;  %v185_v57 = vld [vmem:[%s5465_s0 + $0x558] sm:$0xff] }
 0x1e0   :  { %v1057_v8 = vadd.f32 %v3801_v38, %v1056_v51  ;;  %v952_v51 = vadd.f32 %v3801_v38, %v3161_v18  ;;  %v402_v18 = vld [vmem:[%s5465_s0 + $0xc20] sm:$0xff] }
 0x1e1   :  { %v1505_v4 = vpop.f32.mrf.mxu1 }
 0x1e2   :  { %1103 = vmatmul.f32.gmra.mxu0 %v182_v49  ;;  %v1506_v42 = vadd.f32 %v1505_v4, %v1057_v8  ;;  %v1401_v19 = vadd.f32 %v3172_v22, %v952_v51 }
 0x1e3   :  { %1768 = vmatmul.f32.gmra.mxu3 %v399_v10  ;;  %2510 = vmatmul.msk.f32.gmra.mxu2 %vm486_vm0, %v193_v39 }
 0x1e4   :  { %v3947_v14 = vadd.f32 %v1954_v31, %v1506_v42  ;;  %1552 = vmatmul.f32.gmra.mxu1 %v183_v13  ;;  %v196_v31 = vld [vmem:[%s5465_s0 + $0x5b0] sm:$0xff]  ;;  %v186_v13 = vld [vmem:[%s5465_s0 + $0x560] sm:$0xff] }
 0x1e6   :  { %v1721_v5 = vpop.f32.mrf.mxu3  ;;  %v1963_v49 = vpop.f32.mrf.mxu2 }
 0x1e7   :  { %v3951_v10 = vadd.f32 %v1721_v5, %v1273_v20  ;;  %v1059_v39 = vpop.f32.mrf.mxu0  ;;  %v3969_v20 = vadd.f32 %v3117_v1, %v1401_v19  ;;  %v1276_v5 = vadd.f32 %v3801_v38, %v3178_v24  ;;  %v188_v1 = vld [vmem:[%s5465_s0 + $0x570] sm:$0xff] }
 0x1e8   :  { %v1060_v16 = vadd.f32 %v3801_v38, %v1059_v39  ;;  %v955_v39 = vadd.f32 %v3801_v38, %v3182_v26  ;;  %v405_v26 = vld [vmem:[%s5465_s0 + $0xc38] sm:$0xff] }
 0x1e9   :  { %v1508_v4 = vpop.f32.mrf.mxu1 }
 0x1ea   :  { %1106 = vmatmul.f32.gmra.mxu0 %v185_v57  ;;  %v1509_v42 = vadd.f32 %v1508_v4, %v1060_v16  ;;  %v1404_v19 = vadd.f32 %v3193_v30, %v955_v39 }
 0x1eb   :  { %1771 = vmatmul.f32.gmra.mxu3 %v402_v18  ;;  %2511 = vmatmul.msk.f32.gmra.mxu2 %vm486_vm0, %v196_v31 }
 0x1ec   :  { %v3975_v22 = vadd.f32 %v1957_v36, %v1509_v42  ;;  %1555 = vmatmul.f32.gmra.mxu1 %v186_v13  ;;  %v199_v36 = vld [vmem:[%s5465_s0 + $0x5c8] sm:$0xff]  ;;  %v189_v13 = vld [vmem:[%s5465_s0 + $0x578] sm:$0xff] }
 0x1ee   :  { %v1724_v51 = vpop.f32.mrf.mxu3  ;;  %v1966_v57 = vpop.f32.mrf.mxu2 }
 0x1ef   :  { %v3979_v18 = vadd.f32 %v1724_v51, %v1276_v5  ;;  %v1062_v31 = vpop.f32.mrf.mxu0  ;;  %v3997_v5 = vadd.f32 %v3138_v9, %v1404_v19  ;;  %v1279_v51 = vadd.f32 %v3801_v38, %v3199_v33  ;;  %v191_v9 = vld [vmem:[%s5465_s0 + $0x588] sm:$0xff] }
 0x1f0   :  { %v1063_v24 = vadd.f32 %v3801_v38, %v1062_v31  ;;  %v958_v31 = vadd.f32 %v3801_v38, %v3203_v35  ;;  %v408_v35 = vld [vmem:[%s5465_s0 + $0xc50] sm:$0xff] }
 0x1f1   :  { %v1511_v4 = vpop.f32.mrf.mxu1 }
 0x1f2   :  { %1109 = vmatmul.f32.gmra.mxu0 %v188_v1  ;;  %v1512_v42 = vadd.f32 %v1511_v4, %v1063_v24  ;;  %v1407_v19 = vadd.f32 %v3214_v40, %v958_v31  ;;  %v5627_v24 = vld [vmem:[#allocation16_spill] sm:$0xff] }
 0x1f3   :  { %1774 = vmatmul.f32.gmra.mxu3 %v405_v26  ;;  %2512 = vmatmul.msk.f32.gmra.mxu2 %vm486_vm0, %v199_v36  ;;  %v982_v16 = vadd.f32 %v3801_v38, %v5627_v24  ;;  %v432_v24 = vld [vmem:[%s5465_s0 + $0xd10] sm:$0xff] }
 0x1f4   :  { %v4003_v30 = vadd.f32 %v1960_v41, %v1512_v42  ;;  %1558 = vmatmul.f32.gmra.mxu1 %v189_v13  ;;  %v202_v41 = vld [vmem:[%s5465_s0 + $0x5e0] sm:$0xff]  ;;  %v192_v13 = vld [vmem:[%s5465_s0 + $0x590] sm:$0xff] }
 0x1f6   :  { %v1727_v39 = vpop.f32.mrf.mxu3  ;;  %v1969_v1 = vpop.f32.mrf.mxu2 }
 0x1f7   :  { %v4007_v26 = vadd.f32 %v1727_v39, %v1279_v51  ;;  %v1065_v36 = vpop.f32.mrf.mxu0  ;;  %v4025_v51 = vadd.f32 %v3159_v17, %v1407_v19  ;;  %v1282_v39 = vadd.f32 %v3801_v38, %v3220_v44  ;;  %v194_v17 = vld [vmem:[%s5465_s0 + $0x5a0] sm:$0xff] }
 0x1f8   :  { %v1066_v33 = vadd.f32 %v3801_v38, %v1065_v36  ;;  %v961_v36 = vadd.f32 %v3801_v38, %v3224_v47  ;;  %v411_v47 = vld [vmem:[%s5465_s0 + $0xc68] sm:$0xff] }
 0x1f9   :  { %v1514_v4 = vpop.f32.mrf.mxu1 }
 0x1fa   :  { %1112 = vmatmul.f32.gmra.mxu0 %v191_v9  ;;  %v1515_v42 = vadd.f32 %v1514_v4, %v1066_v33  ;;  %v1410_v19 = vadd.f32 %v3235_v55, %v961_v36 }
 0x1fb   :  { %1777 = vmatmul.f32.gmra.mxu3 %v408_v35  ;;  %2513 = vmatmul.msk.f32.gmra.mxu2 %vm486_vm0, %v202_v41 }
 0x1fc   :  { %v4031_v40 = vadd.f32 %v1963_v49, %v1515_v42  ;;  %1561 = vmatmul.f32.gmra.mxu1 %v192_v13  ;;  %v205_v49 = vld [vmem:[%s5465_s0 + $0x5f8] sm:$0xff]  ;;  %v195_v13 = vld [vmem:[%s5465_s0 + $0x5a8] sm:$0xff] }
 0x1fe   :  { %v1730_v31 = vpop.f32.mrf.mxu3  ;;  %v1972_v9 = vpop.f32.mrf.mxu2 }
 0x1ff   :  { %v4035_v35 = vadd.f32 %v1730_v31, %v1282_v39  ;;  %v1068_v41 = vpop.f32.mrf.mxu0  ;;  %v4053_v39 = vadd.f32 %v3180_v25, %v1410_v19  ;;  %v1285_v31 = vadd.f32 %v3801_v38, %v3241_v60  ;;  %v197_v25 = vld [vmem:[%s5465_s0 + $0x5b8] sm:$0xff] }
 0x200   :  { %v1069_v44 = vadd.f32 %v3801_v38, %v1068_v41  ;;  %v964_v41 = vadd.f32 %v3801_v38, %v3245_v63  ;;  %v414_v63 = vld [vmem:[%s5465_s0 + $0xc80] sm:$0xff] }
 0x201   :  { %v1517_v4 = vpop.f32.mrf.mxu1 }
 0x202   :  { %1115 = vmatmul.f32.gmra.mxu0 %v194_v17  ;;  %v1518_v42 = vadd.f32 %v1517_v4, %v1069_v44  ;;  %v1413_v19 = vadd.f32 %v3256_v7, %v964_v41 }
 0x203   :  { %1780 = vmatmul.f32.gmra.mxu3 %v411_v47  ;;  %2514 = vmatmul.msk.f32.gmra.mxu2 %vm486_vm0, %v205_v49 }
 0x204   :  { %v4059_v55 = vadd.f32 %v1966_v57, %v1518_v42  ;;  %1564 = vmatmul.f32.gmra.mxu1 %v195_v13  ;;  %v208_v57 = vld [vmem:[%s5465_s0 + $0x610] sm:$0xff]  ;;  %v198_v13 = vld [vmem:[%s5465_s0 + $0x5c0] sm:$0xff] }
 0x206   :  { %v1733_v36 = vpop.f32.mrf.mxu3  ;;  %v1975_v17 = vpop.f32.mrf.mxu2 }
 0x207   :  { %v4063_v47 = vadd.f32 %v1733_v36, %v1285_v31  ;;  %v1071_v49 = vpop.f32.mrf.mxu0  ;;  %v4081_v31 = vadd.f32 %v3201_v34, %v1413_v19  ;;  %v1288_v36 = vadd.f32 %v3801_v38, %v3262_v12  ;;  %v200_v34 = vld [vmem:[%s5465_s0 + $0x5d0] sm:$0xff] }
 0x208   :  { %v1072_v60 = vadd.f32 %v3801_v38, %v1071_v49  ;;  %v967_v49 = vadd.f32 %v3801_v38, %v3266_v15  ;;  %v417_v15 = vld [vmem:[%s5465_s0 + $0xc98] sm:$0xff] }
 0x209   :  { %v1520_v4 = vpop.f32.mrf.mxu1 }
 0x20a   :  { %1118 = vmatmul.f32.gmra.mxu0 %v197_v25  ;;  %v1521_v42 = vadd.f32 %v1520_v4, %v1072_v60  ;;  %v1416_v19 = vadd.f32 %v3277_v23, %v967_v49  ;;  %v5623_v60 = vld [vmem:[#allocation12_spill] sm:$0xff] }
 0x20b   :  { %1783 = vmatmul.f32.gmra.mxu3 %v414_v63  ;;  %2515 = vmatmul.msk.f32.gmra.mxu2 %vm486_vm0, %v208_v57  ;;  %v979_v44 = vadd.f32 %v3801_v38, %v5623_v60  ;;  %v429_v60 = vld [vmem:[%s5465_s0 + $0xcf8] sm:$0xff] }
 0x20c   :  { %v4087_v7 = vadd.f32 %v1969_v1, %v1521_v42  ;;  %1567 = vmatmul.f32.gmra.mxu1 %v198_v13  ;;  %v211_v1 = vld [vmem:[%s5465_s0 + $0x628] sm:$0xff]  ;;  %v201_v13 = vld [vmem:[%s5465_s0 + $0x5d8] sm:$0xff] }
 0x20e   :  { %v1736_v41 = vpop.f32.mrf.mxu3  ;;  %v1978_v25 = vpop.f32.mrf.mxu2 }
 0x20f   :  { %v4091_v63 = vadd.f32 %v1736_v41, %v1288_v36  ;;  %v1074_v57 = vpop.f32.mrf.mxu0  ;;  %v4109_v36 = vadd.f32 %v3222_v45, %v1416_v19  ;;  %v1291_v41 = vadd.f32 %v3801_v38, %v3283_v28  ;;  %v203_v45 = vld [vmem:[%s5465_s0 + $0x5e8] sm:$0xff] }
 0x210   :  { %v1075_v12 = vadd.f32 %v3801_v38, %v1074_v57  ;;  %v970_v57 = vadd.f32 %v3801_v38, %v3287_v32  ;;  %v420_v32 = vld [vmem:[%s5465_s0 + $0xcb0] sm:$0xff] }
 0x211   :  { %v1523_v4 = vpop.f32.mrf.mxu1 }
 0x212   :  { %1121 = vmatmul.f32.gmra.mxu0 %v200_v34  ;;  %v1524_v42 = vadd.f32 %v1523_v4, %v1075_v12  ;;  %v1419_v19 = vadd.f32 %v3298_v43, %v970_v57 }
 0x213   :  { %1786 = vmatmul.f32.gmra.mxu3 %v417_v15  ;;  %2516 = vmatmul.msk.f32.gmra.mxu2 %vm486_vm0, %v211_v1 }
 0x214   :  { %v4115_v23 = vadd.f32 %v1972_v9, %v1524_v42  ;;  %1570 = vmatmul.f32.gmra.mxu1 %v201_v13  ;;  %v214_v9 = vld [vmem:[%s5465_s0 + $0x640] sm:$0xff]  ;;  %v204_v13 = vld [vmem:[%s5465_s0 + $0x5f0] sm:$0xff] }
 0x216   :  { %v1739_v49 = vpop.f32.mrf.mxu3  ;;  %v1981_v34 = vpop.f32.mrf.mxu2 }
 0x217   :  { %v4119_v15 = vadd.f32 %v1739_v49, %v1291_v41  ;;  %v1077_v1 = vpop.f32.mrf.mxu0  ;;  %v4137_v41 = vadd.f32 %v3243_v61, %v1419_v19  ;;  %v1294_v49 = vadd.f32 %v3801_v38, %v3304_v52  ;;  %v206_v61 = vld [vmem:[%s5465_s0 + $0x600] sm:$0xff]  ;;  %v5616_v19 = vld [vmem:[#allocation5_spill] sm:$0xff] }
 0x218   :  { %v1078_v28 = vadd.f32 %v3801_v38, %v1077_v1  ;;  %v973_v1 = vadd.f32 %v3801_v38, %v3308_v59  ;;  %v423_v59 = vld [vmem:[%s5465_s0 + $0xcc8] sm:$0xff] }
 0x219   :  { %v1526_v4 = vpop.f32.mrf.mxu1 }
 0x21a   :  { %1124 = vmatmul.f32.gmra.mxu0 %v203_v45  ;;  %v1527_v42 = vadd.f32 %v1526_v4, %v1078_v28  ;;  %v1422_v4 = vadd.f32 %v5616_v19, %v973_v1  ;;  %v976_v28 = vadd.f32 %v3801_v38, %v5619_v29  ;;  %v426_v29 = vld [vmem:[%s5465_s0 + $0xce0] sm:$0xff] }
 0x21b   :  { %1789 = vmatmul.f32.gmra.mxu3 %v420_v32  ;;  %2517 = vmatmul.msk.f32.gmra.mxu2 %vm486_vm0, %v214_v9 }
 0x21c   :  { %v4143_v43 = vadd.f32 %v1975_v17, %v1527_v42  ;;  %1573 = vmatmul.f32.gmra.mxu1 %v204_v13  ;;  %v217_v17 = vld [vmem:[%s5465_s0 + $0x658] sm:$0xff]  ;;  %v207_v42 = vld [vmem:[%s5465_s0 + $0x608] sm:$0xff] }
 0x21e   :  { %v1742_v57 = vpop.f32.mrf.mxu3  ;;  %v1984_v45 = vpop.f32.mrf.mxu2 }
 0x21f   :  { %v4147_v32 = vadd.f32 %v1742_v57, %v1294_v49  ;;  %v1080_v9 = vpop.f32.mrf.mxu0  ;;  %v5617_v57 = vld [vmem:[#allocation2_spill] sm:$0xff] }
 0x220   :  { %v1081_v52 = vadd.f32 %v3801_v38, %v1080_v9  ;;  %v4165_v9 = vadd.f32 %v5617_v57, %v1422_v4  ;;  %v209_v4 = vld [vmem:[%s5465_s0 + $0x618] sm:$0xff] }
 0x221   :  { %v1529_v13 = vpop.f32.mrf.mxu1 }
 0x222   :  { %1127 = vmatmul.f32.gmra.mxu0 %v206_v61  ;;  %v1530_v49 = vadd.f32 %v1529_v13, %v1081_v52  ;;  %v5620_v13 = vld [vmem:[#allocation9_spill] sm:$0xff]  ;;  %v5622_v52 = vld [vmem:[#allocation10_spill] sm:$0xff] }
 0x223   :  { %1792 = vmatmul.f32.gmra.mxu3 %v423_v59  ;;  %2518 = vmatmul.msk.f32.gmra.mxu2 %vm486_vm0, %v217_v17  ;;  %v1300_v12 = vadd.f32 %v3801_v38, %v5622_v52 }
 0x224   :  { %v4171_v1 = vadd.f32 %v1978_v25, %v1530_v49  ;;  %1576 = vmatmul.f32.gmra.mxu1 %v207_v42  ;;  %v220_v25 = vld [vmem:[%s5465_s0 + $0x670] sm:$0xff]  ;;  %v1425_v42 = vadd.f32 %v5620_v13, %v976_v28 }
 0x226   :  { %v1745_v61 = vpop.f32.mrf.mxu3  ;;  %v1987_v19 = vpop.f32.mrf.mxu2 }
 0x227   :  { %v4175_v59 = vadd.f32 %v1745_v61, %v1297_v48  ;;  %v1083_v17 = vpop.f32.mrf.mxu0  ;;  %v210_v48 = vld [vmem:[%s5465_s0 + $0x620] sm:$0xff]  ;;  %v5621_v61 = vld [vmem:[#allocation3_spill] sm:$0xff] }
 0x228   :  { %v1084_v56 = vadd.f32 %v3801_v38, %v1083_v17  ;;  %v4193_v17 = vadd.f32 %v5621_v61, %v1425_v42  ;;  %v212_v42 = vld [vmem:[%s5465_s0 + $0x630] sm:$0xff] }
 0x229   :  { %v1532_v49 = vpop.f32.mrf.mxu1 }
 0x22a   :  { %1130 = vmatmul.f32.gmra.mxu0 %v209_v4  ;;  %v1533_v57 = vadd.f32 %v1532_v49, %v1084_v56  ;;  %v5624_v49 = vld [vmem:[#allocation13_spill] sm:$0xff]  ;;  %v5626_v56 = vld [vmem:[#allocation14_spill] sm:$0xff] }
 0x22b   :  { %1795 = vmatmul.f32.gmra.mxu3 %v426_v29  ;;  %2519 = vmatmul.msk.f32.gmra.mxu2 %vm486_vm0, %v220_v25  ;;  %v1303_v33 = vadd.f32 %v3801_v38, %v5626_v56 }
 0x22c   :  { %v4199_v28 = vadd.f32 %v1981_v34, %v1533_v57  ;;  %1579 = vmatmul.f32.gmra.mxu1 %v210_v48  ;;  %v223_v34 = vld [vmem:[%s5465_s0 + $0x688] sm:$0xff]  ;;  %v1428_v48 = vadd.f32 %v5624_v49, %v979_v44 }
 0x22e   :  { %v1748_v4 = vpop.f32.mrf.mxu3  ;;  %v1990_v13 = vpop.f32.mrf.mxu2 }
 0x22f   :  { %v4203_v29 = vadd.f32 %v1748_v4, %v1300_v12  ;;  %v1086_v25 = vpop.f32.mrf.mxu0  ;;  %v213_v12 = vld [vmem:[%s5465_s0 + $0x638] sm:$0xff]  ;;  %v5625_v4 = vld [vmem:[#allocation4_spill] sm:$0xff] }
 0x230   :  { %v1087_v52 = vadd.f32 %v3801_v38, %v1086_v25  ;;  %v4221_v25 = vadd.f32 %v5625_v4, %v1428_v48  ;;  %v215_v48 = vld [vmem:[%s5465_s0 + $0x648] sm:$0xff] }
 0x231   :  { %v1535_v57 = vpop.f32.mrf.mxu1 }
 0x232   :  { %1133 = vmatmul.f32.gmra.mxu0 %v212_v42  ;;  %v1536_v61 = vadd.f32 %v1535_v57, %v1087_v52  ;;  %v5628_v57 = vld [vmem:[#allocation17_spill] sm:$0xff]  ;;  %v5630_v52 = vld [vmem:[#allocation18_spill] sm:$0xff] }
 0x233   :  { %1798 = vmatmul.f32.gmra.mxu3 %v429_v60  ;;  %2520 = vmatmul.msk.f32.gmra.mxu2 %vm486_vm0, %v223_v34  ;;  %v1306_v8 = vadd.f32 %v3801_v38, %v5630_v52 }
 0x234   :  { %v4227_v44 = vadd.f32 %v1984_v45, %v1536_v61  ;;  %1582 = vmatmul.f32.gmra.mxu1 %v213_v12  ;;  %v226_v45 = vld [vmem:[%s5465_s0 + $0x6a0] sm:$0xff]  ;;  %v1431_v12 = vadd.f32 %v5628_v57, %v982_v16 }
 0x236   :  { %v1751_v42 = vpop.f32.mrf.mxu3  ;;  %v1993_v49 = vpop.f32.mrf.mxu2 }
 0x237   :  { %v4231_v60 = vadd.f32 %v1751_v42, %v1303_v33  ;;  %v1089_v34 = vpop.f32.mrf.mxu0  ;;  %v216_v33 = vld [vmem:[%s5465_s0 + $0x650] sm:$0xff]  ;;  %v5629_v42 = vld [vmem:[#allocation7_spill] sm:$0xff] }
 0x238   :  { %v1090_v56 = vadd.f32 %v3801_v38, %v1089_v34  ;;  %v4249_v34 = vadd.f32 %v5629_v42, %v1431_v12  ;;  %v218_v12 = vld [vmem:[%s5465_s0 + $0x660] sm:$0xff] }
 0x239   :  { %v1538_v61 = vpop.f32.mrf.mxu1 }
 0x23a   :  { %1136 = vmatmul.f32.gmra.mxu0 %v215_v48  ;;  %v1539_v4 = vadd.f32 %v1538_v61, %v1090_v56  ;;  %v5632_v61 = vld [vmem:[#allocation21_spill] sm:$0xff]  ;;  %v5634_v56 = vld [vmem:[#allocation22_spill] sm:$0xff] }
 0x23b   :  { %1801 = vmatmul.f32.gmra.mxu3 %v432_v24  ;;  %2521 = vmatmul.msk.f32.gmra.mxu2 %vm486_vm0, %v226_v45  ;;  %v1309_v3 = vadd.f32 %v3801_v38, %v5634_v56 }
 0x23c   :  { %v4255_v16 = vadd.f32 %v1987_v19, %v1539_v4  ;;  %1585 = vmatmul.f32.gmra.mxu1 %v216_v33  ;;  %v229_v19 = vld [vmem:[%s5465_s0 + $0x6b8] sm:$0xff]  ;;  %v1434_v33 = vadd.f32 %v5632_v61, %v985_v62 }
 0x23e   :  { %v1754_v48 = vpop.f32.mrf.mxu3  ;;  %v1996_v57 = vpop.f32.mrf.mxu2 }
 0x23f   :  { %v4259_v24 = vadd.f32 %v1754_v48, %v1306_v8  ;;  %v1092_v45 = vpop.f32.mrf.mxu0  ;;  %v219_v8 = vld [vmem:[%s5465_s0 + $0x668] sm:$0xff] }
 0x240   :  { %v1093_v52 = vadd.f32 %v3801_v38, %v1092_v45  ;;  %v5633_v48 = vld [vmem:[#allocation11_spill] sm:$0xff] }
 0x241   :  { %v1541_v4 = vpop.f32.mrf.mxu1  ;;  %v4277_v45 = vadd.f32 %v5633_v48, %v1434_v33  ;;  %v221_v33 = vld [vmem:[%s5465_s0 + $0x678] sm:$0xff] }
 0x242   :  { %1139 = vmatmul.f32.gmra.mxu0 %v218_v12  ;;  %v1542_v42 = vadd.f32 %v1541_v4, %v1093_v52  ;;  %v5636_v4 = vld [vmem:[#allocation25_spill] sm:$0xff]  ;;  %v5639_v52 = vld [vmem:[#allocation26_spill] sm:$0xff] }
 0x243   :  { %1804 = vmatmul.f32.gmra.mxu3 %v435_v0  ;;  %2522 = vmatmul.msk.f32.gmra.mxu2 %vm486_vm0, %v229_v19  ;;  %v1312_v53 = vadd.f32 %v3801_v38, %v5639_v52 }
 0x244   :  { %v4283_v62 = vadd.f32 %v1990_v13, %v1542_v42  ;;  %1588 = vmatmul.f32.gmra.mxu1 %v219_v8  ;;  %v232_v13 = vld [vmem:[%s5465_s0 + $0x6d0] sm:$0xff]  ;;  %v1437_v8 = vadd.f32 %v5636_v4, %v988_v54 }
 0x246   :  { %v1757_v12 = vpop.f32.mrf.mxu3  ;;  %v1999_v61 = vpop.f32.mrf.mxu2 }
 0x247   :  { %v4287_v0 = vadd.f32 %v1757_v12, %v1309_v3  ;;  %v1095_v19 = vpop.f32.mrf.mxu0  ;;  %v222_v3 = vld [vmem:[%s5465_s0 + $0x680] sm:$0xff]  ;;  %v5637_v12 = vld [vmem:[#allocation15_spill] sm:$0xff] }
 0x248   :  { %v1096_v56 = vadd.f32 %v3801_v38, %v1095_v19  ;;  %v4305_v19 = vadd.f32 %v5637_v12, %v1437_v8  ;;  %v224_v8 = vld [vmem:[%s5465_s0 + $0x690] sm:$0xff] }
 0x249   :  { %v1544_v42 = vpop.f32.mrf.mxu1 }
 0x24a   :  { %1142 = vmatmul.f32.gmra.mxu0 %v221_v33  ;;  %v1545_v48 = vadd.f32 %v1544_v42, %v1096_v56  ;;  %5638 = vst [vmem:[#allocation5_spill] sm:$0xff] %v4305_v19  ;;  %v5642_v42 = vld [vmem:[#allocation29_spill] sm:$0xff]  ;;  %v5645_v56 = vld [vmem:[#allocation30_spill] sm:$0xff] }
 0x24b   :  { %1807 = vmatmul.f32.gmra.mxu3 %v438_v58  ;;  %2523 = vmatmul.msk.f32.gmra.mxu2 %vm486_vm0, %v232_v13  ;;  %v1315_v27 = vadd.f32 %v3801_v38, %v5645_v56 }
 0x24c   :  { %v4311_v54 = vadd.f32 %v1993_v49, %v1545_v48  ;;  %1591 = vmatmul.f32.gmra.mxu1 %v222_v3  ;;  %v235_v49 = vld [vmem:[%s5465_s0 + $0x6e8] sm:$0xff]  ;;  %v1440_v3 = vadd.f32 %v5642_v42, %v991_v46 }
 0x24e   :  { %5641 = vst [vmem:[#allocation2_spill] sm:$0xff] %v4311_v54  ;;  %v1760_v33 = vpop.f32.mrf.mxu3  ;;  %v2002_v4 = vpop.f32.mrf.mxu2  ;;  %v994_v54 = vadd.f32 %v3801_v38, %v5646_v21  ;;  %v444_v21 = vld [vmem:[%s5465_s0 + $0xd70] sm:$0xff] }
 0x24f   :  { %v4315_v58 = vadd.f32 %v1760_v33, %v1312_v53  ;;  %v1098_v13 = vpop.f32.mrf.mxu0  ;;  %v225_v53 = vld [vmem:[%s5465_s0 + $0x698] sm:$0xff]  ;;  %v5643_v33 = vld [vmem:[#allocation19_spill] sm:$0xff] }
 0x250   :  { %v1099_v52 = vadd.f32 %v3801_v38, %v1098_v13  ;;  %v4333_v13 = vadd.f32 %v5643_v33, %v1440_v3  ;;  %v227_v3 = vld [vmem:[%s5465_s0 + $0x6a8] sm:$0xff] }
 0x251   :  { %v1547_v48 = vpop.f32.mrf.mxu1 }
 0x252   :  { %1145 = vmatmul.f32.gmra.mxu0 %v224_v8  ;;  %v1548_v12 = vadd.f32 %v1547_v48, %v1099_v52  ;;  %5644 = vst [vmem:[#allocation6_spill] sm:$0xff] %v4333_v13  ;;  %v5649_v48 = vld [vmem:[#allocation33_spill] sm:$0xff]  ;;  %v5652_v52 = vld [vmem:[#allocation34_spill] sm:$0xff]  ;;  %v5653_v13 = vld [vmem:[#allocation36_spill] sm:$0xff] }
 0x253   :  { %1810 = vmatmul.f32.gmra.mxu3 %v441_v50  ;;  %2524 = vmatmul.msk.f32.gmra.mxu2 %vm486_vm0, %v235_v49 }
 0x254   :  { %v4339_v46 = vadd.f32 %v1996_v57, %v1548_v12  ;;  %1594 = vmatmul.f32.gmra.mxu1 %v225_v53  ;;  %v238_v57 = vld [vmem:[%s5465_s0 + $0x700] sm:$0xff]  ;;  %v1443_v53 = vadd.f32 %v5649_v48, %v994_v54 }
 0x256   :  { %5647 = vst [vmem:[#allocation8_spill] sm:$0xff] %v4339_v46  ;;  %v1763_v8 = vpop.f32.mrf.mxu3  ;;  %v2005_v42 = vpop.f32.mrf.mxu2  ;;  %v1318_v46 = vadd.f32 %v3801_v38, %v5652_v52 }
 0x257   :  { %v4343_v50 = vadd.f32 %v1763_v8, %v1315_v27  ;;  %v1101_v49 = vpop.f32.mrf.mxu0  ;;  %v228_v27 = vld [vmem:[%s5465_s0 + $0x6b0] sm:$0xff]  ;;  %v5650_v8 = vld [vmem:[#allocation23_spill] sm:$0xff] }
 0x258   :  { %v1102_v56 = vadd.f32 %v3801_v38, %v1101_v49  ;;  %v4361_v49 = vadd.f32 %v5650_v8, %v1443_v53  ;;  %v230_v53 = vld [vmem:[%s5465_s0 + $0x6c0] sm:$0xff] }
 0x259   :  { %5648 = vst [vmem:[#allocation9_spill] sm:$0xff] %v4343_v50  ;;  %v1550_v12 = vpop.f32.mrf.mxu1  ;;  %v997_v50 = vadd.f32 %v3801_v38, %v5653_v13  ;;  %v349_v13 = vld [vmem:[%s5465_s0 + $0xa78] sm:$0xff] }
 0x25a   :  { %1148 = vmatmul.f32.gmra.mxu0 %v227_v3  ;;  %v1551_v33 = vadd.f32 %v1550_v12, %v1102_v56  ;;  %5651 = vst [vmem:[#allocation3_spill] sm:$0xff] %v4361_v49  ;;  %v5656_v12 = vld [vmem:[#allocation37_spill] sm:$0xff]  ;;  %v5659_v56 = vld [vmem:[#allocation38_spill] sm:$0xff]  ;;  %v5660_v49 = vld [vmem:[#allocation40_spill] sm:$0xff] }
 0x25b   :  { %1813 = vmatmul.f32.gmra.mxu3 %v444_v21  ;;  %2525 = vmatmul.msk.f32.gmra.mxu2 %vm486_vm0, %v238_v57 }
 0x25c   :  { %v4367_v54 = vadd.f32 %v1999_v61, %v1551_v33  ;;  %1597 = vmatmul.f32.gmra.mxu1 %v228_v27  ;;  %v241_v61 = vld [vmem:[%s5465_s0 + $0x718] sm:$0xff]  ;;  %v1446_v27 = vadd.f32 %v5656_v12, %v997_v50  ;;  %v1000_v50 = vadd.f32 %v3801_v38, %v5660_v49  ;;  %v352_v49 = vld [vmem:[%s5465_s0 + $0xa90] sm:$0xff] }
 0x25e   :  { %5654 = vst [vmem:[#allocation10_spill] sm:$0xff] %v4367_v54  ;;  %v1766_v3 = vpop.f32.mrf.mxu3  ;;  %v2008_v48 = vpop.f32.mrf.mxu2  ;;  %v1321_v54 = vadd.f32 %v3801_v38, %v5659_v56 }
 0x25f   :  { %v4371_v21 = vadd.f32 %v1766_v3, %v1318_v46  ;;  %v1104_v57 = vpop.f32.mrf.mxu0  ;;  %v231_v46 = vld [vmem:[%s5465_s0 + $0x6c8] sm:$0xff] }
 0x260   :  { %v1105_v52 = vadd.f32 %v3801_v38, %v1104_v57  ;;  %v5657_v3 = vld [vmem:[#allocation27_spill] sm:$0xff] }
 0x261   :  { %5655 = vst [vmem:[#allocation12_spill] sm:$0xff] %v4371_v21  ;;  %v1553_v33 = vpop.f32.mrf.mxu1  ;;  %v4390_v57 = vadd.f32 %v5657_v3, %v1446_v27  ;;  %v233_v27 = vld [vmem:[%s5465_s0 + $0x6d8] sm:$0xff] }
 0x262   :  { %1151 = vmatmul.f32.gmra.mxu0 %v230_v53  ;;  %v1554_v8 = vadd.f32 %v1553_v33, %v1105_v52  ;;  %v5663_v33 = vld [vmem:[#allocation41_spill] sm:$0xff]  ;;  %v5666_v52 = vld [vmem:[#allocation42_spill] sm:$0xff] }
 0x263   :  { %2526 = vmatmul.msk.f32.gmra.mxu2 %vm486_vm0, %v241_v61  ;;  %2562 = vmatmul.msk.f32.vlgmr.msra.gmra.mxu3 %vm486_vm0, %v349_v13  ;;  %5658 = vst [vmem:[#allocation13_spill] sm:$0xff] %v4390_v57  ;;  %v5667_v57 = vld [vmem:[#allocation44_spill] sm:$0xff] }
 0x264   :  { %v4396_v12 = vadd.f32 %v2002_v4, %v1554_v8  ;;  %1600 = vmatmul.f32.gmra.mxu1 %v231_v46  ;;  %v244_v4 = vld [vmem:[%s5465_s0 + $0x730] sm:$0xff]  ;;  %v1449_v46 = vadd.f32 %v5663_v33, %v1000_v50  ;;  %v1003_v50 = vadd.f32 %v3801_v38, %v5667_v57  ;;  %v355_v57 = vld [vmem:[%s5465_s0 + $0xaa8] sm:$0xff] }
 0x266   :  { %5661 = vst [vmem:[#allocation4_spill] sm:$0xff] %v4396_v12  ;;  %v1769_v53 = vpop.f32.mrf.mxu3  ;;  %v2011_v21 = vpop.f32.mrf.mxu2  ;;  %v1324_v12 = vadd.f32 %v3801_v38, %v5666_v52 }
 0x267   :  { %v4400_v61 = vadd.f32 %v1769_v53, %v1321_v54  ;;  %v1107_v13 = vpop.f32.mrf.mxu0  ;;  %v234_v54 = vld [vmem:[%s5465_s0 + $0x6e0] sm:$0xff]  ;;  %v5664_v53 = vld [vmem:[#allocation31_spill] sm:$0xff] }
 0x268   :  { %v1108_v56 = vadd.f32 %v3801_v38, %v1107_v13  ;;  %v4419_v13 = vadd.f32 %v5664_v53, %v1449_v46  ;;  %v236_v46 = vld [vmem:[%s5465_s0 + $0x6f0] sm:$0xff] }
 0x269   :  { %5662 = vst [vmem:[#allocation14_spill] sm:$0xff] %v4400_v61  ;;  %v1556_v8 = vpop.f32.mrf.mxu1 }
 0x26a   :  { %1154 = vmatmul.f32.gmra.mxu0 %v233_v27  ;;  %v1557_v3 = vadd.f32 %v1556_v8, %v1108_v56  ;;  %5665 = vst [vmem:[#allocation16_spill] sm:$0xff] %v4419_v13  ;;  %v5670_v8 = vld [vmem:[#allocation45_spill] sm:$0xff]  ;;  %v5673_v56 = vld [vmem:[#allocation46_spill] sm:$0xff]  ;;  %v5674_v13 = vld [vmem:[#allocation48_spill] sm:$0xff] }
 0x26b   :  { %2527 = vmatmul.msk.f32.gmra.mxu2 %vm486_vm0, %v244_v4  ;;  %2563 = vmatmul.msk.f32.gmra.mxu3 %vm486_vm0, %v352_v49 }
 0x26c   :  { %v4425_v33 = vadd.f32 %v2005_v42, %v1557_v3  ;;  %1603 = vmatmul.f32.gmra.mxu1 %v234_v54  ;;  %v247_v42 = vld [vmem:[%s5465_s0 + $0x748] sm:$0xff]  ;;  %v1452_v54 = vadd.f32 %v5670_v8, %v1003_v50  ;;  %v1006_v50 = vadd.f32 %v3801_v38, %v5674_v13  ;;  %v358_v13 = vld [vmem:[%s5465_s0 + $0xac0] sm:$0xff] }
 0x26e   :  { %5668 = vst [vmem:[#allocation17_spill] sm:$0xff] %v4425_v33  ;;  %v1772_v27 = vpop.f32.mrf.mxu3  ;;  %v2014_v61 = vpop.f32.mrf.mxu2  ;;  %v1327_v33 = vadd.f32 %v3801_v38, %v5673_v56 }
 0x26f   :  { %v4429_v4 = vadd.f32 %v1772_v27, %v1324_v12  ;;  %v1110_v49 = vpop.f32.mrf.mxu0  ;;  %v237_v12 = vld [vmem:[%s5465_s0 + $0x6f8] sm:$0xff]  ;;  %v5671_v27 = vld [vmem:[#allocation35_spill] sm:$0xff] }
 0x270   :  { %v1111_v52 = vadd.f32 %v3801_v38, %v1110_v49  ;;  %v4448_v49 = vadd.f32 %v5671_v27, %v1452_v54  ;;  %v239_v54 = vld [vmem:[%s5465_s0 + $0x708] sm:$0xff] }
 0x271   :  { %5669 = vst [vmem:[#allocation7_spill] sm:$0xff] %v4429_v4  ;;  %v1559_v3 = vpop.f32.mrf.mxu1 }
 0x272   :  { %1157 = vmatmul.f32.gmra.mxu0 %v236_v46  ;;  %v1560_v53 = vadd.f32 %v1559_v3, %v1111_v52  ;;  %5672 = vst [vmem:[#allocation18_spill] sm:$0xff] %v4448_v49  ;;  %v5677_v3 = vld [vmem:[#allocation49_spill] sm:$0xff]  ;;  %v5680_v52 = vld [vmem:[#allocation50_spill] sm:$0xff]  ;;  %v5681_v49 = vld [vmem:[#allocation52_spill] sm:$0xff] }
 0x273   :  { %2528 = vmatmul.msk.f32.gmra.mxu2 %vm486_vm0, %v247_v42  ;;  %2564 = vmatmul.msk.f32.gmra.mxu3 %vm486_vm0, %v355_v57 }
 0x274   :  { %v4454_v8 = vadd.f32 %v2008_v48, %v1560_v53  ;;  %1606 = vmatmul.f32.gmra.mxu1 %v237_v12  ;;  %v250_v48 = vld [vmem:[%s5465_s0 + $0x760] sm:$0xff]  ;;  %v1455_v12 = vadd.f32 %v5677_v3, %v1006_v50  ;;  %v1009_v50 = vadd.f32 %v3801_v38, %v5681_v49  ;;  %v361_v49 = vld [vmem:[%s5465_s0 + $0xad8] sm:$0xff] }
 0x276   :  { %5675 = vst [vmem:[#allocation20_spill] sm:$0xff] %v4454_v8  ;;  %v1775_v46 = vpop.f32.mrf.mxu3  ;;  %v2017_v4 = vpop.f32.mrf.mxu2  ;;  %v1330_v8 = vadd.f32 %v3801_v38, %v5680_v52  ;;  %v4495_v52 = vld [vmem:[%s5466_s2] ss:$0 sm:$0xff] }
 0x277   :  { %v4458_v42 = vadd.f32 %v1775_v46, %v1327_v33  ;;  %v1113_v57 = vpop.f32.mrf.mxu0  ;;  %v240_v33 = vld [vmem:[%s5465_s0 + $0x710] sm:$0xff]  ;;  %v5678_v46 = vld [vmem:[#allocation39_spill] sm:$0xff] }
 0x278   :  { %v1114_v56 = vadd.f32 %v3801_v38, %v1113_v57  ;;  %v4477_v57 = vadd.f32 %v5678_v46, %v1455_v12  ;;  %v242_v12 = vld [vmem:[%s5465_s0 + $0x720] sm:$0xff] }
 0x279   :  { %5676 = vst [vmem:[#allocation21_spill] sm:$0xff] %v4458_v42  ;;  %v1562_v53 = vpop.f32.mrf.mxu1 }
 0x27a   :  { %1160 = vmatmul.f32.gmra.mxu0 %v239_v54  ;;  %v1563_v27 = vadd.f32 %v1562_v53, %v1114_v56  ;;  %5679 = vst [vmem:[#allocation11_spill] sm:$0xff] %v4477_v57  ;;  %v5687_v56 = vld [vmem:[#allocation54_spill] sm:$0xff]  ;;  %v5688_v57 = vld [vmem:[#allocation56_spill] sm:$0xff] }
 0x27b   :  { %2529 = vmatmul.msk.f32.gmra.mxu2 %vm486_vm0, %v250_v48  ;;  %2565 = vmatmul.msk.f32.gmra.mxu3 %vm486_vm0, %v358_v13 }
 0x27c   :  { %v4483_v3 = vadd.f32 %v2011_v21, %v1563_v27  ;;  %1609 = vmatmul.f32.gmra.mxu1 %v240_v33  ;;  %v253_v21 = vld [vmem:[%s5465_s0 + $0x778] sm:$0xff]  ;;  %v243_v27 = vld [vmem:[%s5465_s0 + $0x728] sm:$0xff] }
 0x27e   :  { %5682 = vst [vmem:[#allocation22_spill] sm:$0xff] %v4483_v3  ;;  %v1778_v54 = vpop.f32.mrf.mxu3  ;;  %v2020_v42 = vpop.f32.mrf.mxu2  ;;  %v1333_v3 = vadd.f32 %v4495_v52, %v5687_v56 }
 0x27f   :  { %v4487_v48 = vadd.f32 %v1778_v54, %v1330_v8  ;;  %v1116_v13 = vpop.f32.mrf.mxu0  ;;  %v5684_v8 = vld [vmem:[#allocation53_spill] sm:$0xff]  ;;  %v5685_v54 = vld [vmem:[#allocation43_spill] sm:$0xff] }
 0x280   :  { %v1117_v38 = vadd.f32 %v4495_v52, %v1116_v13  ;;  %v1458_v53 = vadd.f32 %v5684_v8, %v1009_v50  ;;  %v1012_v50 = vadd.f32 %v4495_v52, %v5688_v57  ;;  %v364_v57 = vld [vmem:[%s5465_s0 + $0xaf0] sm:$0xff] }
 0x281   :  { %5683 = vst [vmem:[#allocation24_spill] sm:$0xff] %v4487_v48  ;;  %v1565_v33 = vpop.f32.mrf.mxu1 }
 0x282   :  { %1163 = vmatmul.f32.gmra.mxu0 %v242_v12  ;;  %v1566_v46 = vadd.f32 %v1565_v33, %v1117_v38  ;;  %v4511_v13 = vadd.f32 %v5685_v54, %v1458_v53  ;;  %v245_v53 = vld [vmem:[%s5465_s0 + $0x738] sm:$0xff]  ;;  %v5694_v38 = vld [vmem:[#allocation58_spill] sm:$0xff] }
 0x283   :  { %2530 = vmatmul.msk.f32.gmra.mxu2 %vm486_vm0, %v253_v21  ;;  %2566 = vmatmul.msk.f32.gmra.mxu3 %vm486_vm0, %v361_v49  ;;  %v5691_v33 = vld [vmem:[#allocation57_spill] sm:$0xff] }
 0x284   :  { %5686 = vst [vmem:[#allocation25_spill] sm:$0xff] %v4511_v13  ;;  %v4517_v8 = vadd.f32 %v2014_v61, %v1566_v46  ;;  %1612 = vmatmul.f32.gmra.mxu1 %v243_v27  ;;  %v256_v61 = vld [vmem:[%s5465_s0 + $0x790] sm:$0xff]  ;;  %v1461_v27 = vadd.f32 %v5691_v33, %v1012_v50 }
 0x285   :  { %v5695_v13 = vld [vmem:[#allocation60_spill] sm:$0xff] }
 0x286   :  { %5689 = vst [vmem:[#allocation15_spill] sm:$0xff] %v4517_v8  ;;  %v1781_v12 = vpop.f32.mrf.mxu3  ;;  %v2023_v48 = vpop.f32.mrf.mxu2  ;;  %v1336_v8 = vadd.f32 %v4495_v52, %v5694_v38  ;;  %v1015_v50 = vadd.f32 %v4495_v52, %v5695_v13  ;;  %v367_v13 = vld [vmem:[%s5465_s0 + $0xb08] sm:$0xff] }
 0x287   :  { %v4521_v21 = vadd.f32 %v1781_v12, %v1333_v3  ;;  %v1119_v49 = vpop.f32.mrf.mxu0  ;;  %v246_v3 = vld [vmem:[%s5465_s0 + $0x740] sm:$0xff]  ;;  %v5692_v12 = vld [vmem:[#allocation47_spill] sm:$0xff] }
 0x288   :  { %v1120_v56 = vadd.f32 %v4495_v52, %v1119_v49  ;;  %v4540_v49 = vadd.f32 %v5692_v12, %v1461_v27  ;;  %v248_v27 = vld [vmem:[%s5465_s0 + $0x750] sm:$0xff] }
 0x289   :  { %5690 = vst [vmem:[#allocation26_spill] sm:$0xff] %v4521_v21  ;;  %v1568_v46 = vpop.f32.mrf.mxu1 }
 0x28a   :  { %1166 = vmatmul.f32.gmra.mxu0 %v245_v53  ;;  %v1569_v54 = vadd.f32 %v1568_v46, %v1120_v56  ;;  %5693 = vst [vmem:[#allocation28_spill] sm:$0xff] %v4540_v49  ;;  %v5698_v46 = vld [vmem:[#allocation61_spill] sm:$0xff]  ;;  %v5701_v56 = vld [vmem:[#allocation62_spill] sm:$0xff]  ;;  %v5702_v49 = vld [vmem:[#allocation64_spill] sm:$0xff] }
 0x28b   :  { %2531 = vmatmul.msk.f32.gmra.mxu2 %vm486_vm0, %v256_v61  ;;  %2567 = vmatmul.msk.f32.gmra.mxu3 %vm486_vm0, %v364_v57 }
 0x28c   :  { %v4546_v33 = vadd.f32 %v2017_v4, %v1569_v54  ;;  %1615 = vmatmul.f32.gmra.mxu1 %v246_v3  ;;  %v259_v4 = vld [vmem:[%s5465_s0 + $0x7a8] sm:$0xff]  ;;  %v1464_v3 = vadd.f32 %v5698_v46, %v1015_v50  ;;  %v1018_v50 = vadd.f32 %v4495_v52, %v5702_v49  ;;  %v370_v49 = vld [vmem:[%s5465_s0 + $0xb20] sm:$0xff] }
 0x28e   :  { %5696 = vst [vmem:[#allocation29_spill] sm:$0xff] %v4546_v33  ;;  %v1784_v53 = vpop.f32.mrf.mxu3  ;;  %v2026_v21 = vpop.f32.mrf.mxu2  ;;  %v1339_v33 = vadd.f32 %v4495_v52, %v5701_v56 }
 0x28f   :  { %v4550_v61 = vadd.f32 %v1784_v53, %v1336_v8  ;;  %v1122_v57 = vpop.f32.mrf.mxu0  ;;  %v249_v8 = vld [vmem:[%s5465_s0 + $0x758] sm:$0xff]  ;;  %v5699_v53 = vld [vmem:[#allocation51_spill] sm:$0xff] }
 0x290   :  { %v1123_v38 = vadd.f32 %v4495_v52, %v1122_v57  ;;  %v4569_v57 = vadd.f32 %v5699_v53, %v1464_v3  ;;  %v251_v3 = vld [vmem:[%s5465_s0 + $0x768] sm:$0xff] }
 0x291   :  { %5697 = vst [vmem:[#allocation19_spill] sm:$0xff] %v4550_v61  ;;  %v1571_v54 = vpop.f32.mrf.mxu1 }
 0x292   :  { %1169 = vmatmul.f32.gmra.mxu0 %v248_v27  ;;  %v1572_v12 = vadd.f32 %v1571_v54, %v1123_v38  ;;  %5700 = vst [vmem:[#allocation30_spill] sm:$0xff] %v4569_v57  ;;  %v5705_v54 = vld [vmem:[#allocation65_spill] sm:$0xff]  ;;  %v5708_v38 = vld [vmem:[#allocation66_spill] sm:$0xff]  ;;  %v5709_v57 = vld [vmem:[#allocation68_spill] sm:$0xff] }
 0x293   :  { %2532 = vmatmul.msk.f32.gmra.mxu2 %vm486_vm0, %v259_v4  ;;  %2568 = vmatmul.msk.f32.gmra.mxu3 %vm486_vm0, %v367_v13 }
 0x294   :  { %v4575_v46 = vadd.f32 %v2020_v42, %v1572_v12  ;;  %1618 = vmatmul.f32.gmra.mxu1 %v249_v8  ;;  %v262_v42 = vld [vmem:[%s5465_s0 + $0x7c0] sm:$0xff]  ;;  %v1467_v8 = vadd.f32 %v5705_v54, %v1018_v50  ;;  %v1021_v50 = vadd.f32 %v4495_v52, %v5709_v57  ;;  %v373_v57 = vld [vmem:[%s5465_s0 + $0xb38] sm:$0xff] }
 0x296   :  { %5703 = vst [vmem:[#allocation32_spill] sm:$0xff] %v4575_v46  ;;  %v1787_v27 = vpop.f32.mrf.mxu3  ;;  %v2029_v61 = vpop.f32.mrf.mxu2  ;;  %v1342_v46 = vadd.f32 %v4495_v52, %v5708_v38 }
 0x297   :  { %v4579_v4 = vadd.f32 %v1787_v27, %v1339_v33  ;;  %v1125_v13 = vpop.f32.mrf.mxu0  ;;  %v252_v33 = vld [vmem:[%s5465_s0 + $0x770] sm:$0xff]  ;;  %v5706_v27 = vld [vmem:[#allocation55_spill] sm:$0xff] }
 0x298   :  { %v1126_v56 = vadd.f32 %v4495_v52, %v1125_v13  ;;  %v4598_v13 = vadd.f32 %v5706_v27, %v1467_v8  ;;  %v254_v8 = vld [vmem:[%s5465_s0 + $0x780] sm:$0xff] }
 0x299   :  { %5704 = vst [vmem:[#allocation33_spill] sm:$0xff] %v4579_v4  ;;  %v1574_v12 = vpop.f32.mrf.mxu1 }
 0x29a   :  { %1172 = vmatmul.f32.gmra.mxu0 %v251_v3  ;;  %v1575_v53 = vadd.f32 %v1574_v12, %v1126_v56  ;;  %5707 = vst [vmem:[#allocation23_spill] sm:$0xff] %v4598_v13  ;;  %v5712_v12 = vld [vmem:[#allocation69_spill] sm:$0xff]  ;;  %v5715_v56 = vld [vmem:[#allocation70_spill] sm:$0xff]  ;;  %v5716_v13 = vld [vmem:[#allocation72_spill] sm:$0xff] }
 0x29b   :  { %2533 = vmatmul.msk.f32.gmra.mxu2 %vm486_vm0, %v262_v42  ;;  %2569 = vmatmul.msk.f32.gmra.mxu3 %vm486_vm0, %v370_v49 }
 0x29c   :  { %v4604_v54 = vadd.f32 %v2023_v48, %v1575_v53  ;;  %1621 = vmatmul.f32.gmra.mxu1 %v252_v33  ;;  %v265_v48 = vld [vmem:[%s5465_s0 + $0x7d8] sm:$0xff]  ;;  %v1470_v33 = vadd.f32 %v5712_v12, %v1021_v50  ;;  %v1024_v50 = vadd.f32 %v4495_v52, %v5716_v13  ;;  %v376_v13 = vld [vmem:[%s5465_s0 + $0xb50] sm:$0xff] }
 0x29e   :  { %5710 = vst [vmem:[#allocation34_spill] sm:$0xff] %v4604_v54  ;;  %v1790_v3 = vpop.f32.mrf.mxu3  ;;  %v2032_v4 = vpop.f32.mrf.mxu2  ;;  %v1345_v54 = vadd.f32 %v4495_v52, %v5715_v56 }
 0x29f   :  { %v4608_v42 = vadd.f32 %v1790_v3, %v1342_v46  ;;  %v1128_v49 = vpop.f32.mrf.mxu0  ;;  %v255_v46 = vld [vmem:[%s5465_s0 + $0x788] sm:$0xff] }
 0x2a0   :  { %v1129_v38 = vadd.f32 %v4495_v52, %v1128_v49  ;;  %v5713_v3 = vld [vmem:[#allocation59_spill] sm:$0xff] }
 0x2a1   :  { %5711 = vst [vmem:[#allocation36_spill] sm:$0xff] %v4608_v42  ;;  %v1577_v53 = vpop.f32.mrf.mxu1  ;;  %v4627_v49 = vadd.f32 %v5713_v3, %v1470_v33  ;;  %v257_v33 = vld [vmem:[%s5465_s0 + $0x798] sm:$0xff] }
 0x2a2   :  { %1175 = vmatmul.f32.gmra.mxu0 %v254_v8  ;;  %v1578_v27 = vadd.f32 %v1577_v53, %v1129_v38  ;;  %v5719_v53 = vld [vmem:[#allocation73_spill] sm:$0xff]  ;;  %v5722_v38 = vld [vmem:[#allocation74_spill] sm:$0xff] }
 0x2a3   :  { %2534 = vmatmul.msk.f32.gmra.mxu2 %vm486_vm0, %v265_v48  ;;  %2570 = vmatmul.msk.f32.gmra.mxu3 %vm486_vm0, %v373_v57  ;;  %5714 = vst [vmem:[#allocation37_spill] sm:$0xff] %v4627_v49  ;;  %v5723_v49 = vld [vmem:[#allocation76_spill] sm:$0xff] }
 0x2a4   :  { %v4633_v12 = vadd.f32 %v2026_v21, %v1578_v27  ;;  %1624 = vmatmul.f32.gmra.mxu1 %v255_v46  ;;  %v268_v21 = vld [vmem:[%s5465_s0 + $0x7f0] sm:$0xff]  ;;  %v1473_v46 = vadd.f32 %v5719_v53, %v1024_v50  ;;  %v1027_v50 = vadd.f32 %v4495_v52, %v5723_v49  ;;  %v379_v49 = vld [vmem:[%s5465_s0 + $0xb68] sm:$0xff] }
 0x2a6   :  { %5717 = vst [vmem:[#allocation27_spill] sm:$0xff] %v4633_v12  ;;  %v1793_v8 = vpop.f32.mrf.mxu3  ;;  %v2035_v42 = vpop.f32.mrf.mxu2  ;;  %v1348_v12 = vadd.f32 %v4495_v52, %v5722_v38 }
 0x2a7   :  { %v4637_v48 = vadd.f32 %v1793_v8, %v1345_v54  ;;  %v1131_v57 = vpop.f32.mrf.mxu0  ;;  %v258_v54 = vld [vmem:[%s5465_s0 + $0x7a0] sm:$0xff]  ;;  %v5720_v8 = vld [vmem:[#allocation63_spill] sm:$0xff] }
 0x2a8   :  { %v1132_v56 = vadd.f32 %v4495_v52, %v1131_v57  ;;  %v4656_v57 = vadd.f32 %v5720_v8, %v1473_v46  ;;  %v260_v46 = vld [vmem:[%s5465_s0 + $0x7b0] sm:$0xff] }
 0x2a9   :  { %5718 = vst [vmem:[#allocation38_spill] sm:$0xff] %v4637_v48  ;;  %v1580_v27 = vpop.f32.mrf.mxu1 }
 0x2aa   :  { %1178 = vmatmul.f32.gmra.mxu0 %v257_v33  ;;  %v1581_v3 = vadd.f32 %v1580_v27, %v1132_v56  ;;  %5721 = vst [vmem:[#allocation40_spill] sm:$0xff] %v4656_v57  ;;  %v5726_v27 = vld [vmem:[#allocation77_spill] sm:$0xff]  ;;  %v5729_v56 = vld [vmem:[#allocation78_spill] sm:$0xff]  ;;  %v5730_v57 = vld [vmem:[#allocation80_spill] sm:$0xff] }
 0x2ab   :  { %2535 = vmatmul.msk.f32.gmra.mxu2 %vm486_vm0, %v268_v21  ;;  %2571 = vmatmul.msk.f32.gmra.mxu3 %vm486_vm0, %v376_v13 }
 0x2ac   :  { %v4662_v53 = vadd.f32 %v2029_v61, %v1581_v3  ;;  %1627 = vmatmul.f32.gmra.mxu1 %v258_v54  ;;  %v271_v61 = vld [vmem:[%s5465_s0 + $0x808] sm:$0xff]  ;;  %v1476_v54 = vadd.f32 %v5726_v27, %v1027_v50  ;;  %v1030_v50 = vadd.f32 %v4495_v52, %v5730_v57  ;;  %v382_v57 = vld [vmem:[%s5465_s0 + $0xb80] sm:$0xff] }
 0x2ae   :  { %5724 = vst [vmem:[#allocation41_spill] sm:$0xff] %v4662_v53  ;;  %v1796_v33 = vpop.f32.mrf.mxu3  ;;  %v2038_v48 = vpop.f32.mrf.mxu2  ;;  %v1351_v53 = vadd.f32 %v4495_v52, %v5729_v56 }
 0x2af   :  { %v4666_v21 = vadd.f32 %v1796_v33, %v1348_v12  ;;  %v1134_v13 = vpop.f32.mrf.mxu0  ;;  %v261_v12 = vld [vmem:[%s5465_s0 + $0x7b8] sm:$0xff]  ;;  %v5727_v33 = vld [vmem:[#allocation67_spill] sm:$0xff] }
 0x2b0   :  { %v1135_v38 = vadd.f32 %v4495_v52, %v1134_v13  ;;  %v4685_v13 = vadd.f32 %v5727_v33, %v1476_v54  ;;  %v263_v54 = vld [vmem:[%s5465_s0 + $0x7c8] sm:$0xff] }
 0x2b1   :  { %5725 = vst [vmem:[#allocation31_spill] sm:$0xff] %v4666_v21  ;;  %v1583_v3 = vpop.f32.mrf.mxu1 }
 0x2b2   :  { %1181 = vmatmul.f32.gmra.mxu0 %v260_v46  ;;  %v1584_v8 = vadd.f32 %v1583_v3, %v1135_v38  ;;  %5728 = vst [vmem:[#allocation42_spill] sm:$0xff] %v4685_v13  ;;  %v5733_v3 = vld [vmem:[#allocation81_spill] sm:$0xff]  ;;  %v5736_v38 = vld [vmem:[#allocation82_spill] sm:$0xff]  ;;  %v5737_v13 = vld [vmem:[#allocation84_spill] sm:$0xff] }
 0x2b3   :  { %2536 = vmatmul.msk.f32.gmra.mxu2 %vm486_vm0, %v271_v61  ;;  %2572 = vmatmul.msk.f32.gmra.mxu3 %vm486_vm0, %v379_v49 }
 0x2b4   :  { %v4691_v27 = vadd.f32 %v2032_v4, %v1584_v8  ;;  %1630 = vmatmul.f32.gmra.mxu1 %v261_v12  ;;  %v274_v4 = vld [vmem:[%s5465_s0 + $0x820] sm:$0xff]  ;;  %v1479_v12 = vadd.f32 %v5733_v3, %v1030_v50  ;;  %v1033_v50 = vadd.f32 %v4495_v52, %v5737_v13  ;;  %v385_v13 = vld [vmem:[%s5465_s0 + $0xb98] sm:$0xff] }
 0x2b6   :  { %5731 = vst [vmem:[#allocation44_spill] sm:$0xff] %v4691_v27  ;;  %v1799_v46 = vpop.f32.mrf.mxu3  ;;  %v2041_v21 = vpop.f32.mrf.mxu2  ;;  %v1354_v27 = vadd.f32 %v4495_v52, %v5736_v38 }
 0x2b7   :  { %v4695_v61 = vadd.f32 %v1799_v46, %v1351_v53  ;;  %v1137_v49 = vpop.f32.mrf.mxu0  ;;  %v264_v53 = vld [vmem:[%s5465_s0 + $0x7d0] sm:$0xff]  ;;  %v5734_v46 = vld [vmem:[#allocation71_spill] sm:$0xff] }
 0x2b8   :  { %v1138_v56 = vadd.f32 %v4495_v52, %v1137_v49  ;;  %v4714_v49 = vadd.f32 %v5734_v46, %v1479_v12  ;;  %v266_v12 = vld [vmem:[%s5465_s0 + $0x7e0] sm:$0xff] }
 0x2b9   :  { %5732 = vst [vmem:[#allocation45_spill] sm:$0xff] %v4695_v61  ;;  %v1586_v8 = vpop.f32.mrf.mxu1 }
 0x2ba   :  { %1184 = vmatmul.f32.gmra.mxu0 %v263_v54  ;;  %v1587_v33 = vadd.f32 %v1586_v8, %v1138_v56  ;;  %5735 = vst [vmem:[#allocation35_spill] sm:$0xff] %v4714_v49  ;;  %v5740_v8 = vld [vmem:[#allocation85_spill] sm:$0xff]  ;;  %v5743_v56 = vld [vmem:[#allocation86_spill] sm:$0xff]  ;;  %v5744_v49 = vld [vmem:[#allocation88_spill] sm:$0xff] }
 0x2bb   :  { %2537 = vmatmul.msk.f32.gmra.mxu2 %vm486_vm0, %v274_v4  ;;  %2573 = vmatmul.msk.f32.gmra.mxu3 %vm486_vm0, %v382_v57 }
 0x2bc   :  { %v4720_v3 = vadd.f32 %v2035_v42, %v1587_v33  ;;  %1633 = vmatmul.f32.gmra.mxu1 %v264_v53  ;;  %v277_v42 = vld [vmem:[%s5465_s0 + $0x838] sm:$0xff]  ;;  %v1482_v53 = vadd.f32 %v5740_v8, %v1033_v50  ;;  %v1036_v50 = vadd.f32 %v4495_v52, %v5744_v49  ;;  %v388_v49 = vld [vmem:[%s5465_s0 + $0xbb0] sm:$0xff] }
 0x2be   :  { %5738 = vst [vmem:[#allocation46_spill] sm:$0xff] %v4720_v3  ;;  %v1802_v54 = vpop.f32.mrf.mxu3  ;;  %v2044_v61 = vpop.f32.mrf.mxu2  ;;  %v1357_v3 = vadd.f32 %v4495_v52, %v5743_v56 }
 0x2bf   :  { %v4724_v4 = vadd.f32 %v1802_v54, %v1354_v27  ;;  %v1140_v57 = vpop.f32.mrf.mxu0  ;;  %v267_v27 = vld [vmem:[%s5465_s0 + $0x7e8] sm:$0xff] }
 0x2c0   :  { %v1141_v38 = vadd.f32 %v4495_v52, %v1140_v57  ;;  %v5741_v54 = vld [vmem:[#allocation75_spill] sm:$0xff] }
 0x2c1   :  { %5739 = vst [vmem:[#allocation48_spill] sm:$0xff] %v4724_v4  ;;  %v1589_v33 = vpop.f32.mrf.mxu1  ;;  %v4743_v57 = vadd.f32 %v5741_v54, %v1482_v53  ;;  %v269_v53 = vld [vmem:[%s5465_s0 + $0x7f8] sm:$0xff] }
 0x2c2   :  { %1187 = vmatmul.f32.gmra.mxu0 %v266_v12  ;;  %v1590_v46 = vadd.f32 %v1589_v33, %v1141_v38  ;;  %v5747_v33 = vld [vmem:[#allocation89_spill] sm:$0xff]  ;;  %v5750_v38 = vld [vmem:[#allocation90_spill] sm:$0xff] }
 0x2c3   :  { %2538 = vmatmul.msk.f32.gmra.mxu2 %vm486_vm0, %v277_v42  ;;  %2574 = vmatmul.msk.f32.gmra.mxu3 %vm486_vm0, %v385_v13  ;;  %5742 = vst [vmem:[#allocation49_spill] sm:$0xff] %v4743_v57  ;;  %v5751_v57 = vld [vmem:[#allocation91_spill] sm:$0xff] }
 0x2c4   :  { %v4749_v8 = vadd.f32 %v2038_v48, %v1590_v46  ;;  %1636 = vmatmul.f32.gmra.mxu1 %v267_v27  ;;  %v280_v48 = vld [vmem:[%s5465_s0 + $0x850] sm:$0xff]  ;;  %v1485_v27 = vadd.f32 %v5747_v33, %v1036_v50  ;;  %v1039_v50 = vadd.f32 %v4495_v52, %v5751_v57  ;;  %v391_v57 = vld [vmem:[%s5465_s0 + $0xbc8] sm:$0xff] }
 0x2c6   :  { %5745 = vst [vmem:[#allocation39_spill] sm:$0xff] %v4749_v8  ;;  %v1805_v12 = vpop.f32.mrf.mxu3  ;;  %v2047_v4 = vpop.f32.mrf.mxu2  ;;  %v1360_v8 = vadd.f32 %v4495_v52, %v5750_v38 }
 0x2c7   :  { %v4753_v42 = vadd.f32 %v1805_v12, %v1357_v3  ;;  %v1143_v13 = vpop.f32.mrf.mxu0  ;;  %v270_v3 = vld [vmem:[%s5465_s0 + $0x800] sm:$0xff]  ;;  %v5748_v12 = vld [vmem:[#allocation79_spill] sm:$0xff] }
 0x2c8   :  { %v1144_v56 = vadd.f32 %v4495_v52, %v1143_v13  ;;  %v4772_v13 = vadd.f32 %v5748_v12, %v1485_v27  ;;  %v272_v27 = vld [vmem:[%s5465_s0 + $0x810] sm:$0xff] }
 0x2c9   :  { %5746 = vst [vmem:[#allocation50_spill] sm:$0xff] %v4753_v42  ;;  %v1592_v46 = vpop.f32.mrf.mxu1 }
 0x2ca   :  { %1190 = vmatmul.f32.gmra.mxu0 %v269_v53  ;;  %v1593_v54 = vadd.f32 %v1592_v46, %v1144_v56  ;;  %5749 = vst [vmem:[#allocation52_spill] sm:$0xff] %v4772_v13  ;;  %v5755_v46 = vld [vmem:[#allocation92_spill] sm:$0xff]  ;;  %v5758_v56 = vld [vmem:[#allocation93_spill] sm:$0xff]  ;;  %v5759_v13 = vld [vmem:[#allocation94_spill] sm:$0xff] }
 0x2cb   :  { %2539 = vmatmul.msk.f32.gmra.mxu2 %vm486_vm0, %v280_v48  ;;  %2575 = vmatmul.msk.f32.gmra.mxu3 %vm486_vm0, %v388_v49 }
 0x2cc   :  { %v4778_v33 = vadd.f32 %v2041_v21, %v1593_v54  ;;  %1639 = vmatmul.f32.gmra.mxu1 %v270_v3  ;;  %v283_v21 = vld [vmem:[%s5465_s0 + $0x868] sm:$0xff]  ;;  %v1488_v3 = vadd.f32 %v5755_v46, %v1039_v50  ;;  %v1042_v50 = vadd.f32 %v4495_v52, %v5759_v13  ;;  %v394_v13 = vld [vmem:[%s5465_s0 + $0xbe0] sm:$0xff] }
 0x2ce   :  { %5752 = vst [vmem:[#allocation53_spill] sm:$0xff] %v4778_v33  ;;  %v1808_v53 = vpop.f32.mrf.mxu3  ;;  %v4780_v42 = vpop.f32.mrf.mxu2  ;;  %v1363_v33 = vadd.f32 %v4495_v52, %v5758_v56 }
 0x2cf   :  { %5753 = vst [vmem:[#allocation43_spill] sm:$0xff] %v4780_v42  ;;  %v4784_v48 = vadd.f32 %v1808_v53, %v1360_v8  ;;  %v1146_v49 = vpop.f32.mrf.mxu0  ;;  %v273_v8 = vld [vmem:[%s5465_s0 + $0x818] sm:$0xff]  ;;  %v5756_v53 = vld [vmem:[#allocation83_spill] sm:$0xff] }
 0x2d0   :  { %v1147_v38 = vadd.f32 %v4495_v52, %v1146_v49  ;;  %v4803_v49 = vadd.f32 %v5756_v53, %v1488_v3  ;;  %v275_v3 = vld [vmem:[%s5465_s0 + $0x828] sm:$0xff] }
 0x2d1   :  { %5754 = vst [vmem:[#allocation54_spill] sm:$0xff] %v4784_v48  ;;  %v1595_v54 = vpop.f32.mrf.mxu1 }
 0x2d2   :  { %1193 = vmatmul.f32.gmra.mxu0 %v272_v27  ;;  %v1596_v12 = vadd.f32 %v1595_v54, %v1147_v38  ;;  %5757 = vst [vmem:[#allocation56_spill] sm:$0xff] %v4803_v49  ;;  %v5763_v54 = vld [vmem:[#allocation95_spill] sm:$0xff]  ;;  %v5766_v38 = vld [vmem:[#allocation96_spill] sm:$0xff] }
 0x2d3   :  { %2540 = vmatmul.msk.f32.gmra.mxu2 %vm486_vm0, %v283_v21  ;;  %2576 = vmatmul.msk.f32.gmra.mxu3 %vm486_vm0, %v391_v57 }
 0x2d4   :  { %v4809_v46 = vadd.f32 %v2044_v61, %v1596_v12  ;;  %1642 = vmatmul.f32.gmra.mxu1 %v273_v8  ;;  %v286_v61 = vld [vmem:[%s5465_s0 + $0x880] sm:$0xff]  ;;  %v1491_v8 = vadd.f32 %v5763_v54, %v1042_v50 }
 0x2d6   :  { %5760 = vst [vmem:[#allocation57_spill] sm:$0xff] %v4809_v46  ;;  %v1811_v27 = vpop.f32.mrf.mxu3  ;;  %v4811_v42 = vpop.f32.mrf.mxu2  ;;  %v1366_v46 = vadd.f32 %v4495_v52, %v5766_v38  ;;  %v397_v38 = vld [vmem:[%s5465_s0 + $0xbf8] sm:$0xff] }
 0x2d7   :  { %5761 = vst [vmem:[#allocation47_spill] sm:$0xff] %v4811_v42  ;;  %v4815_v21 = vadd.f32 %v1811_v27, %v1363_v33  ;;  %v1149_v57 = vpop.f32.mrf.mxu0  ;;  %v276_v33 = vld [vmem:[%s5465_s0 + $0x830] sm:$0xff]  ;;  %v5764_v27 = vld [vmem:[#allocation87_spill] sm:$0xff] }
 0x2d8   :  { %v1150_v56 = vadd.f32 %v4495_v52, %v1149_v57  ;;  %v4834_v57 = vadd.f32 %v5764_v27, %v1491_v8  ;;  %v281_v27 = vld [vmem:[%s5465_s0 + $0x858] sm:$0xff]  ;;  %v287_v42 = vld [vmem:[%s5465_s0 + $0x888] sm:$0xff] }
 0x2d9   :  { %5762 = vst [vmem:[#allocation58_spill] sm:$0xff] %v4815_v21  ;;  %v1598_v12 = vpop.f32.mrf.mxu1 }
 0x2da   :  { %1196 = vmatmul.f32.gmra.mxu0 %v275_v3  ;;  %v1599_v53 = vadd.f32 %v1598_v12, %v1150_v56  ;;  %5765 = vst [vmem:[#allocation60_spill] sm:$0xff] %v4834_v57  ;;  %v284_v57 = vld [vmem:[%s5465_s0 + $0x870] sm:$0xff] }
 0x2db   :  { %2541 = vmatmul.msk.f32.gmra.mxu2 %vm486_vm0, %v286_v61  ;;  %2577 = vmatmul.msk.f32.gmra.mxu3 %vm486_vm0, %v394_v13  ;;  %v278_v13 = vld [vmem:[%s5465_s0 + $0x840] sm:$0xff] }
 0x2dc   :  { %v4838_v49 = vadd.f32 %v2047_v4, %v1599_v53  ;;  %1645 = vmatmul.f32.gmra.mxu1 %v276_v33  ;;  %v289_v4 = vld [vmem:[%s5465_s0 + $0x898] sm:$0xff] }
 0x2de   :  { %5767 = vst [vmem:[#allocation61_spill] sm:$0xff] %v4838_v49  ;;  %v1814_v50 = vpop.f32.mrf.mxu3  ;;  %v4840_v3 = vpop.f32.mrf.mxu2 }
 0x2df   :  { %5768 = vst [vmem:[#allocation51_spill] sm:$0xff] %v4840_v3  ;;  %v4844_v56 = vadd.f32 %v1814_v50, %v1366_v46  ;;  %v4846_v61 = vpop.f32.mrf.mxu0  ;;  %v279_v46 = vld [vmem:[%s5465_s0 + $0x848] sm:$0xff]  ;;  %v292_v50 = vld [vmem:[%s5465_s0 + $0x8b0] sm:$0xff] }
 0x2e0   :  { %5770 = vst [vmem:[#allocation64_spill] sm:$0xff] %v4846_v61  ;;  %v403_v3 = vld [vmem:[%s5465_s0 + $0xc28] sm:$0xff] }
 0x2e1   :  { %5769 = vst [vmem:[#allocation62_spill] sm:$0xff] %v4844_v56  ;;  %v4857_v8 = vpop.f32.mrf.mxu1 }
 0x2e2   :  { %5771 = vst [vmem:[#allocation65_spill] sm:$0xff] %v4857_v8  ;;  %1199 = vmatmul.f32.gmra.mxu0 %v278_v13  ;;  %v400_v13 = vld [vmem:[%s5465_s0 + $0xc10] sm:$0xff] }
 0x2e3   :  { %2542 = vmatmul.msk.f32.gmra.mxu2 %vm486_vm0, %v289_v4  ;;  %2578 = vmatmul.msk.f32.gmra.mxu3 %vm486_vm0, %v397_v38  ;;  %v282_v38 = vld [vmem:[%s5465_s0 + $0x860] sm:$0xff] }
 0x2e4   :  { %1648 = vmatmul.f32.gmra.mxu1 %v279_v46 }
 0x2e6   :  { %v2059_v12 = vpop.f32.mrf.mxu2  ;;  %v2167_v33 = vpop.f32.mrf.mxu3 }
 0x2e7   :  { %v4864_v53 = vpop.f32.mrf.mxu0 }
 0x2e8   :  { %5772 = vst [vmem:[#allocation55_spill] sm:$0xff] %v4864_v53 }
 0x2e9   :  { %v4875_v4 = vpop.f32.mrf.mxu1 }
 0x2ea   :  { %5773 = vst [vmem:[#allocation66_spill] sm:$0xff] %v4875_v4  ;;  %1202 = vmatmul.f32.gmra.mxu0 %v281_v27  ;;  %v295_v27 = vld [vmem:[%s5465_s0 + $0x8c8] sm:$0xff] }
 0x2eb   :  { %2543 = vmatmul.msk.f32.gmra.mxu2 %vm486_vm0, %v292_v50  ;;  %2579 = vmatmul.msk.f32.gmra.mxu3 %vm486_vm0, %v400_v13  ;;  %v285_v13 = vld [vmem:[%s5465_s0 + $0x878] sm:$0xff] }
 0x2ec   :  { %1651 = vmatmul.f32.gmra.mxu1 %v282_v38 }
 0x2ee   :  { %v2062_v46 = vpop.f32.mrf.mxu2  ;;  %v2170_v54 = vpop.f32.mrf.mxu3 }
 0x2ef   :  { %v4882_v49 = vpop.f32.mrf.mxu0 }
 0x2f0   :  { %5774 = vst [vmem:[#allocation68_spill] sm:$0xff] %v4882_v49 }
 0x2f1   :  { %v4893_v50 = vpop.f32.mrf.mxu1 }
 0x2f2   :  { %5775 = vst [vmem:[#allocation69_spill] sm:$0xff] %v4893_v50  ;;  %1205 = vmatmul.f32.gmra.mxu0 %v284_v57  ;;  %v298_v57 = vld [vmem:[%s5465_s0 + $0x8e0] sm:$0xff] }
 0x2f3   :  { %2544 = vmatmul.msk.f32.gmra.mxu2 %vm486_vm0, %v295_v27  ;;  %2580 = vmatmul.msk.f32.gmra.mxu3 %vm486_vm0, %v403_v3  ;;  %v406_v27 = vld [vmem:[%s5465_s0 + $0xc40] sm:$0xff]  ;;  %v288_v3 = vld [vmem:[%s5465_s0 + $0x890] sm:$0xff] }
 0x2f4   :  { %1654 = vmatmul.f32.gmra.mxu1 %v285_v13 }
 0x2f6   :  { %v2065_v38 = vpop.f32.mrf.mxu2  ;;  %v2173_v56 = vpop.f32.mrf.mxu3 }
 0x2f7   :  { %v1161_v49 = vpop.f32.mrf.mxu0 }
 0x2f8   :  { %v1162_v21 = vadd.f32 %v4495_v52, %v1161_v49  ;;  %v2168_v49 = vadd.f32 %v2167_v33, %v3923_v2  ;;  %v409_v2 = vld [vmem:[%s5465_s0 + $0xc58] sm:$0xff] }
 0x2f9   :  { %v1610_v50 = vpop.f32.mrf.mxu1 }
 0x2fa   :  { %1208 = vmatmul.f32.gmra.mxu0 %v287_v42  ;;  %v1611_v13 = vadd.f32 %v1610_v50, %v1162_v21  ;;  %v290_v42 = vld [vmem:[%s5465_s0 + $0x8a0] sm:$0xff]  ;;  %v301_v21 = vld [vmem:[%s5465_s0 + $0x8f8] sm:$0xff]  ;;  %v291_v50 = vld [vmem:[%s5465_s0 + $0x8a8] sm:$0xff] }
 0x2fb   :  { %2545 = vmatmul.msk.f32.gmra.mxu2 %vm486_vm0, %v298_v57  ;;  %2581 = vmatmul.msk.f32.gmra.mxu3 %vm486_vm0, %v406_v27  ;;  %v2171_v27 = vadd.f32 %v2170_v54, %v3951_v10  ;;  %v304_v10 = vld [vmem:[%s5465_s0 + $0x910] sm:$0xff] }
 0x2fc   :  { %v2060_v4 = vadd.f32 %v2059_v12, %v1611_v13  ;;  %1657 = vmatmul.f32.gmra.mxu1 %v288_v3  ;;  %v5776_v12 = vmax.f32 %v3913_v11, %v3919_v6  ;;  %v412_v54 = vld [vmem:[%s5465_s0 + $0xc70] sm:$0xff] }
 0x2fe   :  { %v2068_v53 = vpop.f32.mrf.mxu2  ;;  %v2176_v48 = vpop.f32.mrf.mxu3  ;;  %v2305_v8 = vmax.f32 %v2060_v4, %v2168_v49 }
 0x2ff   :  { %v1164_v61 = vpop.f32.mrf.mxu0 }
 0x300   :  { %v1165_v19 = vadd.f32 %v4495_v52, %v1164_v61  ;;  %v2341_v33 = vmax.f32 %v5776_v12, %v2305_v8 }
 0x301   :  { %v1613_v4 = vpop.f32.mrf.mxu1 }
 0x302   :  { %1211 = vmatmul.f32.gmra.mxu0 %v290_v42  ;;  %v2377_v61 = vmax.f32 %v2341_v33, 0.0  ;;  %v1614_v57 = vadd.f32 %v1613_v4, %v1165_v19  ;;  %v293_v19 = vld [vmem:[%s5465_s0 + $0x8b8] sm:$0xff]  ;;  %v2174_v4 = vadd.f32 %v2173_v56, %v3979_v18  ;;  %v307_v18 = vld [vmem:[%s5465_s0 + $0x928] sm:$0xff] }
 0x303   :  { %2546 = vmatmul.msk.f32.gmra.mxu2 %vm486_vm0, %v301_v21  ;;  %2582 = vmatmul.msk.f32.gmra.mxu3 %vm486_vm0, %v409_v2  ;;  %v294_v2 = vld [vmem:[%s5465_s0 + $0x8c0] sm:$0xff]  ;;  %v415_v56 = vld [vmem:[%s5465_s0 + $0xc88] sm:$0xff] }
 0x304   :  { %2414 = vst.msk [vmem:[%s5467_s3 + $0x18] sm:$0xff] %vm2410_vm1, %v2377_v61  ;;  %v2063_v11 = vadd.f32 %v2062_v46, %v1614_v57  ;;  %1660 = vmatmul.f32.gmra.mxu1 %v291_v50  ;;  %v5777_v46 = vmax.f32 %v3941_v37, %v3947_v14 }
 0x306   :  { %v2071_v6 = vpop.f32.mrf.mxu2  ;;  %v2179_v8 = vpop.f32.mrf.mxu3  ;;  %v2306_v3 = vmax.f32 %v2063_v11, %v2171_v27  ;;  %v296_v27 = vld [vmem:[%s5465_s0 + $0x8d0] sm:$0xff] }
 0x307   :  { %v1167_v13 = vpop.f32.mrf.mxu0 }
 0x308   :  { %v1168_v49 = vadd.f32 %v4495_v52, %v1167_v13  ;;  %v2342_v42 = vmax.f32 %v5777_v46, %v2306_v3 }
 0x309   :  { %v1616_v21 = vpop.f32.mrf.mxu1 }
 0x30a   :  { %1214 = vmatmul.f32.gmra.mxu0 %v293_v19  ;;  %v2378_v12 = vmax.f32 %v2342_v42, 0.0  ;;  %v1617_v33 = vadd.f32 %v1616_v21, %v1168_v49  ;;  %v297_v19 = vld [vmem:[%s5465_s0 + $0x8d8] sm:$0xff] }
 0x30b   :  { %2547 = vmatmul.msk.f32.gmra.mxu2 %vm486_vm0, %v304_v10  ;;  %2583 = vmatmul.msk.f32.gmra.mxu3 %vm486_vm0, %v412_v54  ;;  %v2177_v54 = vadd.f32 %v2176_v48, %v4007_v26  ;;  %v310_v26 = vld [vmem:[%s5465_s0 + $0x940] sm:$0xff] }
 0x30c   :  { %2415 = vst.msk [vmem:[%s5467_s3 + $0x20] sm:$0xff] %vm2410_vm1, %v2378_v12  ;;  %v2066_v37 = vadd.f32 %v2065_v38, %v1617_v33  ;;  %1663 = vmatmul.f32.gmra.mxu1 %v294_v2  ;;  %v5778_v38 = vmax.f32 %v3969_v20, %v3975_v22  ;;  %v299_v2 = vld [vmem:[%s5465_s0 + $0x8e8] sm:$0xff]  ;;  %v418_v48 = vld [vmem:[%s5465_s0 + $0xca0] sm:$0xff] }
 0x30e   :  { %v2074_v14 = vpop.f32.mrf.mxu2  ;;  %v2182_v50 = vpop.f32.mrf.mxu3  ;;  %v2307_v61 = vmax.f32 %v2066_v37, %v2174_v4  ;;  %v300_v37 = vld [vmem:[%s5465_s0 + $0x8f0] sm:$0xff] }
 0x30f   :  { %v1170_v57 = vpop.f32.mrf.mxu0 }
 0x310   :  { %v1171_v11 = vadd.f32 %v4495_v52, %v1170_v57  ;;  %v2343_v3 = vmax.f32 %v5778_v38, %v2307_v61  ;;  %v302_v38 = vld [vmem:[%s5465_s0 + $0x900] sm:$0xff] }
 0x311   :  { %v1619_v13 = vpop.f32.mrf.mxu1 }
 0x312   :  { %1217 = vmatmul.f32.gmra.mxu0 %v296_v27  ;;  %v2379_v49 = vmax.f32 %v2343_v3, 0.0  ;;  %v1620_v10 = vadd.f32 %v1619_v13, %v1171_v11  ;;  %v2180_v27 = vadd.f32 %v2179_v8, %v4035_v35  ;;  %v313_v35 = vld [vmem:[%s5465_s0 + $0x958] sm:$0xff] }
 0x313   :  { %2548 = vmatmul.msk.f32.gmra.mxu2 %vm486_vm0, %v307_v18  ;;  %2584 = vmatmul.msk.f32.gmra.mxu3 %vm486_vm0, %v415_v56  ;;  %v421_v8 = vld [vmem:[%s5465_s0 + $0xcb8] sm:$0xff] }
 0x314   :  { %2416 = vst.msk [vmem:[%s5467_s3 + $0x28] sm:$0xff] %vm2410_vm1, %v2379_v49  ;;  %v2069_v20 = vadd.f32 %v2068_v53, %v1620_v10  ;;  %1666 = vmatmul.f32.gmra.mxu1 %v297_v19  ;;  %v5779_v53 = vmax.f32 %v3997_v5, %v4003_v30  ;;  %v303_v49 = vld [vmem:[%s5465_s0 + $0x908] sm:$0xff] }
 0x316   :  { %v2077_v22 = vpop.f32.mrf.mxu2  ;;  %v2185_v46 = vpop.f32.mrf.mxu3  ;;  %v2308_v42 = vmax.f32 %v2069_v20, %v2177_v54  ;;  %v2183_v20 = vadd.f32 %v2182_v50, %v4063_v47  ;;  %v316_v47 = vld [vmem:[%s5465_s0 + $0x970] sm:$0xff] }
 0x317   :  { %v1173_v21 = vpop.f32.mrf.mxu0  ;;  %v424_v50 = vld [vmem:[%s5465_s0 + $0xcd0] sm:$0xff] }
 0x318   :  { %v1174_v12 = vadd.f32 %v4495_v52, %v1173_v21  ;;  %v2344_v33 = vmax.f32 %v5779_v53, %v2308_v42 }
 0x319   :  { %v1622_v4 = vpop.f32.mrf.mxu1 }
 0x31a   :  { %1220 = vmatmul.f32.gmra.mxu0 %v299_v2  ;;  %v2380_v61 = vmax.f32 %v2344_v33, 0.0  ;;  %v1623_v57 = vadd.f32 %v1622_v4, %v1174_v12  ;;  %v305_v12 = vld [vmem:[%s5465_s0 + $0x918] sm:$0xff]  ;;  %v306_v33 = vld [vmem:[%s5465_s0 + $0x920] sm:$0xff] }
 0x31b   :  { %2549 = vmatmul.msk.f32.gmra.mxu2 %vm486_vm0, %v310_v26  ;;  %2585 = vmatmul.msk.f32.gmra.mxu3 %vm486_vm0, %v418_v48 }
 0x31c   :  { %2417 = vst.msk [vmem:[%s5467_s3 + $0x30] sm:$0xff] %vm2410_vm1, %v2380_v61  ;;  %v2072_v5 = vadd.f32 %v2071_v6, %v1623_v57  ;;  %1669 = vmatmul.f32.gmra.mxu1 %v300_v37  ;;  %v5780_v6 = vmax.f32 %v4025_v51, %v4031_v40  ;;  %v2186_v61 = vadd.f32 %v2185_v46, %v4091_v63  ;;  %v319_v63 = vld [vmem:[%s5465_s0 + $0x988] sm:$0xff] }
 0x31d   :  { %v427_v46 = vld [vmem:[%s5465_s0 + $0xce8] sm:$0xff] }
 0x31e   :  { %v2080_v30 = vpop.f32.mrf.mxu2  ;;  %v2188_v11 = vpop.f32.mrf.mxu3  ;;  %v2309_v18 = vmax.f32 %v2072_v5, %v2180_v27 }
 0x31f   :  { %v1176_v56 = vpop.f32.mrf.mxu0 }
 0x320   :  { %v1177_v3 = vadd.f32 %v4495_v52, %v1176_v56  ;;  %v2345_v13 = vmax.f32 %v5780_v6, %v2309_v18  ;;  %v308_v18 = vld [vmem:[%s5465_s0 + $0x930] sm:$0xff] }
 0x321   :  { %v1625_v19 = vpop.f32.mrf.mxu1 }
 0x322   :  { %1223 = vmatmul.f32.gmra.mxu0 %v302_v38  ;;  %v2381_v10 = vmax.f32 %v2345_v13, 0.0  ;;  %v1626_v54 = vadd.f32 %v1625_v19, %v1177_v3  ;;  %v2189_v13 = vadd.f32 %v2188_v11, %v4119_v15  ;;  %v322_v15 = vld [vmem:[%s5465_s0 + $0x9a0] sm:$0xff] }
 0x323   :  { %2550 = vmatmul.msk.f32.gmra.mxu2 %vm486_vm0, %v313_v35  ;;  %2586 = vmatmul.msk.f32.gmra.mxu3 %vm486_vm0, %v421_v8  ;;  %v309_v35 = vld [vmem:[%s5465_s0 + $0x938] sm:$0xff]  ;;  %v430_v11 = vld [vmem:[%s5465_s0 + $0xd00] sm:$0xff] }
 0x324   :  { %2418 = vst.msk [vmem:[%s5467_s3 + $0x38] sm:$0xff] %vm2410_vm1, %v2381_v10  ;;  %v2075_v51 = vadd.f32 %v2074_v14, %v1626_v54  ;;  %1672 = vmatmul.f32.gmra.mxu1 %v303_v49  ;;  %v5781_v14 = vmax.f32 %v4053_v39, %v4059_v55  ;;  %v311_v54 = vld [vmem:[%s5465_s0 + $0x948] sm:$0xff] }
 0x326   :  { %v2083_v40 = vpop.f32.mrf.mxu2  ;;  %v2191_v42 = vpop.f32.mrf.mxu3  ;;  %v2310_v21 = vmax.f32 %v2075_v51, %v2183_v20 }
 0x327   :  { %v1179_v2 = vpop.f32.mrf.mxu0 }
 0x328   :  { %v1180_v26 = vadd.f32 %v4495_v52, %v1179_v2  ;;  %v2346_v48 = vmax.f32 %v5781_v14, %v2310_v21  ;;  %v312_v2 = vld [vmem:[%s5465_s0 + $0x950] sm:$0xff] }
 0x329   :  { %v1628_v53 = vpop.f32.mrf.mxu1 }
 0x32a   :  { %1226 = vmatmul.f32.gmra.mxu0 %v305_v12  ;;  %v2382_v4 = vmax.f32 %v2346_v48, 0.0  ;;  %v1629_v37 = vadd.f32 %v1628_v53, %v1180_v26  ;;  %v314_v53 = vld [vmem:[%s5465_s0 + $0x960] sm:$0xff] }
 0x32b   :  { %2551 = vmatmul.msk.f32.gmra.mxu2 %vm486_vm0, %v316_v47  ;;  %2587 = vmatmul.msk.f32.gmra.mxu3 %vm486_vm0, %v424_v50  ;;  %v2192_v47 = vadd.f32 %v2191_v42, %v4147_v32  ;;  %v325_v32 = vld [vmem:[%s5465_s0 + $0x9b8] sm:$0xff] }
 0x32c   :  { %2419 = vst.msk [vmem:[%s5467_s3 + $0x40] sm:$0xff] %vm2410_vm1, %v2382_v4  ;;  %v2078_v39 = vadd.f32 %v2077_v22, %v1629_v37  ;;  %1675 = vmatmul.f32.gmra.mxu1 %v306_v33  ;;  %v5782_v22 = vmax.f32 %v4081_v31, %v4087_v7  ;;  %v433_v42 = vld [vmem:[%s5465_s0 + $0xd18] sm:$0xff] }
 0x32e   :  { %v2086_v55 = vpop.f32.mrf.mxu2  ;;  %v2194_v57 = vpop.f32.mrf.mxu3  ;;  %v2311_v27 = vmax.f32 %v2078_v39, %v2186_v61  ;;  %v315_v61 = vld [vmem:[%s5465_s0 + $0x968] sm:$0xff] }
 0x32f   :  { %v1182_v5 = vpop.f32.mrf.mxu0 }
 0x330   :  { %v1183_v56 = vadd.f32 %v4495_v52, %v1182_v5  ;;  %v2347_v38 = vmax.f32 %v5782_v22, %v2311_v27  ;;  %v2195_v5 = vadd.f32 %v2194_v57, %v4175_v59  ;;  %v328_v59 = vld [vmem:[%s5465_s0 + $0x9d0] sm:$0xff] }
 0x331   :  { %v1631_v3 = vpop.f32.mrf.mxu1  ;;  %v436_v57 = vld [vmem:[%s5465_s0 + $0xd30] sm:$0xff] }
 0x332   :  { %1229 = vmatmul.f32.gmra.mxu0 %v308_v18  ;;  %v2383_v8 = vmax.f32 %v2347_v38, 0.0  ;;  %v1632_v6 = vadd.f32 %v1631_v3, %v1183_v56 }
 0x333   :  { %2552 = vmatmul.msk.f32.gmra.mxu2 %vm486_vm0, %v319_v63  ;;  %2588 = vmatmul.msk.f32.gmra.mxu3 %vm486_vm0, %v427_v46  ;;  %v317_v46 = vld [vmem:[%s5465_s0 + $0x978] sm:$0xff] }
 0x334   :  { %2420 = vst.msk [vmem:[%s5467_s3 + $0x48] sm:$0xff] %vm2410_vm1, %v2383_v8  ;;  %v2081_v31 = vadd.f32 %v2080_v30, %v1632_v6  ;;  %1678 = vmatmul.f32.gmra.mxu1 %v309_v35  ;;  %v5783_v30 = vmax.f32 %v4109_v36, %v4115_v23  ;;  %v318_v35 = vld [vmem:[%s5465_s0 + $0x980] sm:$0xff] }
 0x336   :  { %v2089_v7 = vpop.f32.mrf.mxu2  ;;  %v2197_v19 = vpop.f32.mrf.mxu3  ;;  %v2312_v49 = vmax.f32 %v2081_v31, %v2189_v13 }
 0x337   :  { %v1185_v10 = vpop.f32.mrf.mxu0  ;;  %v2198_v13 = vadd.f32 %v2197_v19, %v4203_v29  ;;  %v331_v29 = vld [vmem:[%s5465_s0 + $0x9e8] sm:$0xff] }
 0x338   :  { %v1186_v20 = vadd.f32 %v4495_v52, %v1185_v10  ;;  %v2348_v51 = vmax.f32 %v5783_v30, %v2312_v49  ;;  %v439_v19 = vld [vmem:[%s5465_s0 + $0xd48] sm:$0xff]  ;;  %v321_v30 = vld [vmem:[%s5465_s0 + $0x998] sm:$0xff] }
 0x339   :  { %v1634_v21 = vpop.f32.mrf.mxu1 }
 0x33a   :  { %1232 = vmatmul.f32.gmra.mxu0 %v311_v54  ;;  %v2384_v12 = vmax.f32 %v2348_v51, 0.0  ;;  %v1635_v26 = vadd.f32 %v1634_v21, %v1186_v20  ;;  %v320_v54 = vld [vmem:[%s5465_s0 + $0x990] sm:$0xff] }
 0x33b   :  { %2553 = vmatmul.msk.f32.gmra.mxu2 %vm486_vm0, %v322_v15  ;;  %2589 = vmatmul.msk.f32.gmra.mxu3 %vm486_vm0, %v430_v11 }
 0x33c   :  { %2421 = vst.msk [vmem:[%s5467_s3 + $0x50] sm:$0xff] %vm2410_vm1, %v2384_v12  ;;  %v2084_v36 = vadd.f32 %v2083_v40, %v1635_v26  ;;  %1681 = vmatmul.f32.gmra.mxu1 %v312_v2  ;;  %v5784_v40 = vmax.f32 %v4137_v41, %v4143_v43 }
 0x33e   :  { %v2092_v23 = vpop.f32.mrf.mxu2  ;;  %v2200_v50 = vpop.f32.mrf.mxu3  ;;  %v2313_v14 = vmax.f32 %v2084_v36, %v2192_v47  ;;  %v323_v47 = vld [vmem:[%s5465_s0 + $0x9a8] sm:$0xff]  ;;  %v5175_v36 = vld [vmem:[%s5466_s2] ss:$0 sm:$0xff] }
 0x33f   :  { %v1188_v48 = vpop.f32.mrf.mxu0  ;;  %v2201_v21 = vadd.f32 %v2200_v50, %v4231_v60  ;;  %v442_v50 = vld [vmem:[%s5465_s0 + $0xd60] sm:$0xff] }
 0x340   :  { %v1189_v33 = vadd.f32 %v4495_v52, %v1188_v48  ;;  %v2349_v4 = vmax.f32 %v5784_v40, %v2313_v14  ;;  %v5787_v14 = vmax.f32 %v4221_v25, %v4227_v44 }
 0x341   :  { %v1637_v37 = vpop.f32.mrf.mxu1 }
 0x342   :  { %1235 = vmatmul.f32.gmra.mxu0 %v314_v53  ;;  %v2385_v39 = vmax.f32 %v2349_v4, 0.0  ;;  %v1638_v27 = vadd.f32 %v1637_v37, %v1189_v33  ;;  %v324_v33 = vld [vmem:[%s5465_s0 + $0x9b0] sm:$0xff] }
 0x343   :  { %2554 = vmatmul.msk.f32.gmra.mxu2 %vm486_vm0, %v325_v32  ;;  %2590 = vmatmul.msk.f32.gmra.mxu3 %vm486_vm0, %v433_v42 }
 0x344   :  { %2422 = vst.msk [vmem:[%s5467_s3 + $0x58] sm:$0xff] %vm2410_vm1, %v2385_v39  ;;  %v2087_v41 = vadd.f32 %v2086_v55, %v1638_v27  ;;  %1684 = vmatmul.f32.gmra.mxu1 %v315_v61  ;;  %v5785_v55 = vmax.f32 %v4165_v9, %v4171_v1  ;;  %v326_v39 = vld [vmem:[%s5465_s0 + $0x9c0] sm:$0xff] }
 0x346   :  { %v2095_v43 = vpop.f32.mrf.mxu2  ;;  %v2203_v18 = vpop.f32.mrf.mxu3  ;;  %v2314_v56 = vmax.f32 %v2087_v41, %v2195_v5  ;;  %v445_v5 = vld [vmem:[%s5465_s0 + $0xd78] sm:$0xff]  ;;  %v5788_v41 = vmax.f32 %v4249_v34, %v4255_v16 }
 0x347   :  { %v1191_v63 = vpop.f32.mrf.mxu0  ;;  %v2204_v40 = vadd.f32 %v2203_v18, %v4259_v24  ;;  %v337_v24 = vld [vmem:[%s5465_s0 + $0xa18] sm:$0xff] }
 0x348   :  { %v1192_v22 = vadd.f32 %v4495_v52, %v1191_v63  ;;  %v2350_v38 = vmax.f32 %v5785_v55, %v2314_v56  ;;  %v327_v56 = vld [vmem:[%s5465_s0 + $0x9c8] sm:$0xff] }
 0x349   :  { %v1640_v3 = vpop.f32.mrf.mxu1 }
 0x34a   :  { %1238 = vmatmul.f32.gmra.mxu0 %v317_v46  ;;  %v2386_v8 = vmax.f32 %v2350_v38, 0.0  ;;  %v1641_v6 = vadd.f32 %v1640_v3, %v1192_v22  ;;  %v329_v38 = vld [vmem:[%s5465_s0 + $0x9d8] sm:$0xff] }
 0x34b   :  { %2555 = vmatmul.msk.f32.gmra.mxu2 %vm486_vm0, %v328_v59  ;;  %2591 = vmatmul.msk.f32.gmra.mxu3 %vm486_vm0, %v436_v57 }
 0x34c   :  { %2423 = vst.msk [vmem:[%s5467_s3 + $0x60] sm:$0xff] %vm2410_vm1, %v2386_v8  ;;  %v2090_v9 = vadd.f32 %v2089_v7, %v1641_v6  ;;  %1687 = vmatmul.f32.gmra.mxu1 %v318_v35  ;;  %v5786_v7 = vmax.f32 %v4193_v17, %v4199_v28  ;;  %v5789_v35 = vmax.f32 %v4277_v45, %v4283_v62 }
 0x34e   :  { %v2098_v1 = vpop.f32.mrf.mxu2  ;;  %v2206_v31 = vpop.f32.mrf.mxu3  ;;  %v2315_v49 = vmax.f32 %v2090_v9, %v2198_v13  ;;  %v330_v13 = vld [vmem:[%s5465_s0 + $0x9e0] sm:$0xff] }
 0x34f   :  { %v1194_v10 = vpop.f32.mrf.mxu0  ;;  %v2207_v22 = vadd.f32 %v2206_v31, %v4287_v0  ;;  %v340_v0 = vld [vmem:[%s5465_s0 + $0xa30] sm:$0xff] }
 0x350   :  { %v1195_v20 = vadd.f32 %v4495_v52, %v1194_v10  ;;  %v2351_v15 = vmax.f32 %v5786_v7, %v2315_v49  ;;  %v5791_v7 = vld [vmem:[#allocation2_spill] sm:$0xff] }
 0x351   :  { %v1643_v11 = vpop.f32.mrf.mxu1 }
 0x352   :  { %1241 = vmatmul.f32.gmra.mxu0 %v320_v54  ;;  %v2387_v51 = vmax.f32 %v2351_v15, 0.0  ;;  %v1644_v52 = vadd.f32 %v1643_v11, %v1195_v20  ;;  %v332_v20 = vld [vmem:[%s5465_s0 + $0x9f0] sm:$0xff] }
 0x353   :  { %2556 = vmatmul.msk.f32.gmra.mxu2 %vm486_vm0, %v331_v29  ;;  %2592 = vmatmul.msk.f32.gmra.mxu3 %vm486_vm0, %v439_v19  ;;  %v5790_v19 = vld [vmem:[#allocation5_spill] sm:$0xff] }
 0x354   :  { %2424 = vst.msk [vmem:[%s5467_s3 + $0x68] sm:$0xff] %vm2410_vm1, %v2387_v51  ;;  %v2093_v17 = vadd.f32 %v2092_v23, %v1644_v52  ;;  %1690 = vmatmul.f32.gmra.mxu1 %v321_v30  ;;  %v334_v23 = vld [vmem:[%s5465_s0 + $0xa00] sm:$0xff]  ;;  %v5792_v15 = vmax.f32 %v5790_v19, %v5791_v7  ;;  %v333_v51 = vld [vmem:[%s5465_s0 + $0x9f8] sm:$0xff]  ;;  %v5806_v7 = vld [vmem:[#allocation16_spill] sm:$0xff] }
 0x356   :  { %v2101_v28 = vpop.f32.mrf.mxu2  ;;  %v2209_v2 = vpop.f32.mrf.mxu3  ;;  %v2316_v12 = vmax.f32 %v2093_v17, %v2201_v21  ;;  %v5793_v17 = vld [vmem:[#allocation9_spill] sm:$0xff] }
 0x357   :  { %v1197_v26 = vpop.f32.mrf.mxu0  ;;  %v2210_v31 = vadd.f32 %v2209_v2, %v4315_v58  ;;  %v343_v58 = vld [vmem:[%s5465_s0 + $0xa48] sm:$0xff] }
 0x358   :  { %v1198_v60 = vadd.f32 %v5175_v36, %v1197_v26  ;;  %v2352_v48 = vmax.f32 %v5787_v14, %v2316_v12  ;;  %v346_v14 = vld [vmem:[%s5465_s0 + $0xa60] sm:$0xff] }
 0x359   :  { %v1646_v53 = vpop.f32.mrf.mxu1 }
 0x35a   :  { %1244 = vmatmul.f32.gmra.mxu0 %v323_v47  ;;  %v2388_v32 = vmax.f32 %v2352_v48, 0.0  ;;  %v1647_v42 = vadd.f32 %v1646_v53, %v1198_v60  ;;  %v5794_v48 = vld [vmem:[#allocation6_spill] sm:$0xff]  ;;  %v5795_v53 = vld [vmem:[#allocation8_spill] sm:$0xff] }
 0x35b   :  { %2557 = vmatmul.msk.f32.gmra.mxu2 %vm486_vm0, %v334_v23  ;;  %2593 = vmatmul.msk.f32.gmra.mxu3 %vm486_vm0, %v442_v50  ;;  %v335_v23 = vld [vmem:[%s5465_s0 + $0xa08] sm:$0xff] }
 0x35c   :  { %2425 = vst.msk [vmem:[%s5467_s3 + $0x70] sm:$0xff] %vm2410_vm1, %v2388_v32  ;;  %v2096_v25 = vadd.f32 %v2095_v43, %v1647_v42  ;;  %1693 = vmatmul.f32.gmra.mxu1 %v324_v33  ;;  %v5796_v33 = vmax.f32 %v5794_v48, %v5795_v53 }
 0x35e   :  { %v2104_v44 = vpop.f32.mrf.mxu2  ;;  %v2212_v4 = vpop.f32.mrf.mxu3  ;;  %v2317_v37 = vmax.f32 %v2096_v25, %v2204_v40  ;;  %v336_v40 = vld [vmem:[%s5465_s0 + $0xa10] sm:$0xff] }
 0x35f   :  { %v1200_v61 = vpop.f32.mrf.mxu0 }
 0x360   :  { %v1201_v27 = vadd.f32 %v5175_v36, %v1200_v61  ;;  %v2353_v43 = vmax.f32 %v5788_v41, %v2317_v37 }
 0x361   :  { %v1649_v18 = vpop.f32.mrf.mxu1 }
 0x362   :  { %1247 = vmatmul.f32.gmra.mxu0 %v326_v39  ;;  %v2389_v63 = vmax.f32 %v2353_v43, 0.0  ;;  %v1650_v46 = vadd.f32 %v1649_v18, %v1201_v27  ;;  %v5798_v43 = vld [vmem:[#allocation3_spill] sm:$0xff]  ;;  %v5799_v18 = vld [vmem:[#allocation10_spill] sm:$0xff] }
 0x363   :  { %2558 = vmatmul.msk.f32.gmra.mxu2 %vm486_vm0, %v337_v24  ;;  %2594 = vmatmul.msk.f32.gmra.mxu3 %vm486_vm0, %v445_v5 }
 0x364   :  { %2426 = vst.msk [vmem:[%s5467_s3 + $0x78] sm:$0xff] %vm2410_vm1, %v2389_v63  ;;  %v2099_v34 = vadd.f32 %v2098_v1, %v1650_v46  ;;  %1696 = vmatmul.f32.gmra.mxu1 %v327_v56  ;;  %v5800_v56 = vmax.f32 %v5798_v43, %v5799_v18 }
 0x366   :  { %v2107_v16 = vpop.f32.mrf.mxu2  ;;  %v2215_v59 = vpop.f32.mrf.mxu3  ;;  %v2318_v57 = vmax.f32 %v2099_v34, %v2207_v22 }
 0x367   :  { %v1203_v55 = vpop.f32.mrf.mxu0 }
 0x368   :  { %v1204_v3 = vadd.f32 %v5175_v36, %v1203_v55  ;;  %v2354_v8 = vmax.f32 %v5789_v35, %v2318_v57 }
 0x369   :  { %v1652_v6 = vpop.f32.mrf.mxu1 }
 0x36a   :  { %1250 = vmatmul.f32.gmra.mxu0 %v329_v38  ;;  %v2390_v9 = vmax.f32 %v2354_v8, 0.0  ;;  %v1653_v1 = vadd.f32 %v1652_v6, %v1204_v3  ;;  %v5802_v8 = vld [vmem:[#allocation13_spill] sm:$0xff]  ;;  %v5803_v6 = vld [vmem:[#allocation4_spill] sm:$0xff] }
 0x36b   :  { %2559 = vmatmul.msk.f32.gmra.mxu2 %vm486_vm0, %v340_v0 }
 0x36c   :  { %2427 = vst.msk [vmem:[%s5467_s3 + $0x80] sm:$0xff] %vm2410_vm1, %v2390_v9  ;;  %v2102_v49 = vadd.f32 %v2101_v28, %v1653_v1  ;;  %1699 = vmatmul.f32.gmra.mxu1 %v330_v13  ;;  %v2213_v28 = vadd.f32 %v2212_v4, %v5793_v17  ;;  %v5797_v4 = vld [vmem:[#allocation12_spill] sm:$0xff]  ;;  %v5804_v13 = vmax.f32 %v5802_v8, %v5803_v6  ;;  %v5809_v17 = vld [vmem:[#allocation21_spill] sm:$0xff] }
 0x36d   :  { %v2216_v37 = vadd.f32 %v2215_v59, %v5797_v4  ;;  %v5801_v59 = vld [vmem:[#allocation14_spill] sm:$0xff] }
 0x36e   :  { %v2110_v45 = vpop.f32.mrf.mxu2  ;;  %v2218_v62 = vpop.f32.mrf.mxu3  ;;  %v2319_v10 = vmax.f32 %v2102_v49, %v2210_v31 }
 0x36f   :  { %v1206_v54 = vpop.f32.mrf.mxu0  ;;  %v2219_v57 = vadd.f32 %v2218_v62, %v5801_v59  ;;  %v5805_v62 = vld [vmem:[#allocation7_spill] sm:$0xff] }
 0x370   :  { %v1207_v29 = vadd.f32 %v5175_v36, %v1206_v54  ;;  %v2355_v11 = vmax.f32 %v5792_v15, %v2319_v10  ;;  %v5807_v15 = vld [vmem:[#allocation17_spill] sm:$0xff] }
 0x371   :  { %v1655_v30 = vpop.f32.mrf.mxu1 }
 0x372   :  { %1253 = vmatmul.f32.gmra.mxu0 %v332_v20  ;;  %v2391_v52 = vmax.f32 %v2355_v11, 0.0  ;;  %v1656_v21 = vadd.f32 %v1655_v30, %v1207_v29  ;;  %v5808_v11 = vmax.f32 %v5806_v7, %v5807_v15 }
 0x373   :  { %2560 = vmatmul.msk.f32.gmra.mxu2 %vm486_vm0, %v343_v58 }
 0x374   :  { %2428 = vst.msk [vmem:[%s5467_s3 + $0x88] sm:$0xff] %vm2410_vm1, %v2391_v52  ;;  %v2105_v2 = vadd.f32 %v2104_v44, %v1656_v21  ;;  %1702 = vmatmul.f32.gmra.mxu1 %v333_v51 }
 0x376   :  { %v2113_v12 = vpop.f32.mrf.mxu2  ;;  %v2221_v26 = vpop.f32.mrf.mxu3  ;;  %v2320_v47 = vmax.f32 %v2105_v2, %v2213_v28 }
 0x377   :  { %v1209_v60 = vpop.f32.mrf.mxu0  ;;  %v2222_v10 = vadd.f32 %v2221_v26, %v5805_v62 }
 0x378   :  { %v1210_v50 = vadd.f32 %v5175_v36, %v1209_v60  ;;  %v2356_v32 = vmax.f32 %v5796_v33, %v2320_v47 }
 0x379   :  { %v1658_v42 = vpop.f32.mrf.mxu1 }
 0x37a   :  { %1256 = vmatmul.f32.gmra.mxu0 %v335_v23  ;;  %v2392_v25 = vmax.f32 %v2356_v32, 0.0  ;;  %v1659_v44 = vadd.f32 %v1658_v42, %v1210_v50  ;;  %v5810_v50 = vld [vmem:[#allocation18_spill] sm:$0xff] }
 0x37b   :  { %2561 = vmatmul.msk.f32.gmra.mxu2 %vm486_vm0, %v346_v14  ;;  %v5811_v14 = vld [vmem:[#allocation20_spill] sm:$0xff] }
 0x37c   :  { %2429 = vst.msk [vmem:[%s5467_s3 + $0x90] sm:$0xff] %vm2410_vm1, %v2392_v25  ;;  %v2108_v61 = vadd.f32 %v2107_v16, %v1659_v44  ;;  %1705 = vmatmul.f32.gmra.mxu1 %v336_v40  ;;  %v5812_v48 = vmax.f32 %v5810_v50, %v5811_v14  ;;  %v5813_v40 = vld [vmem:[#allocation24_spill] sm:$0xff] }
 0x37e   :  { %v2116_v39 = vpop.f32.mrf.mxu2  ;;  %v2224_v27 = vpop.f32.mrf.mxu3  ;;  %v2321_v24 = vmax.f32 %v2108_v61, %v2216_v37 }
 0x37f   :  { %v1212_v5 = vpop.f32.mrf.mxu0  ;;  %v2225_v28 = vadd.f32 %v2224_v27, %v5809_v17 }
 0x380   :  { %v1213_v41 = vadd.f32 %v5175_v36, %v1212_v5  ;;  %v2357_v63 = vmax.f32 %v5800_v56, %v2321_v24  ;;  %v5814_v24 = vld [vmem:[#allocation11_spill] sm:$0xff]  ;;  %v5815_v5 = vld [vmem:[#allocation22_spill] sm:$0xff] }
 0x381   :  { %v1661_v46 = vpop.f32.mrf.mxu1 }
 0x382   :  { %v2393_v22 = vmax.f32 %v2357_v63, 0.0  ;;  %v1662_v34 = vadd.f32 %v1661_v46, %v1213_v41  ;;  %v5816_v41 = vmax.f32 %v5814_v24, %v5815_v5  ;;  %v5817_v46 = vld [vmem:[#allocation26_spill] sm:$0xff] }
 0x384   :  { %2430 = vst.msk [vmem:[%s5467_s3 + $0x98] sm:$0xff] %vm2410_vm1, %v2393_v22  ;;  %v2111_v16 = vadd.f32 %v2110_v45, %v1662_v34 }
 0x386   :  { %v2119_v55 = vpop.f32.mrf.mxu2  ;;  %v2227_v38 = vpop.f32.mrf.mxu3  ;;  %v2322_v3 = vmax.f32 %v2111_v16, %v2219_v57 }
 0x387   :  { %v1215_v0 = vpop.f32.mrf.mxu0  ;;  %v2228_v25 = vadd.f32 %v2227_v38, %v5813_v40  ;;  %v5818_v38 = vld [vmem:[#allocation25_spill] sm:$0xff] }
 0x388   :  { %v1216_v35 = vadd.f32 %v5175_v36, %v1215_v0  ;;  %v2358_v9 = vmax.f32 %v5804_v13, %v2322_v3  ;;  %v5819_v3 = vld [vmem:[#allocation15_spill] sm:$0xff] }
 0x389   :  { %v1664_v1 = vpop.f32.mrf.mxu1  ;;  %v5820_v0 = vmax.f32 %v5818_v38, %v5819_v3 }
 0x38a   :  { %v2394_v31 = vmax.f32 %v2358_v9, 0.0  ;;  %v1665_v49 = vadd.f32 %v1664_v1, %v1216_v35  ;;  %v5821_v1 = vld [vmem:[#allocation19_spill] sm:$0xff] }
 0x38c   :  { %2431 = vst.msk [vmem:[%s5467_s3 + $0xa0] sm:$0xff] %vm2410_vm1, %v2394_v31  ;;  %v2114_v45 = vadd.f32 %v2113_v12, %v1665_v49 }
 0x38e   :  { %v2122_v54 = vpop.f32.mrf.mxu2  ;;  %v2230_v20 = vpop.f32.mrf.mxu3  ;;  %v2323_v29 = vmax.f32 %v2114_v45, %v2222_v10 }
 0x38f   :  { %v1218_v58 = vpop.f32.mrf.mxu0  ;;  %v2231_v22 = vadd.f32 %v2230_v20, %v5817_v46  ;;  %v5822_v20 = vld [vmem:[#allocation28_spill] sm:$0xff] }
 0x390   :  { %v1219_v19 = vadd.f32 %v5175_v36, %v1218_v58  ;;  %v2359_v30 = vmax.f32 %v5808_v11, %v2323_v29  ;;  %v5823_v29 = vld [vmem:[#allocation29_spill] sm:$0xff] }
 0x391   :  { %v1667_v51 = vpop.f32.mrf.mxu1  ;;  %v5824_v58 = vmax.f32 %v5822_v20, %v5823_v29 }
 0x392   :  { %v2395_v52 = vmax.f32 %v2359_v30, 0.0  ;;  %v1668_v21 = vadd.f32 %v1667_v51, %v1219_v19  ;;  %v5825_v51 = vld [vmem:[#allocation33_spill] sm:$0xff] }
 0x394   :  { %2432 = vst.msk [vmem:[%s5467_s3 + $0xa8] sm:$0xff] %vm2410_vm1, %v2395_v52  ;;  %v2117_v2 = vadd.f32 %v2116_v39, %v1668_v21 }
 0x396   :  { %v2125_v12 = vpop.f32.mrf.mxu2  ;;  %v2233_v26 = vpop.f32.mrf.mxu3  ;;  %v2324_v47 = vmax.f32 %v2117_v2, %v2225_v28 }
 0x397   :  { %v1221_v60 = vpop.f32.mrf.mxu0  ;;  %v2234_v31 = vadd.f32 %v2233_v26, %v5821_v1  ;;  %v5826_v26 = vld [vmem:[#allocation30_spill] sm:$0xff] }
 0x398   :  { %v1222_v23 = vadd.f32 %v5175_v36, %v1221_v60  ;;  %v2360_v53 = vmax.f32 %v5812_v48, %v2324_v47  ;;  %v5827_v47 = vld [vmem:[#allocation32_spill] sm:$0xff] }
 0x399   :  { %v1670_v33 = vpop.f32.mrf.mxu1  ;;  %v5828_v60 = vmax.f32 %v5826_v26, %v5827_v47 }
 0x39a   :  { %v2396_v32 = vmax.f32 %v2360_v53, 0.0  ;;  %v1671_v42 = vadd.f32 %v1670_v33, %v1222_v23  ;;  %v5829_v53 = vld [vmem:[#allocation36_spill] sm:$0xff] }
 0x39c   :  { %2433 = vst.msk [vmem:[%s5467_s3 + $0xb0] sm:$0xff] %vm2410_vm1, %v2396_v32  ;;  %v2120_v44 = vadd.f32 %v2119_v55, %v1671_v42 }
 0x39e   :  { %v2128_v4 = vpop.f32.mrf.mxu2  ;;  %v2325_v37 = vmax.f32 %v2120_v44, %v2228_v25  ;;  %v2236_v39 = vpop.f32.mrf.mxu3 }
 0x39f   :  { %v1224_v61 = vpop.f32.mrf.mxu0  ;;  %v2237_v52 = vadd.f32 %v2236_v39, %v5825_v51 }
 0x3a0   :  { %v1225_v27 = vadd.f32 %v5175_v36, %v1224_v61  ;;  %v2361_v43 = vmax.f32 %v5816_v41, %v2325_v37  ;;  %v5830_v37 = vld [vmem:[#allocation23_spill] sm:$0xff]  ;;  %v5831_v61 = vld [vmem:[#allocation34_spill] sm:$0xff] }
 0x3a1   :  { %v1673_v18 = vpop.f32.mrf.mxu1  ;;  %v5832_v39 = vmax.f32 %v5830_v37, %v5831_v61 }
 0x3a2   :  { %v2397_v56 = vmax.f32 %v2361_v43, 0.0  ;;  %v1674_v63 = vadd.f32 %v1673_v18, %v1225_v27  ;;  %v5833_v43 = vld [vmem:[#allocation38_spill] sm:$0xff] }
 0x3a4   :  { %2434 = vst.msk [vmem:[%s5467_s3 + $0xb8] sm:$0xff] %vm2410_vm1, %v2397_v56  ;;  %v2123_v34 = vadd.f32 %v2122_v54, %v1674_v63 }
 0x3a6   :  { %v2131_v59 = vpop.f32.mrf.mxu2  ;;  %v2326_v57 = vmax.f32 %v2123_v34, %v2231_v22  ;;  %v2239_v8 = vpop.f32.mrf.mxu3 }
 0x3a7   :  { %v1227_v16 = vpop.f32.mrf.mxu0  ;;  %v2240_v33 = vadd.f32 %v2239_v8, %v5829_v53  ;;  %v5837_v8 = vld [vmem:[#allocation31_spill] sm:$0xff] }
 0x3a8   :  { %v1228_v55 = vadd.f32 %v5175_v36, %v1227_v16  ;;  %v2362_v35 = vmax.f32 %v5820_v0, %v2326_v57  ;;  %v5834_v57 = vld [vmem:[#allocation37_spill] sm:$0xff]  ;;  %v5835_v16 = vld [vmem:[#allocation27_spill] sm:$0xff] }
 0x3a9   :  { %v1676_v6 = vpop.f32.mrf.mxu1 }
 0x3aa   :  { %v2398_v13 = vmax.f32 %v2362_v35, 0.0  ;;  %v1677_v9 = vadd.f32 %v1676_v6, %v1228_v55  ;;  %v5836_v55 = vmax.f32 %v5834_v57, %v5835_v16 }
 0x3ac   :  { %2435 = vst.msk [vmem:[%s5467_s3 + $0xc0] sm:$0xff] %vm2410_vm1, %v2398_v13  ;;  %v2126_v49 = vadd.f32 %v2125_v12, %v1677_v9 }
 0x3ae   :  { %v2134_v62 = vpop.f32.mrf.mxu2  ;;  %v2327_v10 = vmax.f32 %v2126_v49, %v2234_v31  ;;  %v2242_v30 = vpop.f32.mrf.mxu3 }
 0x3af   :  { %v1230_v45 = vpop.f32.mrf.mxu0  ;;  %v2243_v18 = vadd.f32 %v2242_v30, %v5833_v43 }
 0x3b0   :  { %v1231_v54 = vadd.f32 %v5175_v36, %v1230_v45  ;;  %v2363_v19 = vmax.f32 %v5824_v58, %v2327_v10  ;;  %v5839_v10 = vld [vmem:[#allocation41_spill] sm:$0xff] }
 0x3b1   :  { %v1679_v7 = vpop.f32.mrf.mxu1 }
 0x3b2   :  { %v2399_v15 = vmax.f32 %v2363_v19, 0.0  ;;  %v1680_v11 = vadd.f32 %v1679_v7, %v1231_v54  ;;  %v5841_v7 = vld [vmem:[#allocation45_spill] sm:$0xff] }
 0x3b4   :  { %2436 = vst.msk [vmem:[%s5467_s3 + $0xc8] sm:$0xff] %vm2410_vm1, %v2399_v15  ;;  %v2129_v21 = vadd.f32 %v2128_v4, %v1680_v11 }
 0x3b6   :  { %v2137_v17 = vpop.f32.mrf.mxu2  ;;  %v2328_v28 = vmax.f32 %v2129_v21, %v2237_v52  ;;  %v2245_v42 = vpop.f32.mrf.mxu3 }
 0x3b7   :  { %v1233_v2 = vpop.f32.mrf.mxu0  ;;  %v2246_v6 = vadd.f32 %v2245_v42, %v5837_v8  ;;  %v5855_v8 = vld [vmem:[#allocation54_spill] sm:$0xff] }
 0x3b8   :  { %v1234_v12 = vadd.f32 %v5175_v36, %v1233_v2  ;;  %v2364_v23 = vmax.f32 %v5828_v60, %v2328_v28  ;;  %v5843_v28 = vld [vmem:[#allocation44_spill] sm:$0xff] }
 0x3b9   :  { %v1682_v50 = vpop.f32.mrf.mxu1 }
 0x3ba   :  { %v2400_v14 = vmax.f32 %v2364_v23, 0.0  ;;  %v1683_v48 = vadd.f32 %v1682_v50, %v1234_v12  ;;  %v5845_v50 = vld [vmem:[#allocation48_spill] sm:$0xff] }
 0x3bc   :  { %2437 = vst.msk [vmem:[%s5467_s3 + $0xd0] sm:$0xff] %vm2410_vm1, %v2400_v14  ;;  %v2132_v32 = vadd.f32 %v2131_v59, %v1683_v48 }
 0x3be   :  { %v2140_v40 = vpop.f32.mrf.mxu2  ;;  %v2329_v25 = vmax.f32 %v2132_v32, %v2240_v33  ;;  %v2248_v34 = vpop.f32.mrf.mxu3 }
 0x3bf   :  { %v1236_v44 = vpop.f32.mrf.mxu0  ;;  %v2249_v15 = vadd.f32 %v2248_v34, %v5841_v7  ;;  %v5851_v34 = vld [vmem:[#allocation49_spill] sm:$0xff] }
 0x3c0   :  { %v1237_v4 = vadd.f32 %v5175_v36, %v1236_v44  ;;  %v2365_v27 = vmax.f32 %v5832_v39, %v2329_v25  ;;  %v5847_v25 = vld [vmem:[#allocation46_spill] sm:$0xff]  ;;  %v5860_v7 = vld [vmem:[#allocation53_spill] sm:$0xff] }
 0x3c1   :  { %v1685_v24 = vpop.f32.mrf.mxu1 }
 0x3c2   :  { %v2401_v5 = vmax.f32 %v2365_v27, 0.0  ;;  %v1686_v41 = vadd.f32 %v1685_v24, %v1237_v4  ;;  %v5849_v27 = vld [vmem:[#allocation50_spill] sm:$0xff] }
 0x3c4   :  { %2438 = vst.msk [vmem:[%s5467_s3 + $0xd8] sm:$0xff] %vm2410_vm1, %v2401_v5  ;;  %v2135_v56 = vadd.f32 %v2134_v62, %v1686_v41  ;;  %v5838_v62 = vld [vmem:[#allocation40_spill] sm:$0xff] }
 0x3c5   :  { %v5840_v45 = vmax.f32 %v5838_v62, %v5839_v10 }
 0x3c6   :  { %v2143_v63 = vpop.f32.mrf.mxu2  ;;  %v2330_v46 = vmax.f32 %v2135_v56, %v2243_v18  ;;  %v2251_v20 = vpop.f32.mrf.mxu3  ;;  %v5850_v18 = vld [vmem:[#allocation64_spill] sm:$0xff] }
 0x3c7   :  { %v1239_v22 = vpop.f32.mrf.mxu0  ;;  %v2252_v14 = vadd.f32 %v2251_v20, %v5845_v50  ;;  %v1153_v56 = vadd.f32 %v5175_v36, %v5850_v18 }
 0x3c8   :  { %v1240_v59 = vadd.f32 %v5175_v36, %v1239_v22  ;;  %v2366_v38 = vmax.f32 %v5836_v55, %v2330_v46 }
 0x3c9   :  { %v1688_v3 = vpop.f32.mrf.mxu1 }
 0x3ca   :  { %v2402_v0 = vmax.f32 %v2366_v38, 0.0  ;;  %v1689_v35 = vadd.f32 %v1688_v3, %v1240_v59  ;;  %v5852_v59 = vld [vmem:[#allocation39_spill] sm:$0xff]  ;;  %v5854_v38 = vld [vmem:[#allocation65_spill] sm:$0xff] }
 0x3cb   :  { %v5853_v57 = vmax.f32 %v5851_v34, %v5852_v59  ;;  %v1602_v3 = vadd.f32 %v5854_v38, %v1153_v56  ;;  %v5873_v56 = vld [vmem:[#allocation69_spill] sm:$0xff] }
 0x3cc   :  { %2439 = vst.msk [vmem:[%s5467_s3 + $0xe0] sm:$0xff] %vm2410_vm1, %v2402_v0  ;;  %v2138_v13 = vadd.f32 %v2137_v17, %v1689_v35  ;;  %v5842_v17 = vld [vmem:[#allocation42_spill] sm:$0xff]  ;;  %v5875_v34 = vld [vmem:[#allocation101_spill] sm:$0xff] }
 0x3cd   :  { %v5844_v2 = vmax.f32 %v5842_v17, %v5843_v28  ;;  %v5863_v28 = vld [vmem:[#allocation97_spill] sm:$0xff] }
 0x3ce   :  { %v2146_v9 = vpop.f32.mrf.mxu2  ;;  %v2331_v1 = vmax.f32 %v2138_v13, %v2246_v6  ;;  %v2254_v23 = vpop.f32.mrf.mxu3 }
 0x3cf   :  { %v1242_v31 = vpop.f32.mrf.mxu0  ;;  %v2255_v24 = vadd.f32 %v2254_v23, %v5849_v27  ;;  %v5871_v27 = vld [vmem:[#allocation57_spill] sm:$0xff] }
 0x3d0   :  { %v1243_v49 = vadd.f32 %v5175_v36, %v1242_v31  ;;  %v2367_v54 = vmax.f32 %v5840_v45, %v2331_v1  ;;  %v5856_v1 = vld [vmem:[#allocation43_spill] sm:$0xff] }
 0x3d1   :  { %v1691_v29 = vpop.f32.mrf.mxu1  ;;  %v2051_v31 = vadd.f32 %v5856_v1, %v1602_v3  ;;  %v5858_v45 = vld [vmem:[#allocation99_spill] sm:$0xff]  ;;  %v5880_v1 = vld [vmem:[#allocation60_spill] sm:$0xff] }
 0x3d2   :  { %v2403_v58 = vmax.f32 %v2367_v54, 0.0  ;;  %v1692_v19 = vadd.f32 %v1691_v29, %v1243_v49  ;;  %v5857_v49 = vld [vmem:[#allocation55_spill] sm:$0xff] }
 0x3d3   :  { %v1156_v62 = vadd.f32 %v5175_v36, %v5857_v49 }
 0x3d4   :  { %2440 = vst.msk [vmem:[%s5467_s3 + $0xe8] sm:$0xff] %vm2410_vm1, %v2403_v58  ;;  %v2141_v11 = vadd.f32 %v2140_v40, %v1692_v19  ;;  %v5846_v40 = vld [vmem:[#allocation35_spill] sm:$0xff]  ;;  %v5859_v19 = vld [vmem:[#allocation52_spill] sm:$0xff] }
 0x3d5   :  { %v5848_v44 = vmax.f32 %v5846_v40, %v5847_v25 }
 0x3d6   :  { %v2149_v30 = vpop.f32.mrf.mxu2  ;;  %v2332_v51 = vmax.f32 %v2141_v11, %v2249_v15  ;;  %v2257_v41 = vpop.f32.mrf.mxu3  ;;  %v5861_v15 = vmax.f32 %v5859_v19, %v5860_v7 }
 0x3d7   :  { %v1245_v52 = vpop.f32.mrf.mxu0  ;;  %v2258_v6 = vadd.f32 %v2257_v41, %v5855_v8 }
 0x3d8   :  { %v1246_v21 = vadd.f32 %v5175_v36, %v1245_v52  ;;  %v2368_v12 = vmax.f32 %v5844_v2, %v2332_v51  ;;  %v5864_v2 = vld [vmem:[#allocation98_spill] sm:$0xff] }
 0x3d9   :  { %v1694_v26 = vpop.f32.mrf.mxu1 }
 0x3da   :  { %v2404_v47 = vmax.f32 %v2368_v12, 0.0  ;;  %v1695_v60 = vadd.f32 %v1694_v26, %v1246_v21  ;;  %v5865_v12 = vmax.f32 %v5863_v28, %v5864_v2 }
 0x3dc   :  { %2441 = vst.msk [vmem:[%s5467_s3 + $0xf0] sm:$0xff] %vm2410_vm1, %v2404_v47  ;;  %v2144_v48 = vadd.f32 %v2143_v63, %v1695_v60  ;;  %v5866_v60 = vld [vmem:[#allocation58_spill] sm:$0xff] }
 0x3de   :  { %v2152_v53 = vpop.f32.mrf.mxu2  ;;  %v2333_v33 = vmax.f32 %v2144_v48, %v2252_v14  ;;  %v2260_v29 = vpop.f32.mrf.mxu3 }
 0x3df   :  { %v1248_v32 = vpop.f32.mrf.mxu0  ;;  %v2261_v23 = vadd.f32 %v2260_v29, %v5866_v60 }
 0x3e0   :  { %v1249_v42 = vadd.f32 %v5175_v36, %v1248_v32  ;;  %v2369_v4 = vmax.f32 %v5848_v44, %v2333_v33  ;;  %v5867_v33 = vld [vmem:[#allocation47_spill] sm:$0xff]  ;;  %v5869_v44 = vld [vmem:[#allocation102_spill] sm:$0xff] }
 0x3e1   :  { %v1697_v37 = vpop.f32.mrf.mxu1 }
 0x3e2   :  { %v2405_v61 = vmax.f32 %v2369_v4, 0.0  ;;  %v1698_v39 = vadd.f32 %v1697_v37, %v1249_v42  ;;  %v5868_v42 = vld [vmem:[#allocation68_spill] sm:$0xff] }
 0x3e3   :  { %v1159_v40 = vadd.f32 %v5175_v36, %v5868_v42 }
 0x3e4   :  { %2442 = vst.msk [vmem:[%s5467_s3 + $0xf8] sm:$0xff] %vm2410_vm1, %v2405_v61  ;;  %v2147_v5 = vadd.f32 %v2146_v9, %v1698_v39  ;;  %v5870_v39 = vld [vmem:[#allocation56_spill] sm:$0xff] }
 0x3e6   :  { %v2155_v43 = vpop.f32.mrf.mxu2  ;;  %v2334_v63 = vmax.f32 %v2147_v5, %v2255_v24  ;;  %v2263_v41 = vpop.f32.mrf.mxu3 }
 0x3e7   :  { %v1251_v46 = vpop.f32.mrf.mxu0 }
 0x3e8   :  { %v1252_v22 = vadd.f32 %v5175_v36, %v1251_v46  ;;  %v2370_v16 = vmax.f32 %v5853_v57, %v2334_v63  ;;  %v1608_v63 = vadd.f32 %v5873_v56, %v1159_v40 }
 0x3e9   :  { %v1700_v55 = vpop.f32.mrf.mxu1 }
 0x3ea   :  { %v2406_v0 = vmax.f32 %v2370_v16, 0.0  ;;  %v1701_v35 = vadd.f32 %v1700_v55, %v1252_v22  ;;  %v5874_v22 = vld [vmem:[#allocation100_spill] sm:$0xff]  ;;  %v5877_v55 = vld [vmem:[#allocation62_spill] sm:$0xff] }
 0x3eb   :  { %v5876_v59 = vmax.f32 %v5874_v22, %v5875_v34  ;;  %v2264_v38 = vadd.f32 %v2263_v41, %v5877_v55 }
 0x3ec   :  { %2443 = vst.msk [vmem:[%s5467_s3 + $0x100] sm:$0xff] %vm2410_vm1, %v2406_v0  ;;  %v2150_v13 = vadd.f32 %v2149_v30, %v1701_v35  ;;  %v5862_v30 = vld [vmem:[#allocation66_spill] sm:$0xff]  ;;  %v5878_v35 = vld [vmem:[#allocation51_spill] sm:$0xff] }
 0x3ed   :  { %v1605_v21 = vadd.f32 %v5862_v30, %v1156_v62  ;;  %v2057_v8 = vadd.f32 %v5878_v35, %v1608_v63 }
 0x3ee   :  { %v2158_v9 = vpop.f32.mrf.mxu2  ;;  %v2335_v10 = vmax.f32 %v2150_v13, %v2258_v6  ;;  %v5879_v13 = vld [vmem:[#allocation105_spill] sm:$0xff] }
 0x3ef   :  { %v2159_v54 = vadd.f32 %v2158_v9, %v5858_v45  ;;  %v1254_v20 = vpop.f32.mrf.mxu0  ;;  %v2054_v32 = vadd.f32 %v5867_v33, %v1605_v21 }
 0x3f0   :  { %v1255_v58 = vadd.f32 %v5175_v36, %v1254_v20  ;;  %v2371_v11 = vmax.f32 %v5861_v15, %v2335_v10  ;;  %v5884_v20 = vld [vmem:[#allocation104_spill] sm:$0xff] }
 0x3f1   :  { %v2302_v51 = vmax.f32 %v2051_v31, %v2159_v54  ;;  %v1703_v52 = vpop.f32.mrf.mxu1  ;;  %v5881_v31 = vld [vmem:[#allocation61_spill] sm:$0xff]  ;;  %v5883_v54 = vld [vmem:[#allocation103_spill] sm:$0xff] }
 0x3f2   :  { %v2407_v17 = vmax.f32 %v2371_v11, 0.0  ;;  %v1704_v47 = vadd.f32 %v1703_v52, %v1255_v58  ;;  %v5882_v49 = vmax.f32 %v5880_v1, %v5881_v31 }
 0x3f3   :  { %v2338_v26 = vmax.f32 %v5865_v12, %v2302_v51 }
 0x3f4   :  { %2444 = vst.msk [vmem:[%s5467_s3 + $0x108] sm:$0xff] %vm2410_vm1, %v2407_v17  ;;  %v2153_v14 = vadd.f32 %v2152_v53, %v1704_v47  ;;  %v5872_v53 = vmax.f32 %v5870_v39, %v5871_v27 }
 0x3f5   :  { %v2374_v50 = vmax.f32 %v2338_v26, 0.0 }
 0x3f6   :  { %v2161_v48 = vpop.f32.mrf.mxu2  ;;  %v2336_v25 = vmax.f32 %v2153_v14, %v2261_v23 }
 0x3f7   :  { %2411 = vst.msk [vmem:[%s5467_s3] sm:$0xff] %vm2410_vm1, %v2374_v50  ;;  %v2162_v4 = vadd.f32 %v2161_v48, %v5869_v44  ;;  %v1257_v37 = vpop.f32.mrf.mxu0 }
 0x3f8   :  { %v1258_v61 = vadd.f32 %v5175_v36, %v1257_v37  ;;  %v2372_v24 = vmax.f32 %v5872_v53, %v2336_v25 }
 0x3f9   :  { %v2303_v5 = vmax.f32 %v2054_v32, %v2162_v4  ;;  %v1706_v18 = vpop.f32.mrf.mxu1 }
 0x3fa   :  { %v2408_v46 = vmax.f32 %v2372_v24, 0.0  ;;  %v1707_v16 = vadd.f32 %v1706_v18, %v1258_v61 }
 0x3fb   :  { %v2339_v57 = vmax.f32 %v5876_v59, %v2303_v5 }
 0x3fc   :  { %2445 = vst.msk [vmem:[%s5467_s3 + $0x110] sm:$0xff] %vm2410_vm1, %v2408_v46  ;;  %v2156_v3 = vadd.f32 %v2155_v43, %v1707_v16  ;;  %v5885_v43 = vmax.f32 %v5883_v54, %v5884_v20 }
 0x3fd   :  { %v2375_v36 = vmax.f32 %v2339_v57, 0.0 }
 0x3fe   :  { %v2164_v0 = vpop.f32.mrf.mxu2  ;;  %v2337_v6 = vmax.f32 %v2156_v3, %v2264_v38 }
 0x3ff   :  { %2412 = vst.msk [vmem:[%s5467_s3 + $0x8] sm:$0xff] %vm2410_vm1, %v2375_v36  ;;  %v2165_v9 = vadd.f32 %v2164_v0, %v5879_v13 }
 0x400   :  { %v2373_v62 = vmax.f32 %v5882_v49, %v2337_v6 }
 0x401   :  { %v2304_v10 = vmax.f32 %v2057_v8, %v2165_v9 }
 0x402   :  { %v2409_v45 = vmax.f32 %v2373_v62, 0.0 }
 0x403   :  { %v2340_v29 = vmax.f32 %v5885_v43, %v2304_v10 }
 0x404   :  { %2446 = vst.msk [vmem:[%s5467_s3 + $0x118] sm:$0xff] %vm2410_vm1, %v2409_v45 }
 0x405   :  { %v2376_v58 = vmax.f32 %v2340_v29, 0.0 }
 0x407   :  { %2413 = vst.msk [vmem:[%s5467_s3 + $0x10] sm:$0xff] %vm2410_vm1, %v2376_v58 }

</bundles_post_ra>
